<compile_context>
chip_gen: v7x
topology: tpu7x:2x2x1
jax: 0.10.0
libtpu: 0.0.40
codegen_flags: <defaults>
</compile_context>

<pallas_src>
import functools
import math

import jax
import jax.numpy as jnp
import numpy as np
from jax.experimental import pallas as pl
from jax.experimental.pallas import tpu as pltpu


# --------------------------------------------------------------------------- #
# Fused kernel: one batch element per grid step, channels-last / token-major.
# --------------------------------------------------------------------------- #
def _sdta_fused_kernel(xp_ref, wc_ref, bc_ref,
                       wqkv_ref, bqkv_ref, trow_ref, hbias_ref,
                       wproj_ref, bproj_ref,
                       w1_ref, b1_ref, w2_ref, b2_ref,
                       o_ref):
    xp = xp_ref[0]                         # (H+2, W+2, C) zero-padded original input
    Hp, Wp, C = xp.shape
    H, W = Hp - 2, Wp - 2
    N = H * W
    cd = wqkv_ref.dtype                    # matmul compute dtype (bf16 by default)

    x = xp[1:1 + H, 1:1 + W, :]            # unpadded original input (final residual)
    xt0 = x.reshape(N, C)

    # ---- depthwise 3x3 conv (T == 1), identity-extended, norm_xca BN pre-folded ----
    w = wc_ref[...]                        # (3, 3, C): conv_w * s1 on conv chans, s1 center-tap on rest
    acc = None
    for kh in range(3):
        for kw in range(3):
            tap = xp[kh:kh + H, kw:kw + W, :] * w[kh, kw]
            acc = tap if acc is None else acc + tap
    xbn = acc.reshape(N, C) + bc_ref[0]    # (N, C) == BN(norm_xca)(conv-mixed x) tokens

    # ---- XCA: all heads at once as a block-diag-masked (C, C) attention -------------
    qkv = jnp.dot(xbn.astype(cd), wqkv_ref[...],
                  preferred_element_type=jnp.float32) + bqkv_ref[0]   # (N, 3C)
    q = qkv[:, :C]
    k = qkv[:, C:2 * C]
    v = qkv[:, 2 * C:]
    # F.normalize(dim=-1) in torch == per-channel L2 norm over tokens here (eps=1e-12);
    # per-head temperature is folded into the normalized q columns (trow).
    qn = q * (trow_ref[0] *
              jax.lax.rsqrt(jnp.maximum(jnp.sum(q * q, axis=0, keepdims=True), 1e-24)))
    kn = k * jax.lax.rsqrt(jnp.maximum(jnp.sum(k * k, axis=0, keepdims=True), 1e-24))
    # Gram over tokens; the per-head d x d attentions are its diagonal blocks.
    gram = jnp.dot(jnp.transpose(qn).astype(cd), kn.astype(cd),
                   preferred_element_type=jnp.float32)                 # (C, C)
    logits = gram + hbias_ref[...]         # -1e30 additive mask off the head blocks
    logits = logits - jnp.max(logits, axis=-1, keepdims=True)
    pexp = jnp.exp(logits)
    attn = pexp * pl.reciprocal(jnp.sum(pexp, axis=-1, keepdims=True), approx=True)
    # xo[n, c] = sum_c' attn[c, c'] * v[n, c']   (attn is zero off-block)
    xo = jnp.dot(v.astype(cd), jnp.transpose(attn).astype(cd),
                 preferred_element_type=jnp.float32)                   # (N, C)
    # proj with gamma_xca folded into its weights/bias; layer-scale residual onto xbn.
    x2 = xbn + jnp.dot(xo.astype(cd), wproj_ref[...],
                       preferred_element_type=jnp.float32) + bproj_ref[0]

    # ---- pwconv1 (norm BN folded) + Hardswish + pwconv2 (gamma & 1/6 folded) --------
    h = jnp.dot(x2.astype(cd), w1_ref[...],
                preferred_element_type=jnp.float32) + b1_ref[0]
    h = h * jnp.clip(h + 3.0, 0.0, 6.0)                                # Hardswish * 6 (1/6 in w2)
    z = jnp.dot(h.astype(cd), w2_ref[...],
                preferred_element_type=jnp.float32) + b2_ref[0]
    o_ref[0] = (xt0 + z).reshape(H, W, C)  # residual with the ORIGINAL input


# --------------------------------------------------------------------------- #
# Wrapper: fold BN / gamma / temperature / conv pass-through, one pallas_call.
# --------------------------------------------------------------------------- #
def sdta_forward(x, p, *, width, num_heads, matmul_dtype=jnp.bfloat16):
    B, C, T, H, W = x.shape
    assert T == 1, "reference forward's reshape(B, C, H*W) requires T == 1"
    d = C // num_heads
    eps = 1e-5
    f32 = jnp.float32
    cd = matmul_dtype

    # Fold eval-mode BatchNorms into per-channel scale/shift.
    s1 = (p["bn1_w"] * jax.lax.rsqrt(p["bn1_v"] + eps)).astype(f32)
    o1 = (p["bn1_b"] - p["bn1_m"] * s1).astype(f32)
    s2 = (p["bn2_w"] * jax.lax.rsqrt(p["bn2_v"] + eps)).astype(f32)
    o2 = (p["bn2_b"] - p["bn2_m"] * s2).astype(f32)

    # Depthwise Conv3d with T == 1: only the middle temporal tap sees real data.
    # Extend to all C channels with an identity center-tap (so the untouched split
    # channels pass through without a lane concatenate) and fold norm_xca's BN in.
    wconv = jnp.zeros((3, 3, C), f32)
    wconv = wconv.at[:, :, :width].set(p["conv_w"][1].astype(f32) * s1[:width])
    wconv = wconv.at[1, 1, width:].set(s1[width:])
    bconv = jnp.concatenate([p["conv_b"].astype(f32) * s1[:width] + o1[:width],
                             o1[width:]])

    # Per-channel temperature row (head h owns channels [h*d, (h+1)*d)).
    trow = jnp.repeat(p["temperature"].astype(f32), d).reshape(1, C)
    # Additive block-diagonal head mask for the (C, C) attention logits.
    hidx = jnp.arange(C) // d
    hbias = jnp.where(hidx[:, None] == hidx[None, :], 0.0, -1e30).astype(f32)

    # Fold gamma_xca (layer scale) into the attention projection.
    wproj = (p["wproj"] * p["gamma_xca"][None, :]).astype(cd)
    bproj = (p["bproj"] * p["gamma_xca"]).reshape(1, C).astype(f32)
    # Fold norm's BN into pwconv1; fold gamma and Hardswish's 1/6 into pwconv2.
    w1 = (s2[:, None] * p["w1"]).astype(cd)
    b1 = (o2 @ p["w1"] + p["b1"]).reshape(1, -1).astype(f32)
    w2 = (p["w2"] * (p["gamma"][None, :] / 6.0)).astype(cd)
    b2 = (p["b2"] * p["gamma"]).reshape(1, C).astype(f32)

    # Single layout change at the module boundary: NCTHW -> channels-last + conv halo.
    xcl = jnp.transpose(x.reshape(B, C, H, W), (0, 2, 3, 1)).astype(f32)
    xpad = jnp.pad(xcl, ((0, 0), (1, 1), (1, 1), (0, 0)))

    Ch = p["w1"].shape[1]

    def full(shape):
        n = len(shape)
        return pl.BlockSpec(shape, lambda b: (0,) * n)   # VMEM-resident across grid steps

    out_cl = pl.pallas_call(
        _sdta_fused_kernel,
        out_shape=jax.ShapeDtypeStruct((B, H, W, C), f32),
        grid=(B,),
        in_specs=[
            pl.BlockSpec((1, H + 2, W + 2, C), lambda b: (b, 0, 0, 0)),
            full((3, 3, C)), full((1, C)),
            full((C, 3 * C)), full((1, 3 * C)), full((1, C)), full((C, C)),
            full((C, C)), full((1, C)),
            full((C, Ch)), full((1, Ch)), full((Ch, C)), full((1, C)),
        ],
        out_specs=pl.BlockSpec((1, H, W, C), lambda b: (b, 0, 0, 0)),
        compiler_params=pltpu.CompilerParams(dimension_semantics=("parallel",)),
    )(xpad, wconv, bconv.reshape(1, C),
      p["wqkv"].astype(cd), p["bqkv"].reshape(1, 3 * C).astype(f32), trow, hbias,
      wproj, bproj,
      w1, b1, w2, b2)

    return jnp.transpose(out_cl, (0, 3, 1, 2)).reshape(B, C, T, H, W)


# --------------------------------------------------------------------------- #
# Pure-JAX (f32) reference for sanity checking
# --------------------------------------------------------------------------- #
def reference_forward(x, p, width, num_heads):
    B, C, T, H, W = x.shape
    nh = num_heads
    eps = 1e-5
    sp0, sp1 = x[:, :width], x[:, width:]
    xpd = jnp.pad(jnp.transpose(sp0, (0, 2, 3, 4, 1)),
                  ((0, 0), (1, 1), (1, 1), (1, 1), (0, 0)))
    acc = jnp.zeros((B, T, H, W, width), jnp.float32)
    for kt in range(3):
        for kh in range(3):
            for kw in range(3):
                acc = acc + xpd[:, kt:kt + T, kh:kh + H, kw:kw + W, :] * p["conv_w"][kt, kh, kw]
    acc = acc + p["conv_b"]
    xc = jnp.concatenate([jnp.transpose(acc, (0, 4, 1, 2, 3)), sp1], axis=1)
    xt = jnp.transpose(xc.reshape(B, C, H * W), (0, 2, 1))

    s1 = p["bn1_w"] / jnp.sqrt(p["bn1_v"] + eps)
    xbn = xt * s1 + (p["bn1_b"] - p["bn1_m"] * s1)
    qkv = xbn @ p["wqkv"] + p["bqkv"]
    d = C // nh
    q = qkv[..., :C].reshape(B, H * W, nh, d).transpose(0, 2, 3, 1)
    k = qkv[..., C:2 * C].reshape(B, H * W, nh, d).transpose(0, 2, 3, 1)
    v = qkv[..., 2 * C:].reshape(B, H * W, nh, d).transpose(0, 2, 3, 1)
    q = q / jnp.maximum(jnp.linalg.norm(q, axis=-1, keepdims=True), 1e-12)
    k = k / jnp.maximum(jnp.linalg.norm(k, axis=-1, keepdims=True), 1e-12)
    attn = jnp.einsum('bhdn,bhen->bhde', q, k) * p["temperature"][None, :, None, None]
    attn = jax.nn.softmax(attn, axis=-1)
    o = jnp.einsum('bhde,bhen->bhdn', attn, v).transpose(0, 3, 1, 2).reshape(B, H * W, C)
    o = o @ p["wproj"] + p["bproj"]
    x2 = xbn + p["gamma_xca"] * o

    s2 = p["bn2_w"] / jnp.sqrt(p["bn2_v"] + eps)
    y = x2 * s2 + (p["bn2_b"] - p["bn2_m"] * s2)
    h1 = y @ p["w1"] + p["b1"]
    h1 = h1 * jnp.clip(h1 + 3.0, 0.0, 6.0) / 6.0
    y2 = p["gamma"] * (h1 @ p["w2"] + p["b2"])
    out = jnp.transpose(x.reshape(B, C, H * W), (0, 2, 1)) + y2
    return jnp.transpose(out, (0, 2, 1)).reshape(B, C, T, H, W)


# --------------------------------------------------------------------------- #
# Deterministic parameter init (shapes per SDTAEncoderBNHS.__init__)
# --------------------------------------------------------------------------- #
def init_params(key, dim, width, num_heads, expan_ratio, layer_scale=0.1):
    ks = jax.random.split(key, 20)
    n = lambda k, shp, s=0.05: (s * jax.random.normal(k, shp)).astype(jnp.float32)
    return dict(
        conv_w=n(ks[0], (3, 3, 3, width), 0.1),          # depthwise Conv3d weight (kt,kh,kw,c)
        conv_b=n(ks[1], (width,), 0.1),
        bn1_w=1.0 + n(ks[2], (dim,), 0.1), bn1_b=n(ks[3], (dim,), 0.1),
        bn1_m=n(ks[4], (dim,), 0.1), bn1_v=1.0 + jnp.abs(n(ks[5], (dim,), 0.1)),
        wqkv=n(ks[6], (dim, 3 * dim)), bqkv=n(ks[7], (3 * dim,)),
        temperature=jnp.ones((num_heads,), jnp.float32),
        wproj=n(ks[8], (dim, dim)), bproj=n(ks[9], (dim,)),
        gamma_xca=layer_scale * jnp.ones((dim,), jnp.float32),
        bn2_w=1.0 + n(ks[10], (dim,), 0.1), bn2_b=n(ks[11], (dim,), 0.1),
        bn2_m=n(ks[12], (dim,), 0.1), bn2_v=1.0 + jnp.abs(n(ks[13], (dim,), 0.1)),
        w1=n(ks[14], (dim, expan_ratio * dim)), b1=n(ks[15], (expan_ratio * dim,)),
        w2=n(ks[16], (expan_ratio * dim, dim)), b2=n(ks[17], (dim,)),
        gamma=layer_scale * jnp.ones((dim,), jnp.float32),
    )


if __name__ == "__main__":
    B, dim, T, H, W = 2, 128, 1, 16, 16          # C=128 -> lane-dense blocks
    scales, num_heads, expan_ratio = 2, 8, 4
    width = max(int(math.ceil(dim / scales)), int(math.floor(dim // scales)))

    key = jax.random.PRNGKey(0)
    kx, kp = jax.random.split(key)
    x = jax.random.normal(kx, (B, dim, T, H, W), jnp.float32)
    params = init_params(kp, dim, width, num_heads, expan_ratio)

    fwd = jax.jit(functools.partial(sdta_forward, width=width, num_heads=num_heads))
    out = jax.block_until_ready(fwd(x, params))
    assert out.shape == (B, dim, T, H, W)

    ref = reference_forward(x, params, width, num_heads)
    np.testing.assert_allclose(np.asarray(out), np.asarray(ref), atol=1e-2, rtol=1e-2)
    print("KERNEL_OK")
</pallas_src>

<mosaic_0001>
module attributes {stable_mosaic.version = 11 : i64} {
  func.func @_sdta_fused_kernel(%arg0: i32, %arg1: memref<1x18x18x128xf32, #tpu.memory_space<vmem>>, %arg2: memref<3x3x128xf32, #tpu.memory_space<vmem>>, %arg3: memref<1x128xf32, #tpu.memory_space<vmem>>, %arg4: memref<128x384xbf16, #tpu.memory_space<vmem>>, %arg5: memref<1x384xf32, #tpu.memory_space<vmem>>, %arg6: memref<1x128xf32, #tpu.memory_space<vmem>>, %arg7: memref<128x128xf32, #tpu.memory_space<vmem>>, %arg8: memref<128x128xbf16, #tpu.memory_space<vmem>>, %arg9: memref<1x128xf32, #tpu.memory_space<vmem>>, %arg10: memref<128x512xbf16, #tpu.memory_space<vmem>>, %arg11: memref<1x512xf32, #tpu.memory_space<vmem>>, %arg12: memref<512x128xbf16, #tpu.memory_space<vmem>>, %arg13: memref<1x128xf32, #tpu.memory_space<vmem>>, %arg14: memref<1x16x16x128xf32, #tpu.memory_space<vmem>>) attributes {dimension_semantics = [#tpu.dimension_semantics<parallel>], iteration_bounds = array<i64: 2>, scalar_prefetch = 0 : i64, scratch_operands = 0 : i64, tpu.core_type = #tpu.core_type<tc>, window_params = [{transform_indices = @transform_0, window_bounds = array<i64: 1, 18, 18, 128>}, {pipeline_mode = #tpu.pipeline_mode<synchronous>, transform_indices = @transform_1, window_bounds = array<i64: 3, 3, 128>}, {pipeline_mode = #tpu.pipeline_mode<synchronous>, transform_indices = @transform_2, window_bounds = array<i64: 1, 128>}, {pipeline_mode = #tpu.pipeline_mode<synchronous>, transform_indices = @transform_3, window_bounds = array<i64: 128, 384>}, {pipeline_mode = #tpu.pipeline_mode<synchronous>, transform_indices = @transform_4, window_bounds = array<i64: 1, 384>}, {pipeline_mode = #tpu.pipeline_mode<synchronous>, transform_indices = @transform_5, window_bounds = array<i64: 1, 128>}, {pipeline_mode = #tpu.pipeline_mode<synchronous>, transform_indices = @transform_6, window_bounds = array<i64: 128, 128>}, {pipeline_mode = #tpu.pipeline_mode<synchronous>, transform_indices = @transform_7, window_bounds = array<i64: 128, 128>}, {pipeline_mode = #tpu.pipeline_mode<synchronous>, transform_indices = @transform_8, window_bounds = array<i64: 1, 128>}, {pipeline_mode = #tpu.pipeline_mode<synchronous>, transform_indices = @transform_9, window_bounds = array<i64: 128, 512>}, {pipeline_mode = #tpu.pipeline_mode<synchronous>, transform_indices = @transform_10, window_bounds = array<i64: 1, 512>}, {pipeline_mode = #tpu.pipeline_mode<synchronous>, transform_indices = @transform_11, window_bounds = array<i64: 512, 128>}, {pipeline_mode = #tpu.pipeline_mode<synchronous>, transform_indices = @transform_12, window_bounds = array<i64: 1, 128>}, {transform_indices = @transform_13, window_bounds = array<i64: 1, 16, 16, 128>}]} {
    %c0 = arith.constant 0 : index
    %c0_0 = arith.constant 0 : index
    %c0_1 = arith.constant 0 : index
    %c0_2 = arith.constant 0 : index
    %0 = vector.load %arg1[%c0, %c0_0, %c0_1, %c0_2] : memref<1x18x18x128xf32, #tpu.memory_space<vmem>>, vector<1x18x18x128xf32>
    %1 = vector.shape_cast %0 : vector<1x18x18x128xf32> to vector<18x18x128xf32>
    %2 = vector.extract_strided_slice %1 {offsets = [1, 1, 0], sizes = [16, 16, 128], strides = [1, 1, 1]} : vector<18x18x128xf32> to vector<16x16x128xf32>
    %3 = vector.shape_cast %2 : vector<16x16x128xf32> to vector<256x128xf32>
    %c0_3 = arith.constant 0 : index
    %c0_4 = arith.constant 0 : index
    %c0_5 = arith.constant 0 : index
    %4 = vector.load %arg2[%c0_3, %c0_4, %c0_5] : memref<3x3x128xf32, #tpu.memory_space<vmem>>, vector<3x3x128xf32>
    %5 = vector.extract_strided_slice %1 {offsets = [0, 0, 0], sizes = [16, 16, 128], strides = [1, 1, 1]} : vector<18x18x128xf32> to vector<16x16x128xf32>
    %6 = vector.extract_strided_slice %4 {offsets = [0, 0, 0], sizes = [1, 1, 128], strides = [1, 1, 1]} : vector<3x3x128xf32> to vector<1x1x128xf32>
    %7 = vector.shape_cast %6 : vector<1x1x128xf32> to vector<128xf32>
    %8 = vector.shape_cast %7 : vector<128xf32> to vector<1x1x128xf32>
    %9 = vector.broadcast %8 : vector<1x1x128xf32> to vector<16x16x128xf32>
    %10 = arith.mulf %5, %9 : vector<16x16x128xf32>
    %11 = vector.extract_strided_slice %1 {offsets = [0, 1, 0], sizes = [16, 16, 128], strides = [1, 1, 1]} : vector<18x18x128xf32> to vector<16x16x128xf32>
    %12 = vector.extract_strided_slice %4 {offsets = [0, 1, 0], sizes = [1, 1, 128], strides = [1, 1, 1]} : vector<3x3x128xf32> to vector<1x1x128xf32>
    %13 = vector.shape_cast %12 : vector<1x1x128xf32> to vector<128xf32>
    %14 = vector.shape_cast %13 : vector<128xf32> to vector<1x1x128xf32>
    %15 = vector.broadcast %14 : vector<1x1x128xf32> to vector<16x16x128xf32>
    %16 = arith.mulf %11, %15 : vector<16x16x128xf32>
    %17 = arith.addf %10, %16 : vector<16x16x128xf32>
    %18 = vector.extract_strided_slice %1 {offsets = [0, 2, 0], sizes = [16, 16, 128], strides = [1, 1, 1]} : vector<18x18x128xf32> to vector<16x16x128xf32>
    %19 = vector.extract_strided_slice %4 {offsets = [0, 2, 0], sizes = [1, 1, 128], strides = [1, 1, 1]} : vector<3x3x128xf32> to vector<1x1x128xf32>
    %20 = vector.shape_cast %19 : vector<1x1x128xf32> to vector<128xf32>
    %21 = vector.shape_cast %20 : vector<128xf32> to vector<1x1x128xf32>
    %22 = vector.broadcast %21 : vector<1x1x128xf32> to vector<16x16x128xf32>
    %23 = arith.mulf %18, %22 : vector<16x16x128xf32>
    %24 = arith.addf %17, %23 : vector<16x16x128xf32>
    %25 = vector.extract_strided_slice %1 {offsets = [1, 0, 0], sizes = [16, 16, 128], strides = [1, 1, 1]} : vector<18x18x128xf32> to vector<16x16x128xf32>
    %26 = vector.extract_strided_slice %4 {offsets = [1, 0, 0], sizes = [1, 1, 128], strides = [1, 1, 1]} : vector<3x3x128xf32> to vector<1x1x128xf32>
    %27 = vector.shape_cast %26 : vector<1x1x128xf32> to vector<128xf32>
    %28 = vector.shape_cast %27 : vector<128xf32> to vector<1x1x128xf32>
    %29 = vector.broadcast %28 : vector<1x1x128xf32> to vector<16x16x128xf32>
    %30 = arith.mulf %25, %29 : vector<16x16x128xf32>
    %31 = arith.addf %24, %30 : vector<16x16x128xf32>
    %32 = vector.extract_strided_slice %1 {offsets = [1, 1, 0], sizes = [16, 16, 128], strides = [1, 1, 1]} : vector<18x18x128xf32> to vector<16x16x128xf32>
    %33 = vector.extract_strided_slice %4 {offsets = [1, 1, 0], sizes = [1, 1, 128], strides = [1, 1, 1]} : vector<3x3x128xf32> to vector<1x1x128xf32>
    %34 = vector.shape_cast %33 : vector<1x1x128xf32> to vector<128xf32>
    %35 = vector.shape_cast %34 : vector<128xf32> to vector<1x1x128xf32>
    %36 = vector.broadcast %35 : vector<1x1x128xf32> to vector<16x16x128xf32>
    %37 = arith.mulf %32, %36 : vector<16x16x128xf32>
    %38 = arith.addf %31, %37 : vector<16x16x128xf32>
    %39 = vector.extract_strided_slice %1 {offsets = [1, 2, 0], sizes = [16, 16, 128], strides = [1, 1, 1]} : vector<18x18x128xf32> to vector<16x16x128xf32>
    %40 = vector.extract_strided_slice %4 {offsets = [1, 2, 0], sizes = [1, 1, 128], strides = [1, 1, 1]} : vector<3x3x128xf32> to vector<1x1x128xf32>
    %41 = vector.shape_cast %40 : vector<1x1x128xf32> to vector<128xf32>
    %42 = vector.shape_cast %41 : vector<128xf32> to vector<1x1x128xf32>
    %43 = vector.broadcast %42 : vector<1x1x128xf32> to vector<16x16x128xf32>
    %44 = arith.mulf %39, %43 : vector<16x16x128xf32>
    %45 = arith.addf %38, %44 : vector<16x16x128xf32>
    %46 = vector.extract_strided_slice %1 {offsets = [2, 0, 0], sizes = [16, 16, 128], strides = [1, 1, 1]} : vector<18x18x128xf32> to vector<16x16x128xf32>
    %47 = vector.extract_strided_slice %4 {offsets = [2, 0, 0], sizes = [1, 1, 128], strides = [1, 1, 1]} : vector<3x3x128xf32> to vector<1x1x128xf32>
    %48 = vector.shape_cast %47 : vector<1x1x128xf32> to vector<128xf32>
    %49 = vector.shape_cast %48 : vector<128xf32> to vector<1x1x128xf32>
    %50 = vector.broadcast %49 : vector<1x1x128xf32> to vector<16x16x128xf32>
    %51 = arith.mulf %46, %50 : vector<16x16x128xf32>
    %52 = arith.addf %45, %51 : vector<16x16x128xf32>
    %53 = vector.extract_strided_slice %1 {offsets = [2, 1, 0], sizes = [16, 16, 128], strides = [1, 1, 1]} : vector<18x18x128xf32> to vector<16x16x128xf32>
    %54 = vector.extract_strided_slice %4 {offsets = [2, 1, 0], sizes = [1, 1, 128], strides = [1, 1, 1]} : vector<3x3x128xf32> to vector<1x1x128xf32>
    %55 = vector.shape_cast %54 : vector<1x1x128xf32> to vector<128xf32>
    %56 = vector.shape_cast %55 : vector<128xf32> to vector<1x1x128xf32>
    %57 = vector.broadcast %56 : vector<1x1x128xf32> to vector<16x16x128xf32>
    %58 = arith.mulf %53, %57 : vector<16x16x128xf32>
    %59 = arith.addf %52, %58 : vector<16x16x128xf32>
    %60 = vector.extract_strided_slice %1 {offsets = [2, 2, 0], sizes = [16, 16, 128], strides = [1, 1, 1]} : vector<18x18x128xf32> to vector<16x16x128xf32>
    %61 = vector.extract_strided_slice %4 {offsets = [2, 2, 0], sizes = [1, 1, 128], strides = [1, 1, 1]} : vector<3x3x128xf32> to vector<1x1x128xf32>
    %62 = vector.shape_cast %61 : vector<1x1x128xf32> to vector<128xf32>
    %63 = vector.shape_cast %62 : vector<128xf32> to vector<1x1x128xf32>
    %64 = vector.broadcast %63 : vector<1x1x128xf32> to vector<16x16x128xf32>
    %65 = arith.mulf %60, %64 : vector<16x16x128xf32>
    %66 = arith.addf %59, %65 : vector<16x16x128xf32>
    %67 = vector.shape_cast %66 : vector<16x16x128xf32> to vector<256x128xf32>
    %c0_6 = arith.constant 0 : index
    %c0_7 = arith.constant 0 : index
    %68 = vector.load %arg3[%c0_6, %c0_7] : memref<1x128xf32, #tpu.memory_space<vmem>>, vector<1x128xf32>
    %69 = vector.shape_cast %68 : vector<1x128xf32> to vector<128xf32>
    %70 = vector.shape_cast %69 : vector<128xf32> to vector<1x128xf32>
    %71 = vector.broadcast %70 : vector<1x128xf32> to vector<256x128xf32>
    %72 = arith.addf %67, %71 : vector<256x128xf32>
    %73 = arith.truncf %72 : vector<256x128xf32> to vector<256x128xbf16>
    %c0_8 = arith.constant 0 : index
    %c0_9 = arith.constant 0 : index
    %74 = vector.load %arg4[%c0_8, %c0_9] : memref<128x384xbf16, #tpu.memory_space<vmem>>, vector<128x384xbf16>
    %cst = arith.constant dense<0.000000e+00> : vector<256x384xf32>
    %75 = tpu.matmul %73, %74, %cst {dimension_numbers = #tpu.dot_dimension_numbers<[1], [0], [0], [1], [0, 0, 1, 1], [], []>} : vector<256x128xbf16>, vector<128x384xbf16>, vector<256x384xf32> -> vector<256x384xf32>
    %c0_10 = arith.constant 0 : index
    %c0_11 = arith.constant 0 : index
    %76 = vector.load %arg5[%c0_10, %c0_11] : memref<1x384xf32, #tpu.memory_space<vmem>>, vector<1x384xf32>
    %77 = vector.shape_cast %76 : vector<1x384xf32> to vector<384xf32>
    %78 = vector.shape_cast %77 : vector<384xf32> to vector<1x384xf32>
    %79 = vector.broadcast %78 : vector<1x384xf32> to vector<256x384xf32>
    %80 = arith.addf %75, %79 : vector<256x384xf32>
    %81 = vector.extract_strided_slice %80 {offsets = [0, 0], sizes = [256, 128], strides = [1, 1]} : vector<256x384xf32> to vector<256x128xf32>
    %82 = vector.extract_strided_slice %80 {offsets = [0, 128], sizes = [256, 128], strides = [1, 1]} : vector<256x384xf32> to vector<256x128xf32>
    %83 = vector.extract_strided_slice %80 {offsets = [0, 256], sizes = [256, 128], strides = [1, 1]} : vector<256x384xf32> to vector<256x128xf32>
    %c0_12 = arith.constant 0 : index
    %c0_13 = arith.constant 0 : index
    %84 = vector.load %arg6[%c0_12, %c0_13] : memref<1x128xf32, #tpu.memory_space<vmem>>, vector<1x128xf32>
    %85 = vector.shape_cast %84 : vector<1x128xf32> to vector<128xf32>
    %86 = arith.mulf %81, %81 : vector<256x128xf32>
    %cst_14 = arith.constant dense<0.000000e+00> : vector<128xf32>
    %87 = vector.multi_reduction <add>, %86, %cst_14 [0] : vector<256x128xf32> to vector<128xf32>
    %88 = vector.shape_cast %87 : vector<128xf32> to vector<1x128xf32>
    %cst_15 = arith.constant 1.000000e-24 : f32
    %89 = vector.broadcast %cst_15 : f32 to vector<1x128xf32>
    %90 = arith.maximumf %88, %89 : vector<1x128xf32>
    %91 = math.rsqrt %90 : vector<1x128xf32>
    %92 = vector.shape_cast %85 : vector<128xf32> to vector<1x128xf32>
    %93 = arith.mulf %92, %91 : vector<1x128xf32>
    %94 = vector.broadcast %93 : vector<1x128xf32> to vector<256x128xf32>
    %95 = arith.mulf %81, %94 : vector<256x128xf32>
    %96 = arith.mulf %82, %82 : vector<256x128xf32>
    %cst_16 = arith.constant dense<0.000000e+00> : vector<128xf32>
    %97 = vector.multi_reduction <add>, %96, %cst_16 [0] : vector<256x128xf32> to vector<128xf32>
    %98 = vector.shape_cast %97 : vector<128xf32> to vector<1x128xf32>
    %cst_17 = arith.constant 1.000000e-24 : f32
    %99 = vector.broadcast %cst_17 : f32 to vector<1x128xf32>
    %100 = arith.maximumf %98, %99 : vector<1x128xf32>
    %101 = math.rsqrt %100 : vector<1x128xf32>
    %102 = vector.broadcast %101 : vector<1x128xf32> to vector<256x128xf32>
    %103 = arith.mulf %82, %102 : vector<256x128xf32>
    %104 = tpu.transpose %95, [1, 0] : vector<256x128xf32> -> vector<128x256xf32>
    %105 = arith.truncf %104 : vector<128x256xf32> to vector<128x256xbf16>
    %106 = arith.truncf %103 : vector<256x128xf32> to vector<256x128xbf16>
    %cst_18 = arith.constant dense<0.000000e+00> : vector<128x128xf32>
    %107 = tpu.matmul %105, %106, %cst_18 {dimension_numbers = #tpu.dot_dimension_numbers<[1], [0], [0], [1], [0, 0, 1, 1], [], []>} : vector<128x256xbf16>, vector<256x128xbf16>, vector<128x128xf32> -> vector<128x128xf32>
    %c0_19 = arith.constant 0 : index
    %c0_20 = arith.constant 0 : index
    %108 = vector.load %arg7[%c0_19, %c0_20] : memref<128x128xf32, #tpu.memory_space<vmem>>, vector<128x128xf32>
    %109 = arith.addf %107, %108 : vector<128x128xf32>
    %cst_21 = arith.constant dense<0xFF800000> : vector<128xf32>
    %110 = vector.multi_reduction <maximumf>, %109, %cst_21 [1] : vector<128x128xf32> to vector<128xf32>
    %111 = vector.shape_cast %110 : vector<128xf32> to vector<128x1xf32>
    %112 = vector.broadcast %111 : vector<128x1xf32> to vector<128x128xf32>
    %113 = arith.subf %109, %112 : vector<128x128xf32>
    %114 = math.exp %113 : vector<128x128xf32>
    %cst_22 = arith.constant dense<0.000000e+00> : vector<128xf32>
    %115 = vector.multi_reduction <add>, %114, %cst_22 [1] : vector<128x128xf32> to vector<128xf32>
    %116 = vector.shape_cast %115 : vector<128xf32> to vector<128x1xf32>
    %117 = tpu.reciprocal %116 {approx = true} : vector<128x1xf32> -> vector<128x1xf32>
    %118 = vector.broadcast %117 : vector<128x1xf32> to vector<128x128xf32>
    %119 = arith.mulf %114, %118 : vector<128x128xf32>
    %120 = arith.truncf %83 : vector<256x128xf32> to vector<256x128xbf16>
    %121 = tpu.transpose %119, [1, 0] : vector<128x128xf32> -> vector<128x128xf32>
    %122 = arith.truncf %121 : vector<128x128xf32> to vector<128x128xbf16>
    %cst_23 = arith.constant dense<0.000000e+00> : vector<256x128xf32>
    %123 = tpu.matmul %120, %122, %cst_23 {dimension_numbers = #tpu.dot_dimension_numbers<[1], [0], [0], [1], [0, 0, 1, 1], [], []>} : vector<256x128xbf16>, vector<128x128xbf16>, vector<256x128xf32> -> vector<256x128xf32>
    %124 = arith.truncf %123 : vector<256x128xf32> to vector<256x128xbf16>
    %c0_24 = arith.constant 0 : index
    %c0_25 = arith.constant 0 : index
    %125 = vector.load %arg8[%c0_24, %c0_25] : memref<128x128xbf16, #tpu.memory_space<vmem>>, vector<128x128xbf16>
    %cst_26 = arith.constant dense<0.000000e+00> : vector<256x128xf32>
    %126 = tpu.matmul %124, %125, %cst_26 {dimension_numbers = #tpu.dot_dimension_numbers<[1], [0], [0], [1], [0, 0, 1, 1], [], []>} : vector<256x128xbf16>, vector<128x128xbf16>, vector<256x128xf32> -> vector<256x128xf32>
    %127 = arith.addf %72, %126 : vector<256x128xf32>
    %c0_27 = arith.constant 0 : index
    %c0_28 = arith.constant 0 : index
    %128 = vector.load %arg9[%c0_27, %c0_28] : memref<1x128xf32, #tpu.memory_space<vmem>>, vector<1x128xf32>
    %129 = vector.shape_cast %128 : vector<1x128xf32> to vector<128xf32>
    %130 = vector.shape_cast %129 : vector<128xf32> to vector<1x128xf32>
    %131 = vector.broadcast %130 : vector<1x128xf32> to vector<256x128xf32>
    %132 = arith.addf %127, %131 : vector<256x128xf32>
    %133 = arith.truncf %132 : vector<256x128xf32> to vector<256x128xbf16>
    %c0_29 = arith.constant 0 : index
    %c0_30 = arith.constant 0 : index
    %134 = vector.load %arg10[%c0_29, %c0_30] : memref<128x512xbf16, #tpu.memory_space<vmem>>, vector<128x512xbf16>
    %cst_31 = arith.constant dense<0.000000e+00> : vector<256x512xf32>
    %135 = tpu.matmul %133, %134, %cst_31 {dimension_numbers = #tpu.dot_dimension_numbers<[1], [0], [0], [1], [0, 0, 1, 1], [], []>} : vector<256x128xbf16>, vector<128x512xbf16>, vector<256x512xf32> -> vector<256x512xf32>
    %c0_32 = arith.constant 0 : index
    %c0_33 = arith.constant 0 : index
    %136 = vector.load %arg11[%c0_32, %c0_33] : memref<1x512xf32, #tpu.memory_space<vmem>>, vector<1x512xf32>
    %137 = vector.shape_cast %136 : vector<1x512xf32> to vector<512xf32>
    %138 = vector.shape_cast %137 : vector<512xf32> to vector<1x512xf32>
    %139 = vector.broadcast %138 : vector<1x512xf32> to vector<256x512xf32>
    %140 = arith.addf %135, %139 : vector<256x512xf32>
    %cst_34 = arith.constant 3.000000e+00 : f32
    %141 = vector.broadcast %cst_34 : f32 to vector<256x512xf32>
    %142 = arith.addf %140, %141 : vector<256x512xf32>
    %cst_35 = arith.constant 0.000000e+00 : f32
    %cst_36 = arith.constant 6.000000e+00 : f32
    %143 = vector.broadcast %cst_35 : f32 to vector<256x512xf32>
    %144 = arith.maximumf %143, %142 : vector<256x512xf32>
    %145 = vector.broadcast %cst_36 : f32 to vector<256x512xf32>
    %146 = arith.minimumf %145, %144 : vector<256x512xf32>
    %147 = arith.mulf %140, %146 : vector<256x512xf32>
    %148 = arith.truncf %147 : vector<256x512xf32> to vector<256x512xbf16>
    %c0_37 = arith.constant 0 : index
    %c0_38 = arith.constant 0 : index
    %149 = vector.load %arg12[%c0_37, %c0_38] : memref<512x128xbf16, #tpu.memory_space<vmem>>, vector<512x128xbf16>
    %cst_39 = arith.constant dense<0.000000e+00> : vector<256x128xf32>
    %150 = tpu.matmul %148, %149, %cst_39 {dimension_numbers = #tpu.dot_dimension_numbers<[1], [0], [0], [1], [0, 0, 1, 1], [], []>} : vector<256x512xbf16>, vector<512x128xbf16>, vector<256x128xf32> -> vector<256x128xf32>
    %c0_40 = arith.constant 0 : index
    %c0_41 = arith.constant 0 : index
    %151 = vector.load %arg13[%c0_40, %c0_41] : memref<1x128xf32, #tpu.memory_space<vmem>>, vector<1x128xf32>
    %152 = vector.shape_cast %151 : vector<1x128xf32> to vector<128xf32>
    %153 = vector.shape_cast %152 : vector<128xf32> to vector<1x128xf32>
    %154 = vector.broadcast %153 : vector<1x128xf32> to vector<256x128xf32>
    %155 = arith.addf %150, %154 : vector<256x128xf32>
    %156 = arith.addf %3, %155 : vector<256x128xf32>
    %157 = vector.shape_cast %156 : vector<256x128xf32> to vector<16x16x128xf32>
    %c0_42 = arith.constant 0 : index
    %c0_43 = arith.constant 0 : index
    %c0_44 = arith.constant 0 : index
    %c0_45 = arith.constant 0 : index
    %158 = vector.load %arg14[%c0_42, %c0_43, %c0_44, %c0_45] : memref<1x16x16x128xf32, #tpu.memory_space<vmem>>, vector<1x16x16x128xf32>
    %159 = vector.shape_cast %158 : vector<1x16x16x128xf32> to vector<16x16x128xf32>
    %160 = vector.shape_cast %157 : vector<16x16x128xf32> to vector<1x16x16x128xf32>
    tpu.vector_store %arg14[%c0_42, %c0_43, %c0_44, %c0_45], %160 {strides = array<i32>} : memref<1x16x16x128xf32, #tpu.memory_space<vmem>>, vector<1x16x16x128xf32>,
    return
  }
  func.func @transform_0(%arg0: i32) -> (i32, i32, i32, i32) {
    %c0_i32 = arith.constant 0 : i32
    %c0_i32_0 = arith.constant 0 : i32
    %c0_i32_1 = arith.constant 0 : i32
    %c0_i32_2 = arith.constant 0 : i32
    return %arg0, %c0_i32, %c0_i32_0, %c0_i32_1 : i32, i32, i32, i32
  }
  func.func @transform_1(%arg0: i32) -> (i32, i32, i32) {
    %c0_i32 = arith.constant 0 : i32
    %c0_i32_0 = arith.constant 0 : i32
    %c0_i32_1 = arith.constant 0 : i32
    %c0_i32_2 = arith.constant 0 : i32
    return %c0_i32, %c0_i32_0, %c0_i32_1 : i32, i32, i32
  }
  func.func @transform_2(%arg0: i32) -> (i32, i32) {
    %c0_i32 = arith.constant 0 : i32
    %c0_i32_0 = arith.constant 0 : i32
    %c0_i32_1 = arith.constant 0 : i32
    return %c0_i32, %c0_i32_0 : i32, i32
  }
  func.func @transform_3(%arg0: i32) -> (i32, i32) {
    %c0_i32 = arith.constant 0 : i32
    %c0_i32_0 = arith.constant 0 : i32
    %c0_i32_1 = arith.constant 0 : i32
    return %c0_i32, %c0_i32_0 : i32, i32
  }
  func.func @transform_4(%arg0: i32) -> (i32, i32) {
    %c0_i32 = arith.constant 0 : i32
    %c0_i32_0 = arith.constant 0 : i32
    %c0_i32_1 = arith.constant 0 : i32
    return %c0_i32, %c0_i32_0 : i32, i32
  }
  func.func @transform_5(%arg0: i32) -> (i32, i32) {
    %c0_i32 = arith.constant 0 : i32
    %c0_i32_0 = arith.constant 0 : i32
    %c0_i32_1 = arith.constant 0 : i32
    return %c0_i32, %c0_i32_0 : i32, i32
  }
  func.func @transform_6(%arg0: i32) -> (i32, i32) {
    %c0_i32 = arith.constant 0 : i32
    %c0_i32_0 = arith.constant 0 : i32
    %c0_i32_1 = arith.constant 0 : i32
    return %c0_i32, %c0_i32_0 : i32, i32
  }
  func.func @transform_7(%arg0: i32) -> (i32, i32) {
    %c0_i32 = arith.constant 0 : i32
    %c0_i32_0 = arith.constant 0 : i32
    %c0_i32_1 = arith.constant 0 : i32
    return %c0_i32, %c0_i32_0 : i32, i32
  }
  func.func @transform_8(%arg0: i32) -> (i32, i32) {
    %c0_i32 = arith.constant 0 : i32
    %c0_i32_0 = arith.constant 0 : i32
    %c0_i32_1 = arith.constant 0 : i32
    return %c0_i32, %c0_i32_0 : i32, i32
  }
  func.func @transform_9(%arg0: i32) -> (i32, i32) {
    %c0_i32 = arith.constant 0 : i32
    %c0_i32_0 = arith.constant 0 : i32
    %c0_i32_1 = arith.constant 0 : i32
    return %c0_i32, %c0_i32_0 : i32, i32
  }
  func.func @transform_10(%arg0: i32) -> (i32, i32) {
    %c0_i32 = arith.constant 0 : i32
    %c0_i32_0 = arith.constant 0 : i32
    %c0_i32_1 = arith.constant 0 : i32
    return %c0_i32, %c0_i32_0 : i32, i32
  }
  func.func @transform_11(%arg0: i32) -> (i32, i32) {
    %c0_i32 = arith.constant 0 : i32
    %c0_i32_0 = arith.constant 0 : i32
    %c0_i32_1 = arith.constant 0 : i32
    return %c0_i32, %c0_i32_0 : i32, i32
  }
  func.func @transform_12(%arg0: i32) -> (i32, i32) {
    %c0_i32 = arith.constant 0 : i32
    %c0_i32_0 = arith.constant 0 : i32
    %c0_i32_1 = arith.constant 0 : i32
    return %c0_i32, %c0_i32_0 : i32, i32
  }
  func.func @transform_13(%arg0: i32) -> (i32, i32, i32, i32) {
    %c0_i32 = arith.constant 0 : i32
    %c0_i32_0 = arith.constant 0 : i32
    %c0_i32_1 = arith.constant 0 : i32
    %c0_i32_2 = arith.constant 0 : i32
    return %arg0, %c0_i32, %c0_i32_0, %c0_i32_1 : i32, i32, i32, i32
  }
}

</mosaic_0001>

<bundles_post_ra>
// kernel: sdta_forward.1
= control target key start
LH: loop header
LB: loop body
LE: loop exit
PB: predicated region body
PF: predicated region fallthrough
CT: control target
= control target key end

     0   :  { %18 = vsyncpa [#allocation3], 0  ;;  %s10874_s0 = inlined_call_operand.vmem [shape: f32[2,18,18,128], index: 0, kind: input, shape index: {}]   ;;  %s10875_s1 = inlined_call_operand.vmem [shape: f32[3,3,128], index: 1, kind: input, shape index: {}]   ;;  %s10876_s2 = inlined_call_operand.vmem [shape: f32[1,128], index: 2, kind: input, shape index: {}]   ;;  %s10877_s3 = inlined_call_operand.vmem [shape: bf16[128,384], index: 3, kind: input, shape index: {}]   ;;  %s10878_s4 = inlined_call_operand.vmem [shape: f32[1,384], index: 4, kind: input, shape index: {}]   ;;  %s10879_s5 = inlined_call_operand.vmem [shape: f32[1,128], index: 5, kind: input, shape index: {}]   ;;  %s10880_s6 = inlined_call_operand.vmem [shape: f32[128,128], index: 6, kind: input, shape index: {}]   ;;  %s10881_s7 = inlined_call_operand.vmem [shape: bf16[128,128], index: 7, kind: input, shape index: {}]   ;;  %s10882_s8 = inlined_call_operand.vmem [shape: f32[1,128], index: 8, kind: input, shape index: {}]   ;;  %s10883_s9 = inlined_call_operand.vmem [shape: bf16[128,512], index: 9, kind: input, shape index: {}]   ;;  %s10884_s10 = inlined_call_operand.vmem [shape: f32[1,512], index: 10, kind: input, shape index: {}]   ;;  %s10885_s11 = inlined_call_operand.vmem [shape: bf16[512,128], index: 11, kind: input, shape index: {}]   ;;  %s10886_s12 = inlined_call_operand.vmem [shape: f32[1,128], index: 12, kind: input, shape index: {}]   ;;  %s10887_s13 = inlined_call_operand.hbm [shape: f32[2,16,16,128], index: 13, kind: output, shape index: {}]  }
   0x1   :  { %20 = vsyncpa [#allocation3 + $0x1], 0  ;;  %s7040_s25 = smov 0   ;;  %s7042_s26 = smov 0  }
   0x2   :  { %s7044_s27 = smov 0   ;;  %s7046_s28 = smov 0  }
   0x3 LB: > { %10957 = sst [smem:[#allocation5_spill]] %s6960_s27  ;;  %s7061_s29 = sadd.s32 4294967295, %s6964_s28   ;;  %s6964_s28 = sphi %s7046_s28, %s11154_s28   ;;  %s6960_s27 = sphi %s7044_s27, %s11156_s27   ;;  %s6956_s26 = sphi %s7042_s26, %s11158_s26   ;;  %s6952_s25 = sphi %s7040_s25, %s11157_s25  }
   0x4   : > { %s5894_s30 = sadd.s32 4294967294, %s6964_s28   ;;  %s7065_s14 = sadd.s32 1, %s6964_s28  }
   0x5   : > { %10958 = sst [smem:[#allocation6_spill]] %s7065_s14  ;;  %s311_s15 = sadd.s32 1, %s6960_s27 }
   0x6   : > { %s308_s16 = ssub.s32 %s6964_s28, %s7065_s14  ;;  %p321_p0 = scmp.ne.s32.totalorder %s6960_s27, %s6956_s26 }
   0x7   : > { %p309_p1 = scmp.eq.s32.totalorder %s308_s16, 0  ;;  %p322_p2 = scmp.eq.s32.totalorder %s7061_s29, 1 }
   0x8   : > { %p327_p3 = scmp.ne.s32.totalorder %s6956_s26, %s6952_s25  ;;  %p328_p4 = scmp.eq.s32.totalorder %s5894_s30, 1 }
   0x9   : > { %s7076_s17 = scalar_select %p309_p1, %s6960_s27, %s311_s15  }
   0xa   : > { %p7078_p5 = por %p322_p2, %p321_p0  ;;  %p7082_p6 = por %p328_p4, %p327_p3 }
   0xb   : > { %10959 = sst [smem:[#allocation7_spill]] %s7076_s17  ;;  %p5897_p7 = scmp.ge.s32.totalorder %s6964_s28, 1 }
   0xc   : > { %p390_p8 = scmp.lt.s32.totalorder %s6964_s28, 3 }
   0xe   : > { %p391_p9 = pnand %p5897_p7, %p390_p8 }
  0x10   : > { %394 = sbr.rel (%p391_p9) target bundleno = 2526 (0x9de), region = 72 }
  0x17   : > { %v6664_v0 = vld [vmem:[%s10877_s3 + $0x4] ss:$12 sps:$4 sm:$0xff]   ;;  %p434_p10 = scmp.lt.s32.totalorder %s7061_s29, 1  ;;  %v6666_v1 = vld [vmem:[%s10877_s3] ss:$12 sps:$4 sm:$0xff]   ;;  %v10891_v2 = vmov 0   ;;  %v658_v4 = vlaneseq }
  0x18   : > { %2559 = vmatprep.mubr.bf16.mxu0 %v10891_v2  ;;  %2527 = vmatprep.subr.bf16.mxu0 %v6664_v0  ;;  %v6667_v3 = vld [vmem:[%s10877_s3 + $0x1c] ss:$12 sps:$4 sm:$0xff]   ;;  %v6669_v5 = vld [vmem:[%s10877_s3 + $0x18] ss:$12 sps:$4 sm:$0xff]   ;;  %v6670_v6 = vld [vmem:[%s10877_s3 + $0x34] ss:$12 sps:$4 sm:$0xff]  }
  0x19   : > { %s435_s15 = scalar_select %p434_p10, %s7061_s29, 1  ;;  %2528 = vmatpush1.bf16.msra.mxu0 %v6666_v1  ;;  %v7106_v7 = vshrl.u32 %v658_v4, 7  ;;  %v6672_v8 = vld [vmem:[%s10877_s3 + $0x30] ss:$12 sps:$4 sm:$0xff]   ;;  %v6673_v9 = vld [vmem:[%s10877_s3 + $0x4c] ss:$12 sps:$4 sm:$0xff]  }
  0x1a   : > { %2529 = vmatprep.subr.bf16.mxu0 %v6667_v3  ;;  %v6675_v13 = vld [vmem:[%s10877_s3 + $0x48] ss:$12 sps:$4 sm:$0xff]   ;;  %v6676_v14 = vld [vmem:[%s10877_s3 + $0x64] ss:$12 sps:$4 sm:$0xff]   ;;  %vm542_vm0 = vcmask 1046528   ;;  %vm1038_vm1 = vcmask 1045504  }
  0x1b   : > { %s6509_s22 = smul.u32 432, %s435_s15  ;;  %10962 = vst [vmem:[#allocation8_spill] sm:$0xff] %v7106_v7  ;;  %v7120_v10 = vsub.s32 0, %v7106_v7  ;;  %v7123_v11 = vsub.s32 1, %v7106_v7  ;;  %v7126_v12 = vsub.s32 2, %v7106_v7  ;;  %s431_s15 = sand.u32 1, %s6956_s26  }
  0x1c   : > { %v655_v17 = vld [vmem:[%s10875_s1] sm:$0x7]  ;;  %v656_v19 = vld [vmem:[%s10875_s1 + $0x4] sm:$0x7]  ;;  %v7146_v20 = vld [vmem:[%s10875_s1 + $0x8] sm:$0x7] }
  0x1d   : > { %2530 = vmatpush1.bf16.msra.mxu0 %v6669_v5  ;;  %s7117_s14 = scalar_lea.vmem %s10874_s0, %s6509_s22  ;;  %10963 = vst [vmem:[#allocation9_spill] sm:$0xff] %v7123_v11  ;;  %10964 = vst [vmem:[#allocation10_spill] sm:$0xff] %v7126_v12  ;;  %v7149_v21 = vrot.slane %v655_v17, %v7120_v10  ;;  %v7152_v22 = vrot.slane %v655_v17, %v7123_v11  ;;  %v7155_v23 = vrot.slane %v655_v17, %v7126_v12  ;;  %v6678_v24 = vld [vmem:[%s10877_s3 + $0x60] ss:$12 sps:$4 sm:$0xff]   ;;  %v6679_v31 = vld [vmem:[%s10877_s3 + $0x7c] ss:$12 sps:$4 sm:$0xff]  }
  0x1e   : > { %2531 = vmatprep.subr.bf16.mxu0 %v6670_v6  ;;  %v440_v15 = vld [vmem:[%s7117_s14] sm:$0xff]  ;;  %v441_v16 = vld [vmem:[%s7117_s14 + $0x8] sm:$0xff]  ;;  %v442_v18 = vld [vmem:[%s7117_s14 + $0x10] sm:$0x3]  ;;  %v7167_v27 = vrot.slane %v656_v19, %v7120_v10  ;;  %v7170_v28 = vrot.slane %v656_v19, %v7123_v11  ;;  %v7173_v29 = vrot.slane %v656_v19, %v7126_v12  ;;  %v7177_v30 = vrot.slane %v7146_v20, %v7120_v10  ;;  %s5898_s21 = sshll.u32 %s431_s15, 8  ;;  %s6004_s23 = sshll.u32 %s7061_s29, 12 }
  0x1f   : > { %v7161_v25 = vld [vmem:[%s7117_s14 + $0x18] sm:$0xff]  ;;  %v7164_v26 = vld [vmem:[%s7117_s14 + $0x20] sm:$0xff]  ;;  %v662_v32 = vmul.f32 %v7149_v21, %v440_v15  ;;  %v663_v33 = vmul.f32 %v7149_v21, %v441_v16  ;;  %v698_v34 = vmul.f32 %v7152_v22, %v440_v15  ;;  %v699_v35 = vmul.f32 %v7152_v22, %v441_v16  ;;  %v7187_v36 = vld [vmem:[%s7117_s14 + $0x28] sm:$0x3]  ;;  %s10683_s22 = scalar_lea.vmem [#allocation2], %s5898_s21  ;;  %s10825_s16 = scalar_lea.hbm %s10887_s13, %s6004_s23 }
  0x20   : > { %v700_v37 = vmul.f32 %v7152_v22, %v442_v18  ;;  %v942_v38 = vmul.f32 %v7155_v23, %v440_v15  ;;  %v943_v39 = vmul.f32 %v7155_v23, %v441_v16  ;;  %v944_v40 = vmul.f32 %v7155_v23, %v442_v18  ;;  %v6681_v45 = vld [vmem:[%s10877_s3 + $0x78] ss:$12 sps:$4 sm:$0xff]   ;;  %v6682_v50 = vld [vmem:[%s10877_s3 + $0x94] ss:$12 sps:$4 sm:$0xff]   ;;  %v6684_v55 = vld [vmem:[%s10877_s3 + $0x90] ss:$12 sps:$4 sm:$0xff]  }
  0x21   : > { %2532 = vmatpush1.bf16.msra.mxu0 %v6672_v8  ;;  %v794_v41 = vrot.slane %v698_v34, 1  ;;  %v795_v42 = vrot.slane %v699_v35, 1  ;;  %v1187_v43 = vmul.f32 %v7167_v27, %v7161_v25  ;;  %v1188_v44 = vmul.f32 %v7167_v27, %v7164_v26  ;;  %v7214_v56 = vld [vmem:[%s7117_s14 + $0x30] sm:$0xff]  ;;  %v6685_v61 = vld [vmem:[%s10877_s3 + $0xac] ss:$12 sps:$4 sm:$0xff]   ;;  %s5832_s24 = sshll.u32 %s10683_s22, 4  ;;  %s10827_s24 = int_to_ptr.vmem [resolvable:$true] %s5832_s24 }
  0x22   : > { %2533 = vmatprep.subr.bf16.mxu0 %v6673_v9  ;;  %v797_v46 = vrot.slane %v700_v37, 1  ;;  %v1039_v47 = vrot.slane %v942_v38, 2  ;;  %v1040_v48 = vrot.slane %v943_v39, 2  ;;  %v1042_v49 = vrot.slane %v944_v40, 2  ;;  %v7223_v62 = vld [vmem:[%s7117_s14 + $0x38] sm:$0xff]  ;;  %s10833_s29 = scalar_lea.sflag [#allocation3], %s431_s15 }
  0x23   : > { %v796_v51 = vsel %vm542_vm0, %v794_v41, %v795_v42  ;;  %v1255_v52 = vmul.f32 %v7170_v28, %v7161_v25  ;;  %v1256_v53 = vmul.f32 %v7170_v28, %v7164_v26  ;;  %v1257_v54 = vmul.f32 %v7170_v28, %v7187_v36  ;;  %v7226_v4 = vld [vmem:[%s7117_s14 + $0x40] sm:$0x3]  ;;  %v6687_v17 = vld [vmem:[%s10877_s3 + $0xa8] ss:$12 sps:$4 sm:$0xff]   ;;  %s6902_s20 = scalar_lea.vmem %s10827_s24, 4096  ;;  %s6967_s27 = smov [#allocation2]  }
  0x24   : > { %v798_v57 = vsel %vm542_vm0, %v795_v42, %v797_v46  ;;  %v906_v58 = vadd.f32 %v796_v51, %v662_v32  ;;  %v1041_v59 = vsel %vm1038_vm1, %v1039_v47, %v1040_v48  ;;  %v1043_v60 = vsel %vm1038_vm1, %v1040_v48, %v1042_v49  ;;  %p6903_p11 = scmp.ne.s32.totalorder %s10827_s24, %s6902_s20  ;;  %s6906_s17 = sshll.u32 %s6967_s27, 4  ;;  %s6907_s17 = int_to_ptr.vmem [resolvable:$false] %s6906_s17 }
  0x25   : > { %2534 = vmatpush1.bf16.msra.mxu0 %v6675_v13  ;;  %v907_v63 = vadd.f32 %v798_v57, %v663_v33  ;;  %v1351_v0 = vrot.slane %v1255_v52, 1  ;;  %v1352_v1 = vrot.slane %v1256_v53, 1  ;;  %v1354_v3 = vrot.slane %v1257_v54, 1  ;;  %s6908_s21 = scalar_lea.vmem %s6907_s17, 8192  ;;  %p6909_p0 = scmp.lt.s32.totalorder %s10827_s24, %s6907_s17 }
  0x26   : > { %2535 = vmatprep.subr.bf16.mxu0 %v6676_v14  ;;  %v1151_v5 = vadd.f32 %v1041_v59, %v906_v58  ;;  %v1499_v6 = vmul.f32 %v7173_v29, %v7161_v25  ;;  %v1500_v8 = vmul.f32 %v7173_v29, %v7164_v26  ;;  %v1501_v9 = vmul.f32 %v7173_v29, %v7187_v36  ;;  %p6904_p12 = pnand %p6903_p11, %p7078_p5  ;;  %p6910_p1 = scmp.lt.s32.totalorder %s6908_s21, %s6902_s20 }
  0x27   : > { %v1152_v13 = vadd.f32 %v1043_v60, %v907_v63  ;;  %v1353_v14 = vsel %vm542_vm0, %v1351_v0, %v1352_v1  ;;  %v1355_v15 = vsel %vm542_vm0, %v1352_v1, %v1354_v3  ;;  %v1743_v16 = vmul.f32 %v7177_v30, %v7214_v56  ;;  %v7272_v60 = vld [vmem:[%s10876_s2] ss:$0 sm:$0xff] }
  0x28   : > { %v1219_v18 = vadd.f32 %v1187_v43, %v1151_v5  ;;  %v1595_v19 = vrot.slane %v1499_v6, 2  ;;  %v1744_v33 = vmul.f32 %v7177_v30, %v7223_v62  ;;  %v7245_v34 = vrot.slane %v7146_v20, %v7123_v11  ;;  %p6905_p13 = pneg %p6904_p12  ;;  %p6911_p2 = por %p6910_p1, %p6909_p0 }
  0x29   : > { %2536 = vmatpush1.bf16.msra.mxu0 %v6678_v24  ;;  %v1596_v24 = vrot.slane %v1500_v8, 2  ;;  %v1220_v32 = vadd.f32 %v1188_v44, %v1152_v13  ;;  %v7249_v35 = vrot.slane %v7146_v20, %v7126_v12  ;;  %v664_v40 = vmul.f32 %v7149_v21, %v7161_v25 }
  0x2a   : > { %2537 = vmatprep.subr.bf16.mxu0 %v6679_v31  ;;  %v1598_v31 = vrot.slane %v1501_v9, 2  ;;  %v1463_v37 = vadd.f32 %v1353_v14, %v1219_v18  ;;  %v1811_v42 = vmul.f32 %v7245_v34, %v7214_v56  ;;  %v1812_v43 = vmul.f32 %v7245_v34, %v7223_v62  ;;  %p6912_p3 = pnand %p6911_p2, %p6905_p13 }
  0x2b   : > { %v1597_v38 = vsel %vm1038_vm1, %v1595_v19, %v1596_v24  ;;  %v1464_v41 = vadd.f32 %v1355_v15, %v1220_v32  ;;  %v1813_v20 = vmul.f32 %v7245_v34, %v7226_v4  ;;  %v2056_v46 = vmul.f32 %v7249_v35, %v7223_v62 }
  0x2c   : > { %v1599_v39 = vsel %vm1038_vm1, %v1596_v24, %v1598_v31  ;;  %v1707_v44 = vadd.f32 %v1597_v38, %v1463_v37  ;;  %v2057_v47 = vmul.f32 %v7249_v35, %v7226_v4  ;;  %v1907_v49 = vrot.slane %v1811_v42, 1 }
  0x2d   : > { %2538 = vmatpush1.bf16.msra.mxu0 %v6681_v45  ;;  %v2055_v45 = vmul.f32 %v7249_v35, %v7214_v56  ;;  %v1708_v48 = vadd.f32 %v1599_v39, %v1464_v41  ;;  %v1910_v51 = vrot.slane %v1813_v20, 1  ;;  %v2152_v54 = vrot.slane %v2056_v46, 2  ;;  %v7303_v39 = vld [vmem:[%s7117_s14 + $0x48] sm:$0xff] }
  0x2e   : > { %2539 = vmatprep.subr.bf16.mxu0 %v6682_v50  ;;  %v1908_v50 = vrot.slane %v1812_v43, 1  ;;  %v1775_v52 = vadd.f32 %v1743_v16, %v1707_v44  ;;  %v701_v3 = vmul.f32 %v7152_v22, %v7161_v25  ;;  %v702_v6 = vmul.f32 %v7152_v22, %v7164_v26 }
  0x2f   : > { %v2151_v53 = vrot.slane %v2055_v45, 2  ;;  %v1776_v57 = vadd.f32 %v1744_v33, %v1708_v48  ;;  %v703_v8 = vmul.f32 %v7152_v22, %v7187_v36  ;;  %v945_v9 = vmul.f32 %v7155_v23, %v7161_v25  ;;  %v7310_v45 = vld [vmem:[%s7117_s14 + $0x50] sm:$0xff] }
  0x30   : > { %v1909_v58 = vsel %vm542_vm0, %v1907_v49, %v1908_v50  ;;  %v1911_v59 = vsel %vm542_vm0, %v1908_v50, %v1910_v51  ;;  %v799_v14 = vrot.slane %v701_v3, 1  ;;  %v946_v15 = vmul.f32 %v7155_v23, %v7164_v26 }
  0x31   : > { %2540 = vmatpush1.bf16.msra.mxu0 %v6684_v55  ;;  %v2154_v55 = vrot.slane %v2057_v47, 2  ;;  %v2019_v63 = vadd.f32 %v1909_v58, %v1775_v52  ;;  %v2153_v0 = vsel %vm1038_vm1, %v2151_v53, %v2152_v54  ;;  %v2020_v5 = vadd.f32 %v1911_v59, %v1776_v57 }
  0x32   : > { %2541 = vmatprep.subr.bf16.mxu0 %v6685_v61  ;;  %v665_v61 = vmul.f32 %v7149_v21, %v7164_v26  ;;  %v947_v16 = vmul.f32 %v7155_v23, %v7187_v36  ;;  %v800_v18 = vrot.slane %v702_v6, 1  ;;  %v802_v19 = vrot.slane %v703_v8, 1 }
  0x33   : > { %v2155_v1 = vsel %vm1038_vm1, %v2152_v54, %v2154_v55  ;;  %v2263_v13 = vadd.f32 %v2153_v0, %v2019_v63  ;;  %v1044_v24 = vrot.slane %v945_v9, 2  ;;  %v1045_v32 = vrot.slane %v946_v15, 2 }
  0x34   : > { %v1047_v33 = vrot.slane %v947_v16, 2  ;;  %v1189_v25 = vmul.f32 %v7167_v27, %v7214_v56  ;;  %v801_v26 = vsel %vm542_vm0, %v799_v14, %v800_v18  ;;  %v803_v36 = vsel %vm542_vm0, %v800_v18, %v802_v19 }
  0x35   : > { %2542 = vmatpush1.bf16.msra.mxu0 %v6687_v17  ;;  %v2264_v17 = vadd.f32 %v2155_v1, %v2020_v5  ;;  %v7291_v31 = vadd.f32 %v7272_v60, %v2263_v13  ;;  %v1190_v38 = vmul.f32 %v7167_v27, %v7223_v62  ;;  %v908_v41 = vadd.f32 %v801_v26, %v664_v40  ;;  %v7319_v40 = vld [vmem:[%s7117_s14 + $0x58] sm:$0x3] }
  0x36   : > { %v909_v42 = vadd.f32 %v803_v36, %v665_v61  ;;  %v1046_v43 = vsel %vm1038_vm1, %v1044_v24, %v1045_v32  ;;  %v1048_v20 = vsel %vm1038_vm1, %v1045_v32, %v1047_v33  ;;  %v1258_v46 = vmul.f32 %v7170_v28, %v7214_v56 }
  0x37   : > { %10965 = vst [vmem:[#allocation11_spill] sm:$0xff] %v7291_v31  ;;  %v7296_v37 = vadd.f32 %v7272_v60, %v2264_v17  ;;  %v1259_v47 = vmul.f32 %v7170_v28, %v7223_v62  ;;  %v1260_v48 = vmul.f32 %v7170_v28, %v7226_v4  ;;  %v1153_v49 = vadd.f32 %v1046_v43, %v908_v41 }
  0x38   : > { %v1154_v50 = vadd.f32 %v1048_v20, %v909_v42  ;;  %v1502_v51 = vmul.f32 %v7173_v29, %v7214_v56  ;;  %v1503_v52 = vmul.f32 %v7173_v29, %v7223_v62  ;;  %v1356_v53 = vrot.slane %v1258_v46, 1 }
  0x39   : > { %10966 = vst [vmem:[#allocation12_spill] sm:$0xff] %v7296_v37  ;;  %v2334_v44 = vpack.c.bf16 %v7296_v37, %v7291_v31  ;;  %v1357_v54 = vrot.slane %v1259_v47, 1  ;;  %v1359_v55 = vrot.slane %v1260_v48, 1  ;;  %v1504_v57 = vmul.f32 %v7173_v29, %v7226_v4 }
  0x3a   : > { %v1221_v58 = vadd.f32 %v1189_v25, %v1153_v49  ;;  %v1222_v59 = vadd.f32 %v1190_v38, %v1154_v50  ;;  %v1600_v61 = vrot.slane %v1502_v51, 2  ;;  %v1601_v63 = vrot.slane %v1503_v52, 2 }
  0x3b   : > { %2560 = vmatmul.mubr.bf16.vlgmr.msra.gmra.mrb[0].mxu0 %v2334_v44  ;;  %6381 = vmatprep.mubr.bf16.mxu1 %v2334_v44  ;;  %v1358_v0 = vsel %vm542_vm0, %v1356_v53, %v1357_v54  ;;  %v1360_v1 = vsel %vm542_vm0, %v1357_v54, %v1359_v55  ;;  %v1603_v3 = vrot.slane %v1504_v57, 2  ;;  %v1745_v5 = vmul.f32 %v7177_v30, %v7303_v39 }
  0x3c   : > { %2569 = vmatprep.mubr.bf16.mxu0 %v10891_v2  ;;  %v1465_v6 = vadd.f32 %v1358_v0, %v1221_v58  ;;  %v1466_v8 = vadd.f32 %v1360_v1, %v1222_v59  ;;  %v1602_v9 = vsel %vm1038_vm1, %v1600_v61, %v1601_v63  ;;  %v1746_v13 = vmul.f32 %v7177_v30, %v7310_v45 }
  0x3d   : > { %v1604_v14 = vsel %vm1038_vm1, %v1601_v63, %v1603_v3  ;;  %v1814_v15 = vmul.f32 %v7245_v34, %v7303_v39  ;;  %v1815_v16 = vmul.f32 %v7245_v34, %v7310_v45  ;;  %v1816_v17 = vmul.f32 %v7245_v34, %v7319_v40 }
  0x3e   : > { %v1709_v18 = vadd.f32 %v1602_v9, %v1465_v6  ;;  %v1710_v19 = vadd.f32 %v1604_v14, %v1466_v8  ;;  %v2058_v24 = vmul.f32 %v7249_v35, %v7303_v39  ;;  %v2059_v32 = vmul.f32 %v7249_v35, %v7310_v45 }
  0x3f   : > { %v1912_v33 = vrot.slane %v1814_v15, 1  ;;  %v1913_v25 = vrot.slane %v1815_v16, 1  ;;  %v1915_v26 = vrot.slane %v1816_v17, 1  ;;  %v2060_v36 = vmul.f32 %v7249_v35, %v7319_v40 }
  0x40   : > { %v1777_v38 = vadd.f32 %v1745_v5, %v1709_v18  ;;  %v1778_v41 = vadd.f32 %v1746_v13, %v1710_v19  ;;  %v2156_v42 = vrot.slane %v2058_v24, 2  ;;  %v2157_v43 = vrot.slane %v2059_v32, 2  ;;  %v7387_v19 = vld [vmem:[%s7117_s14 + $0x68] sm:$0xff] }
  0x41   : > { %v1914_v20 = vsel %vm542_vm0, %v1912_v33, %v1913_v25  ;;  %v1916_v44 = vsel %vm542_vm0, %v1913_v25, %v1915_v26  ;;  %v2159_v46 = vrot.slane %v2060_v36, 2  ;;  %v666_v47 = vmul.f32 %v7149_v21, %v7214_v56 }
  0x42   : > { %v2021_v48 = vadd.f32 %v1914_v20, %v1777_v38  ;;  %v2022_v49 = vadd.f32 %v1916_v44, %v1778_v41  ;;  %v2158_v50 = vsel %vm1038_vm1, %v2156_v42, %v2157_v43  ;;  %v667_v51 = vmul.f32 %v7149_v21, %v7223_v62  ;;  %v7403_v42 = vld [vmem:[%s7117_s14 + $0x70] sm:$0x3] }
  0x43   : > { %v2160_v52 = vsel %vm1038_vm1, %v2157_v43, %v2159_v46  ;;  %v704_v53 = vmul.f32 %v7152_v22, %v7214_v56  ;;  %v705_v54 = vmul.f32 %v7152_v22, %v7223_v62  ;;  %v706_v55 = vmul.f32 %v7152_v22, %v7226_v4 }
  0x44   : > { %v2265_v57 = vadd.f32 %v2158_v50, %v2021_v48  ;;  %v2266_v58 = vadd.f32 %v2160_v52, %v2022_v49  ;;  %v948_v59 = vmul.f32 %v7155_v23, %v7214_v56  ;;  %v949_v61 = vmul.f32 %v7155_v23, %v7223_v62 }
  0x45   : > { %v804_v63 = vrot.slane %v704_v53, 1  ;;  %v805_v0 = vrot.slane %v705_v54, 1  ;;  %v807_v1 = vrot.slane %v706_v55, 1  ;;  %v950_v3 = vmul.f32 %v7155_v23, %v7226_v4  ;;  %v7383_v4 = vld [vmem:[%s7117_s14 + $0x60] sm:$0xff] }
  0x46   : > { %v7369_v5 = vadd.f32 %v7272_v60, %v2265_v57  ;;  %v7372_v6 = vadd.f32 %v7272_v60, %v2266_v58  ;;  %v1049_v8 = vrot.slane %v948_v59, 2  ;;  %v1050_v9 = vrot.slane %v949_v61, 2 }
  0x47   : > { %v806_v56 = vsel %vm542_vm0, %v804_v63, %v805_v0  ;;  %v808_v13 = vsel %vm542_vm0, %v805_v0, %v807_v1  ;;  %v1052_v62 = vrot.slane %v950_v3, 2  ;;  %v1191_v14 = vmul.f32 %v7167_v27, %v7303_v39 }
  0x48   : > { %10967 = vst [vmem:[#allocation13_spill] sm:$0xff] %v7369_v5  ;;  %10968 = vst [vmem:[#allocation14_spill] sm:$0xff] %v7372_v6  ;;  %v7380_v15 = vpack.c.bf16 %v7372_v6, %v7369_v5  ;;  %v910_v16 = vadd.f32 %v806_v56, %v666_v47  ;;  %v911_v17 = vadd.f32 %v808_v13, %v667_v51 }
  0x49   : > { %v1051_v18 = vsel %vm1038_vm1, %v1049_v8, %v1050_v9  ;;  %v1053_v24 = vsel %vm1038_vm1, %v1050_v9, %v1052_v62  ;;  %v1192_v32 = vmul.f32 %v7167_v27, %v7310_v45  ;;  %v1261_v33 = vmul.f32 %v7170_v28, %v7303_v39 }
  0x4a   : > { %v1262_v25 = vmul.f32 %v7170_v28, %v7310_v45  ;;  %2570 = vmatmul.mubr.bf16.gmra.mrb[4].mxu0 %v7380_v15  ;;  %v1155_v26 = vadd.f32 %v1051_v18, %v910_v16  ;;  %v1156_v36 = vadd.f32 %v1053_v24, %v911_v17  ;;  %v1263_v38 = vmul.f32 %v7170_v28, %v7319_v40 }
  0x4b   : > { %v1505_v41 = vmul.f32 %v7173_v29, %v7303_v39  ;;  %2579 = vmatprep.mubr.bf16.mxu0 %v10891_v2  ;;  %v1361_v43 = vrot.slane %v1261_v33, 1  ;;  %v1506_v44 = vmul.f32 %v7173_v29, %v7310_v45  ;;  %v1507_v46 = vmul.f32 %v7173_v29, %v7319_v40 }
  0x4c   : > { %v1362_v20 = vrot.slane %v1262_v25, 1  ;;  %v1223_v47 = vadd.f32 %v1191_v14, %v1155_v26  ;;  %v1224_v48 = vadd.f32 %v1192_v32, %v1156_v36  ;;  %v1364_v49 = vrot.slane %v1263_v38, 1 }
  0x4d   : > { %v1605_v50 = vrot.slane %v1505_v41, 2  ;;  %v1606_v52 = vrot.slane %v1506_v44, 2  ;;  %v1608_v53 = vrot.slane %v1507_v46, 2  ;;  %v1747_v54 = vmul.f32 %v7177_v30, %v7383_v4 }
  0x4e   : > { %v1363_v51 = vsel %vm542_vm0, %v1361_v43, %v1362_v20  ;;  %v1365_v55 = vsel %vm542_vm0, %v1362_v20, %v1364_v49  ;;  %v1748_v58 = vmul.f32 %v7177_v30, %v7387_v19  ;;  %v1817_v59 = vmul.f32 %v7245_v34, %v7383_v4 }
  0x4f   : > { %v1467_v57 = vadd.f32 %v1363_v51, %v1223_v47  ;;  %v1468_v61 = vadd.f32 %v1365_v55, %v1224_v48  ;;  %v1607_v63 = vsel %vm1038_vm1, %v1605_v50, %v1606_v52  ;;  %v1609_v0 = vsel %vm1038_vm1, %v1606_v52, %v1608_v53 }
  0x50   : > { %v1818_v1 = vmul.f32 %v7245_v34, %v7387_v19  ;;  %v1819_v8 = vmul.f32 %v7245_v34, %v7403_v42  ;;  %v1917_v9 = vrot.slane %v1817_v59, 1  ;;  %v2061_v56 = vmul.f32 %v7249_v35, %v7383_v4 }
  0x51   : > { %v1711_v3 = vadd.f32 %v1607_v63, %v1467_v57  ;;  %v1712_v13 = vadd.f32 %v1609_v0, %v1468_v61  ;;  %v2062_v14 = vmul.f32 %v7249_v35, %v7387_v19  ;;  %v2063_v16 = vmul.f32 %v7249_v35, %v7403_v42 }
  0x52   : > { %v1918_v62 = vrot.slane %v1818_v1, 1  ;;  %v1920_v18 = vrot.slane %v1819_v8, 1  ;;  %v2161_v24 = vrot.slane %v2061_v56, 2  ;;  %v668_v32 = vmul.f32 %v7149_v21, %v7303_v39 }
  0x53   : > { %v1779_v17 = vadd.f32 %v1747_v54, %v1711_v3  ;;  %v1780_v33 = vadd.f32 %v1748_v58, %v1712_v13  ;;  %v2162_v26 = vrot.slane %v2062_v14, 2  ;;  %v2164_v36 = vrot.slane %v2063_v16, 2  ;;  %v7468_v13 = vld [vmem:[%s7117_s14 + $0x78] sm:$0xff] }
  0x54   : > { %v1919_v25 = vsel %vm542_vm0, %v1917_v9, %v1918_v62  ;;  %v1921_v38 = vsel %vm542_vm0, %v1918_v62, %v1920_v18  ;;  %v669_v43 = vmul.f32 %v7149_v21, %v7310_v45  ;;  %v707_v20 = vmul.f32 %v7152_v22, %v7303_v39 }
  0x55   : > { %v2023_v41 = vadd.f32 %v1919_v25, %v1779_v17  ;;  %v2024_v44 = vadd.f32 %v1921_v38, %v1780_v33  ;;  %v2163_v46 = vsel %vm1038_vm1, %v2161_v24, %v2162_v26  ;;  %v2165_v47 = vsel %vm1038_vm1, %v2162_v26, %v2164_v36  ;;  %v7478_v33 = vld [vmem:[%s7117_s14 + $0x80] sm:$0xff] }
  0x56   : > { %v708_v48 = vmul.f32 %v7152_v22, %v7310_v45  ;;  %v709_v50 = vmul.f32 %v7152_v22, %v7319_v40  ;;  %v809_v51 = vrot.slane %v707_v20, 1  ;;  %v951_v52 = vmul.f32 %v7155_v23, %v7303_v39 }
  0x57   : > { %v2267_v49 = vadd.f32 %v2163_v46, %v2023_v41  ;;  %v2268_v53 = vadd.f32 %v2165_v47, %v2024_v44  ;;  %v952_v55 = vmul.f32 %v7155_v23, %v7310_v45  ;;  %v953_v57 = vmul.f32 %v7155_v23, %v7319_v40  ;;  %v7490_v46 = vld [vmem:[%s7117_s14 + $0x88] sm:$0x3] }
  0x58   : > { %v810_v54 = vrot.slane %v708_v48, 1  ;;  %v812_v59 = vrot.slane %v709_v50, 1  ;;  %v1054_v61 = vrot.slane %v951_v52, 2  ;;  %v1193_v63 = vmul.f32 %v7167_v27, %v7383_v4 }
  0x59   : > { %v7450_v58 = vadd.f32 %v7272_v60, %v2267_v49  ;;  %v7455_v0 = vadd.f32 %v7272_v60, %v2268_v53  ;;  %v1055_v1 = vrot.slane %v952_v55, 2  ;;  %v1057_v3 = vrot.slane %v953_v57, 2 }
  0x5a   : > { %v811_v39 = vsel %vm542_vm0, %v809_v51, %v810_v54  ;;  %v813_v45 = vsel %vm542_vm0, %v810_v54, %v812_v59  ;;  %v1194_v40 = vmul.f32 %v7167_v27, %v7387_v19  ;;  %v1264_v9 = vmul.f32 %v7170_v28, %v7383_v4 }
  0x5b   : > { %10969 = vst [vmem:[#allocation15_spill] sm:$0xff] %v7450_v58  ;;  %10970 = vst [vmem:[#allocation16_spill] sm:$0xff] %v7455_v0  ;;  %v912_v8 = vadd.f32 %v811_v39, %v668_v32  ;;  %v7465_v56 = vpack.c.bf16 %v7455_v0, %v7450_v58  ;;  %v913_v62 = vadd.f32 %v813_v45, %v669_v43 }
  0x5c   : > { %v1056_v14 = vsel %vm1038_vm1, %v1054_v61, %v1055_v1  ;;  %v1058_v16 = vsel %vm1038_vm1, %v1055_v1, %v1057_v3  ;;  %v1265_v18 = vmul.f32 %v7170_v28, %v7387_v19  ;;  %v1266_v24 = vmul.f32 %v7170_v28, %v7403_v42 }
  0x5d   : > { %v1157_v17 = vadd.f32 %v1056_v14, %v912_v8  ;;  %v1366_v32 = vrot.slane %v1264_v9, 1  ;;  %2580 = vmatmul.mubr.bf16.gmra.mrb[8].mxu0 %v7465_v56  ;;  %v1158_v25 = vadd.f32 %v1058_v16, %v913_v62  ;;  %v1508_v26 = vmul.f32 %v7173_v29, %v7383_v4 }
  0x5e   : > { %v1509_v36 = vmul.f32 %v7173_v29, %v7387_v19  ;;  %v1510_v38 = vmul.f32 %v7173_v29, %v7403_v42  ;;  %2589 = vmatprep.mubr.bf16.mxu0 %v10891_v2  ;;  %v1367_v43 = vrot.slane %v1265_v18, 1  ;;  %v1369_v20 = vrot.slane %v1266_v24, 1 }
  0x5f   : > { %v1225_v41 = vadd.f32 %v1193_v63, %v1157_v17  ;;  %v1749_v44 = vmul.f32 %v7177_v30, %v7468_v13  ;;  %v1226_v47 = vadd.f32 %v1194_v40, %v1158_v25  ;;  %v1610_v48 = vrot.slane %v1508_v26, 2 }
  0x60   : > { %v1611_v49 = vrot.slane %v1509_v36, 2  ;;  %v1613_v50 = vrot.slane %v1510_v38, 2  ;;  %v1368_v51 = vsel %vm542_vm0, %v1366_v32, %v1367_v43  ;;  %v1370_v52 = vsel %vm542_vm0, %v1367_v43, %v1369_v20 }
  0x61   : > { %v1750_v53 = vmul.f32 %v7177_v30, %v7478_v33  ;;  %v1820_v54 = vmul.f32 %v7245_v34, %v7468_v13  ;;  %v1469_v55 = vadd.f32 %v1368_v51, %v1225_v41  ;;  %v1470_v57 = vadd.f32 %v1370_v52, %v1226_v47 }
  0x62   : > { %v1612_v59 = vsel %vm1038_vm1, %v1610_v48, %v1611_v49  ;;  %v1614_v61 = vsel %vm1038_vm1, %v1611_v49, %v1613_v50  ;;  %v1821_v63 = vmul.f32 %v7245_v34, %v7478_v33  ;;  %v1822_v39 = vmul.f32 %v7245_v34, %v7490_v46 }
  0x63   : > { %v1922_v1 = vrot.slane %v1820_v54, 1  ;;  %v2064_v3 = vmul.f32 %v7249_v35, %v7468_v13  ;;  %v1713_v45 = vadd.f32 %v1612_v59, %v1469_v55  ;;  %v1714_v8 = vadd.f32 %v1614_v61, %v1470_v57 }
  0x64   : > { %v2065_v40 = vmul.f32 %v7249_v35, %v7478_v33  ;;  %v2066_v9 = vmul.f32 %v7249_v35, %v7490_v46  ;;  %v1923_v62 = vrot.slane %v1821_v63, 1  ;;  %v1925_v14 = vrot.slane %v1822_v39, 1 }
  0x65   : > { %v2166_v16 = vrot.slane %v2064_v3, 2  ;;  %v670_v17 = vmul.f32 %v7149_v21, %v7383_v4  ;;  %v1781_v18 = vadd.f32 %v1749_v44, %v1713_v45  ;;  %v1782_v24 = vadd.f32 %v1750_v53, %v1714_v8 }
  0x66   : > { %v2167_v32 = vrot.slane %v2065_v40, 2  ;;  %v2169_v25 = vrot.slane %v2066_v9, 2  ;;  %v1924_v26 = vsel %vm542_vm0, %v1922_v1, %v1923_v62  ;;  %v1926_v36 = vsel %vm542_vm0, %v1923_v62, %v1925_v14  ;;  %v7549_v9 = vld [vmem:[%s7117_s14 + $0x90] sm:$0xff] }
  0x67   : > { %v671_v38 = vmul.f32 %v7149_v21, %v7387_v19  ;;  %v710_v41 = vmul.f32 %v7152_v22, %v7383_v4  ;;  %v2025_v43 = vadd.f32 %v1924_v26, %v1781_v18  ;;  %v2026_v20 = vadd.f32 %v1926_v36, %v1782_v24  ;;  %v7559_v26 = vld [vmem:[%s7117_s14 + $0x98] sm:$0xff] }
  0x68   : > { %v2168_v47 = vsel %vm1038_vm1, %v2166_v16, %v2167_v32  ;;  %v2170_v48 = vsel %vm1038_vm1, %v2167_v32, %v2169_v25  ;;  %v711_v44 = vmul.f32 %v7152_v22, %v7387_v19  ;;  %v712_v49 = vmul.f32 %v7152_v22, %v7403_v42 }
  0x69   : > { %v814_v50 = vrot.slane %v710_v41, 1  ;;  %v954_v51 = vmul.f32 %v7155_v23, %v7383_v4  ;;  %v2269_v52 = vadd.f32 %v2168_v47, %v2025_v43  ;;  %v2270_v53 = vadd.f32 %v2170_v48, %v2026_v20 }
  0x6a   : > { %v955_v54 = vmul.f32 %v7155_v23, %v7387_v19  ;;  %v956_v55 = vmul.f32 %v7155_v23, %v7403_v42  ;;  %v815_v57 = vrot.slane %v711_v44, 1  ;;  %v817_v59 = vrot.slane %v712_v49, 1  ;;  %v7571_v44 = vld [vmem:[%s7117_s14 + $0xa0] sm:$0x3] }
  0x6b   : > { %v1059_v61 = vrot.slane %v954_v51, 2  ;;  %v1195_v63 = vmul.f32 %v7167_v27, %v7468_v13  ;;  %v7533_v39 = vadd.f32 %v7272_v60, %v2269_v52  ;;  %v7536_v4 = vadd.f32 %v7272_v60, %v2270_v53 }
  0x6c   : > { %v1060_v1 = vrot.slane %v955_v54, 2  ;;  %v1062_v3 = vrot.slane %v956_v55, 2  ;;  %v816_v19 = vsel %vm542_vm0, %v814_v50, %v815_v57  ;;  %v818_v45 = vsel %vm542_vm0, %v815_v57, %v817_v59 }
  0x6d   : > { %10971 = vst [vmem:[#allocation17_spill] sm:$0xff] %v7533_v39  ;;  %10972 = vst [vmem:[#allocation18_spill] sm:$0xff] %v7536_v4  ;;  %v1196_v42 = vmul.f32 %v7167_v27, %v7478_v33  ;;  %v1267_v8 = vmul.f32 %v7170_v28, %v7468_v13  ;;  %v7546_v40 = vpack.c.bf16 %v7536_v4, %v7533_v39 }
  0x6e   : > { %v914_v62 = vadd.f32 %v816_v19, %v670_v17  ;;  %v915_v14 = vadd.f32 %v818_v45, %v671_v38  ;;  %v1061_v16 = vsel %vm1038_vm1, %v1059_v61, %v1060_v1  ;;  %v1063_v18 = vsel %vm1038_vm1, %v1060_v1, %v1062_v3 }
  0x6f   : > { %v1268_v24 = vmul.f32 %v7170_v28, %v7478_v33  ;;  %v1269_v32 = vmul.f32 %v7170_v28, %v7490_v46  ;;  %v1371_v25 = vrot.slane %v1267_v8, 1  ;;  %2590 = vmatmul.mubr.bf16.gmra.mrb[12].mxu0 %v7546_v40  ;;  %v1511_v17 = vmul.f32 %v7173_v29, %v7468_v13 }
  0x70   : > { %v1159_v36 = vadd.f32 %v1061_v16, %v914_v62  ;;  %v1160_v41 = vadd.f32 %v1063_v18, %v915_v14  ;;  %v1512_v38 = vmul.f32 %v7173_v29, %v7478_v33  ;;  %2599 = vmatprep.mubr.bf16.mxu0 %v10891_v2  ;;  %v1513_v47 = vmul.f32 %v7173_v29, %v7490_v46 }
  0x71   : > { %v1372_v43 = vrot.slane %v1268_v24, 1  ;;  %v1374_v20 = vrot.slane %v1269_v32, 1  ;;  %v1751_v48 = vmul.f32 %v7177_v30, %v7549_v9  ;;  %v1615_v51 = vrot.slane %v1511_v17, 2 }
  0x72   : > { %v1227_v49 = vadd.f32 %v1195_v63, %v1159_v36  ;;  %v1228_v50 = vadd.f32 %v1196_v42, %v1160_v41  ;;  %v1616_v52 = vrot.slane %v1512_v38, 2  ;;  %v1618_v55 = vrot.slane %v1513_v47, 2 }
  0x73   : > { %v1373_v53 = vsel %vm542_vm0, %v1371_v25, %v1372_v43  ;;  %v1375_v54 = vsel %vm542_vm0, %v1372_v43, %v1374_v20  ;;  %v1752_v57 = vmul.f32 %v7177_v30, %v7559_v26  ;;  %v1823_v3 = vmul.f32 %v7245_v34, %v7549_v9 }
  0x74   : > { %v1471_v59 = vadd.f32 %v1373_v53, %v1227_v49  ;;  %v1472_v61 = vadd.f32 %v1375_v54, %v1228_v50  ;;  %v1617_v1 = vsel %vm1038_vm1, %v1615_v51, %v1616_v52  ;;  %v1619_v63 = vsel %vm1038_vm1, %v1616_v52, %v1618_v55 }
  0x75   : > { %v1824_v19 = vmul.f32 %v7245_v34, %v7559_v26  ;;  %v1825_v45 = vmul.f32 %v7245_v34, %v7571_v44  ;;  %v2067_v42 = vmul.f32 %v7249_v35, %v7549_v9  ;;  %v1927_v14 = vrot.slane %v1823_v3, 1 }
  0x76   : > { %v1715_v8 = vadd.f32 %v1617_v1, %v1471_v59  ;;  %v1716_v62 = vadd.f32 %v1619_v63, %v1472_v61  ;;  %v2068_v16 = vmul.f32 %v7249_v35, %v7559_v26  ;;  %v2069_v32 = vmul.f32 %v7249_v35, %v7571_v44 }
  0x77   : > { %v1928_v18 = vrot.slane %v1824_v19, 1  ;;  %v1930_v24 = vrot.slane %v1825_v45, 1  ;;  %v2171_v25 = vrot.slane %v2067_v42, 2  ;;  %v672_v38 = vmul.f32 %v7149_v21, %v7468_v13 }
  0x78   : > { %v1783_v36 = vadd.f32 %v1751_v48, %v1715_v8  ;;  %v1784_v41 = vadd.f32 %v1752_v57, %v1716_v62  ;;  %v2172_v17 = vrot.slane %v2068_v16, 2  ;;  %v2174_v47 = vrot.slane %v2069_v32, 2 }
  0x79   : > { %v1929_v43 = vsel %vm542_vm0, %v1927_v14, %v1928_v18  ;;  %v1931_v20 = vsel %vm542_vm0, %v1928_v18, %v1930_v24  ;;  %v673_v49 = vmul.f32 %v7149_v21, %v7478_v33  ;;  %v713_v48 = vmul.f32 %v7152_v22, %v7468_v13 }
  0x7a   : > { %v2027_v50 = vadd.f32 %v1929_v43, %v1783_v36  ;;  %v2028_v51 = vadd.f32 %v1931_v20, %v1784_v41  ;;  %v2173_v52 = vsel %vm1038_vm1, %v2171_v25, %v2172_v17  ;;  %v2175_v53 = vsel %vm1038_vm1, %v2172_v17, %v2174_v47  ;;  %v7637_v47 = vld [vmem:[%s7117_s14 + $0xa8] sm:$0xff] }
  0x7b   : > { %v714_v54 = vmul.f32 %v7152_v22, %v7478_v33  ;;  %v715_v55 = vmul.f32 %v7152_v22, %v7490_v46  ;;  %v957_v57 = vmul.f32 %v7155_v23, %v7468_v13  ;;  %v819_v1 = vrot.slane %v713_v48, 1 }
  0x7c   : > { %v2271_v59 = vadd.f32 %v2173_v52, %v2027_v50  ;;  %v2272_v61 = vadd.f32 %v2175_v53, %v2028_v51  ;;  %v958_v3 = vmul.f32 %v7155_v23, %v7478_v33  ;;  %v959_v45 = vmul.f32 %v7155_v23, %v7490_v46  ;;  %v7645_v52 = vld [vmem:[%s7117_s14 + $0xb0] sm:$0xff] }
  0x7d   : > { %v820_v63 = vrot.slane %v714_v54, 1  ;;  %v822_v19 = vrot.slane %v715_v55, 1  ;;  %v1064_v42 = vrot.slane %v957_v57, 2  ;;  %v1197_v14 = vmul.f32 %v7167_v27, %v7549_v9  ;;  %v7650_v57 = vld [vmem:[%s7117_s14 + $0xb8] sm:$0x3] }
  0x7e   : > { %v7612_v8 = vadd.f32 %v7272_v60, %v2271_v59  ;;  %v7615_v62 = vadd.f32 %v7272_v60, %v2272_v61  ;;  %v1065_v13 = vrot.slane %v958_v3, 2  ;;  %v1067_v18 = vrot.slane %v959_v45, 2 }
  0x7f   : > { %v821_v16 = vsel %vm542_vm0, %v819_v1, %v820_v63  ;;  %v823_v33 = vsel %vm542_vm0, %v820_v63, %v822_v19  ;;  %v1198_v46 = vmul.f32 %v7167_v27, %v7559_v26  ;;  %v1270_v17 = vmul.f32 %v7170_v28, %v7549_v9 }
  0x80   : > { %10973 = vst [vmem:[#allocation19_spill] sm:$0xff] %v7612_v8  ;;  %10974 = vst [vmem:[#allocation20_spill] sm:$0xff] %v7615_v62  ;;  %v7625_v24 = vpack.c.bf16 %v7615_v62, %v7612_v8  ;;  %v916_v32 = vadd.f32 %v821_v16, %v672_v38  ;;  %v917_v25 = vadd.f32 %v823_v33, %v673_v49 }
  0x81   : > { %v1066_v36 = vsel %vm1038_vm1, %v1064_v42, %v1065_v13  ;;  %v1068_v41 = vsel %vm1038_vm1, %v1065_v13, %v1067_v18  ;;  %v1271_v43 = vmul.f32 %v7170_v28, %v7559_v26  ;;  %v1272_v20 = vmul.f32 %v7170_v28, %v7571_v44 }
  0x82   : > { %2600 = vmatmul.mubr.bf16.gmra.mrb[16].mxu0 %v7625_v24  ;;  %v1161_v38 = vadd.f32 %v1066_v36, %v916_v32  ;;  %v1162_v49 = vadd.f32 %v1068_v41, %v917_v25  ;;  %v1514_v50 = vmul.f32 %v7173_v29, %v7549_v9  ;;  %v1515_v51 = vmul.f32 %v7173_v29, %v7559_v26 }
  0x83   : > { %2609 = vmatprep.mubr.bf16.mxu0 %v10891_v2  ;;  %v1376_v48 = vrot.slane %v1270_v17, 1  ;;  %v1377_v53 = vrot.slane %v1271_v43, 1  ;;  %v1379_v54 = vrot.slane %v1272_v20, 1  ;;  %v1516_v55 = vmul.f32 %v7173_v29, %v7571_v44 }
  0x84   : > { %v1229_v59 = vadd.f32 %v1197_v14, %v1161_v38  ;;  %v1230_v61 = vadd.f32 %v1198_v46, %v1162_v49  ;;  %v1620_v1 = vrot.slane %v1514_v50, 2  ;;  %v1621_v3 = vrot.slane %v1515_v51, 2 }
  0x85   : > { %v1378_v63 = vsel %vm542_vm0, %v1376_v48, %v1377_v53  ;;  %v1380_v19 = vsel %vm542_vm0, %v1377_v53, %v1379_v54  ;;  %v1623_v45 = vrot.slane %v1516_v55, 2  ;;  %v1753_v42 = vmul.f32 %v7177_v30, %v7637_v47 }
  0x86   : > { %v1473_v13 = vadd.f32 %v1378_v63, %v1229_v59  ;;  %v1474_v16 = vadd.f32 %v1380_v19, %v1230_v61  ;;  %v1622_v33 = vsel %vm1038_vm1, %v1620_v1, %v1621_v3  ;;  %v1754_v18 = vmul.f32 %v7177_v30, %v7645_v52 }
  0x87   : > { %v1624_v14 = vsel %vm1038_vm1, %v1621_v3, %v1623_v45  ;;  %v1826_v46 = vmul.f32 %v7245_v34, %v7637_v47  ;;  %v1827_v32 = vmul.f32 %v7245_v34, %v7645_v52  ;;  %v1828_v25 = vmul.f32 %v7245_v34, %v7650_v57 }
  0x88   : > { %v1717_v36 = vadd.f32 %v1622_v33, %v1473_v13  ;;  %v1718_v41 = vadd.f32 %v1624_v14, %v1474_v16  ;;  %v2070_v17 = vmul.f32 %v7249_v35, %v7637_v47  ;;  %v2071_v43 = vmul.f32 %v7249_v35, %v7645_v52 }
  0x89   : > { %v1932_v20 = vrot.slane %v1826_v46, 1  ;;  %v1933_v38 = vrot.slane %v1827_v32, 1  ;;  %v1935_v49 = vrot.slane %v1828_v25, 1  ;;  %v2072_v50 = vmul.f32 %v7249_v35, %v7650_v57 }
  0x8a   : > { %v1785_v51 = vadd.f32 %v1753_v42, %v1717_v36  ;;  %v1786_v48 = vadd.f32 %v1754_v18, %v1718_v41  ;;  %v2176_v53 = vrot.slane %v2070_v17, 2  ;;  %v2177_v54 = vrot.slane %v2071_v43, 2 }
  0x8b   : > { %v1934_v55 = vsel %vm542_vm0, %v1932_v20, %v1933_v38  ;;  %v1936_v59 = vsel %vm542_vm0, %v1933_v38, %v1935_v49  ;;  %v2179_v61 = vrot.slane %v2072_v50, 2  ;;  %v674_v1 = vmul.f32 %v7149_v21, %v7549_v9  ;;  %v7698_v20 = vld [vmem:[%s10876_s2] ss:$0 sm:$0xff] }
  0x8c   : > { %v2029_v3 = vadd.f32 %v1934_v55, %v1785_v51  ;;  %v2030_v63 = vadd.f32 %v1936_v59, %v1786_v48  ;;  %v2178_v19 = vsel %vm1038_vm1, %v2176_v53, %v2177_v54  ;;  %v675_v45 = vmul.f32 %v7149_v21, %v7559_v26 }
  0x8d   : > { %v2180_v42 = vsel %vm1038_vm1, %v2177_v54, %v2179_v61  ;;  %v716_v13 = vmul.f32 %v7152_v22, %v7549_v9  ;;  %v717_v16 = vmul.f32 %v7152_v22, %v7559_v26  ;;  %v718_v33 = vmul.f32 %v7152_v22, %v7571_v44 }
  0x8e   : > { %v2273_v18 = vadd.f32 %v2178_v19, %v2029_v3  ;;  %v2274_v14 = vadd.f32 %v2180_v42, %v2030_v63  ;;  %v960_v46 = vmul.f32 %v7155_v23, %v7549_v9  ;;  %v961_v32 = vmul.f32 %v7155_v23, %v7559_v26  ;;  %v7721_v63 = vld [vmem:[%s7117_s14 + $0xc0] sm:$0xff] }
  0x8f   : > { %v824_v25 = vrot.slane %v716_v13, 1  ;;  %v825_v36 = vrot.slane %v717_v16, 1  ;;  %v827_v41 = vrot.slane %v718_v33, 1  ;;  %v962_v17 = vmul.f32 %v7155_v23, %v7571_v44  ;;  %v7729_v13 = vld [vmem:[%s7117_s14 + $0xc8] sm:$0xff] }
  0x90   : > { %v7693_v43 = vadd.f32 %v7272_v60, %v2273_v18  ;;  %v7701_v38 = vadd.f32 %v7698_v20, %v2274_v14  ;;  %v1069_v9 = vrot.slane %v960_v46, 2  ;;  %v1070_v26 = vrot.slane %v961_v32, 2 }
  0x91   : > { %v826_v49 = vsel %vm542_vm0, %v824_v25, %v825_v36  ;;  %v828_v50 = vsel %vm542_vm0, %v825_v36, %v827_v41  ;;  %v1072_v51 = vrot.slane %v962_v17, 2  ;;  %v1199_v60 = vmul.f32 %v7167_v27, %v7637_v47  ;;  %v7736_v41 = vld [vmem:[%s7117_s14 + $0xd0] sm:$0x3] }
  0x92   : > { %10975 = vst [vmem:[#allocation21_spill] sm:$0xff] %v7693_v43  ;;  %10976 = vst [vmem:[#allocation22_spill] sm:$0xff] %v7701_v38  ;;  %v7709_v44 = vpack.c.bf16 %v7701_v38, %v7693_v43  ;;  %v918_v48 = vadd.f32 %v826_v49, %v674_v1  ;;  %v919_v53 = vadd.f32 %v828_v50, %v675_v45 }
  0x93   : > { %v1071_v54 = vsel %vm1038_vm1, %v1069_v9, %v1070_v26  ;;  %v1073_v55 = vsel %vm1038_vm1, %v1070_v26, %v1072_v51  ;;  %v1200_v59 = vmul.f32 %v7167_v27, %v7645_v52  ;;  %v1273_v61 = vmul.f32 %v7170_v28, %v7637_v47 }
  0x94   : > { %v1274_v3 = vmul.f32 %v7170_v28, %v7645_v52  ;;  %2610 = vmatmul.mubr.bf16.gmra.mrb[20].mxu0 %v7709_v44  ;;  %v1163_v1 = vadd.f32 %v1071_v54, %v918_v48  ;;  %v1164_v19 = vadd.f32 %v1073_v55, %v919_v53  ;;  %v1275_v45 = vmul.f32 %v7170_v28, %v7650_v57 }
  0x95   : > { %v1517_v42 = vmul.f32 %v7173_v29, %v7637_v47  ;;  %2619 = vmatprep.mubr.bf16.mxu0 %v10891_v2  ;;  %v1381_v16 = vrot.slane %v1273_v61, 1  ;;  %v1518_v18 = vmul.f32 %v7173_v29, %v7645_v52  ;;  %v1519_v14 = vmul.f32 %v7173_v29, %v7650_v57 }
  0x96   : > { %v1382_v33 = vrot.slane %v1274_v3, 1  ;;  %v1231_v46 = vadd.f32 %v1199_v60, %v1163_v1  ;;  %v1232_v32 = vadd.f32 %v1200_v59, %v1164_v19  ;;  %v1384_v25 = vrot.slane %v1275_v45, 1 }
  0x97   : > { %v1625_v36 = vrot.slane %v1517_v42, 2  ;;  %v1626_v9 = vrot.slane %v1518_v18, 2  ;;  %v1628_v26 = vrot.slane %v1519_v14, 2  ;;  %v1755_v49 = vmul.f32 %v7177_v30, %v7721_v63 }
  0x98   : > { %v1383_v17 = vsel %vm542_vm0, %v1381_v16, %v1382_v33  ;;  %v1385_v50 = vsel %vm542_vm0, %v1382_v33, %v1384_v25  ;;  %v1756_v48 = vmul.f32 %v7177_v30, %v7729_v13  ;;  %v1829_v60 = vmul.f32 %v7245_v34, %v7721_v63 }
  0x99   : > { %v1475_v51 = vadd.f32 %v1383_v17, %v1231_v46  ;;  %v1476_v53 = vadd.f32 %v1385_v50, %v1232_v32  ;;  %v1627_v54 = vsel %vm1038_vm1, %v1625_v36, %v1626_v9  ;;  %v1629_v55 = vsel %vm1038_vm1, %v1626_v9, %v1628_v26 }
  0x9a   : > { %v1830_v59 = vmul.f32 %v7245_v34, %v7729_v13  ;;  %v1831_v3 = vmul.f32 %v7245_v34, %v7736_v41  ;;  %v1937_v1 = vrot.slane %v1829_v60, 1  ;;  %v2073_v19 = vmul.f32 %v7249_v35, %v7721_v63 }
  0x9b   : > { %v1719_v61 = vadd.f32 %v1627_v54, %v1475_v51  ;;  %v1720_v45 = vadd.f32 %v1629_v55, %v1476_v53  ;;  %v2074_v16 = vmul.f32 %v7249_v35, %v7729_v13  ;;  %v2075_v33 = vmul.f32 %v7249_v35, %v7736_v41 }
  0x9c   : > { %v1938_v42 = vrot.slane %v1830_v59, 1  ;;  %v1940_v14 = vrot.slane %v1831_v3, 1  ;;  %v2181_v46 = vrot.slane %v2073_v19, 2  ;;  %v676_v32 = vmul.f32 %v7149_v21, %v7637_v47 }
  0x9d   : > { %v1787_v18 = vadd.f32 %v1755_v49, %v1719_v61  ;;  %v1788_v25 = vadd.f32 %v1756_v48, %v1720_v45  ;;  %v2182_v17 = vrot.slane %v2074_v16, 2  ;;  %v2184_v9 = vrot.slane %v2075_v33, 2 }
  0x9e   : > { %v1939_v36 = vsel %vm542_vm0, %v1937_v1, %v1938_v42  ;;  %v1941_v26 = vsel %vm542_vm0, %v1938_v42, %v1940_v14  ;;  %v677_v51 = vmul.f32 %v7149_v21, %v7645_v52  ;;  %v719_v60 = vmul.f32 %v7152_v22, %v7637_v47 }
  0x9f   : > { %v2031_v50 = vadd.f32 %v1939_v36, %v1787_v18  ;;  %v2032_v49 = vadd.f32 %v1941_v26, %v1788_v25  ;;  %v2183_v53 = vsel %vm1038_vm1, %v2181_v46, %v2182_v17  ;;  %v2185_v54 = vsel %vm1038_vm1, %v2182_v17, %v2184_v9 }
  0xa0   : > { %v720_v48 = vmul.f32 %v7152_v22, %v7645_v52  ;;  %v721_v59 = vmul.f32 %v7152_v22, %v7650_v57  ;;  %v829_v61 = vrot.slane %v719_v60, 1  ;;  %v963_v3 = vmul.f32 %v7155_v23, %v7637_v47 }
  0xa1   : > { %v2275_v55 = vadd.f32 %v2183_v53, %v2031_v50  ;;  %v2276_v1 = vadd.f32 %v2185_v54, %v2032_v49  ;;  %v964_v45 = vmul.f32 %v7155_v23, %v7645_v52  ;;  %v965_v42 = vmul.f32 %v7155_v23, %v7650_v57  ;;  %v7797_v50 = vld [vmem:[%s7117_s14 + $0xd8] sm:$0xff] }
  0xa2   : > { %v830_v19 = vrot.slane %v720_v48, 1  ;;  %v832_v33 = vrot.slane %v721_v59, 1  ;;  %v1074_v18 = vrot.slane %v963_v3, 2  ;;  %v1201_v14 = vmul.f32 %v7167_v27, %v7721_v63  ;;  %v7807_v59 = vld [vmem:[%s7117_s14 + $0xe0] sm:$0xff] }
  0xa3   : > { %v7779_v16 = vadd.f32 %v7698_v20, %v2275_v55  ;;  %v7784_v46 = vadd.f32 %v7698_v20, %v2276_v1  ;;  %v1075_v25 = vrot.slane %v964_v45, 2  ;;  %v1077_v36 = vrot.slane %v965_v42, 2 }
  0xa4   : > { %v831_v47 = vsel %vm542_vm0, %v829_v61, %v830_v19  ;;  %v833_v52 = vsel %vm542_vm0, %v830_v19, %v832_v33  ;;  %v1202_v57 = vmul.f32 %v7167_v27, %v7729_v13  ;;  %v1276_v9 = vmul.f32 %v7170_v28, %v7721_v63 }
  0xa5   : > { %10977 = vst [vmem:[#allocation23_spill] sm:$0xff] %v7779_v16  ;;  %10978 = vst [vmem:[#allocation24_spill] sm:$0xff] %v7784_v46  ;;  %v920_v17 = vadd.f32 %v831_v47, %v676_v32  ;;  %v7794_v26 = vpack.c.bf16 %v7784_v46, %v7779_v16  ;;  %v921_v60 = vadd.f32 %v833_v52, %v677_v51 }
  0xa6   : > { %v1076_v49 = vsel %vm1038_vm1, %v1074_v18, %v1075_v25  ;;  %v1078_v53 = vsel %vm1038_vm1, %v1075_v25, %v1077_v36  ;;  %v1277_v32 = vmul.f32 %v7170_v28, %v7729_v13  ;;  %v1278_v48 = vmul.f32 %v7170_v28, %v7736_v41  ;;  %v7819_v18 = vld [vmem:[%s7117_s14 + $0xe8] sm:$0x3] }
  0xa7   : > { %v1165_v54 = vadd.f32 %v1076_v49, %v920_v17  ;;  %v1386_v55 = vrot.slane %v1276_v9, 1  ;;  %2620 = vmatmul.mubr.bf16.gmra.mrb[24].mxu0 %v7794_v26  ;;  %v1166_v61 = vadd.f32 %v1078_v53, %v921_v60  ;;  %v1520_v51 = vmul.f32 %v7173_v29, %v7721_v63 }
  0xa8   : > { %v1521_v3 = vmul.f32 %v7173_v29, %v7729_v13  ;;  %v1522_v1 = vmul.f32 %v7173_v29, %v7736_v41  ;;  %2629 = vmatprep.mubr.bf16.mxu0 %v10891_v2  ;;  %v1387_v45 = vrot.slane %v1277_v32, 1  ;;  %v1389_v42 = vrot.slane %v1278_v48, 1 }
  0xa9   : > { %v1233_v19 = vadd.f32 %v1201_v14, %v1165_v54  ;;  %v1757_v33 = vmul.f32 %v7177_v30, %v7797_v50  ;;  %v1234_v47 = vadd.f32 %v1202_v57, %v1166_v61  ;;  %v1630_v25 = vrot.slane %v1520_v51, 2 }
  0xaa   : > { %v1631_v36 = vrot.slane %v1521_v3, 2  ;;  %v1633_v52 = vrot.slane %v1522_v1, 2  ;;  %v1388_v17 = vsel %vm542_vm0, %v1386_v55, %v1387_v45  ;;  %v1390_v9 = vsel %vm542_vm0, %v1387_v45, %v1389_v42 }
  0xab   : > { %v1758_v60 = vmul.f32 %v7177_v30, %v7807_v59  ;;  %v1832_v14 = vmul.f32 %v7245_v34, %v7797_v50  ;;  %v1477_v49 = vadd.f32 %v1388_v17, %v1233_v19  ;;  %v1478_v53 = vadd.f32 %v1390_v9, %v1234_v47 }
  0xac   : > { %v1632_v54 = vsel %vm1038_vm1, %v1630_v25, %v1631_v36  ;;  %v1634_v32 = vsel %vm1038_vm1, %v1631_v36, %v1633_v52  ;;  %v1833_v57 = vmul.f32 %v7245_v34, %v7807_v59  ;;  %v1834_v48 = vmul.f32 %v7245_v34, %v7819_v18 }
  0xad   : > { %v1942_v55 = vrot.slane %v1832_v14, 1  ;;  %v2076_v61 = vmul.f32 %v7249_v35, %v7797_v50  ;;  %v1721_v51 = vadd.f32 %v1632_v54, %v1477_v49  ;;  %v1722_v3 = vadd.f32 %v1634_v32, %v1478_v53 }
  0xae   : > { %v2077_v1 = vmul.f32 %v7249_v35, %v7807_v59  ;;  %v2078_v19 = vmul.f32 %v7249_v35, %v7819_v18  ;;  %v1943_v45 = vrot.slane %v1833_v57, 1  ;;  %v1945_v42 = vrot.slane %v1834_v48, 1 }
  0xaf   : > { %v2186_v47 = vrot.slane %v2076_v61, 2  ;;  %v678_v25 = vmul.f32 %v7149_v21, %v7721_v63  ;;  %v1789_v36 = vadd.f32 %v1757_v33, %v1721_v51  ;;  %v1790_v52 = vadd.f32 %v1758_v60, %v1722_v3 }
  0xb0   : > { %v2187_v17 = vrot.slane %v2077_v1, 2  ;;  %v2189_v9 = vrot.slane %v2078_v19, 2  ;;  %v1944_v14 = vsel %vm542_vm0, %v1942_v55, %v1943_v45  ;;  %v1946_v49 = vsel %vm542_vm0, %v1943_v45, %v1945_v42 }
  0xb1   : > { %v679_v53 = vmul.f32 %v7149_v21, %v7729_v13  ;;  %v722_v54 = vmul.f32 %v7152_v22, %v7721_v63  ;;  %v2033_v32 = vadd.f32 %v1944_v14, %v1789_v36  ;;  %v2034_v57 = vadd.f32 %v1946_v49, %v1790_v52 }
  0xb2   : > { %v2188_v48 = vsel %vm1038_vm1, %v2186_v47, %v2187_v17  ;;  %v2190_v61 = vsel %vm1038_vm1, %v2187_v17, %v2189_v9  ;;  %v723_v33 = vmul.f32 %v7152_v22, %v7729_v13  ;;  %v724_v60 = vmul.f32 %v7152_v22, %v7736_v41 }
  0xb3   : > { %v834_v55 = vrot.slane %v722_v54, 1  ;;  %v966_v51 = vmul.f32 %v7155_v23, %v7721_v63  ;;  %v2277_v3 = vadd.f32 %v2188_v48, %v2033_v32  ;;  %v2278_v1 = vadd.f32 %v2190_v61, %v2034_v57  ;;  %v7878_v57 = vld [vmem:[%s7117_s14 + $0xf0] sm:$0xff] }
  0xb4   : > { %v967_v19 = vmul.f32 %v7155_v23, %v7729_v13  ;;  %v968_v45 = vmul.f32 %v7155_v23, %v7736_v41  ;;  %v835_v42 = vrot.slane %v723_v33, 1  ;;  %v837_v47 = vrot.slane %v724_v60, 1 }
  0xb5   : > { %v1079_v36 = vrot.slane %v966_v51, 2  ;;  %v1203_v52 = vmul.f32 %v7167_v27, %v7797_v50  ;;  %v7862_v17 = vadd.f32 %v7698_v20, %v2277_v3  ;;  %v7865_v63 = vadd.f32 %v7698_v20, %v2278_v1  ;;  %v7888_v1 = vld [vmem:[%s7117_s14 + $0xf8] sm:$0xff] }
  0xb6   : > { %v1080_v9 = vrot.slane %v967_v19, 2  ;;  %v1082_v14 = vrot.slane %v968_v45, 2  ;;  %v836_v13 = vsel %vm542_vm0, %v834_v55, %v835_v42  ;;  %v838_v49 = vsel %vm542_vm0, %v835_v42, %v837_v47 }
  0xb7   : > { %10979 = vst [vmem:[#allocation25_spill] sm:$0xff] %v7862_v17  ;;  %10980 = vst [vmem:[#allocation26_spill] sm:$0xff] %v7865_v63  ;;  %v1204_v41 = vmul.f32 %v7167_v27, %v7807_v59  ;;  %v1279_v54 = vmul.f32 %v7170_v28, %v7797_v50  ;;  %v7875_v32 = vpack.c.bf16 %v7865_v63, %v7862_v17 }
  0xb8   : > { %v922_v48 = vadd.f32 %v836_v13, %v678_v25  ;;  %v923_v61 = vadd.f32 %v838_v49, %v679_v53  ;;  %v1081_v33 = vsel %vm1038_vm1, %v1079_v36, %v1080_v9  ;;  %v1083_v60 = vsel %vm1038_vm1, %v1080_v9, %v1082_v14  ;;  %v7900_v14 = vld [vmem:[%s7117_s14 + $0x100] sm:$0x3] }
  0xb9   : > { %v1280_v55 = vmul.f32 %v7170_v28, %v7807_v59  ;;  %v1281_v51 = vmul.f32 %v7170_v28, %v7819_v18  ;;  %v1391_v3 = vrot.slane %v1279_v54, 1  ;;  %2630 = vmatmul.mubr.bf16.gmra.mrb[28].mxu0 %v7875_v32  ;;  %v1523_v25 = vmul.f32 %v7173_v29, %v7797_v50 }
  0xba   : > { %v1167_v19 = vadd.f32 %v1081_v33, %v922_v48  ;;  %v1168_v45 = vadd.f32 %v1083_v60, %v923_v61  ;;  %v1524_v53 = vmul.f32 %v7173_v29, %v7807_v59  ;;  %2639 = vmatprep.mubr.bf16.mxu0 %v10891_v2  ;;  %v1525_v36 = vmul.f32 %v7173_v29, %v7819_v18 }
  0xbb   : > { %v1392_v42 = vrot.slane %v1280_v55, 1  ;;  %v1394_v47 = vrot.slane %v1281_v51, 1  ;;  %v1759_v9 = vmul.f32 %v7177_v30, %v7878_v57  ;;  %v1635_v54 = vrot.slane %v1523_v25, 2 }
  0xbc   : > { %v1235_v13 = vadd.f32 %v1203_v52, %v1167_v19  ;;  %v1236_v49 = vadd.f32 %v1204_v41, %v1168_v45  ;;  %v1636_v48 = vrot.slane %v1524_v53, 2  ;;  %v1638_v60 = vrot.slane %v1525_v36, 2 }
  0xbd   : > { %v1393_v61 = vsel %vm542_vm0, %v1391_v3, %v1392_v42  ;;  %v1395_v33 = vsel %vm542_vm0, %v1392_v42, %v1394_v47  ;;  %v1760_v55 = vmul.f32 %v7177_v30, %v7888_v1  ;;  %v1835_v46 = vmul.f32 %v7245_v34, %v7878_v57 }
  0xbe   : > { %v1479_v51 = vadd.f32 %v1393_v61, %v1235_v13  ;;  %v1480_v2 = vadd.f32 %v1395_v33, %v1236_v49  ;;  %v1637_v7 = vsel %vm1038_vm1, %v1635_v54, %v1636_v48  ;;  %v1639_v52 = vsel %vm1038_vm1, %v1636_v48, %v1638_v60 }
  0xbf   : > { %v1836_v41 = vmul.f32 %v7245_v34, %v7888_v1  ;;  %v1837_v3 = vmul.f32 %v7245_v34, %v7900_v14  ;;  %v2079_v19 = vmul.f32 %v7249_v35, %v7878_v57  ;;  %v1947_v53 = vrot.slane %v1835_v46, 1 }
  0xc0   : > { %v1723_v45 = vadd.f32 %v1637_v7, %v1479_v51  ;;  %v1724_v25 = vadd.f32 %v1639_v52, %v1480_v2  ;;  %v2080_v42 = vmul.f32 %v7249_v35, %v7888_v1  ;;  %v2081_v13 = vmul.f32 %v7249_v35, %v7900_v14 }
  0xc1   : > { %v1948_v47 = vrot.slane %v1836_v41, 1  ;;  %v1950_v36 = vrot.slane %v1837_v3, 1  ;;  %v2191_v49 = vrot.slane %v2079_v19, 2  ;;  %v680_v33 = vmul.f32 %v7149_v21, %v7797_v50 }
  0xc2   : > { %v1791_v54 = vadd.f32 %v1759_v9, %v1723_v45  ;;  %v1792_v48 = vadd.f32 %v1760_v55, %v1724_v25  ;;  %v2192_v61 = vrot.slane %v2080_v42, 2  ;;  %v2194_v7 = vrot.slane %v2081_v13, 2 }
  0xc3   : > { %v1949_v60 = vsel %vm542_vm0, %v1947_v53, %v1948_v47  ;;  %v1951_v2 = vsel %vm542_vm0, %v1948_v47, %v1950_v36  ;;  %v681_v46 = vmul.f32 %v7149_v21, %v7807_v59  ;;  %v725_v9 = vmul.f32 %v7152_v22, %v7797_v50 }
  0xc4   : > { %v2035_v51 = vadd.f32 %v1949_v60, %v1791_v54  ;;  %v2036_v52 = vadd.f32 %v1951_v2, %v1792_v48  ;;  %v2193_v41 = vsel %vm1038_vm1, %v2191_v49, %v2192_v61  ;;  %v2195_v55 = vsel %vm1038_vm1, %v2192_v61, %v2194_v7 }
  0xc5   : > { %v726_v3 = vmul.f32 %v7152_v22, %v7807_v59  ;;  %v727_v19 = vmul.f32 %v7152_v22, %v7819_v18  ;;  %v969_v45 = vmul.f32 %v7155_v23, %v7797_v50  ;;  %v839_v42 = vrot.slane %v725_v9, 1 }
  0xc6   : > { %v2279_v25 = vadd.f32 %v2193_v41, %v2035_v51  ;;  %v2280_v53 = vadd.f32 %v2195_v55, %v2036_v52  ;;  %v970_v47 = vmul.f32 %v7155_v23, %v7807_v59  ;;  %v971_v49 = vmul.f32 %v7155_v23, %v7819_v18 }
  0xc7   : > { %v840_v36 = vrot.slane %v726_v3, 1  ;;  %v842_v13 = vrot.slane %v727_v19, 1  ;;  %v1084_v54 = vrot.slane %v969_v45, 2  ;;  %v1205_v60 = vmul.f32 %v7167_v27, %v7878_v57 }
  0xc8   : > { %v7941_v48 = vadd.f32 %v7698_v20, %v2279_v25  ;;  %v7944_v61 = vadd.f32 %v7698_v20, %v2280_v53  ;;  %v1085_v50 = vrot.slane %v970_v47, 2  ;;  %v1087_v7 = vrot.slane %v971_v49, 2  ;;  %v7966_v25 = vld [vmem:[%s7117_s14 + $0x108] sm:$0xff] }
  0xc9   : > { %v841_v2 = vsel %vm542_vm0, %v839_v42, %v840_v36  ;;  %v843_v59 = vsel %vm542_vm0, %v840_v36, %v842_v13  ;;  %v1206_v18 = vmul.f32 %v7167_v27, %v7888_v1  ;;  %v1282_v3 = vmul.f32 %v7170_v28, %v7878_v57  ;;  %v7974_v36 = vld [vmem:[%s7117_s14 + $0x110] sm:$0xff] }
  0xca   : > { %10981 = vst [vmem:[#allocation27_spill] sm:$0xff] %v7941_v48  ;;  %10982 = vst [vmem:[#allocation28_spill] sm:$0xff] %v7944_v61  ;;  %v7954_v51 = vpack.c.bf16 %v7944_v61, %v7941_v48  ;;  %v924_v52 = vadd.f32 %v841_v2, %v680_v33  ;;  %v925_v41 = vadd.f32 %v843_v59, %v681_v46  ;;  %v10983_v47 = vmov 0   ;;  %v7979_v2 = vld [vmem:[%s7117_s14 + $0x118] sm:$0x3] }
  0xcb   : > { %v1086_v9 = vsel %vm1038_vm1, %v1084_v54, %v1085_v50  ;;  %v1088_v55 = vsel %vm1038_vm1, %v1085_v50, %v1087_v7  ;;  %v1283_v19 = vmul.f32 %v7170_v28, %v7888_v1  ;;  %v1284_v45 = vmul.f32 %v7170_v28, %v7900_v14 }
  0xcc   : > { %2640 = vmatmul.mubr.bf16.gmra.mrb[32].mxu0 %v7954_v51  ;;  %v1169_v33 = vadd.f32 %v1086_v9, %v924_v52  ;;  %v1170_v46 = vadd.f32 %v1088_v55, %v925_v41  ;;  %v1526_v53 = vmul.f32 %v7173_v29, %v7878_v57  ;;  %v1527_v42 = vmul.f32 %v7173_v29, %v7888_v1 }
  0xcd   : > { %2649 = vmatprep.mubr.bf16.mxu0 %v10983_v47  ;;  %v1396_v13 = vrot.slane %v1282_v3, 1  ;;  %v1397_v49 = vrot.slane %v1283_v19, 1  ;;  %v1399_v54 = vrot.slane %v1284_v45, 1  ;;  %v1528_v50 = vmul.f32 %v7173_v29, %v7900_v14 }
  0xce   : > { %v1237_v59 = vadd.f32 %v1205_v60, %v1169_v33  ;;  %v1238_v7 = vadd.f32 %v1206_v18, %v1170_v46  ;;  %v1640_v52 = vrot.slane %v1526_v53, 2  ;;  %v1641_v41 = vrot.slane %v1527_v42, 2 }
  0xcf   : > { %v1398_v9 = vsel %vm542_vm0, %v1396_v13, %v1397_v49  ;;  %v1400_v55 = vsel %vm542_vm0, %v1397_v49, %v1399_v54  ;;  %v1643_v61 = vrot.slane %v1528_v50, 2  ;;  %v1761_v48 = vmul.f32 %v7177_v30, %v7966_v25 }
  0xd0   : > { %v1481_v3 = vadd.f32 %v1398_v9, %v1237_v59  ;;  %v1482_v19 = vadd.f32 %v1400_v55, %v1238_v7  ;;  %v1642_v45 = vsel %vm1038_vm1, %v1640_v52, %v1641_v41  ;;  %v1762_v63 = vmul.f32 %v7177_v30, %v7974_v36 }
  0xd1   : > { %v1644_v60 = vsel %vm1038_vm1, %v1641_v41, %v1643_v61  ;;  %v1838_v18 = vmul.f32 %v7245_v34, %v7966_v25  ;;  %v1839_v33 = vmul.f32 %v7245_v34, %v7974_v36  ;;  %v1840_v46 = vmul.f32 %v7245_v34, %v7979_v2 }
  0xd2   : > { %v1725_v53 = vadd.f32 %v1642_v45, %v1481_v3  ;;  %v1726_v42 = vadd.f32 %v1644_v60, %v1482_v19  ;;  %v2082_v13 = vmul.f32 %v7249_v35, %v7966_v25  ;;  %v2083_v49 = vmul.f32 %v7249_v35, %v7974_v36 }
  0xd3   : > { %v1952_v54 = vrot.slane %v1838_v18, 1  ;;  %v1953_v50 = vrot.slane %v1839_v33, 1  ;;  %v1955_v61 = vrot.slane %v1840_v46, 1  ;;  %v2084_v59 = vmul.f32 %v7249_v35, %v7979_v2 }
  0xd4   : > { %v1793_v7 = vadd.f32 %v1761_v48, %v1725_v53  ;;  %v1794_v52 = vadd.f32 %v1762_v63, %v1726_v42  ;;  %v2196_v41 = vrot.slane %v2082_v13, 2  ;;  %v2197_v9 = vrot.slane %v2083_v49, 2 }
  0xd5   : > { %v1954_v55 = vsel %vm542_vm0, %v1952_v54, %v1953_v50  ;;  %v1956_v3 = vsel %vm542_vm0, %v1953_v50, %v1955_v61  ;;  %v2199_v19 = vrot.slane %v2084_v59, 2  ;;  %v682_v45 = vmul.f32 %v7149_v21, %v7878_v57 }
  0xd6   : > { %v2037_v60 = vadd.f32 %v1954_v55, %v1793_v7  ;;  %v2038_v16 = vadd.f32 %v1956_v3, %v1794_v52  ;;  %v2198_v18 = vsel %vm1038_vm1, %v2196_v41, %v2197_v9  ;;  %v683_v33 = vmul.f32 %v7149_v21, %v7888_v1 }
  0xd7   : > { %v2200_v48 = vsel %vm1038_vm1, %v2197_v9, %v2199_v19  ;;  %v728_v63 = vmul.f32 %v7152_v22, %v7878_v57  ;;  %v729_v46 = vmul.f32 %v7152_v22, %v7888_v1  ;;  %v730_v53 = vmul.f32 %v7152_v22, %v7900_v14 }
  0xd8   : > { %v2281_v42 = vadd.f32 %v2198_v18, %v2037_v60  ;;  %v2282_v13 = vadd.f32 %v2200_v48, %v2038_v16  ;;  %v972_v49 = vmul.f32 %v7155_v23, %v7878_v57  ;;  %v973_v54 = vmul.f32 %v7155_v23, %v7888_v1 }
  0xd9   : > { %v844_v50 = vrot.slane %v728_v63, 1  ;;  %v845_v61 = vrot.slane %v729_v46, 1  ;;  %v847_v59 = vrot.slane %v730_v53, 1  ;;  %v974_v7 = vmul.f32 %v7155_v23, %v7900_v14 }
  0xda   : > { %v8022_v52 = vadd.f32 %v7698_v20, %v2281_v42  ;;  %v8025_v41 = vadd.f32 %v7698_v20, %v2282_v13  ;;  %v1089_v16 = vrot.slane %v972_v49, 2  ;;  %v1090_v9 = vrot.slane %v973_v54, 2  ;;  %v8045_v42 = vld [vmem:[%s7117_s14 + $0x120] sm:$0xff]  ;;  %v8053_v54 = vld [vmem:[%s7117_s14 + $0x128] sm:$0xff] }
  0xdb   : > { %v846_v57 = vsel %vm542_vm0, %v844_v50, %v845_v61  ;;  %v848_v55 = vsel %vm542_vm0, %v845_v61, %v847_v59  ;;  %v1092_v1 = vrot.slane %v974_v7, 2  ;;  %v1207_v3 = vmul.f32 %v7167_v27, %v7966_v25 }
  0xdc   : > { %10984 = vst [vmem:[#allocation29_spill] sm:$0xff] %v8022_v52  ;;  %10985 = vst [vmem:[#allocation30_spill] sm:$0xff] %v8025_v41  ;;  %v8033_v14 = vpack.c.bf16 %v8025_v41, %v8022_v52  ;;  %v926_v19 = vadd.f32 %v846_v57, %v682_v45  ;;  %v927_v60 = vadd.f32 %v848_v55, %v683_v33 }
  0xdd   : > { %v1091_v18 = vsel %vm1038_vm1, %v1089_v16, %v1090_v9  ;;  %v1093_v48 = vsel %vm1038_vm1, %v1090_v9, %v1092_v1  ;;  %v1208_v63 = vmul.f32 %v7167_v27, %v7974_v36  ;;  %v1285_v46 = vmul.f32 %v7170_v28, %v7966_v25  ;;  %v8060_v1 = vld [vmem:[%s7117_s14 + $0x130] sm:$0x3] }
  0xde   : > { %v1286_v53 = vmul.f32 %v7170_v28, %v7974_v36  ;;  %2650 = vmatmul.mubr.bf16.gmra.mrb[36].mxu0 %v8033_v14  ;;  %v1171_v45 = vadd.f32 %v1091_v18, %v926_v19  ;;  %v1172_v33 = vadd.f32 %v1093_v48, %v927_v60  ;;  %v1287_v13 = vmul.f32 %v7170_v28, %v7979_v2 }
  0xdf   : > { %v1529_v49 = vmul.f32 %v7173_v29, %v7966_v25  ;;  %2659 = vmatprep.mubr.bf16.mxu0 %v10983_v47  ;;  %v1401_v50 = vrot.slane %v1285_v46, 1  ;;  %v1530_v59 = vmul.f32 %v7173_v29, %v7974_v36  ;;  %v1531_v7 = vmul.f32 %v7173_v29, %v7979_v2 }
  0xe0   : > { %v1402_v61 = vrot.slane %v1286_v53, 1  ;;  %v1239_v16 = vadd.f32 %v1207_v3, %v1171_v45  ;;  %v1240_v9 = vadd.f32 %v1208_v63, %v1172_v33  ;;  %v1404_v57 = vrot.slane %v1287_v13, 1 }
  0xe1   : > { %v1645_v55 = vrot.slane %v1529_v49, 2  ;;  %v1646_v60 = vrot.slane %v1530_v59, 2  ;;  %v1648_v18 = vrot.slane %v1531_v7, 2  ;;  %v1763_v48 = vmul.f32 %v7177_v30, %v8045_v42 }
  0xe2   : > { %v1403_v19 = vsel %vm542_vm0, %v1401_v50, %v1402_v61  ;;  %v1405_v46 = vsel %vm542_vm0, %v1402_v61, %v1404_v57  ;;  %v1764_v41 = vmul.f32 %v7177_v30, %v8053_v54  ;;  %v1841_v3 = vmul.f32 %v7245_v34, %v8045_v42 }
  0xe3   : > { %v1483_v53 = vadd.f32 %v1403_v19, %v1239_v16  ;;  %v1484_v63 = vadd.f32 %v1405_v46, %v1240_v9  ;;  %v1647_v45 = vsel %vm1038_vm1, %v1645_v55, %v1646_v60  ;;  %v1649_v33 = vsel %vm1038_vm1, %v1646_v60, %v1648_v18 }
  0xe4   : > { %v1842_v13 = vmul.f32 %v7245_v34, %v8053_v54  ;;  %v1843_v50 = vmul.f32 %v7245_v34, %v8060_v1  ;;  %v1957_v61 = vrot.slane %v1841_v3, 1  ;;  %v2085_v59 = vmul.f32 %v7249_v35, %v8045_v42 }
  0xe5   : > { %v1727_v49 = vadd.f32 %v1647_v45, %v1483_v53  ;;  %v1728_v7 = vadd.f32 %v1649_v33, %v1484_v63  ;;  %v2086_v9 = vmul.f32 %v7249_v35, %v8053_v54  ;;  %v2087_v57 = vmul.f32 %v7249_v35, %v8060_v1 }
  0xe6   : > { %v1958_v16 = vrot.slane %v1842_v13, 1  ;;  %v1960_v19 = vrot.slane %v1843_v50, 1  ;;  %v2201_v60 = vrot.slane %v2085_v59, 2  ;;  %v684_v18 = vmul.f32 %v7149_v21, %v7966_v25 }
  0xe7   : > { %v1795_v55 = vadd.f32 %v1763_v48, %v1727_v49  ;;  %v1796_v46 = vadd.f32 %v1764_v41, %v1728_v7  ;;  %v2202_v3 = vrot.slane %v2086_v9, 2  ;;  %v2204_v45 = vrot.slane %v2087_v57, 2 }
  0xe8   : > { %v1959_v53 = vsel %vm542_vm0, %v1957_v61, %v1958_v16  ;;  %v1961_v63 = vsel %vm542_vm0, %v1958_v16, %v1960_v19  ;;  %v685_v13 = vmul.f32 %v7149_v21, %v7974_v36  ;;  %v731_v52 = vmul.f32 %v7152_v22, %v7966_v25 }
  0xe9   : > { %v2039_v33 = vadd.f32 %v1959_v53, %v1795_v55  ;;  %v2040_v48 = vadd.f32 %v1961_v63, %v1796_v46  ;;  %v2203_v49 = vsel %vm1038_vm1, %v2201_v60, %v2202_v3  ;;  %v2205_v50 = vsel %vm1038_vm1, %v2202_v3, %v2204_v45 }
  0xea   : > { %v732_v41 = vmul.f32 %v7152_v22, %v7974_v36  ;;  %v733_v59 = vmul.f32 %v7152_v22, %v7979_v2  ;;  %v849_v7 = vrot.slane %v731_v52, 1  ;;  %v975_v16 = vmul.f32 %v7155_v23, %v7966_v25 }
  0xeb   : > { %v2283_v61 = vadd.f32 %v2203_v49, %v2039_v33  ;;  %v2284_v9 = vadd.f32 %v2205_v50, %v2040_v48  ;;  %v976_v55 = vmul.f32 %v7155_v23, %v7974_v36  ;;  %v977_v19 = vmul.f32 %v7155_v23, %v7979_v2  ;;  %v8121_v50 = vld [vmem:[%s7117_s14 + $0x138] sm:$0xff] }
  0xec   : > { %v850_v57 = vrot.slane %v732_v41, 1  ;;  %v852_v46 = vrot.slane %v733_v59, 1  ;;  %v1094_v53 = vrot.slane %v975_v16, 2  ;;  %v1209_v52 = vmul.f32 %v7167_v27, %v8045_v42 }
  0xed   : > { %v8103_v60 = vadd.f32 %v7698_v20, %v2283_v61  ;;  %v8108_v3 = vadd.f32 %v7698_v20, %v2284_v9  ;;  %v1095_v45 = vrot.slane %v976_v55, 2  ;;  %v1097_v63 = vrot.slane %v977_v19, 2 }
  0xee   : > { %v851_v25 = vsel %vm542_vm0, %v849_v7, %v850_v57  ;;  %v853_v36 = vsel %vm542_vm0, %v850_v57, %v852_v46  ;;  %v1210_v2 = vmul.f32 %v7167_v27, %v8053_v54  ;;  %v1288_v48 = vmul.f32 %v7170_v28, %v8045_v42  ;;  %v8131_v57 = vld [vmem:[%s7117_s14 + $0x140] sm:$0xff] }
  0xef   : > { %10986 = vst [vmem:[#allocation31_spill] sm:$0xff] %v8103_v60  ;;  %10987 = vst [vmem:[#allocation32_spill] sm:$0xff] %v8108_v3  ;;  %v928_v33 = vadd.f32 %v851_v25, %v684_v18  ;;  %v8118_v49 = vpack.c.bf16 %v8108_v3, %v8103_v60  ;;  %v929_v41 = vadd.f32 %v853_v36, %v685_v13  ;;  %v8143_v36 = vld [vmem:[%s7117_s14 + $0x148] sm:$0x3] }
  0xf0   : > { %v1096_v61 = vsel %vm1038_vm1, %v1094_v53, %v1095_v45  ;;  %v1098_v59 = vsel %vm1038_vm1, %v1095_v45, %v1097_v63  ;;  %v1289_v18 = vmul.f32 %v7170_v28, %v8053_v54  ;;  %v1290_v16 = vmul.f32 %v7170_v28, %v8060_v1 }
  0xf1   : > { %v1173_v7 = vadd.f32 %v1096_v61, %v928_v33  ;;  %v1406_v9 = vrot.slane %v1288_v48, 1  ;;  %2660 = vmatmul.mubr.bf16.gmra.mrb[40].mxu0 %v8118_v49  ;;  %v1174_v55 = vadd.f32 %v1098_v59, %v929_v41  ;;  %v1532_v13 = vmul.f32 %v7173_v29, %v8045_v42 }
  0xf2   : > { %v1533_v19 = vmul.f32 %v7173_v29, %v8053_v54  ;;  %v1534_v46 = vmul.f32 %v7173_v29, %v8060_v1  ;;  %2669 = vmatprep.mubr.bf16.mxu0 %v10983_v47  ;;  %v1407_v25 = vrot.slane %v1289_v18, 1  ;;  %v1409_v45 = vrot.slane %v1290_v16, 1 }
  0xf3   : > { %v1241_v53 = vadd.f32 %v1209_v52, %v1173_v7  ;;  %v1765_v63 = vmul.f32 %v7177_v30, %v8121_v50  ;;  %v1242_v33 = vadd.f32 %v1210_v2, %v1174_v55  ;;  %v1650_v48 = vrot.slane %v1532_v13, 2 }
  0xf4   : > { %v1651_v41 = vrot.slane %v1533_v19, 2  ;;  %v1653_v61 = vrot.slane %v1534_v46, 2  ;;  %v1408_v59 = vsel %vm542_vm0, %v1406_v9, %v1407_v25  ;;  %v1410_v3 = vsel %vm542_vm0, %v1407_v25, %v1409_v45 }
  0xf5   : > { %v1766_v60 = vmul.f32 %v7177_v30, %v8131_v57  ;;  %v1844_v52 = vmul.f32 %v7245_v34, %v8121_v50  ;;  %v1485_v7 = vadd.f32 %v1408_v59, %v1241_v53  ;;  %v1486_v18 = vadd.f32 %v1410_v3, %v1242_v33 }
  0xf6   : > { %v1652_v16 = vsel %vm1038_vm1, %v1650_v48, %v1651_v41  ;;  %v1654_v17 = vsel %vm1038_vm1, %v1651_v41, %v1653_v61  ;;  %v1845_v2 = vmul.f32 %v7245_v34, %v8131_v57  ;;  %v1846_v9 = vmul.f32 %v7245_v34, %v8143_v36 }
  0xf7   : > { %v1962_v55 = vrot.slane %v1844_v52, 1  ;;  %v2088_v13 = vmul.f32 %v7249_v35, %v8121_v50  ;;  %v1729_v19 = vadd.f32 %v1652_v16, %v1485_v7  ;;  %v1730_v46 = vadd.f32 %v1654_v17, %v1486_v18 }
  0xf8   : > { %v2089_v53 = vmul.f32 %v7249_v35, %v8131_v57  ;;  %v2090_v3 = vmul.f32 %v7249_v35, %v8143_v36  ;;  %v1963_v25 = vrot.slane %v1845_v2, 1  ;;  %v1965_v45 = vrot.slane %v1846_v9, 1 }
  0xf9   : > { %v2206_v33 = vrot.slane %v2088_v13, 2  ;;  %v686_v48 = vmul.f32 %v7149_v21, %v8045_v42  ;;  %v1797_v41 = vadd.f32 %v1765_v63, %v1729_v19  ;;  %v1798_v61 = vadd.f32 %v1766_v60, %v1730_v46 }
  0xfa   : > { %v2207_v59 = vrot.slane %v2089_v53, 2  ;;  %v2209_v52 = vrot.slane %v2090_v3, 2  ;;  %v1964_v62 = vsel %vm542_vm0, %v1962_v55, %v1963_v25  ;;  %v1966_v17 = vsel %vm542_vm0, %v1963_v25, %v1965_v45 }
  0xfb   : > { %v687_v7 = vmul.f32 %v7149_v21, %v8053_v54  ;;  %v734_v18 = vmul.f32 %v7152_v22, %v8045_v42  ;;  %v2041_v16 = vadd.f32 %v1964_v62, %v1797_v41  ;;  %v2042_v2 = vadd.f32 %v1966_v17, %v1798_v61 }
  0xfc   : > { %v2208_v9 = vsel %vm1038_vm1, %v2206_v33, %v2207_v59  ;;  %v2210_v13 = vsel %vm1038_vm1, %v2207_v59, %v2209_v52  ;;  %v735_v60 = vmul.f32 %v7152_v22, %v8053_v54  ;;  %v736_v63 = vmul.f32 %v7152_v22, %v8060_v1 }
  0xfd   : > { %v854_v55 = vrot.slane %v734_v18, 1  ;;  %v978_v19 = vmul.f32 %v7155_v23, %v8045_v42  ;;  %v2285_v46 = vadd.f32 %v2208_v9, %v2041_v16  ;;  %v2286_v53 = vadd.f32 %v2210_v13, %v2042_v2  ;;  %v8202_v2 = vld [vmem:[%s7117_s14 + $0x150] sm:$0xff] }
  0xfe   : > { %v979_v62 = vmul.f32 %v7155_v23, %v8053_v54  ;;  %v980_v3 = vmul.f32 %v7155_v23, %v8060_v1  ;;  %v855_v25 = vrot.slane %v735_v60, 1  ;;  %v857_v45 = vrot.slane %v736_v63, 1 }
  0xff   : > { %v1099_v33 = vrot.slane %v978_v19, 2  ;;  %v1211_v41 = vmul.f32 %v7167_v27, %v8121_v50  ;;  %v8186_v61 = vadd.f32 %v7698_v20, %v2285_v46  ;;  %v8189_v42 = vadd.f32 %v7698_v20, %v2286_v53  ;;  %v8212_v46 = vld [vmem:[%s7117_s14 + $0x158] sm:$0xff] }
 0x100   : > { %v1100_v59 = vrot.slane %v979_v62, 2  ;;  %v1102_v52 = vrot.slane %v980_v3, 2  ;;  %v856_v54 = vsel %vm542_vm0, %v854_v55, %v855_v25  ;;  %v858_v17 = vsel %vm542_vm0, %v855_v25, %v857_v45 }
 0x101   : > { %10988 = vst [vmem:[#allocation33_spill] sm:$0xff] %v8186_v61  ;;  %10989 = vst [vmem:[#allocation34_spill] sm:$0xff] %v8189_v42  ;;  %v1212_v1 = vmul.f32 %v7167_v27, %v8131_v57  ;;  %v1291_v18 = vmul.f32 %v7170_v28, %v8121_v50  ;;  %v8199_v16 = vpack.c.bf16 %v8189_v42, %v8186_v61 }
 0x102   : > { %v930_v20 = vadd.f32 %v856_v54, %v686_v48  ;;  %v931_v9 = vadd.f32 %v858_v17, %v687_v7  ;;  %v1101_v13 = vsel %vm1038_vm1, %v1099_v33, %v1100_v59  ;;  %v1103_v60 = vsel %vm1038_vm1, %v1100_v59, %v1102_v52  ;;  %v8224_v59 = vld [vmem:[%s7117_s14 + $0x160] sm:$0x3] }
 0x103   : > { %v1292_v63 = vmul.f32 %v7170_v28, %v8131_v57  ;;  %v1293_v55 = vmul.f32 %v7170_v28, %v8143_v36  ;;  %v1411_v19 = vrot.slane %v1291_v18, 1  ;;  %2670 = vmatmul.mubr.bf16.gmra.mrb[44].mxu0 %v8199_v16  ;;  %v1535_v48 = vmul.f32 %v7173_v29, %v8121_v50 }
 0x104   : > { %v1175_v53 = vadd.f32 %v1101_v13, %v930_v20  ;;  %v1176_v62 = vadd.f32 %v1103_v60, %v931_v9  ;;  %v1536_v7 = vmul.f32 %v7173_v29, %v8131_v57  ;;  %2679 = vmatprep.mubr.bf16.mxu0 %v10983_v47  ;;  %v1537_v45 = vmul.f32 %v7173_v29, %v8143_v36 }
 0x105   : > { %v1412_v3 = vrot.slane %v1292_v63, 1  ;;  %v1414_v25 = vrot.slane %v1293_v55, 1  ;;  %v1767_v33 = vmul.f32 %v7177_v30, %v8202_v2  ;;  %v1655_v17 = vrot.slane %v1535_v48, 2 }
 0x106   : > { %v1243_v52 = vadd.f32 %v1211_v41, %v1175_v53  ;;  %v1244_v54 = vadd.f32 %v1212_v1, %v1176_v62  ;;  %v1656_v18 = vrot.slane %v1536_v7, 2  ;;  %v1658_v13 = vrot.slane %v1537_v45, 2 }
 0x107   : > { %v1413_v20 = vsel %vm542_vm0, %v1411_v19, %v1412_v3  ;;  %v1415_v9 = vsel %vm542_vm0, %v1412_v3, %v1414_v25  ;;  %v1768_v60 = vmul.f32 %v7177_v30, %v8212_v46  ;;  %v1847_v61 = vmul.f32 %v7245_v34, %v8202_v2 }
 0x108   : > { %v1487_v63 = vadd.f32 %v1413_v20, %v1243_v52  ;;  %v1488_v55 = vadd.f32 %v1415_v9, %v1244_v54  ;;  %v1657_v42 = vsel %vm1038_vm1, %v1655_v17, %v1656_v18  ;;  %v1659_v41 = vsel %vm1038_vm1, %v1656_v18, %v1658_v13 }
 0x109   : > { %v1848_v1 = vmul.f32 %v7245_v34, %v8212_v46  ;;  %v1849_v19 = vmul.f32 %v7245_v34, %v8224_v59  ;;  %v2091_v53 = vmul.f32 %v7249_v35, %v8202_v2  ;;  %v1967_v7 = vrot.slane %v1847_v61, 1 }
 0x10a   : > { %v1731_v62 = vadd.f32 %v1657_v42, %v1487_v63  ;;  %v1732_v48 = vadd.f32 %v1659_v41, %v1488_v55  ;;  %v2092_v3 = vmul.f32 %v7249_v35, %v8212_v46  ;;  %v2093_v52 = vmul.f32 %v7249_v35, %v8224_v59 }
 0x10b   : > { %v1968_v25 = vrot.slane %v1848_v1, 1  ;;  %v1970_v45 = vrot.slane %v1849_v19, 1  ;;  %v2211_v54 = vrot.slane %v2091_v53, 2  ;;  %v688_v9 = vmul.f32 %v7149_v21, %v8121_v50 }
 0x10c   : > { %v1799_v17 = vadd.f32 %v1767_v33, %v1731_v62  ;;  %v1800_v18 = vadd.f32 %v1768_v60, %v1732_v48  ;;  %v2212_v20 = vrot.slane %v2092_v3, 2  ;;  %v2214_v61 = vrot.slane %v2093_v52, 2 }
 0x10d   : > { %v1969_v13 = vsel %vm542_vm0, %v1967_v7, %v1968_v25  ;;  %v1971_v42 = vsel %vm542_vm0, %v1968_v25, %v1970_v45  ;;  %v689_v63 = vmul.f32 %v7149_v21, %v8131_v57  ;;  %v737_v33 = vmul.f32 %v7152_v22, %v8121_v50 }
 0x10e   : > { %v2043_v55 = vadd.f32 %v1969_v13, %v1799_v17  ;;  %v2044_v41 = vadd.f32 %v1971_v42, %v1800_v18  ;;  %v2213_v1 = vsel %vm1038_vm1, %v2211_v54, %v2212_v20  ;;  %v2215_v60 = vsel %vm1038_vm1, %v2212_v20, %v2214_v61  ;;  %v8260_v48 = vpop.f32.mrb[0].mxu0 }
 0x10f   : > { %v738_v19 = vmul.f32 %v7152_v22, %v8131_v57  ;;  %v739_v53 = vmul.f32 %v7152_v22, %v8143_v36  ;;  %v981_v62 = vmul.f32 %v7155_v23, %v8121_v50  ;;  %v859_v25 = vrot.slane %v737_v33, 1  ;;  %v8264_v52 = vpop.f32.mrb[1].mxu0  ;;  %v8273_v50 = vld [vmem:[%s10876_s2] ss:$0 sm:$0xff] }
 0x110   : > { %v2287_v7 = vadd.f32 %v2213_v1, %v2043_v55  ;;  %v2288_v3 = vadd.f32 %v2215_v60, %v2044_v41  ;;  %v982_v45 = vmul.f32 %v7155_v23, %v8131_v57  ;;  %v983_v18 = vmul.f32 %v7155_v23, %v8143_v36  ;;  %v8268_v13 = vpop.f32.mrb[2].mxu0 }
 0x111   : > { %v860_v54 = vrot.slane %v738_v19, 1  ;;  %v862_v17 = vrot.slane %v739_v53, 1  ;;  %v1104_v20 = vrot.slane %v981_v62, 2  ;;  %v1213_v55 = vmul.f32 %v7167_v27, %v8202_v2  ;;  %v8283_v36 = vpop.f32.mrb[3].mxu0 }
 0x112   : > { %v8276_v42 = vadd.f32 %v8273_v50, %v2287_v7  ;;  %v8279_v57 = vadd.f32 %v8273_v50, %v2288_v3  ;;  %v1105_v61 = vrot.slane %v982_v45, 2  ;;  %v1107_v33 = vrot.slane %v983_v18, 2 }
 0x113   : > { %v861_v41 = vsel %vm542_vm0, %v859_v25, %v860_v54  ;;  %v863_v1 = vsel %vm542_vm0, %v860_v54, %v862_v17  ;;  %v1214_v60 = vmul.f32 %v7167_v27, %v8212_v46  ;;  %v1294_v25 = vmul.f32 %v7170_v28, %v8202_v2  ;;  %v8303_v17 = vld [vmem:[%s7117_s14 + $0x168] sm:$0xff] }
 0x114   : > { %10990 = vst [vmem:[#allocation35_spill] sm:$0xff] %v8276_v42  ;;  %10991 = vst [vmem:[#allocation36_spill] sm:$0xff] %v8279_v57  ;;  %v8291_v19 = vpack.c.bf16 %v8279_v57, %v8276_v42  ;;  %v932_v53 = vadd.f32 %v861_v41, %v688_v9  ;;  %v933_v62 = vadd.f32 %v863_v1, %v689_v63  ;;  %v8316_v42 = vld [vmem:[%s7117_s14 + $0x178] sm:$0x3] }
 0x115   : > { %v1106_v7 = vsel %vm1038_vm1, %v1104_v20, %v1105_v61  ;;  %v1108_v3 = vsel %vm1038_vm1, %v1105_v61, %v1107_v33  ;;  %v1295_v45 = vmul.f32 %v7170_v28, %v8212_v46  ;;  %v1296_v54 = vmul.f32 %v7170_v28, %v8224_v59  ;;  %v8311_v61 = vld [vmem:[%s7117_s14 + $0x170] sm:$0xff] }
 0x116   : > { %2680 = vmatmul.mubr.bf16.gmra.mrb[48].mxu0 %v8291_v19  ;;  %v1177_v9 = vadd.f32 %v1106_v7, %v932_v53  ;;  %v1178_v63 = vadd.f32 %v1108_v3, %v933_v62  ;;  %v1538_v18 = vmul.f32 %v7173_v29, %v8202_v2  ;;  %v1539_v20 = vmul.f32 %v7173_v29, %v8212_v46 }
 0x117   : > { %2689 = vmatprep.mubr.bf16.mxu0 %v10983_v47  ;;  %v1416_v41 = vrot.slane %v1294_v25, 1  ;;  %v1417_v1 = vrot.slane %v1295_v45, 1  ;;  %v1419_v33 = vrot.slane %v1296_v54, 1  ;;  %v1540_v57 = vmul.f32 %v7173_v29, %v8224_v59 }
 0x118   : > { %v1245_v53 = vadd.f32 %v1213_v55, %v1177_v9  ;;  %v1246_v62 = vadd.f32 %v1214_v60, %v1178_v63  ;;  %v1660_v7 = vrot.slane %v1538_v18, 2  ;;  %v1661_v3 = vrot.slane %v1539_v20, 2 }
 0x119   : > { %v1418_v38 = vsel %vm542_vm0, %v1416_v41, %v1417_v1  ;;  %v1420_v8 = vsel %vm542_vm0, %v1417_v1, %v1419_v33  ;;  %v1663_v43 = vrot.slane %v1540_v57, 2  ;;  %v1769_v0 = vmul.f32 %v7177_v30, %v8303_v17 }
 0x11a   : > { %v1489_v25 = vadd.f32 %v1418_v38, %v1245_v53  ;;  %v1490_v45 = vadd.f32 %v1420_v8, %v1246_v62  ;;  %v1662_v54 = vsel %vm1038_vm1, %v1660_v7, %v1661_v3  ;;  %v1770_v4 = vmul.f32 %v7177_v30, %v8311_v61 }
 0x11b   : > { %v1664_v55 = vsel %vm1038_vm1, %v1661_v3, %v1663_v43  ;;  %v1850_v60 = vmul.f32 %v7245_v34, %v8303_v17  ;;  %v1851_v9 = vmul.f32 %v7245_v34, %v8311_v61  ;;  %v1852_v57 = vmul.f32 %v7245_v34, %v8316_v42 }
 0x11c   : > { %v1733_v63 = vadd.f32 %v1662_v54, %v1489_v25  ;;  %v1734_v18 = vadd.f32 %v1664_v55, %v1490_v45  ;;  %v2094_v8 = vmul.f32 %v7249_v35, %v8303_v17  ;;  %v2095_v38 = vmul.f32 %v7249_v35, %v8311_v61 }
 0x11d   : > { %v1972_v20 = vrot.slane %v1850_v60, 1  ;;  %v1973_v41 = vrot.slane %v1851_v9, 1  ;;  %v1975_v43 = vrot.slane %v1852_v57, 1  ;;  %v2096_v1 = vmul.f32 %v7249_v35, %v8316_v42  ;;  %v8345_v57 = vpop.f32.mrb[4].mxu0 }
 0x11e   : > { %v1801_v33 = vadd.f32 %v1769_v0, %v1733_v63  ;;  %v1802_v53 = vadd.f32 %v1770_v4, %v1734_v18  ;;  %v2216_v62 = vrot.slane %v2094_v8, 2  ;;  %v2217_v7 = vrot.slane %v2095_v38, 2  ;;  %v8354_v8 = vpop.f32.mrb[5].mxu0 }
 0x11f   : > { %v1974_v3 = vsel %vm542_vm0, %v1972_v20, %v1973_v41  ;;  %v1976_v25 = vsel %vm542_vm0, %v1973_v41, %v1975_v43  ;;  %v2219_v45 = vrot.slane %v2096_v1, 2  ;;  %v690_v54 = vmul.f32 %v7149_v21, %v8202_v2  ;;  %v8360_v1 = vpop.f32.mrb[6].mxu0 }
 0x120   : > { %v2045_v55 = vadd.f32 %v1974_v3, %v1801_v33  ;;  %v2046_v58 = vadd.f32 %v1976_v25, %v1802_v53  ;;  %v2218_v60 = vsel %vm1038_vm1, %v2216_v62, %v2217_v7  ;;  %v691_v9 = vmul.f32 %v7149_v21, %v8212_v46  ;;  %v8364_v3 = vpop.f32.mrb[7].mxu0 }
 0x121   : > { %v2220_v0 = vsel %vm1038_vm1, %v2217_v7, %v2219_v45  ;;  %v740_v4 = vmul.f32 %v7152_v22, %v8202_v2  ;;  %v741_v63 = vmul.f32 %v7152_v22, %v8212_v46  ;;  %v742_v18 = vmul.f32 %v7152_v22, %v8224_v59 }
 0x122   : > { %v2289_v38 = vadd.f32 %v2218_v60, %v2045_v55  ;;  %v2290_v20 = vadd.f32 %v2220_v0, %v2046_v58  ;;  %v984_v41 = vmul.f32 %v7155_v23, %v8202_v2  ;;  %v985_v43 = vmul.f32 %v7155_v23, %v8212_v46 }
 0x123   : > { %v864_v33 = vrot.slane %v740_v4, 1  ;;  %v865_v53 = vrot.slane %v741_v63, 1  ;;  %v867_v62 = vrot.slane %v742_v18, 1  ;;  %v986_v7 = vmul.f32 %v7155_v23, %v8224_v59 }
 0x124   : > { %v8367_v25 = vadd.f32 %v8273_v50, %v2289_v38  ;;  %v8370_v58 = vadd.f32 %v8273_v50, %v2290_v20  ;;  %v1109_v2 = vrot.slane %v984_v41, 2  ;;  %v1110_v45 = vrot.slane %v985_v43, 2 }
 0x125   : > { %v866_v46 = vsel %vm542_vm0, %v864_v33, %v865_v53  ;;  %v868_v55 = vsel %vm542_vm0, %v865_v53, %v867_v62  ;;  %v1112_v60 = vrot.slane %v986_v7, 2  ;;  %v1215_v0 = vmul.f32 %v7167_v27, %v8303_v17  ;;  %v8390_v33 = vld [vmem:[%s7117_s14 + $0x180] sm:$0xff]  ;;  %v8398_v7 = vld [vmem:[%s7117_s14 + $0x188] sm:$0xff] }
 0x126   : > { %10992 = vst [vmem:[#allocation37_spill] sm:$0xff] %v8367_v25  ;;  %10993 = vst [vmem:[#allocation38_spill] sm:$0xff] %v8370_v58  ;;  %v8378_v59 = vpack.c.bf16 %v8370_v58, %v8367_v25  ;;  %v934_v4 = vadd.f32 %v866_v46, %v690_v54  ;;  %v935_v63 = vadd.f32 %v868_v55, %v691_v9 }
 0x127   : > { %v1111_v18 = vsel %vm1038_vm1, %v1109_v2, %v1110_v45  ;;  %v1113_v38 = vsel %vm1038_vm1, %v1110_v45, %v1112_v60  ;;  %v1216_v20 = vmul.f32 %v7167_v27, %v8311_v61  ;;  %v1297_v41 = vmul.f32 %v7170_v28, %v8303_v17 }
 0x128   : > { %v1298_v43 = vmul.f32 %v7170_v28, %v8311_v61  ;;  %2690 = vmatmul.mubr.bf16.gmra.mrb[52].mxu0 %v8378_v59  ;;  %v1179_v54 = vadd.f32 %v1111_v18, %v934_v4  ;;  %v1180_v9 = vadd.f32 %v1113_v38, %v935_v63  ;;  %v1299_v53 = vmul.f32 %v7170_v28, %v8316_v42  ;;  %v8405_v38 = vld [vmem:[%s7117_s14 + $0x190] sm:$0x3] }
 0x129   : > { %v1541_v62 = vmul.f32 %v7173_v29, %v8303_v17  ;;  %2699 = vmatprep.mubr.bf16.mxu0 %v10983_v47  ;;  %v1421_v2 = vrot.slane %v1297_v41, 1  ;;  %v1542_v46 = vmul.f32 %v7173_v29, %v8311_v61  ;;  %v1543_v55 = vmul.f32 %v7173_v29, %v8316_v42 }
 0x12a   : > { %v1422_v45 = vrot.slane %v1298_v43, 1  ;;  %v1247_v60 = vadd.f32 %v1215_v0, %v1179_v54  ;;  %v1248_v4 = vadd.f32 %v1216_v20, %v1180_v9  ;;  %v1424_v63 = vrot.slane %v1299_v53, 1 }
 0x12b   : > { %v1665_v18 = vrot.slane %v1541_v62, 2  ;;  %v1666_v25 = vrot.slane %v1542_v46, 2  ;;  %v1668_v39 = vrot.slane %v1543_v55, 2  ;;  %v1771_v41 = vmul.f32 %v7177_v30, %v8390_v33 }
 0x12c   : > { %v1423_v58 = vsel %vm542_vm0, %v1421_v2, %v1422_v45  ;;  %v1425_v43 = vsel %vm542_vm0, %v1422_v45, %v1424_v63  ;;  %v1772_v6 = vmul.f32 %v7177_v30, %v8398_v7  ;;  %v1853_v0 = vmul.f32 %v7245_v34, %v8390_v33 }
 0x12d   : > { %v1491_v37 = vadd.f32 %v1423_v58, %v1247_v60  ;;  %v1492_v20 = vadd.f32 %v1425_v43, %v1248_v4  ;;  %v1667_v54 = vsel %vm1038_vm1, %v1665_v18, %v1666_v25  ;;  %v1669_v9 = vsel %vm1038_vm1, %v1666_v25, %v1668_v39 }
 0x12e   : > { %v1854_v53 = vmul.f32 %v7245_v34, %v8398_v7  ;;  %v1855_v2 = vmul.f32 %v7245_v34, %v8405_v38  ;;  %v1977_v45 = vrot.slane %v1853_v0, 1  ;;  %v2097_v58 = vmul.f32 %v7249_v35, %v8390_v33 }
 0x12f   : > { %v1735_v62 = vadd.f32 %v1667_v54, %v1491_v37  ;;  %v1736_v46 = vadd.f32 %v1669_v9, %v1492_v20  ;;  %v2098_v60 = vmul.f32 %v7249_v35, %v8398_v7  ;;  %v2099_v4 = vmul.f32 %v7249_v35, %v8405_v38 }
 0x130   : > { %v1978_v55 = vrot.slane %v1854_v53, 1  ;;  %v1980_v25 = vrot.slane %v1855_v2, 1  ;;  %v2221_v63 = vrot.slane %v2097_v58, 2  ;;  %v692_v37 = vmul.f32 %v7149_v21, %v8303_v17 }
 0x131   : > { %v1803_v39 = vadd.f32 %v1771_v41, %v1735_v62  ;;  %v1804_v18 = vadd.f32 %v1772_v6, %v1736_v46  ;;  %v2222_v0 = vrot.slane %v2098_v60, 2  ;;  %v2224_v54 = vrot.slane %v2099_v4, 2 }
 0x132   : > { %v1979_v43 = vsel %vm542_vm0, %v1977_v45, %v1978_v55  ;;  %v1981_v20 = vsel %vm542_vm0, %v1978_v55, %v1980_v25  ;;  %v693_v53 = vmul.f32 %v7149_v21, %v8311_v61  ;;  %v743_v31 = vmul.f32 %v7152_v22, %v8303_v17  ;;  %v8439_v45 = vpop.f32.mrb[8].mxu0 }
 0x133   : > { %v2047_v9 = vadd.f32 %v1979_v43, %v1803_v39  ;;  %v2048_v41 = vadd.f32 %v1981_v20, %v1804_v18  ;;  %v2223_v62 = vsel %vm1038_vm1, %v2221_v63, %v2222_v0  ;;  %v2225_v2 = vsel %vm1038_vm1, %v2222_v0, %v2224_v54  ;;  %v8445_v60 = vpop.f32.mrb[9].mxu0 }
 0x134   : > { %v744_v6 = vmul.f32 %v7152_v22, %v8311_v61  ;;  %v745_v46 = vmul.f32 %v7152_v22, %v8316_v42  ;;  %v869_v55 = vrot.slane %v743_v31, 1  ;;  %v987_v21 = vmul.f32 %v7155_v23, %v8303_v17  ;;  %v8451_v18 = vpop.f32.mrb[10].mxu0 }
 0x135   : > { %v2291_v58 = vadd.f32 %v2223_v62, %v2047_v9  ;;  %v2292_v4 = vadd.f32 %v2225_v2, %v2048_v41  ;;  %v988_v25 = vmul.f32 %v7155_v23, %v8311_v61  ;;  %v989_v63 = vmul.f32 %v7155_v23, %v8316_v42  ;;  %v8458_v0 = vpop.f32.mrb[11].mxu0 }
 0x136   : > { %v870_v39 = vrot.slane %v744_v6, 1  ;;  %v872_v22 = vrot.slane %v745_v46, 1  ;;  %v1114_v31 = vrot.slane %v987_v21, 2  ;;  %v1217_v17 = vmul.f32 %v7167_v27, %v8390_v33  ;;  %v491_v6 = vld [vmem:[%s7117_s14 + $0x198] sm:$0xff] }
 0x137   : > { %v8454_v43 = vadd.f32 %v8273_v50, %v2291_v58  ;;  %v8461_v54 = vadd.f32 %v8273_v50, %v2292_v4  ;;  %v1115_v20 = vrot.slane %v988_v25, 2  ;;  %v1117_v23 = vrot.slane %v989_v63, 2 }
 0x138   : > { %v871_v61 = vsel %vm542_vm0, %v869_v55, %v870_v39  ;;  %v873_v42 = vsel %vm542_vm0, %v870_v39, %v872_v22  ;;  %v1218_v41 = vmul.f32 %v7167_v27, %v8398_v7  ;;  %v1300_v62 = vmul.f32 %v7170_v28, %v8390_v33  ;;  %v492_v39 = vld [vmem:[%s7117_s14 + $0x1a0] sm:$0xff] }
 0x139   : > { %10994 = vst [vmem:[#allocation39_spill] sm:$0xff] %v8454_v43  ;;  %10995 = vst [vmem:[#allocation40_spill] sm:$0xff] %v8461_v54  ;;  %v936_v9 = vadd.f32 %v871_v61, %v692_v37  ;;  %v8471_v2 = vpack.c.bf16 %v8461_v54, %v8454_v43  ;;  %v937_v58 = vadd.f32 %v873_v42, %v693_v53 }
 0x13a   : > { %v1116_v46 = vsel %vm1038_vm1, %v1114_v31, %v1115_v20  ;;  %v1118_v55 = vsel %vm1038_vm1, %v1115_v20, %v1117_v23  ;;  %v1301_v37 = vmul.f32 %v7170_v28, %v8398_v7  ;;  %v1302_v27 = vmul.f32 %v7170_v28, %v8405_v38  ;;  %v493_v23 = vld [vmem:[%s7117_s14 + $0x1a8] sm:$0x3] }
 0x13b   : > { %v1181_v21 = vadd.f32 %v1116_v46, %v936_v9  ;;  %v1426_v4 = vrot.slane %v1300_v62, 1  ;;  %2700 = vmatmul.mubr.bf16.gmra.mrb[56].mxu0 %v8471_v2  ;;  %v1182_v25 = vadd.f32 %v1118_v55, %v937_v58  ;;  %v1544_v53 = vmul.f32 %v7173_v29, %v8390_v33 }
 0x13c   : > { %v1545_v63 = vmul.f32 %v7173_v29, %v8398_v7  ;;  %v1546_v22 = vmul.f32 %v7173_v29, %v8405_v38  ;;  %2709 = vmatprep.mubr.bf16.mxu0 %v10983_v47  ;;  %v1427_v61 = vrot.slane %v1301_v37, 1  ;;  %v1429_v20 = vrot.slane %v1302_v27, 1 }
 0x13d   : > { %v1249_v31 = vadd.f32 %v1217_v17, %v1181_v21  ;;  %v1773_v28 = vmul.f32 %v7177_v30, %v491_v6  ;;  %v1250_v42 = vadd.f32 %v1218_v41, %v1182_v25  ;;  %v1670_v9 = vrot.slane %v1544_v53, 2 }
 0x13e   : > { %v1671_v62 = vrot.slane %v1545_v63, 2  ;;  %v1673_v58 = vrot.slane %v1546_v22, 2  ;;  %v1428_v33 = vsel %vm542_vm0, %v1426_v4, %v1427_v61  ;;  %v1430_v46 = vsel %vm542_vm0, %v1427_v61, %v1429_v20 }
 0x13f   : > { %v1774_v7 = vmul.f32 %v7177_v30, %v492_v39  ;;  %v1856_v29 = vmul.f32 %v7245_v34, %v491_v6  ;;  %v1493_v38 = vadd.f32 %v1428_v33, %v1249_v31  ;;  %v1494_v55 = vadd.f32 %v1430_v46, %v1250_v42 }
 0x140   : > { %v1672_v17 = vsel %vm1038_vm1, %v1670_v9, %v1671_v62  ;;  %v1674_v21 = vsel %vm1038_vm1, %v1671_v62, %v1673_v58  ;;  %v1857_v37 = vmul.f32 %v7245_v34, %v492_v39  ;;  %v1858_v41 = vmul.f32 %v7245_v34, %v493_v23 }
 0x141   : > { %v1982_v27 = vrot.slane %v1856_v29, 1  ;;  %v2100_v25 = vmul.f32 %v7249_v35, %v491_v6  ;;  %v1737_v4 = vadd.f32 %v1672_v17, %v1493_v38  ;;  %v1738_v53 = vadd.f32 %v1674_v21, %v1494_v55 }
 0x142   : > { %v2101_v63 = vmul.f32 %v7249_v35, %v492_v39  ;;  %v2102_v30 = vmul.f32 %v7249_v35, %v493_v23  ;;  %v1983_v22 = vrot.slane %v1857_v37, 1  ;;  %v1985_v31 = vrot.slane %v1858_v41, 1  ;;  %v8506_v39 = vpop.f32.mrb[12].mxu0 }
 0x143   : > { %v2226_v61 = vrot.slane %v2100_v25, 2  ;;  %v1805_v20 = vadd.f32 %v1773_v28, %v1737_v4  ;;  %v1806_v42 = vadd.f32 %v1774_v7, %v1738_v53  ;;  %v2593_v35 = vpop.f32.mrb[13].mxu0 }
 0x144   : > { %v2227_v9 = vrot.slane %v2101_v63, 2  ;;  %v2229_v62 = vrot.slane %v2102_v30, 2  ;;  %v1984_v58 = vsel %vm542_vm0, %v1982_v27, %v1983_v22  ;;  %v1986_v34 = vsel %vm542_vm0, %v1983_v22, %v1985_v31  ;;  %v8508_v55 = vpop.f32.mrb[14].mxu0 }
 0x145   : > { %v2049_v33 = vadd.f32 %v1984_v58, %v1805_v20  ;;  %v2050_v46 = vadd.f32 %v1986_v34, %v1806_v42  ;;  %v2597_v28 = vpop.f32.mrb[15].mxu0 }
 0x146   : > { %v2228_v6 = vsel %vm1038_vm1, %v2226_v61, %v2227_v9  ;;  %v2230_v29 = vsel %vm1038_vm1, %v2227_v9, %v2229_v62 }
 0x147   : > { %v2293_v23 = vadd.f32 %v2228_v6, %v2049_v33  ;;  %v2294_v38 = vadd.f32 %v2230_v29, %v2050_v46 }
 0x149   : > { %v8511_v7 = vadd.f32 %v8273_v50, %v2293_v23  ;;  %v8514_v17 = vadd.f32 %v8273_v50, %v2294_v38  ;;  %v8532_v50 = vld [vmem:[%s10878_s4] sm:$0x7] }
 0x14a   : > { %10998 = vst [vmem:[#allocation43_spill] sm:$0xff] %v8532_v50  ;;  %v8536_v22 = vrot.slane %v8532_v50, %v7123_v11 }
 0x14b   : > { %10996 = vst [vmem:[#allocation41_spill] sm:$0xff] %v8511_v7  ;;  %10997 = vst [vmem:[#allocation42_spill] sm:$0xff] %v8514_v17  ;;  %v8518_v21 = vpack.c.bf16 %v8514_v17, %v8511_v7 }
 0x14c   : > { %v8540_v31 = vadd.f32 %v8283_v36, %v8536_v22  ;;  %v8544_v61 = vadd.f32 %v8264_v52, %v8536_v22  ;;  %v8548_v20 = vadd.f32 %v8354_v8, %v8536_v22  ;;  %v8558_v36 = vadd.f32 %v8364_v3, %v8536_v22 }
 0x14d   : > { %2710 = vmatmul.mubr.bf16.gmra.mrb[60].mxu0 %v8518_v21  ;;  %v8562_v52 = vadd.f32 %v8445_v60, %v8536_v22  ;;  %v8572_v29 = vadd.f32 %v8458_v0, %v8536_v22  ;;  %v8577_v60 = vadd.f32 %v2593_v35, %v8536_v22 }
 0x14e   : > { %v2993_v42 = vmul.f32 %v8540_v31, %v8540_v31  ;;  %v2992_v9 = vmul.f32 %v8544_v61, %v8544_v61  ;;  %v2994_v62 = vmul.f32 %v8548_v20, %v8548_v20  ;;  %v2995_v34 = vmul.f32 %v8558_v36, %v8558_v36 }
 0x14f   : > { %v2996_v6 = vmul.f32 %v8562_v52, %v8562_v52 }
 0x150   : > { %v3024_v58 = vadd.f32 %v2993_v42, %v2992_v9  ;;  %v2997_v9 = vmul.f32 %v8572_v29, %v8572_v29 }
 0x152   : > { %v3025_v8 = vadd.f32 %v3024_v58, %v2994_v62  ;;  %v2998_v62 = vmul.f32 %v8577_v60, %v8577_v60  ;;  %v8584_v58 = vadd.f32 %v2597_v28, %v8536_v22 }
 0x154   : > { %v3026_v38 = vadd.f32 %v3025_v8, %v2995_v34  ;;  %10999 = vst [vmem:[#allocation44_spill] sm:$0xff] %v8584_v58  ;;  %v2999_v8 = vmul.f32 %v8584_v58, %v8584_v58 }
 0x155   : > { %v8521_v37 = vpop.f32.mrb[16].mxu0 }
 0x156   : > { %v2603_v41 = vpop.f32.mrb[17].mxu0  ;;  %v3027_v42 = vadd.f32 %v3026_v38, %v2996_v6 }
 0x157   : > { %v8523_v27 = vpop.f32.mrb[18].mxu0  ;;  %v8587_v0 = vadd.f32 %v2603_v41, %v8536_v22 }
 0x158   : > { %v2607_v25 = vpop.f32.mrb[19].mxu0  ;;  %v3028_v11 = vadd.f32 %v3027_v42, %v2997_v9 }
 0x159   : > { %11000 = vst [vmem:[#allocation45_spill] sm:$0xff] %v8587_v0  ;;  %v3000_v35 = vmul.f32 %v8587_v0, %v8587_v0  ;;  %v8594_v34 = vadd.f32 %v2607_v25, %v8536_v22 }
 0x15a   : > { %v3029_v54 = vadd.f32 %v3028_v11, %v2998_v62 }
 0x15b   : > { %11001 = vst [vmem:[#allocation46_spill] sm:$0xff] %v8594_v34  ;;  %v3001_v42 = vmul.f32 %v8594_v34, %v8594_v34 }
 0x15c   : > { %v3030_v6 = vadd.f32 %v3029_v54, %v2999_v8 }
 0x15e   : > { %v3031_v28 = vadd.f32 %v3030_v6, %v3000_v35 }
 0x160   : > { %v3032_v54 = vadd.f32 %v3031_v28, %v3001_v42 }
 0x167   : > { %v8525_v4 = vpop.f32.mrb[20].mxu0 }
 0x168   : > { %v2613_v53 = vpop.f32.mrb[21].mxu0 }
 0x169   : > { %v8527_v63 = vpop.f32.mrb[22].mxu0  ;;  %v8597_v38 = vadd.f32 %v2613_v53, %v8536_v22 }
 0x16a   : > { %v2617_v30 = vpop.f32.mrb[23].mxu0 }
 0x16b   : > { %11002 = vst [vmem:[#allocation47_spill] sm:$0xff] %v8597_v38  ;;  %v3002_v9 = vmul.f32 %v8597_v38, %v8597_v38  ;;  %v8606_v62 = vadd.f32 %v2617_v30, %v8536_v22 }
 0x16d   : > { %11003 = vst [vmem:[#allocation48_spill] sm:$0xff] %v8606_v62  ;;  %v3033_v8 = vadd.f32 %v3032_v54, %v3002_v9  ;;  %v3003_v35 = vmul.f32 %v8606_v62, %v8606_v62 }
 0x16f   : > { %v3034_v7 = vadd.f32 %v3033_v8, %v3003_v35 }
 0x17a   : > { %v8566_v33 = vpop.f32.mrb[24].mxu0 }
 0x17b   : > { %v2623_v46 = vpop.f32.mrb[25].mxu0 }
 0x17c   : > { %v8574_v3 = vpop.f32.mrb[26].mxu0  ;;  %v8611_v53 = vadd.f32 %v2623_v46, %v8536_v22 }
 0x17d   : > { %v2627_v23 = vpop.f32.mrb[27].mxu0 }
 0x17e   : > { %11004 = vst [vmem:[#allocation49_spill] sm:$0xff] %v8611_v53  ;;  %v3004_v6 = vmul.f32 %v8611_v53, %v8611_v53  ;;  %v8618_v43 = vadd.f32 %v2627_v23, %v8536_v22 }
 0x180   : > { %11005 = vst [vmem:[#allocation50_spill] sm:$0xff] %v8618_v43  ;;  %v3035_v5 = vadd.f32 %v3034_v7, %v3004_v6  ;;  %v3005_v28 = vmul.f32 %v8618_v43, %v8618_v43 }
 0x182   : > { %v3036_v9 = vadd.f32 %v3035_v5, %v3005_v28 }
 0x18c   : > { %v8601_v41 = vpop.f32.mrb[28].mxu0 }
 0x18d   : > { %v2633_v11 = vpop.f32.mrb[29].mxu0 }
 0x18e   : > { %v8608_v17 = vpop.f32.mrb[30].mxu0  ;;  %v8621_v30 = vadd.f32 %v2633_v11, %v8536_v22 }
 0x18f   : > { %v2637_v25 = vpop.f32.mrb[31].mxu0 }
 0x190   : > { %11006 = vst [vmem:[#allocation51_spill] sm:$0xff] %v8621_v30  ;;  %v3006_v46 = vmul.f32 %v8621_v30, %v8621_v30  ;;  %v8628_v42 = vadd.f32 %v2637_v25, %v8536_v22 }
 0x192   : > { %11007 = vst [vmem:[#allocation52_spill] sm:$0xff] %v8628_v42  ;;  %v3037_v54 = vadd.f32 %v3036_v9, %v3006_v46  ;;  %v3007_v23 = vmul.f32 %v8628_v42, %v8628_v42 }
 0x194   : > { %v3038_v6 = vadd.f32 %v3037_v54, %v3007_v23  ;;  %v6688_v54 = vld [vmem:[%s10877_s3 + $0x8] ss:$12 sps:$4 sm:$0xff]  }
 0x195   : > { %6365 = vmatprep.subr.bf16.mxu1 %v6688_v54 }
 0x196   : > { %6366 = vmatpush3.bf16.msra.mxu1 %v6688_v54 }
 0x19f   : > { %v8632_v47 = vpop.f32.mrb[32].mxu0 }
 0x1a0   : > { %v2643_v8 = vpop.f32.mrb[33].mxu0 }
 0x1a1   : > { %v8635_v11 = vadd.f32 %v2643_v8, %v8536_v22  ;;  %v8637_v7 = vpop.f32.mrb[34].mxu0 }
 0x1a2   : > { %v2647_v35 = vpop.f32.mrb[35].mxu0 }
 0x1a3   : > { %v3008_v12 = vmul.f32 %v8635_v11, %v8635_v11  ;;  %v8642_v25 = vadd.f32 %v2647_v35, %v8536_v22 }
 0x1a5   : > { %v3039_v5 = vadd.f32 %v3038_v6, %v3008_v12  ;;  %v3009_v28 = vmul.f32 %v8642_v25, %v8642_v25 }
 0x1a7   : > { %v3040_v46 = vadd.f32 %v3039_v5, %v3009_v28  ;;  %v6689_v5 = vld [vmem:[%s10877_s3 + $0x20] ss:$12 sps:$4 sm:$0xff]   ;;  %v8668_v28 = vrot.slane %v8532_v50, %v7120_v10 }
 0x1a8   : > { %6367 = vmatprep.subr.bf16.mxu1 %v6689_v5 }
 0x1a9   : > { %6368 = vmatpush3.bf16.msra.mxu1 %v6689_v5  ;;  %v8679_v54 = vadd.f32 %v8260_v48, %v8668_v28  ;;  %v8696_v5 = vadd.f32 %v8360_v1, %v8668_v28  ;;  %v8700_v50 = vadd.f32 %v8439_v45, %v8668_v28  ;;  %v8713_v45 = vadd.f32 %v8451_v18, %v8668_v28 }
 0x1aa   : > { %v8725_v0 = vadd.f32 %v8506_v39, %v8668_v28  ;;  %v6694_v39 = vld [vmem:[%s10877_s3 + $0x98] ss:$12 sps:$4 sm:$0xff]  }
 0x1ab   : > { %11008 = vst [vmem:[#allocation53_spill] sm:$0xff] %v8696_v5  ;;  %11009 = vst [vmem:[#allocation54_spill] sm:$0xff] %v8700_v50  ;;  %v2885_v62 = vmul.f32 %v8696_v5, %v8696_v5  ;;  %v2886_v1 = vmul.f32 %v8700_v50, %v8700_v50 }
 0x1ac   : > { %11010 = vst [vmem:[#allocation55_spill] sm:$0xff] %v8713_v45  ;;  %11011 = vst [vmem:[#allocation56_spill] sm:$0xff] %v8725_v0 }
 0x1b1   : > { %v8646_v9 = vpop.f32.mrb[36].mxu0 }
 0x1b2   : > { %v2653_v42 = vpop.f32.mrb[37].mxu0 }
 0x1b3   : > { %v8649_v8 = vadd.f32 %v2653_v42, %v8536_v22  ;;  %v8651_v30 = vpop.f32.mrb[38].mxu0 }
 0x1b4   : > { %v2657_v23 = vpop.f32.mrb[39].mxu0 }
 0x1b5   : > { %v3010_v12 = vmul.f32 %v8649_v8, %v8649_v8  ;;  %v8659_v35 = vadd.f32 %v2657_v23, %v8536_v22  ;;  %v8672_v23 = vadd.f32 %v8268_v13, %v8668_v28  ;;  %v6691_v13 = vld [vmem:[%s10877_s3 + $0x50] ss:$12 sps:$4 sm:$0xff]  }
 0x1b7   : > { %v3041_v6 = vadd.f32 %v3040_v46, %v3010_v12  ;;  %v3011_v42 = vmul.f32 %v8659_v35, %v8659_v35  ;;  %v6690_v46 = vld [vmem:[%s10877_s3 + $0x38] ss:$12 sps:$4 sm:$0xff]   ;;  %v8683_v12 = vadd.f32 %v8345_v57, %v8668_v28 }
 0x1b8   : > { %6369 = vmatprep.subr.bf16.mxu1 %v6690_v46 }
 0x1b9   : > { %v3042_v43 = vadd.f32 %v3041_v6, %v3011_v42  ;;  %v2883_v6 = vmul.f32 %v8672_v23, %v8672_v23  ;;  %6370 = vmatpush3.bf16.msra.mxu1 %v6690_v46  ;;  %v2882_v42 = vmul.f32 %v8679_v54, %v8679_v54  ;;  %v2884_v48 = vmul.f32 %v8683_v12, %v8683_v12  ;;  %v6692_v46 = vld [vmem:[%s10877_s3 + $0x68] ss:$12 sps:$4 sm:$0xff]  }
 0x1ba   : > { %6371 = vmatprep.subr.bf16.mxu1 %v6691_v13 }
 0x1bb   : > { %v2914_v57 = vadd.f32 %v2883_v6, %v2882_v42 }
 0x1bd   : > { %6372 = vmatpush3.bf16.msra.mxu1 %v6691_v13  ;;  %v2915_v53 = vadd.f32 %v2914_v57, %v2884_v48  ;;  %v6693_v48 = vld [vmem:[%s10877_s3 + $0x80] ss:$12 sps:$4 sm:$0xff]  }
 0x1be   : > { %6373 = vmatprep.subr.bf16.mxu1 %v6692_v46 }
 0x1bf   : > { %v2916_v57 = vadd.f32 %v2915_v53, %v2885_v62  ;;  %v2888_v62 = vmul.f32 %v8725_v0, %v8725_v0  ;;  %v8743_v53 = vadd.f32 %v8508_v55, %v8668_v28 }
 0x1c1   : > { %6374 = vmatpush3.bf16.msra.mxu1 %v6692_v46  ;;  %v2887_v46 = vmul.f32 %v8713_v45, %v8713_v45  ;;  %11012 = vst [vmem:[#allocation57_spill] sm:$0xff] %v8743_v53 }
 0x1c2   : > { %6375 = vmatprep.subr.bf16.mxu1 %v6693_v48 }
 0x1c4   : > { %v8707_v38 = vpop.f32.mrb[40].mxu0 }
 0x1c5   : > { %v2663_v34 = vpop.f32.mrb[41].mxu0  ;;  %6376 = vmatpush3.bf16.msra.mxu1 %v6693_v48  ;;  %v6695_v48 = vld [vmem:[%s10877_s3 + $0xb0] ss:$12 sps:$4 sm:$0xff]  }
 0x1c6   : > { %v8716_v6 = vadd.f32 %v2663_v34, %v8536_v22  ;;  %v8718_v13 = vpop.f32.mrb[42].mxu0  ;;  %v2917_v34 = vadd.f32 %v2916_v57, %v2886_v1  ;;  %6377 = vmatprep.subr.bf16.mxu1 %v6694_v39 }
 0x1c7   : > { %v2667_v42 = vpop.f32.mrb[43].mxu0 }
 0x1c8   : > { %v3012_v18 = vmul.f32 %v8716_v6, %v8716_v6  ;;  %v8730_v50 = vadd.f32 %v2667_v42, %v8536_v22  ;;  %v2918_v42 = vadd.f32 %v2917_v34, %v2887_v46 }
 0x1c9   : > { %6378 = vmatpush3.bf16.msra.mxu1 %v6694_v39 }
 0x1ca   : > { %v3043_v5 = vadd.f32 %v3042_v43, %v3012_v18  ;;  %v3013_v58 = vmul.f32 %v8730_v50, %v8730_v50  ;;  %v8747_v43 = vadd.f32 %v8521_v37, %v8668_v28  ;;  %v2919_v57 = vadd.f32 %v2918_v42, %v2888_v62  ;;  %6379 = vmatprep.subr.bf16.mxu1 %v6695_v48 }
 0x1cb   : > { %v2889_v18 = vmul.f32 %v8743_v53, %v8743_v53  ;;  %v8772_v42 = vadd.f32 %v8527_v63, %v8668_v28 }
 0x1cc   : > { %v3044_v1 = vadd.f32 %v3043_v5, %v3013_v58  ;;  %11013 = vst [vmem:[#allocation58_spill] sm:$0xff] %v8747_v43  ;;  %v2890_v55 = vmul.f32 %v8747_v43, %v8747_v43  ;;  %v8758_v58 = vadd.f32 %v8523_v27, %v8668_v28  ;;  %v8762_v5 = vadd.f32 %v8525_v4, %v8668_v28 }
 0x1cd   : > { %6380 = vmatpush3.bf16.msra.mxu1 %v6695_v48  ;;  %v2920_v37 = vadd.f32 %v2919_v57, %v2889_v18  ;;  %11016 = vst [vmem:[#allocation61_spill] sm:$0xff] %v8772_v42  ;;  %v8779_v18 = vadd.f32 %v8566_v33, %v8668_v28  ;;  %v2893_v63 = vmul.f32 %v8772_v42, %v8772_v42 }
 0x1ce   : > { %11014 = vst [vmem:[#allocation59_spill] sm:$0xff] %v8758_v58  ;;  %11015 = vst [vmem:[#allocation60_spill] sm:$0xff] %v8762_v5  ;;  %v2891_v46 = vmul.f32 %v8758_v58, %v8758_v58  ;;  %v2892_v27 = vmul.f32 %v8762_v5, %v8762_v5 }
 0x1cf   : > { %v2921_v34 = vadd.f32 %v2920_v37, %v2890_v55  ;;  %v2894_v33 = vmul.f32 %v8779_v18, %v8779_v18 }
 0x1d0   : > { %6382 = vmatmul.mubr.bf16.vlgmr.msra.gmra.mrb[0].mxu1 %v7380_v15 }
 0x1d1   : > { %6385 = vmatprep.mubr.bf16.mxu1 %v7465_v56  ;;  %v2922_v57 = vadd.f32 %v2921_v34, %v2891_v46  ;;  %v8795_v34 = vadd.f32 %v8574_v3, %v8668_v28 }
 0x1d3   : > { %v2923_v37 = vadd.f32 %v2922_v57, %v2892_v27  ;;  %v2895_v57 = vmul.f32 %v8795_v34, %v8795_v34 }
 0x1d5   : > { %v2924_v27 = vadd.f32 %v2923_v37, %v2893_v63 }
 0x1d6   : > { %v2671_v39 = vpop.f32.mrb[44].mxu0 }
 0x1d7   : > { %v2673_v62 = vpop.f32.mrb[45].mxu0 }
 0x1d8   : > { %v8775_v4 = vadd.f32 %v2673_v62, %v8536_v22  ;;  %v2675_v48 = vpop.f32.mrb[46].mxu0  ;;  %6386 = vmatmul.mubr.bf16.gmra.mrb[4].mxu1 %v7546_v40 }
 0x1d9   : > { %v2677_v15 = vpop.f32.mrb[47].mxu0  ;;  %6389 = vmatprep.mubr.bf16.mxu1 %v7625_v24  ;;  %v8813_v24 = vadd.f32 %v8632_v47, %v8668_v28 }
 0x1da   : > { %v3014_v56 = vmul.f32 %v8775_v4, %v8775_v4  ;;  %v8784_v55 = vadd.f32 %v2677_v15, %v8536_v22  ;;  %v8800_v15 = vadd.f32 %v8601_v41, %v8668_v28 }
 0x1dc   : > { %v3045_v5 = vadd.f32 %v3044_v1, %v3014_v56  ;;  %v3015_v62 = vmul.f32 %v8784_v55, %v8784_v55  ;;  %v2925_v1 = vadd.f32 %v2924_v27, %v2894_v33  ;;  %v2896_v40 = vmul.f32 %v8800_v15, %v8800_v15 }
 0x1dd   : > { %v8808_v56 = vadd.f32 %v8608_v17, %v8668_v28  ;;  %v8822_v17 = vadd.f32 %v8637_v7, %v8668_v28 }
 0x1de   : > { %v3046_v46 = vadd.f32 %v3045_v5, %v3015_v62  ;;  %v2926_v3 = vadd.f32 %v2925_v1, %v2895_v57  ;;  %v2898_v62 = vmul.f32 %v8813_v24, %v8813_v24 }
 0x1df   : > { %v2897_v5 = vmul.f32 %v8808_v56, %v8808_v56 }
 0x1e0   : > { %6390 = vmatmul.mubr.bf16.gmra.mrb[8].mxu1 %v7709_v44  ;;  %v2927_v41 = vadd.f32 %v2926_v3, %v2896_v40  ;;  %v2899_v40 = vmul.f32 %v8822_v17, %v8822_v17 }
 0x1e1   : > { %6393 = vmatprep.mubr.bf16.mxu1 %v7794_v26  ;;  %v8829_v26 = vadd.f32 %v8646_v9, %v8668_v28 }
 0x1e2   : > { %v2928_v27 = vadd.f32 %v2927_v41, %v2897_v5  ;;  %v8846_v5 = vadd.f32 %v8651_v30, %v8668_v28 }
 0x1e3   : > { %v2900_v9 = vmul.f32 %v8829_v26, %v8829_v26 }
 0x1e4   : > { %v2929_v7 = vadd.f32 %v2928_v27, %v2898_v62  ;;  %v8859_v27 = vadd.f32 %v8718_v13, %v8668_v28 }
 0x1e6   : > { %11018 = vst [vmem:[#allocation63_spill] sm:$0xff] %v8859_v27 }
 0x1e8   : > { %6394 = vmatmul.mubr.bf16.gmra.mrb[12].mxu1 %v7875_v32  ;;  %v8850_v32 = vadd.f32 %v8707_v38, %v8668_v28 }
 0x1e9   : > { %v2681_v37 = vpop.f32.mrb[48].mxu0  ;;  %6397 = vmatprep.mubr.bf16.mxu1 %v7954_v51 }
 0x1ea   : > { %v2683_v63 = vpop.f32.mrb[49].mxu0  ;;  %11017 = vst [vmem:[#allocation62_spill] sm:$0xff] %v8850_v32  ;;  %v2902_v51 = vmul.f32 %v8850_v32, %v8850_v32 }
 0x1eb   : > { %v8825_v44 = vadd.f32 %v2683_v63, %v8536_v22  ;;  %v2685_v47 = vpop.f32.mrb[50].mxu0 }
 0x1ec   : > { %v2687_v33 = vpop.f32.mrb[51].mxu0 }
 0x1ed   : > { %v3016_v1 = vmul.f32 %v8825_v44, %v8825_v44  ;;  %v8834_v57 = vadd.f32 %v2687_v33, %v8536_v22  ;;  %v2930_v33 = vadd.f32 %v2929_v7, %v2899_v40  ;;  %v2903_v7 = vmul.f32 %v8859_v27, %v8859_v27 }
 0x1ef   : > { %v3047_v3 = vadd.f32 %v3046_v46, %v3016_v1  ;;  %v3017_v41 = vmul.f32 %v8834_v57, %v8834_v57  ;;  %v2931_v62 = vadd.f32 %v2930_v33, %v2900_v9  ;;  %v2901_v46 = vmul.f32 %v8846_v5, %v8846_v5 }
 0x1f0   : > { %6398 = vmatmul.mubr.bf16.gmra.mrb[16].mxu1 %v8033_v14  ;;  %v8863_v1 = vadd.f32 %v2671_v39, %v8668_v28  ;;  %v8877_v33 = vadd.f32 %v2681_v37, %v8668_v28 }
 0x1f1   : > { %v3048_v63 = vadd.f32 %v3047_v3, %v3017_v41  ;;  %6401 = vmatprep.mubr.bf16.mxu1 %v8118_v49  ;;  %v2932_v30 = vadd.f32 %v2931_v62, %v2901_v46  ;;  %v8870_v41 = vadd.f32 %v2675_v48, %v8668_v28 }
 0x1f2   : > { %11019 = vst [vmem:[#allocation64_spill] sm:$0xff] %v8863_v1  ;;  %v2904_v14 = vmul.f32 %v8863_v1, %v8863_v1  ;;  %11021 = vst [vmem:[#allocation66_spill] sm:$0xff] %v8877_v33  ;;  %v2906_v37 = vmul.f32 %v8877_v33, %v8877_v33 }
 0x1f3   : > { %v2933_v38 = vadd.f32 %v2932_v30, %v2902_v51  ;;  %11020 = vst [vmem:[#allocation65_spill] sm:$0xff] %v8870_v41  ;;  %v2905_v51 = vmul.f32 %v8870_v41, %v8870_v41 }
 0x1f5   : > { %v2934_v39 = vadd.f32 %v2933_v38, %v2903_v7  ;;  %v8892_v38 = vadd.f32 %v2685_v47, %v8668_v28 }
 0x1f7   : > { %v2935_v48 = vadd.f32 %v2934_v39, %v2904_v14  ;;  %11022 = vst [vmem:[#allocation67_spill] sm:$0xff] %v8892_v38 }
 0x1f8   : > { %6402 = vmatmul.mubr.bf16.gmra.mrb[20].mxu1 %v8199_v16 }
 0x1f9   : > { %6405 = vmatprep.mubr.bf16.mxu1 %v8291_v19 }
 0x1fb   : > { %v2691_v40 = vpop.f32.mrb[52].mxu0 }
 0x1fc   : > { %v2693_v3 = vpop.f32.mrb[53].mxu0 }
 0x1fd   : > { %v8873_v13 = vadd.f32 %v2693_v3, %v8536_v22  ;;  %v2695_v49 = vpop.f32.mrb[54].mxu0  ;;  %v2936_v3 = vadd.f32 %v2935_v48, %v2905_v51 }
 0x1fe   : > { %v2697_v9 = vpop.f32.mrb[55].mxu0  ;;  %v8904_v39 = vadd.f32 %v2695_v49, %v8668_v28 }
 0x1ff   : > { %v3018_v62 = vmul.f32 %v8873_v13, %v8873_v13  ;;  %v8882_v46 = vadd.f32 %v2697_v9, %v8536_v22  ;;  %v8895_v9 = vadd.f32 %v2691_v40, %v8668_v28  ;;  %v2937_v19 = vadd.f32 %v2936_v3, %v2906_v37 }
 0x200   : > { %6406 = vmatmul.mubr.bf16.gmra.mrb[24].mxu1 %v8378_v59  ;;  %11024 = vst [vmem:[#allocation69_spill] sm:$0xff] %v8904_v39  ;;  %v2909_v40 = vmul.f32 %v8904_v39, %v8904_v39 }
 0x201   : > { %v3049_v30 = vadd.f32 %v3048_v63, %v3018_v62  ;;  %v3019_v16 = vmul.f32 %v8882_v46, %v8882_v46  ;;  %11023 = vst [vmem:[#allocation68_spill] sm:$0xff] %v8895_v9  ;;  %v2907_v63 = vmul.f32 %v8892_v38, %v8892_v38  ;;  %6409 = vmatprep.mubr.bf16.mxu1 %v8471_v2 }
 0x202   : > { %v2908_v14 = vmul.f32 %v8895_v9, %v8895_v9 }
 0x203   : > { %v3050_v7 = vadd.f32 %v3049_v30, %v3019_v16  ;;  %v2938_v47 = vadd.f32 %v2937_v19, %v2907_v63 }
 0x205   : > { %v2939_v62 = vadd.f32 %v2938_v47, %v2908_v14 }
 0x207   : > { %v2940_v16 = vadd.f32 %v2939_v62, %v2909_v40 }
 0x208   : > { %6410 = vmatmul.mubr.bf16.gmra.mrb[28].mxu1 %v8518_v21 }
 0x20e   : > { %v2701_v48 = vpop.f32.mrb[56].mxu0 }
 0x20f   : > { %v2702_v59 = vadd.f32 %v2701_v48, %v8668_v28  ;;  %v2703_v51 = vpop.f32.mrb[57].mxu0 }
 0x210   : > { %v8911_v30 = vadd.f32 %v2703_v51, %v8536_v22  ;;  %v2705_v2 = vpop.f32.mrb[58].mxu0 }
 0x211   : > { %v2910_v37 = vmul.f32 %v2702_v59, %v2702_v59  ;;  %v2706_v49 = vadd.f32 %v2705_v2, %v8668_v28  ;;  %v2707_v3 = vpop.f32.mrb[59].mxu0 }
 0x212   : > { %v3020_v19 = vmul.f32 %v8911_v30, %v8911_v30  ;;  %v8917_v63 = vadd.f32 %v2707_v3, %v8536_v22 }
 0x213   : > { %v2941_v14 = vadd.f32 %v2940_v16, %v2910_v37  ;;  %v2911_v21 = vmul.f32 %v2706_v49, %v2706_v49 }
 0x214   : > { %v3051_v47 = vadd.f32 %v3050_v7, %v3020_v19  ;;  %v3021_v48 = vmul.f32 %v8917_v63, %v8917_v63 }
 0x215   : > { %v2942_v51 = vadd.f32 %v2941_v14, %v2911_v21 }
 0x216   : > { %v3052_v39 = vadd.f32 %v3051_v47, %v3021_v48 }
 0x220   : > { %v2711_v42 = vpop.f32.mrb[60].mxu0 }
 0x221   : > { %v2712_v62 = vadd.f32 %v2711_v42, %v8668_v28  ;;  %v2713_v40 = vpop.f32.mrb[61].mxu0 }
 0x222   : > { %v2714_v2 = vadd.f32 %v2713_v40, %v8536_v22  ;;  %v2715_v9 = vpop.f32.mrb[62].mxu0 }
 0x223   : > { %v2912_v38 = vmul.f32 %v2712_v62, %v2712_v62  ;;  %v2716_v58 = vadd.f32 %v2715_v9, %v8668_v28  ;;  %v2717_v3 = vpop.f32.mrb[63].mxu0 }
 0x224   : > { %v3022_v33 = vmul.f32 %v2714_v2, %v2714_v2  ;;  %v2718_v16 = vadd.f32 %v2717_v3, %v8536_v22 }
 0x225   : > { %v2943_v7 = vadd.f32 %v2942_v51, %v2912_v38  ;;  %v2913_v37 = vmul.f32 %v2716_v58, %v2716_v58 }
 0x226   : > { %v3053_v19 = vadd.f32 %v3052_v39, %v3022_v33  ;;  %v3023_v43 = vmul.f32 %v2718_v16, %v2718_v16 }
 0x227   : > { %v2944_v14 = vadd.f32 %v2943_v7, %v2913_v37 }
 0x228   : > { %v3054_v21 = vadd.f32 %v3053_v19, %v3023_v43  ;;  %v2881_v43 = vld [vmem:[%s10879_s5] sm:$0x1] }
 0x229   : > { %v2945_v47 = vrot.slane %v2944_v14, 4 }
 0x22a   : > { %v3055_v48 = vrot.slane %v3054_v21, 4 }
 0x22b   : > { %v2946_v42 = vadd.f32 %v2945_v47, %v2944_v14 }
 0x22c   : > { %v3056_v41 = vadd.f32 %v3055_v48, %v3054_v21 }
 0x22d   : > { %v2947_v53 = vrot.slane %v2946_v42, 2 }
 0x22e   : > { %v3057_v40 = vrot.slane %v3056_v41, 2 }
 0x22f   : > { %v2948_v1 = vadd.f32 %v2947_v53, %v2946_v42 }
 0x230   : > { %v3058_v0 = vadd.f32 %v3057_v40, %v3056_v41 }
 0x231   : > { %v2949_v27 = vrot.slane %v2948_v1, 1 }
 0x232   : > { %v3059_v28 = vrot.slane %v3058_v0, 1 }
 0x233   : > { %v2950_v9 = vadd.f32 %v2949_v27, %v2948_v1 }
 0x234   : > { %v3060_v45 = vadd.f32 %v3059_v28, %v3058_v0 }
 0x235   : > { %v2951_v32 = vmax.f32 %v2950_v9, 1e-24 }
 0x236   : > { %v3061_v22 = vmax.f32 %v3060_v45, 1e-24 }
 0x237   : > { %6784 = vrsqrt.f32 %v2951_v32 }
 0x238   : > { %6786 = vrsqrt.f32 %v3061_v22  ;;  %v11025_v22 = vld [vmem:[#allocation44_spill] sm:$0xff] }
 0x241   : > { %v6785_v33 = vpop.eup %6784 }
 0x242   : > { %v8928_v38 = vpop.eup %6786  ;;  %v2953_v39 = vmul.f32 %v6785_v33, %v2881_v43 }
 0x243   : > { %v8931_v51 = vmul.f32 %v8928_v38, %v2718_v16  ;;  %v3063_v1 = vmul.f32 %v8928_v38, %v8544_v61  ;;  %v3064_v41 = vmul.f32 %v8928_v38, %v8540_v31  ;;  %v3079_v3 = vmul.f32 %v8928_v38, %v8635_v11 }
 0x244   : > { %v8934_v53 = vrot.slane %v2953_v39, %v7120_v10  ;;  %v3084_v61 = vmul.f32 %v8928_v38, %v8730_v50  ;;  %v3085_v31 = vmul.f32 %v8928_v38, %v8775_v4  ;;  %v3086_v11 = vmul.f32 %v8928_v38, %v8784_v55  ;;  %v11026_v39 = vld [vmem:[#allocation53_spill] sm:$0xff] }
 0x245   : > { %v8982_v50 = vmul.f32 %v8928_v38, %v8911_v30  ;;  %v8986_v4 = vmul.f32 %v8928_v38, %v8917_v63  ;;  %v8989_v55 = vmul.f32 %v8928_v38, %v2714_v2  ;;  %v3066_v30 = vmul.f32 %v8928_v38, %v8558_v36 }
 0x246   : > { %v8937_v0 = vmul.f32 %v8934_v53, %v2716_v58  ;;  %v8940_v45 = vmul.f32 %v8934_v53, %v2702_v59  ;;  %v8943_v32 = vmul.f32 %v8934_v53, %v2706_v49  ;;  %v8946_v27 = vmul.f32 %v8934_v53, %v2712_v62 }
 0x247   : > { %v3080_v58 = vmul.f32 %v8928_v38, %v8642_v25  ;;  %v3081_v59 = vmul.f32 %v8928_v38, %v8649_v8  ;;  %v3082_v49 = vmul.f32 %v8928_v38, %v8659_v35  ;;  %v3083_v62 = vmul.f32 %v8928_v38, %v8716_v6 }
 0x248   : > { %v3087_v25 = vmul.f32 %v8928_v38, %v8825_v44  ;;  %v3088_v8 = vmul.f32 %v8928_v38, %v8834_v57  ;;  %v8974_v35 = vmul.f32 %v8928_v38, %v8873_v13  ;;  %v8978_v6 = vmul.f32 %v8928_v38, %v8882_v46 }
 0x249   : > { %v3065_v44 = vmul.f32 %v8928_v38, %v8548_v20  ;;  %v3175_v57 = vpack.c.bf16 %v3064_v41, %v3063_v1  ;;  %v2961_v13 = vmul.f32 %v8934_v53, %v8672_v23  ;;  %v8997_v46 = vmul.f32 %v8934_v53, %v8779_v18  ;;  %v11027_v1 = vld [vmem:[#allocation45_spill] sm:$0xff] }
 0x24a   : > { %v3183_v16 = vpack.c.bf16 %v3080_v58, %v3079_v3  ;;  %v3184_v63 = vpack.c.bf16 %v3082_v49, %v3081_v59  ;;  %v2960_v2 = vmul.f32 %v8934_v53, %v8679_v54  ;;  %v2976_v7 = vmul.f32 %v8934_v53, %v8813_v24  ;;  %v11028_v3 = vld [vmem:[#allocation46_spill] sm:$0xff] }
 0x24b   : > { %v3185_v20 = vpack.c.bf16 %v3084_v61, %v3083_v62  ;;  %v9007_v37 = vmul.f32 %v8934_v53, %v8795_v34  ;;  %v9011_v23 = vmul.f32 %v8934_v53, %v8800_v15  ;;  %v3186_v18 = vpack.c.bf16 %v3086_v11, %v3085_v31  ;;  %v11029_v59 = vld [vmem:[#allocation54_spill] sm:$0xff] }
 0x24c   : > { %6029 = vmatprep.subr.bf16.mxu1 %v3183_v16  ;;  %v3187_v36 = vpack.c.bf16 %v3088_v8, %v3087_v25  ;;  %v9015_v19 = vmul.f32 %v8934_v53, %v8808_v56  ;;  %v2977_v54 = vmul.f32 %v8934_v53, %v8822_v17  ;;  %v6552_v24 = vpack.i.bf16 %v2960_v2, %v2976_v7  ;;  %v11030_v62 = vld [vmem:[#allocation62_spill] sm:$0xff]  ;;  %v11032_v25 = vld [vmem:[#allocation48_spill] sm:$0xff] }
 0x24d   : > { %6030 = vmatpush3.bf16.msra.mxu1 %v3175_v57  ;;  %v3188_v34 = vpack.c.bf16 %v8978_v6, %v8974_v35  ;;  %v3189_v15 = vpack.c.bf16 %v8986_v4, %v8982_v50  ;;  %v3190_v14 = vpack.c.bf16 %v8931_v51, %v8989_v55  ;;  %v3067_v21 = vmul.f32 %v8928_v38, %v8562_v52  ;;  %v11033_v6 = vld [vmem:[#allocation55_spill] sm:$0xff]  ;;  %v11035_v57 = vld [vmem:[#allocation49_spill] sm:$0xff]  ;;  %v11037_v2 = vld [vmem:[#allocation56_spill] sm:$0xff] }
 0x24e   : > { %6031 = vmatprep.subr.bf16.mxu1 %v3184_v63  ;;  %v3068_v56 = vmul.f32 %v8928_v38, %v8572_v29  ;;  %v3176_v47 = vpack.c.bf16 %v3066_v30, %v3065_v44  ;;  %6553 = vxpose.xlu0.b32.start [1/16] %v6552_v24, 128  ;;  %v6576_v17 = vpack.i.bf16 %v8997_v46, %v8940_v45  ;;  %v11034_v4 = vld [vmem:[#allocation63_spill] sm:$0xff]  ;;  %v11036_v30 = vld [vmem:[#allocation50_spill] sm:$0xff] }
 0x24f   : > { %v6578_v48 = vpack.i.bf16 %v9007_v37, %v8943_v32  ;;  %v6580_v42 = vpack.i.bf16 %v9011_v23, %v8946_v27  ;;  %v2962_v40 = vmul.f32 %v8934_v53, %v8683_v12  ;;  %v2978_v52 = vmul.f32 %v8934_v53, %v8829_v26 }
 0x250   : > { %v6554_v28 = vpack.i.bf16 %v2961_v13, %v2977_v54  ;;  %v6582_v29 = vpack.i.bf16 %v9015_v19, %v8937_v0  ;;  %v3069_v9 = vmul.f32 %v8928_v38, %v8577_v60  ;;  %v3070_v43 = vmul.f32 %v8928_v38, %v11025_v22  ;;  %v11039_v54 = vld [vmem:[#allocation51_spill] sm:$0xff] }
 0x251   : > { %6032 = vmatpush3.bf16.msra.mxu1 %v3176_v47  ;;  %v3177_v33 = vpack.c.bf16 %v3068_v56, %v3067_v21  ;;  %v2963_v12 = vmul.f32 %v8934_v53, %v11026_v39  ;;  %v2979_v26 = vmul.f32 %v8934_v53, %v8846_v5  ;;  %v6556_v51 = vpack.i.bf16 %v2962_v40, %v2978_v52  ;;  %v11031_v5 = vld [vmem:[#allocation47_spill] sm:$0xff]  ;;  %v11041_v47 = vld [vmem:[#allocation57_spill] sm:$0xff] }
 0x252   : > { %6033 = vmatprep.subr.bf16.mxu1 %v3185_v20  ;;  %6555 = vxpose.xlu0.b32.cont [2/16] %v6554_v28, 128  ;;  %v3071_v41 = vmul.f32 %v8928_v38, %v11027_v1  ;;  %v3072_v60 = vmul.f32 %v8928_v38, %v11028_v3  ;;  %v3178_v58 = vpack.c.bf16 %v3070_v43, %v3069_v9  ;;  %v11038_v20 = vld [vmem:[#allocation64_spill] sm:$0xff]  ;;  %v11042_v52 = vld [vmem:[#allocation65_spill] sm:$0xff] }
 0x253   : > { %v2964_v49 = vmul.f32 %v8934_v53, %v11029_v59  ;;  %v2980_v61 = vmul.f32 %v8934_v53, %v11030_v62  ;;  %v6558_v31 = vpack.i.bf16 %v2963_v12, %v2979_v26  ;;  %v3073_v11 = vmul.f32 %v8928_v38, %v11031_v5  ;;  %v11045_v12 = vld [vmem:[#allocation59_spill] sm:$0xff] }
 0x254   : > { %v3074_v8 = vmul.f32 %v8928_v38, %v11032_v25  ;;  %v3179_v35 = vpack.c.bf16 %v3072_v60, %v3071_v41  ;;  %v2965_v50 = vmul.f32 %v8934_v53, %v11033_v6  ;;  %v2981_v55 = vmul.f32 %v8934_v53, %v11034_v4  ;;  %v11048_v60 = vld [vmem:[#allocation68_spill] sm:$0xff]  ;;  %v11052_v25 = vld [vmem:[#allocation43_spill] sm:$0xff] }
 0x255   : > { %6034 = vmatpush3.bf16.msra.mxu1 %v3177_v33  ;;  %v6560_v44 = vpack.i.bf16 %v2964_v49, %v2980_v61  ;;  %v3075_v13 = vmul.f32 %v8928_v38, %v11035_v57  ;;  %v3076_v16 = vmul.f32 %v8928_v38, %v11036_v30  ;;  %v2966_v7 = vmul.f32 %v8934_v53, %v11037_v2  ;;  %v11044_v33 = vld [vmem:[#allocation66_spill] sm:$0xff]  ;;  %v11049_v49 = vld [vmem:[#allocation61_spill] sm:$0xff] }
 0x256   : > { %6035 = vmatprep.subr.bf16.mxu1 %v3186_v18  ;;  %6557 = vxpose.xlu0.b32.cont [3/16] %v6556_v51, 128  ;;  %v3180_v63 = vpack.c.bf16 %v3074_v8, %v3073_v11  ;;  %v2982_v18 = vmul.f32 %v8934_v53, %v11038_v20  ;;  %v3077_v24 = vmul.f32 %v8928_v38, %v11039_v54  ;;  %v11046_v51 = vld [vmem:[#allocation67_spill] sm:$0xff]  ;;  %v11050_v61 = vld [vmem:[#allocation69_spill] sm:$0xff] }
 0x257   : > { %v3181_v56 = vpack.c.bf16 %v3076_v16, %v3075_v13  ;;  %v2967_v40 = vmul.f32 %v8934_v53, %v11041_v47  ;;  %v2983_v28 = vmul.f32 %v8934_v53, %v11042_v52  ;;  %v2984_v39 = vmul.f32 %v8934_v53, %v11044_v33 }
 0x258   : > { %v6564_v9 = vpack.i.bf16 %v2966_v7, %v2982_v18  ;;  %v2969_v26 = vmul.f32 %v8934_v53, %v11045_v12  ;;  %v2985_v1 = vmul.f32 %v8934_v53, %v11046_v51  ;;  %v2971_v62 = vmul.f32 %v8934_v53, %v11049_v49 }
 0x259   : > { %6036 = vmatpush3.bf16.msra.mxu1 %v3178_v58  ;;  %v2986_v58 = vmul.f32 %v8934_v53, %v11048_v60 }
 0x25a   : > { %6037 = vmatprep.subr.bf16.mxu1 %v3187_v36  ;;  %6559 = vxpose.xlu0.b32.cont [4/16] %v6558_v31, 128  ;;  %v6562_v36 = vpack.i.bf16 %v2965_v50, %v2981_v55  ;;  %v6570_v59 = vpack.i.bf16 %v2969_v26, %v2985_v1  ;;  %v2987_v31 = vmul.f32 %v8934_v53, %v11050_v61 }
 0x25c   : > { %v6574_v11 = vpack.i.bf16 %v2971_v62, %v2987_v31 }
 0x25d   : > { %6038 = vmatpush3.bf16.msra.mxu1 %v3179_v35 }
 0x25e   : > { %6039 = vmatprep.subr.bf16.mxu1 %v3188_v34  ;;  %6561 = vxpose.xlu0.b32.cont [5/16] %v6560_v44, 128  ;;  %v11040_v34 = vld [vmem:[#allocation52_spill] sm:$0xff] }
 0x25f   : > { %v3078_v21 = vmul.f32 %v8928_v38, %v11040_v34  ;;  %v6566_v38 = vpack.i.bf16 %v2967_v40, %v2983_v28 }
 0x261   : > { %6040 = vmatpush3.bf16.msra.mxu1 %v3180_v63  ;;  %v3182_v22 = vpack.c.bf16 %v3078_v21, %v3077_v24 }
 0x262   : > { %6041 = vmatprep.subr.bf16.mxu1 %v3189_v15  ;;  %6563 = vxpose.xlu0.b32.cont [6/16] %v6562_v36, 128  ;;  %v11043_v15 = vld [vmem:[#allocation58_spill] sm:$0xff] }
 0x263   : > { %v2968_v43 = vmul.f32 %v8934_v53, %v11043_v15 }
 0x265   : > { %6042 = vmatpush3.bf16.msra.mxu1 %v3181_v56  ;;  %v6568_v41 = vpack.i.bf16 %v2968_v43, %v2984_v39 }
 0x266   : > { %6043 = vmatprep.subr.bf16.mxu1 %v3190_v14  ;;  %6565 = vxpose.xlu0.b32.cont [7/16] %v6564_v9, 128  ;;  %v11047_v14 = vld [vmem:[#allocation60_spill] sm:$0xff] }
 0x267   : > { %v2970_v3 = vmul.f32 %v8934_v53, %v11047_v14  ;;  %v11051_v53 = vld [vmem:[#allocation10_spill] sm:$0xff] }
 0x268   : > { %v9111_v8 = vrot.slane %v11052_v25, %v11051_v53 }
 0x269   : > { %6044 = vmatpush3.bf16.msra.mxu1 %v3182_v22  ;;  %v6572_v5 = vpack.i.bf16 %v2970_v3, %v2986_v58 }
 0x26a   : > { %6567 = vxpose.xlu0.b32.cont [8/16] %v6566_v38, 128 }
 0x26e   : > { %6569 = vxpose.xlu0.b32.cont [9/16] %v6568_v41, 128 }
 0x272   : > { %6571 = vxpose.xlu0.b32.cont [10/16] %v6570_v59, 128 }
 0x276   : > { %6573 = vxpose.xlu0.b32.cont [11/16] %v6572_v5, 128 }
 0x27a   : > { %6575 = vxpose.xlu0.b32.cont [12/16] %v6574_v11, 128 }
 0x27e   : > { %6577 = vxpose.xlu0.b32.cont [13/16] %v6576_v17, 128 }
 0x282   : > { %6579 = vxpose.xlu0.b32.cont [14/16] %v6578_v48, 128 }
 0x286   : > { %6581 = vxpose.xlu0.b32.cont [15/16] %v6580_v42, 128 }
 0x28a   : > { %6583 = vxpose.xlu0.b32.end [16/16] %v6582_v29, 128 }
 0x2a3   : > { %v6383_v35 = vpop.f32.mrb[0].mxu1 }
 0x2a4   : > { %v9114_v45 = vadd.f32 %v6383_v35, %v9111_v8  ;;  %v2754_v46 = vpop.f32.mrb[1].mxu1 }
 0x2a5   : > { %v2755_v32 = vadd.f32 %v2754_v46, %v9111_v8  ;;  %v6384_v37 = vpop.f32.mrb[2].mxu1 }
 0x2a6   : > { %v9118_v17 = vadd.f32 %v6384_v37, %v9111_v8  ;;  %v2757_v27 = vpop.f32.mrb[3].mxu1 }
 0x2a7   : > { %v2758_v23 = vadd.f32 %v2757_v27, %v9111_v8 }
 0x2a8   : > { %v3449_v0 = vpack.c.bf16 %v9118_v17, %v9114_v45 }
 0x2a9   : > { %v3448_v19 = vpack.c.bf16 %v2758_v23, %v2755_v32 }
 0x2ab   : > { %v6387_v48 = vpop.f32.mrb[4].mxu1  ;;  %6429 = vmatprep.mubr.bf16.mxu0 %v3448_v19 }
 0x2ac   : > { %v9124_v42 = vadd.f32 %v6387_v48, %v9111_v8  ;;  %v2770_v29 = vpop.f32.mrb[5].mxu1 }
 0x2ad   : > { %v9127_v6 = vadd.f32 %v2770_v29, %v9111_v8  ;;  %v6388_v50 = vpop.f32.mrb[6].mxu1 }
 0x2ae   : > { %v9130_v4 = vadd.f32 %v6388_v50, %v9111_v8  ;;  %v2773_v55 = vpop.f32.mrb[7].mxu1 }
 0x2af   : > { %v9133_v44 = vadd.f32 %v2773_v55, %v9111_v8 }
 0x2b0   : > { %v3451_v57 = vpack.c.bf16 %v9130_v4, %v9124_v42 }
 0x2b1   : > { %v3450_v13 = vpack.c.bf16 %v9133_v44, %v9127_v6 }
 0x2b3   : > { %v6391_v30 = vpop.f32.mrb[8].mxu1 }
 0x2b4   : > { %v9140_v16 = vadd.f32 %v6391_v30, %v9111_v8  ;;  %v2786_v63 = vpop.f32.mrb[9].mxu1 }
 0x2b5   : > { %v9143_v2 = vadd.f32 %v2786_v63, %v9111_v8  ;;  %v6392_v7 = vpop.f32.mrb[10].mxu1 }
 0x2b6   : > { %v9146_v20 = vadd.f32 %v6392_v7, %v9111_v8  ;;  %v2789_v18 = vpop.f32.mrb[11].mxu1 }
 0x2b7   : > { %v9149_v36 = vadd.f32 %v2789_v18, %v9111_v8 }
 0x2bb   : > { %v6395_v34 = vpop.f32.mrb[12].mxu1 }
 0x2bc   : > { %v9156_v21 = vadd.f32 %v6395_v34, %v9111_v8  ;;  %v2802_v56 = vpop.f32.mrb[13].mxu1 }
 0x2bd   : > { %v9159_v47 = vadd.f32 %v2802_v56, %v9111_v8  ;;  %v6396_v40 = vpop.f32.mrb[14].mxu1 }
 0x2be   : > { %v9162_v52 = vadd.f32 %v6396_v40, %v9111_v8  ;;  %v2805_v28 = vpop.f32.mrb[15].mxu1 }
 0x2bf   : > { %v9165_v9 = vadd.f32 %v2805_v28, %v9111_v8 }
 0x2c0   : > { %v11056_v17 = vpack.c.bf16 %v9162_v52, %v9156_v21  ;;  %v6706_v21 = vld [vmem:[%s10883_s9 + $0x4] ss:$16 sps:$4 sm:$0xff]  }
 0x2c1   : > { %v11055_v45 = vpack.c.bf16 %v9165_v9, %v9159_v47  ;;  %v6709_v47 = vld [vmem:[%s10883_s9 + $0xc] ss:$16 sps:$4 sm:$0xff]   ;;  %v6712_v52 = vld [vmem:[%s10883_s9 + $0x24] ss:$16 sps:$4 sm:$0xff]   ;;  %v6710_v9 = vld [vmem:[%s10883_s9 + $0x20] ss:$16 sps:$4 sm:$0xff]  }
 0x2c3   : > { %v6399_v43 = vpop.f32.mrb[16].mxu1 }
 0x2c4   : > { %v9172_v33 = vadd.f32 %v6399_v43, %v9111_v8  ;;  %v2818_v39 = vpop.f32.mrb[17].mxu1 }
 0x2c5   : > { %v9175_v38 = vadd.f32 %v2818_v39, %v9111_v8  ;;  %v6400_v12 = vpop.f32.mrb[18].mxu1 }
 0x2c6   : > { %v9178_v26 = vadd.f32 %v6400_v12, %v9111_v8  ;;  %v2821_v51 = vpop.f32.mrb[19].mxu1 }
 0x2c7   : > { %v9181_v1 = vadd.f32 %v2821_v51, %v9111_v8 }
 0x2c8   : > { %v11058_v42 = vpack.c.bf16 %v9178_v26, %v9172_v33  ;;  %v6718_v33 = vld [vmem:[%s10883_s9 + $0x44] ss:$16 sps:$4 sm:$0xff]  }
 0x2c9   : > { %v6724_v26 = vld [vmem:[%s10883_s9 + $0x64] ss:$16 sps:$4 sm:$0xff]  }
 0x2cb   : > { %v6403_v3 = vpop.f32.mrb[20].mxu1 }
 0x2cc   : > { %v9188_v60 = vadd.f32 %v6403_v3, %v9111_v8  ;;  %v2834_v58 = vpop.f32.mrb[21].mxu1 }
 0x2cd   : > { %v9191_v59 = vadd.f32 %v2834_v58, %v9111_v8  ;;  %v6404_v49 = vpop.f32.mrb[22].mxu1 }
 0x2ce   : > { %v9194_v62 = vadd.f32 %v6404_v49, %v9111_v8  ;;  %v2837_v61 = vpop.f32.mrb[23].mxu1  ;;  %v6584_v25 = vpop.trf.xlu0 }
 0x2cf   : > { %v9197_v31 = vadd.f32 %v2837_v61, %v9111_v8  ;;  %v6588_v48 = vunpack.i.h.bf16 %v6584_v25  ;;  %v6585_v29 = vunpack.i.l.bf16 %v6584_v25 }
 0x2d0   : > { %v11060_v4 = vpack.c.bf16 %v9194_v62, %v9188_v60  ;;  %v6730_v60 = vld [vmem:[%s10883_s9 + $0x84] ss:$16 sps:$4 sm:$0xff]  }
 0x2d1   : > { %v11059_v6 = vpack.c.bf16 %v9197_v31, %v9191_v59  ;;  %v6728_v59 = vld [vmem:[%s10883_s9 + $0x80] ss:$16 sps:$4 sm:$0xff]   ;;  %v6736_v62 = vld [vmem:[%s10883_s9 + $0xa4] ss:$16 sps:$4 sm:$0xff]  }
 0x2d2   : > { %v6589_v50 = vpop.trf.xlu0  ;;  %v6734_v31 = vld [vmem:[%s10883_s9 + $0xa0] ss:$16 sps:$4 sm:$0xff]  }
 0x2d3   : > { %v6407_v35 = vpop.f32.mrb[24].mxu1  ;;  %v6593_v30 = vunpack.i.h.bf16 %v6589_v50  ;;  %v6590_v63 = vunpack.i.l.bf16 %v6589_v50 }
 0x2d4   : > { %v2850_v46 = vpop.f32.mrb[25].mxu1  ;;  %v9204_v32 = vadd.f32 %v6407_v35, %v9111_v8 }
 0x2d5   : > { %v9207_v37 = vadd.f32 %v2850_v46, %v9111_v8  ;;  %v6408_v27 = vpop.f32.mrb[26].mxu1  ;;  %v3159_v34 = vpack.c.bf16 %v6593_v30, %v6588_v48  ;;  %v3160_v56 = vpack.c.bf16 %v6590_v63, %v6585_v29 }
 0x2d6   : > { %v9210_v23 = vadd.f32 %v6408_v27, %v9111_v8  ;;  %v2853_v19 = vpop.f32.mrb[27].mxu1  ;;  %v6594_v40 = vpop.trf.xlu0 }
 0x2d7   : > { %v9213_v55 = vadd.f32 %v2853_v19, %v9111_v8  ;;  %3239 = vmatprep.mubr.bf16.mxu1 %v3160_v56  ;;  %v6598_v49 = vunpack.i.h.bf16 %v6594_v40  ;;  %v6595_v61 = vunpack.i.l.bf16 %v6594_v40 }
 0x2d8   : > { %3240 = vmatmul.mubr.bf16.vlgmr.msra.gmra.mrb[32].mxu1 %v3159_v34 }
 0x2d9   : > { %v11061_v44 = vpack.c.bf16 %v9213_v55, %v9207_v37 }
 0x2da   : > { %v6599_v25 = vpop.trf.xlu0 }
 0x2db   : > { %v6411_v28 = vpop.f32.mrb[28].mxu1  ;;  %v6603_v46 = vunpack.i.h.bf16 %v6599_v25  ;;  %v6600_v27 = vunpack.i.l.bf16 %v6599_v25 }
 0x2dc   : > { %v2866_v43 = vpop.f32.mrb[29].mxu1  ;;  %v9220_v39 = vadd.f32 %v6411_v28, %v9111_v8 }
 0x2dd   : > { %v9223_v12 = vadd.f32 %v2866_v43, %v9111_v8  ;;  %v6412_v51 = vpop.f32.mrb[30].mxu1  ;;  %v3162_v29 = vpack.c.bf16 %v6600_v27, %v6595_v61  ;;  %v3161_v50 = vpack.c.bf16 %v6603_v46, %v6598_v49 }
 0x2de   : > { %v9226_v3 = vadd.f32 %v6412_v51, %v9111_v8  ;;  %v2869_v58 = vpop.f32.mrb[31].mxu1  ;;  %v6604_v30 = vpop.trf.xlu0 }
 0x2df   : > { %v9229_v35 = vadd.f32 %v2869_v58, %v9111_v8  ;;  %3247 = vmatprep.mubr.bf16.mxu1 %v3162_v29  ;;  %v6608_v63 = vunpack.i.h.bf16 %v6604_v30  ;;  %v6605_v34 = vunpack.i.l.bf16 %v6604_v30 }
 0x2e0   : > { %3248 = vmatmul.mubr.bf16.gmra.mrb[36].mxu1 %v3161_v50 }
 0x2e2   : > { %v6609_v56 = vpop.trf.xlu0 }
 0x2e3   : > { %v6613_v40 = vunpack.i.h.bf16 %v6609_v56  ;;  %v6610_v28 = vunpack.i.l.bf16 %v6609_v56 }
 0x2e5   : > { %v3164_v8 = vpack.c.bf16 %v6610_v28, %v6605_v34  ;;  %v3163_v43 = vpack.c.bf16 %v6613_v40, %v6608_v63 }
 0x2e6   : > { %v6614_v51 = vpop.trf.xlu0 }
 0x2e7   : > { %3255 = vmatprep.mubr.bf16.mxu1 %v3164_v8  ;;  %v6618_v58 = vunpack.i.h.bf16 %v6614_v51  ;;  %v6615_v25 = vunpack.i.l.bf16 %v6614_v51 }
 0x2e8   : > { %3256 = vmatmul.mubr.bf16.gmra.mrb[40].mxu1 %v3163_v43 }
 0x2ea   : > { %v6619_v19 = vpop.trf.xlu0 }
 0x2eb   : > { %v6623_v7 = vunpack.i.h.bf16 %v6619_v19  ;;  %v6620_v48 = vunpack.i.l.bf16 %v6619_v19 }
 0x2ed   : > { %v3166_v61 = vpack.c.bf16 %v6620_v48, %v6615_v25  ;;  %v3165_v49 = vpack.c.bf16 %v6623_v7, %v6618_v58 }
 0x2ee   : > { %v6624_v46 = vpop.trf.xlu0 }
 0x2ef   : > { %3263 = vmatprep.mubr.bf16.mxu1 %v3166_v61  ;;  %v6628_v27 = vunpack.i.h.bf16 %v6624_v46  ;;  %v6625_v29 = vunpack.i.l.bf16 %v6624_v46 }
 0x2f0   : > { %3264 = vmatmul.mubr.bf16.gmra.mrb[44].mxu1 %v3165_v49 }
 0x2f2   : > { %v6629_v50 = vpop.trf.xlu0 }
 0x2f3   : > { %v6633_v30 = vunpack.i.h.bf16 %v6629_v50  ;;  %v6630_v56 = vunpack.i.l.bf16 %v6629_v50 }
 0x2f5   : > { %v3168_v34 = vpack.c.bf16 %v6630_v56, %v6625_v29  ;;  %v3167_v63 = vpack.c.bf16 %v6633_v30, %v6628_v27 }
 0x2f6   : > { %v6634_v40 = vpop.trf.xlu0 }
 0x2f7   : > { %3271 = vmatprep.mubr.bf16.mxu1 %v3168_v34  ;;  %v6638_v28 = vunpack.i.h.bf16 %v6634_v40  ;;  %v6635_v8 = vunpack.i.l.bf16 %v6634_v40 }
 0x2f8   : > { %3272 = vmatmul.mubr.bf16.gmra.mrb[48].mxu1 %v3167_v63 }
 0x2fa   : > { %v6639_v43 = vpop.trf.xlu0 }
 0x2fb   : > { %v6643_v51 = vunpack.i.h.bf16 %v6639_v43  ;;  %v6640_v19 = vunpack.i.l.bf16 %v6639_v43 }
 0x2fd   : > { %v3170_v48 = vpack.c.bf16 %v6640_v19, %v6635_v8  ;;  %v3169_v7 = vpack.c.bf16 %v6643_v51, %v6638_v28 }
 0x2fe   : > { %v6644_v58 = vpop.trf.xlu0 }
 0x2ff   : > { %3279 = vmatprep.mubr.bf16.mxu1 %v3170_v48  ;;  %v6648_v25 = vunpack.i.h.bf16 %v6644_v58  ;;  %v6645_v61 = vunpack.i.l.bf16 %v6644_v58  ;;  %v3191_v48 = vld [vmem:[%s10880_s6] sm:$0xff] }
 0x300   : > { %3280 = vmatmul.mubr.bf16.gmra.mrb[52].mxu1 %v3169_v7 }
 0x302   : > { %v6649_v49 = vpop.trf.xlu0 }
 0x303   : > { %v6653_v46 = vunpack.i.h.bf16 %v6649_v49  ;;  %v6650_v50 = vunpack.i.l.bf16 %v6649_v49 }
 0x305   : > { %v3172_v29 = vpack.c.bf16 %v6650_v50, %v6645_v61  ;;  %v3171_v27 = vpack.c.bf16 %v6653_v46, %v6648_v25  ;;  %v3192_v46 = vld [vmem:[%s10880_s6 + $0x8] sm:$0xff] }
 0x306   : > { %v6654_v30 = vpop.trf.xlu0 }
 0x307   : > { %3287 = vmatprep.mubr.bf16.mxu1 %v3172_v29  ;;  %v6658_v56 = vunpack.i.h.bf16 %v6654_v30  ;;  %v6655_v34 = vunpack.i.l.bf16 %v6654_v30  ;;  %v3193_v30 = vld [vmem:[%s10880_s6 + $0x10] sm:$0xff] }
 0x308   : > { %3288 = vmatmul.mubr.bf16.gmra.mrb[56].mxu1 %v3171_v27 }
 0x30a   : > { %v6659_v63 = vpop.trf.xlu0 }
 0x30b   : > { %v6663_v40 = vunpack.i.h.bf16 %v6659_v63  ;;  %v6660_v43 = vunpack.i.l.bf16 %v6659_v63 }
 0x30d   : > { %v3174_v8 = vpack.c.bf16 %v6660_v43, %v6655_v34  ;;  %v3173_v28 = vpack.c.bf16 %v6663_v40, %v6658_v56 }
 0x30f   : > { %3295 = vmatprep.mubr.bf16.mxu1 %v3174_v8  ;;  %v3194_v8 = vld [vmem:[%s10880_s6 + $0x18] sm:$0xff] }
 0x310   : > { %3296 = vmatmul.mubr.bf16.gmra.mrb[60].mxu1 %v3173_v28 }
 0x3ab   : > { %v6045_v51 = vpop.f32.mrb[32].mxu1 }
 0x3ac   : > { %v6046_v19 = vpop.f32.mrb[33].mxu1 }
 0x3ad   : > { %v6047_v7 = vadd.f32 %v6046_v19, %v6045_v51  ;;  %v6048_v58 = vpop.f32.mrb[34].mxu1 }
 0x3ae   : > { %v6049_v25 = vpop.f32.mrb[35].mxu1 }
 0x3af   : > { %v6050_v61 = vadd.f32 %v6049_v25, %v6048_v58  ;;  %v9238_v49 = vadd.f32 %v6047_v7, %v3191_v48  ;;  %v3195_v48 = vld [vmem:[%s10880_s6 + $0x20] sm:$0xff] }
 0x3b1   : > { %3304 = vmax.xlane.f32.xlu1 %v9238_v49  ;;  %v9244_v29 = vadd.f32 %v6050_v61, %v3192_v46 }
 0x3b3   : > { %v6051_v50 = vpop.f32.mrb[36].mxu1 }
 0x3b4   : > { %v6052_v27 = vpop.f32.mrb[37].mxu1 }
 0x3b5   : > { %v6053_v56 = vadd.f32 %v6052_v27, %v6051_v50  ;;  %v6054_v34 = vpop.f32.mrb[38].mxu1  ;;  %3306 = vmax.xlane.f32.xlu1 %v9244_v29  ;;  %v3196_v50 = vld [vmem:[%s10880_s6 + $0x28] sm:$0xff] }
 0x3b6   : > { %v6055_v63 = vpop.f32.mrb[39].mxu1 }
 0x3b7   : > { %v6056_v40 = vadd.f32 %v6055_v63, %v6054_v34  ;;  %v9250_v43 = vadd.f32 %v6053_v56, %v3193_v30  ;;  %v3197_v34 = vld [vmem:[%s10880_s6 + $0x30] sm:$0xff] }
 0x3b9   : > { %3308 = vmax.xlane.f32.xlu1 %v9250_v43  ;;  %v9256_v51 = vadd.f32 %v6056_v40, %v3194_v8 }
 0x3bb   : > { %v6057_v28 = vpop.f32.mrb[40].mxu1 }
 0x3bc   : > { %v6058_v19 = vpop.f32.mrb[41].mxu1 }
 0x3bd   : > { %v6059_v7 = vadd.f32 %v6058_v19, %v6057_v28  ;;  %v6060_v58 = vpop.f32.mrb[42].mxu1  ;;  %3310 = vmax.xlane.f32.xlu1 %v9256_v51 }
 0x3be   : > { %v6061_v25 = vpop.f32.mrb[43].mxu1 }
 0x3bf   : > { %v6062_v61 = vadd.f32 %v6061_v25, %v6060_v58  ;;  %v9262_v46 = vadd.f32 %v6059_v7, %v3195_v48  ;;  %v3198_v48 = vld [vmem:[%s10880_s6 + $0x38] sm:$0xff] }
 0x3c1   : > { %3312 = vmax.xlane.f32.xlu1 %v9262_v46  ;;  %v9268_v30 = vadd.f32 %v6062_v61, %v3196_v50  ;;  %v3199_v61 = vld [vmem:[%s10880_s6 + $0x40] sm:$0xff] }
 0x3c3   : > { %v6063_v27 = vpop.f32.mrb[44].mxu1 }
 0x3c4   : > { %v6064_v56 = vpop.f32.mrb[45].mxu1 }
 0x3c5   : > { %v6065_v63 = vadd.f32 %v6064_v56, %v6063_v27  ;;  %v6066_v40 = vpop.f32.mrb[46].mxu1  ;;  %3314 = vmax.xlane.f32.xlu1 %v9268_v30 }
 0x3c6   : > { %v6067_v8 = vpop.f32.mrb[47].mxu1 }
 0x3c7   : > { %v6068_v28 = vadd.f32 %v6067_v8, %v6066_v40  ;;  %v9274_v19 = vadd.f32 %v6065_v63, %v3197_v34  ;;  %v3200_v40 = vld [vmem:[%s10880_s6 + $0x48] sm:$0xff] }
 0x3c9   : > { %3316 = vmax.xlane.f32.xlu1 %v9274_v19  ;;  %v9280_v58 = vadd.f32 %v6068_v28, %v3198_v48 }
 0x3cb   : > { %v6069_v7 = vpop.f32.mrb[48].mxu1 }
 0x3cc   : > { %v6070_v25 = vpop.f32.mrb[49].mxu1 }
 0x3cd   : > { %v6071_v50 = vadd.f32 %v6070_v25, %v6069_v7  ;;  %v6072_v27 = vpop.f32.mrb[50].mxu1  ;;  %3318 = vmax.xlane.f32.xlu1 %v9280_v58  ;;  %v3201_v7 = vld [vmem:[%s10880_s6 + $0x50] sm:$0xff] }
 0x3ce   : > { %v6073_v56 = vpop.f32.mrb[51].mxu1 }
 0x3cf   : > { %v6074_v34 = vadd.f32 %v6073_v56, %v6072_v27  ;;  %v9286_v63 = vadd.f32 %v6071_v50, %v3199_v61  ;;  %v3202_v56 = vld [vmem:[%s10880_s6 + $0x58] sm:$0xff] }
 0x3d1   : > { %3320 = vmax.xlane.f32.xlu1 %v9286_v63  ;;  %v9292_v28 = vadd.f32 %v6074_v34, %v3200_v40 }
 0x3d3   : > { %v6075_v8 = vpop.f32.mrb[52].mxu1 }
 0x3d4   : > { %v6076_v48 = vpop.f32.mrb[53].mxu1 }
 0x3d5   : > { %v6077_v25 = vadd.f32 %v6076_v48, %v6075_v8  ;;  %v6078_v18 = vpop.f32.mrb[54].mxu1  ;;  %3322 = vmax.xlane.f32.xlu1 %v9292_v28  ;;  %v3203_v8 = vld [vmem:[%s10880_s6 + $0x60] sm:$0xff] }
 0x3d6   : > { %v6079_v61 = vpop.f32.mrb[55].mxu1 }
 0x3d7   : > { %v6080_v50 = vadd.f32 %v6079_v61, %v6078_v18  ;;  %v9298_v27 = vadd.f32 %v6077_v25, %v3201_v7  ;;  %v3204_v61 = vld [vmem:[%s10880_s6 + $0x68] sm:$0xff] }
 0x3d9   : > { %3324 = vmax.xlane.f32.xlu1 %v9298_v27  ;;  %v9304_v40 = vadd.f32 %v6080_v50, %v3202_v56 }
 0x3db   : > { %v6081_v34 = vpop.f32.mrb[56].mxu1 }
 0x3dc   : > { %v6082_v5 = vpop.f32.mrb[57].mxu1 }
 0x3dd   : > { %v6083_v48 = vadd.f32 %v6082_v5, %v6081_v34  ;;  %v6084_v11 = vpop.f32.mrb[58].mxu1  ;;  %3326 = vmax.xlane.f32.xlu1 %v9304_v40  ;;  %v3205_v5 = vld [vmem:[%s10880_s6 + $0x70] sm:$0xff] }
 0x3de   : > { %v6085_v18 = vpop.f32.mrb[59].mxu1 }
 0x3df   : > { %v6086_v7 = vadd.f32 %v6085_v18, %v6084_v11  ;;  %v9310_v25 = vadd.f32 %v6083_v48, %v3203_v8  ;;  %v3206_v18 = vld [vmem:[%s10880_s6 + $0x78] sm:$0xff] }
 0x3e1   : > { %3328 = vmax.xlane.f32.xlu1 %v9310_v25  ;;  %v9316_v56 = vadd.f32 %v6086_v7, %v3204_v61 }
 0x3e3   : > { %v6087_v50 = vpop.f32.mrb[60].mxu1 }
 0x3e4   : > { %v6088_v41 = vpop.f32.mrb[61].mxu1 }
 0x3e5   : > { %v6089_v34 = vadd.f32 %v6088_v41, %v6087_v50  ;;  %v6090_v14 = vpop.f32.mrb[62].mxu1  ;;  %3330 = vmax.xlane.f32.xlu1 %v9316_v56 }
 0x3e6   : > { %v6091_v11 = vpop.f32.mrb[63].mxu1 }
 0x3e7   : > { %v6092_v8 = vadd.f32 %v6091_v11, %v6090_v14  ;;  %v9322_v48 = vadd.f32 %v6089_v34, %v3205_v5 }
 0x3e9   : > { %3332 = vmax.xlane.f32.xlu1 %v9322_v48  ;;  %v9328_v7 = vadd.f32 %v6092_v8, %v3206_v18 }
 0x3ed   : > { %3334 = vmax.xlane.f32.xlu1 %v9328_v7 }
 0x43e   : > { %v3305_v61 = vpop.xlane.xlu1 %3304 }
 0x43f   : > { %v3336_v41 = vsub.f32 %v9238_v49, %v3305_v61 }
 0x441   : > { %v3352_v50 = vmul.f32 1.442695, %v3336_v41 }
 0x442   : > { %v3307_v22 = vpop.xlane.xlu1 %3306 }
 0x443   : > { %6788 = vpow2.f32 %v3352_v50  ;;  %v3337_v14 = vsub.f32 %v9244_v29, %v3307_v22 }
 0x445   : > { %v3354_v5 = vmul.f32 1.442695, %v3337_v14 }
 0x446   : > { %v3309_v34 = vpop.xlane.xlu1 %3308 }
 0x447   : > { %6790 = vpow2.f32 %v3354_v5  ;;  %v3338_v11 = vsub.f32 %v9250_v43, %v3309_v34 }
 0x449   : > { %v3356_v15 = vmul.f32 1.442695, %v3338_v11 }
 0x44a   : > { %v3311_v54 = vpop.xlane.xlu1 %3310 }
 0x44b   : > { %6792 = vpow2.f32 %v3356_v15  ;;  %v3339_v8 = vsub.f32 %v9256_v51, %v3311_v54 }
 0x44d   : > { %v9335_v18 = vpop.eup %6788  ;;  %v3358_v24 = vmul.f32 1.442695, %v3339_v8 }
 0x44e   : > { %3384 = vadd.xlane.f32.xlu0 %v9335_v18  ;;  %v3313_v49 = vpop.xlane.xlu1 %3312 }
 0x44f   : > { %6794 = vpow2.f32 %v3358_v24  ;;  %v3340_v61 = vsub.f32 %v9262_v46, %v3313_v49 }
 0x451   : > { %v9339_v22 = vpop.eup %6790  ;;  %v3360_v29 = vmul.f32 1.442695, %v3340_v61 }
 0x452   : > { %3386 = vadd.xlane.f32.xlu1 %v9339_v22  ;;  %v3315_v43 = vpop.xlane.xlu1 %3314 }
 0x453   : > { %6796 = vpow2.f32 %v3360_v29  ;;  %v3341_v15 = vsub.f32 %v9268_v30, %v3315_v43 }
 0x455   : > { %v9343_v41 = vpop.eup %6792  ;;  %v3362_v54 = vmul.f32 1.442695, %v3341_v15 }
 0x456   : > { %3388 = vadd.xlane.f32.xlu1 %v9343_v41  ;;  %v3317_v51 = vpop.xlane.xlu1 %3316 }
 0x457   : > { %6798 = vpow2.f32 %v3362_v54  ;;  %v3342_v24 = vsub.f32 %v9274_v19, %v3317_v51 }
 0x459   : > { %v9347_v50 = vpop.eup %6794  ;;  %v3364_v46 = vmul.f32 1.442695, %v3342_v24 }
 0x45a   : > { %3390 = vadd.xlane.f32.xlu1 %v9347_v50  ;;  %v3319_v14 = vpop.xlane.xlu1 %3318 }
 0x45b   : > { %6800 = vpow2.f32 %v3364_v46  ;;  %v3343_v5 = vsub.f32 %v9280_v58, %v3319_v14 }
 0x45d   : > { %v9351_v34 = vpop.eup %6796  ;;  %v3366_v30 = vmul.f32 1.442695, %v3343_v5 }
 0x45e   : > { %3392 = vadd.xlane.f32.xlu1 %v9351_v34  ;;  %v3321_v11 = vpop.xlane.xlu1 %3320 }
 0x45f   : > { %6802 = vpow2.f32 %v3366_v30  ;;  %v3344_v8 = vsub.f32 %v9286_v63, %v3321_v11 }
 0x461   : > { %v9355_v49 = vpop.eup %6798  ;;  %v3368_v19 = vmul.f32 1.442695, %v3344_v8 }
 0x462   : > { %3394 = vadd.xlane.f32.xlu1 %v9355_v49  ;;  %v3323_v61 = vpop.xlane.xlu1 %3322 }
 0x463   : > { %6804 = vpow2.f32 %v3368_v19  ;;  %v3345_v29 = vsub.f32 %v9292_v28, %v3323_v61 }
 0x465   : > { %v9359_v43 = vpop.eup %6800  ;;  %v3370_v58 = vmul.f32 1.442695, %v3345_v29 }
 0x466   : > { %3396 = vadd.xlane.f32.xlu1 %v9359_v43  ;;  %v3325_v15 = vpop.xlane.xlu1 %3324 }
 0x467   : > { %6806 = vpow2.f32 %v3370_v58  ;;  %v3346_v54 = vsub.f32 %v9298_v27, %v3325_v15 }
 0x469   : > { %v9363_v51 = vpop.eup %6802  ;;  %v3372_v63 = vmul.f32 1.442695, %v3346_v54 }
 0x46a   : > { %3398 = vadd.xlane.f32.xlu1 %v9363_v51  ;;  %v3327_v24 = vpop.xlane.xlu1 %3326 }
 0x46b   : > { %6808 = vpow2.f32 %v3372_v63  ;;  %v3347_v46 = vsub.f32 %v9304_v40, %v3327_v24 }
 0x46d   : > { %v9367_v14 = vpop.eup %6804  ;;  %v3374_v28 = vmul.f32 1.442695, %v3347_v46 }
 0x46e   : > { %3400 = vadd.xlane.f32.xlu1 %v9367_v14  ;;  %v3329_v5 = vpop.xlane.xlu1 %3328 }
 0x46f   : > { %6810 = vpow2.f32 %v3374_v28  ;;  %v3348_v30 = vsub.f32 %v9310_v25, %v3329_v5 }
 0x471   : > { %v9371_v11 = vpop.eup %6806  ;;  %v3376_v27 = vmul.f32 1.442695, %v3348_v30 }
 0x472   : > { %3402 = vadd.xlane.f32.xlu1 %v9371_v11  ;;  %v3331_v8 = vpop.xlane.xlu1 %3330 }
 0x473   : > { %6812 = vpow2.f32 %v3376_v27  ;;  %v3349_v19 = vsub.f32 %v9316_v56, %v3331_v8 }
 0x475   : > { %v9375_v61 = vpop.eup %6808  ;;  %v3378_v40 = vmul.f32 1.442695, %v3349_v19 }
 0x476   : > { %3404 = vadd.xlane.f32.xlu1 %v9375_v61  ;;  %v3333_v29 = vpop.xlane.xlu1 %3332 }
 0x477   : > { %6814 = vpow2.f32 %v3378_v40  ;;  %v3350_v58 = vsub.f32 %v9322_v48, %v3333_v29 }
 0x479   : > { %v9379_v15 = vpop.eup %6810  ;;  %v3380_v25 = vmul.f32 1.442695, %v3350_v58 }
 0x47a   : > { %3406 = vadd.xlane.f32.xlu1 %v9379_v15  ;;  %v3335_v54 = vpop.xlane.xlu1 %3334 }
 0x47b   : > { %6816 = vpow2.f32 %v3380_v25  ;;  %v3351_v63 = vsub.f32 %v9328_v7, %v3335_v54 }
 0x47d   : > { %v9383_v24 = vpop.eup %6812  ;;  %v3382_v56 = vmul.f32 1.442695, %v3351_v63 }
 0x47e   : > { %3408 = vadd.xlane.f32.xlu1 %v9383_v24 }
 0x47f   : > { %6818 = vpow2.f32 %v3382_v56 }
 0x481   : > { %v9386_v46 = vpop.eup %6814 }
 0x482   : > { %3410 = vadd.xlane.f32.xlu0 %v9386_v46 }
 0x485   : > { %v9389_v48 = vpop.eup %6816 }
 0x486   : > { %3412 = vadd.xlane.f32.xlu1 %v9389_v48 }
 0x489   : > { %v9392_v28 = vpop.eup %6818 }
 0x48a   : > { %3414 = vadd.xlane.f32.xlu0 %v9392_v28 }
 0x4db   : > { %v3385_v5 = vpop.xlane.xlu0 %3384 }
 0x4dc   : > { %6820 = vrcp.f32 %v3385_v5 }
 0x4df   : > { %v3387_v7 = vpop.xlane.xlu1 %3386 }
 0x4e0   : > { %6822 = vrcp.f32 %v3387_v7 }
 0x4e3   : > { %v3389_v30 = vpop.xlane.xlu1 %3388 }
 0x4e4   : > { %6824 = vrcp.f32 %v3389_v30 }
 0x4e6   : > { %v6821_v27 = vpop.eup %6820 }
 0x4e7   : > { %v3391_v8 = vpop.xlane.xlu1 %3390  ;;  %v3432_v19 = vmul.f32 %v6821_v27, %v9335_v18 }
 0x4e8   : > { %6826 = vrcp.f32 %v3391_v8 }
 0x4e9   : > { %3464 = vxpose.xlu1.b32.start [1/16] %v3432_v19, 128 }
 0x4ea   : > { %v6823_v40 = vpop.eup %6822 }
 0x4eb   : > { %v3393_v29 = vpop.xlane.xlu1 %3392  ;;  %v3433_v58 = vmul.f32 %v6823_v40, %v9339_v22 }
 0x4ec   : > { %6828 = vrcp.f32 %v3393_v29 }
 0x4ed   : > { %3465 = vxpose.xlu1.b32.cont [2/16] %v3433_v58, 128 }
 0x4ee   : > { %v6825_v25 = vpop.eup %6824 }
 0x4ef   : > { %v3395_v54 = vpop.xlane.xlu1 %3394  ;;  %v3434_v63 = vmul.f32 %v6825_v25, %v9343_v41 }
 0x4f0   : > { %6830 = vrcp.f32 %v3395_v54 }
 0x4f1   : > { %3466 = vxpose.xlu1.b32.cont [3/16] %v3434_v63, 128 }
 0x4f2   : > { %v6827_v56 = vpop.eup %6826 }
 0x4f3   : > { %v3397_v5 = vpop.xlane.xlu1 %3396  ;;  %v3435_v7 = vmul.f32 %v6827_v56, %v9347_v50 }
 0x4f4   : > { %6832 = vrcp.f32 %v3397_v5 }
 0x4f5   : > { %3467 = vxpose.xlu1.b32.cont [4/16] %v3435_v7, 128 }
 0x4f6   : > { %v6829_v18 = vpop.eup %6828 }
 0x4f7   : > { %v3399_v30 = vpop.xlane.xlu1 %3398  ;;  %v3436_v27 = vmul.f32 %v6829_v18, %v9351_v34 }
 0x4f8   : > { %6834 = vrcp.f32 %v3399_v30 }
 0x4f9   : > { %3468 = vxpose.xlu1.b32.cont [5/16] %v3436_v27, 128 }
 0x4fa   : > { %v6831_v22 = vpop.eup %6830 }
 0x4fb   : > { %v3401_v8 = vpop.xlane.xlu1 %3400  ;;  %v3437_v19 = vmul.f32 %v6831_v22, %v9355_v49 }
 0x4fc   : > { %6836 = vrcp.f32 %v3401_v8 }
 0x4fd   : > { %3469 = vxpose.xlu1.b32.cont [6/16] %v3437_v19, 128 }
 0x4fe   : > { %v6833_v41 = vpop.eup %6832 }
 0x4ff   : > { %v3403_v40 = vpop.xlane.xlu1 %3402  ;;  %v3438_v29 = vmul.f32 %v6833_v41, %v9359_v43 }
 0x500   : > { %6838 = vrcp.f32 %v3403_v40 }
 0x501   : > { %3470 = vxpose.xlu1.b32.cont [7/16] %v3438_v29, 128 }
 0x502   : > { %v6835_v50 = vpop.eup %6834 }
 0x503   : > { %v3405_v58 = vpop.xlane.xlu1 %3404  ;;  %v3439_v25 = vmul.f32 %v6835_v50, %v9363_v51 }
 0x504   : > { %6840 = vrcp.f32 %v3405_v58 }
 0x505   : > { %3471 = vxpose.xlu1.b32.cont [8/16] %v3439_v25, 128  ;;  %v6700_v25 = vld [vmem:[%s10881_s7 + $0x20] sm:$0xff]  }
 0x506   : > { %v6837_v34 = vpop.eup %6836 }
 0x507   : > { %v3407_v54 = vpop.xlane.xlu1 %3406  ;;  %v3440_v63 = vmul.f32 %v6837_v34, %v9367_v14 }
 0x508   : > { %6842 = vrcp.f32 %v3407_v54  ;;  %v6701_v54 = vld [vmem:[%s10881_s7 + $0x28] sm:$0xff]  }
 0x509   : > { %3472 = vxpose.xlu1.b32.cont [9/16] %v3440_v63, 128 }
 0x50a   : > { %v6839_v49 = vpop.eup %6838 }
 0x50b   : > { %v3409_v56 = vpop.xlane.xlu1 %3408  ;;  %v3441_v5 = vmul.f32 %v6839_v49, %v9371_v11 }
 0x50c   : > { %6844 = vrcp.f32 %v3409_v56  ;;  %v6702_v56 = vld [vmem:[%s10881_s7 + $0x30] sm:$0xff]  }
 0x50d   : > { %3473 = vxpose.xlu1.b32.cont [10/16] %v3441_v5, 128 }
 0x50e   : > { %v6841_v43 = vpop.eup %6840 }
 0x50f   : > { %v3411_v7 = vpop.xlane.xlu0 %3410  ;;  %v3442_v18 = vmul.f32 %v6841_v43, %v9375_v61 }
 0x510   : > { %6846 = vrcp.f32 %v3411_v7 }
 0x511   : > { %3474 = vxpose.xlu1.b32.cont [11/16] %v3442_v18, 128 }
 0x512   : > { %v6843_v51 = vpop.eup %6842 }
 0x513   : > { %v3413_v30 = vpop.xlane.xlu1 %3412  ;;  %v3443_v27 = vmul.f32 %v6843_v51, %v9379_v15  ;;  %v6696_v15 = vld [vmem:[%s10881_s7] sm:$0xff]  }
 0x514   : > { %6848 = vrcp.f32 %v3413_v30  ;;  %6461 = vmatprep.subr.bf16.mxu1 %v6696_v15 }
 0x515   : > { %3475 = vxpose.xlu1.b32.cont [12/16] %v3443_v27, 128  ;;  %6462 = vmatpush3.bf16.msra.mxu1 %v6696_v15 }
 0x516   : > { %v6845_v14 = vpop.eup %6844 }
 0x517   : > { %v3415_v22 = vpop.xlane.xlu0 %3414  ;;  %v3444_v8 = vmul.f32 %v6845_v14, %v9383_v24  ;;  %v6697_v24 = vld [vmem:[%s10881_s7 + $0x8] sm:$0xff]  }
 0x518   : > { %6850 = vrcp.f32 %v3415_v22  ;;  %6463 = vmatprep.subr.bf16.mxu1 %v6697_v24 }
 0x519   : > { %3476 = vxpose.xlu1.b32.cont [13/16] %v3444_v8, 128  ;;  %6464 = vmatpush3.bf16.msra.mxu1 %v6697_v24 }
 0x51a   : > { %v6847_v11 = vpop.eup %6846 }
 0x51b   : > { %v3445_v19 = vmul.f32 %v6847_v11, %v9386_v46  ;;  %v6698_v46 = vld [vmem:[%s10881_s7 + $0x10] sm:$0xff]  }
 0x51c   : > { %6465 = vmatprep.subr.bf16.mxu1 %v6698_v46 }
 0x51d   : > { %3477 = vxpose.xlu1.b32.cont [14/16] %v3445_v19, 128  ;;  %6466 = vmatpush3.bf16.msra.mxu1 %v6698_v46  ;;  %v11053_v46 = vpack.c.bf16 %v9149_v36, %v9143_v2  ;;  %v11065_v2 = vmov 0   ;;  %v6704_v36 = vld [vmem:[%s10883_s9] ss:$16 sps:$4 sm:$0xff]  }
 0x51e   : > { %v6849_v41 = vpop.eup %6848 }
 0x51f   : > { %v3446_v61 = vmul.f32 %v6849_v41, %v9389_v48 }
 0x521   : > { %3478 = vxpose.xlu1.b32.cont [15/16] %v3446_v61, 128 }
 0x522   : > { %v6851_v40 = vpop.eup %6850 }
 0x523   : > { %v3447_v29 = vmul.f32 %v6851_v40, %v9392_v28  ;;  %v6699_v28 = vld [vmem:[%s10881_s7 + $0x18] sm:$0xff]  }
 0x524   : > { %6467 = vmatprep.subr.bf16.mxu1 %v6699_v28 }
 0x525   : > { %3479 = vxpose.xlu1.b32.end [16/16] %v3447_v29, 128  ;;  %6468 = vmatpush3.bf16.msra.mxu1 %v6699_v28 }
 0x526   : > { %6469 = vmatprep.subr.bf16.mxu1 %v6700_v25 }
 0x529   : > { %6470 = vmatpush3.bf16.msra.mxu1 %v6700_v25  ;;  %v6721_v25 = vld [vmem:[%s10883_s9 + $0x4c] ss:$16 sps:$4 sm:$0xff]  }
 0x52a   : > { %6471 = vmatprep.subr.bf16.mxu1 %v6701_v54 }
 0x52d   : > { %6472 = vmatpush3.bf16.msra.mxu1 %v6701_v54 }
 0x52e   : > { %6473 = vmatprep.subr.bf16.mxu1 %v6702_v56 }
 0x531   : > { %6474 = vmatpush3.bf16.msra.mxu1 %v6702_v56  ;;  %v6719_v56 = vld [vmem:[%s10883_s9 + $0x48] ss:$16 sps:$4 sm:$0xff]  }
 0x569   : > { %v3480_v48 = vpop.trf.xlu1 }
 0x56d   : > { %v3481_v50 = vpop.trf.xlu1 }
 0x56e   : > { %v3496_v58 = vpack.c.bf16 %v3481_v50, %v3480_v48  ;;  %v11054_v48 = vpack.c.bf16 %v9146_v20, %v9140_v16  ;;  %v11064_v16 = vpack.c.bf16 %v9226_v3, %v9220_v39  ;;  %v6703_v20 = vld [vmem:[%s10881_s7 + $0x38] sm:$0xff]  }
 0x56f   : > { %6475 = vmatprep.subr.bf16.mxu1 %v6703_v20  ;;  %v6707_v3 = vld [vmem:[%s10883_s9 + $0x8] ss:$16 sps:$4 sm:$0xff]  }
 0x570   : > { %6413 = vmatprep.subr.bf16.mxu0 %v3496_v58  ;;  %6476 = vmatpush3.bf16.msra.mxu1 %v6703_v20  ;;  %v6713_v50 = vld [vmem:[%s10883_s9 + $0x28] ss:$16 sps:$4 sm:$0xff]  }
 0x571   : > { %6414 = vmatpush3.bf16.msra.mxu0 %v3496_v58  ;;  %v3482_v34 = vpop.trf.xlu1  ;;  %4400 = vmatprep.subr.bf16.mxu1 %v6709_v47 }
 0x575   : > { %v3483_v63 = vpop.trf.xlu1 }
 0x576   : > { %v3497_v49 = vpack.c.bf16 %v3483_v63, %v3482_v34 }
 0x578   : > { %6415 = vmatprep.subr.bf16.mxu0 %v3497_v49 }
 0x579   : > { %v3484_v5 = vpop.trf.xlu1  ;;  %6416 = vmatpush3.bf16.msra.mxu0 %v3497_v49 }
 0x57d   : > { %v3485_v43 = vpop.trf.xlu1 }
 0x57e   : > { %v3498_v7 = vpack.c.bf16 %v3485_v43, %v3484_v5  ;;  %v6727_v5 = vld [vmem:[%s10883_s9 + $0x6c] ss:$16 sps:$4 sm:$0xff]  }
 0x580   : > { %6417 = vmatprep.subr.bf16.mxu0 %v3498_v7 }
 0x581   : > { %v3486_v18 = vpop.trf.xlu1  ;;  %6418 = vmatpush3.bf16.msra.mxu0 %v3498_v7  ;;  %v6725_v7 = vld [vmem:[%s10883_s9 + $0x68] ss:$16 sps:$4 sm:$0xff]  }
 0x585   : > { %v3487_v51 = vpop.trf.xlu1 }
 0x586   : > { %v3499_v30 = vpack.c.bf16 %v3487_v51, %v3486_v18  ;;  %v6733_v51 = vld [vmem:[%s10883_s9 + $0x8c] ss:$16 sps:$4 sm:$0xff]  }
 0x588   : > { %6419 = vmatprep.subr.bf16.mxu0 %v3499_v30 }
 0x589   : > { %v3488_v27 = vpop.trf.xlu1  ;;  %6420 = vmatpush3.bf16.msra.mxu0 %v3499_v30 }
 0x58d   : > { %v3489_v14 = vpop.trf.xlu1 }
 0x58e   : > { %v3500_v22 = vpack.c.bf16 %v3489_v14, %v3488_v27 }
 0x590   : > { %6421 = vmatprep.subr.bf16.mxu0 %v3500_v22 }
 0x591   : > { %v3490_v8 = vpop.trf.xlu1  ;;  %6422 = vmatpush3.bf16.msra.mxu0 %v3500_v22 }
 0x595   : > { %v3491_v11 = vpop.trf.xlu1 }
 0x596   : > { %v3501_v19 = vpack.c.bf16 %v3491_v11, %v3490_v8  ;;  %v6731_v8 = vld [vmem:[%s10883_s9 + $0x88] ss:$16 sps:$4 sm:$0xff]   ;;  %v6739_v11 = vld [vmem:[%s10883_s9 + $0xac] ss:$16 sps:$4 sm:$0xff]  }
 0x598   : > { %6423 = vmatprep.subr.bf16.mxu0 %v3501_v19 }
 0x599   : > { %v3492_v41 = vpop.trf.xlu1  ;;  %6424 = vmatpush3.bf16.msra.mxu0 %v3501_v19 }
 0x59d   : > { %v3493_v61 = vpop.trf.xlu1 }
 0x59e   : > { %v3502_v40 = vpack.c.bf16 %v3493_v61, %v3492_v41  ;;  %v6737_v41 = vld [vmem:[%s10883_s9 + $0xa8] ss:$16 sps:$4 sm:$0xff]  }
 0x5a0   : > { %6425 = vmatprep.subr.bf16.mxu0 %v3502_v40 }
 0x5a1   : > { %v3494_v29 = vpop.trf.xlu1  ;;  %6426 = vmatpush3.bf16.msra.mxu0 %v3502_v40 }
 0x5a5   : > { %v3495_v15 = vpop.trf.xlu1 }
 0x5a6   : > { %v3503_v24 = vpack.c.bf16 %v3495_v15, %v3494_v29 }
 0x5a8   : > { %6427 = vmatprep.subr.bf16.mxu0 %v3503_v24 }
 0x5a9   : > { %6428 = vmatpush3.bf16.msra.mxu0 %v3503_v24 }
 0x5aa   : > { %4207 = vmatprep.subr.bf16.mxu0 %v6706_v21 }
 0x5ac   : > { %6430 = vmatmul.mubr.bf16.vlgmr.msra.gmra.mrb[64].mxu0 %v3449_v0  ;;  %v11057_v0 = vpack.c.bf16 %v9181_v1, %v9175_v38  ;;  %v6716_v38 = vld [vmem:[%s10883_s9 + $0x40] ss:$16 sps:$4 sm:$0xff]  }
 0x5ad   : > { %6433 = vmatprep.mubr.bf16.mxu0 %v3450_v13  ;;  %v11063_v13 = vpack.c.bf16 %v9229_v35, %v9223_v12  ;;  %4208 = vmatpush1.bf16.msra.mxu0 %v6704_v36  ;;  %v6722_v1 = vld [vmem:[%s10883_s9 + $0x60] ss:$16 sps:$4 sm:$0xff]   ;;  %v6715_v35 = vld [vmem:[%s10883_s9 + $0x2c] ss:$16 sps:$4 sm:$0xff]  }
 0x5ae   : > { %4209 = vmatprep.subr.bf16.mxu0 %v6712_v52 }
 0x5b1   : > { %4210 = vmatpush1.bf16.msra.mxu0 %v6710_v9 }
 0x5b2   : > { %4211 = vmatprep.subr.bf16.mxu0 %v6718_v33 }
 0x5b4   : > { %6434 = vmatmul.mubr.bf16.gmra.mrb[68].mxu0 %v3451_v57  ;;  %v11062_v57 = vpack.c.bf16 %v9210_v23, %v9204_v32 }
 0x5b5   : > { %6437 = vmatprep.mubr.bf16.mxu0 %v11053_v46  ;;  %4212 = vmatpush1.bf16.msra.mxu0 %v6716_v38 }
 0x5b6   : > { %4213 = vmatprep.subr.bf16.mxu0 %v6724_v26 }
 0x5b9   : > { %4214 = vmatpush1.bf16.msra.mxu0 %v6722_v1 }
 0x5ba   : > { %4215 = vmatprep.subr.bf16.mxu0 %v6730_v60 }
 0x5bc   : > { %6438 = vmatmul.mubr.bf16.gmra.mrb[72].mxu0 %v11054_v48 }
 0x5bd   : > { %6441 = vmatprep.mubr.bf16.mxu0 %v11055_v45  ;;  %4216 = vmatpush1.bf16.msra.mxu0 %v6728_v59 }
 0x5be   : > { %4217 = vmatprep.subr.bf16.mxu0 %v6736_v62  ;;  %v6742_v62 = vld [vmem:[%s10883_s9 + $0xc4] ss:$16 sps:$4 sm:$0xff]  }
 0x5c1   : > { %4218 = vmatpush1.bf16.msra.mxu0 %v6734_v31  ;;  %v6745_v31 = vld [vmem:[%s10883_s9 + $0xcc] ss:$16 sps:$4 sm:$0xff]  }
 0x5c2   : > { %4219 = vmatprep.subr.bf16.mxu0 %v6742_v62  ;;  %v6764_v62 = vld [vmem:[%s10885_s11 + $0x58] sm:$0xff]  }
 0x5c4   : > { %6442 = vmatmul.mubr.bf16.gmra.mrb[76].mxu0 %v11056_v17 }
 0x5c5   : > { %6445 = vmatprep.mubr.bf16.mxu0 %v11057_v0 }
 0x5cc   : > { %6446 = vmatmul.mubr.bf16.gmra.mrb[80].mxu0 %v11058_v42 }
 0x5cd   : > { %6449 = vmatprep.mubr.bf16.mxu0 %v11059_v6 }
 0x5d4   : > { %6450 = vmatmul.mubr.bf16.gmra.mrb[84].mxu0 %v11060_v4 }
 0x5d5   : > { %6453 = vmatprep.mubr.bf16.mxu0 %v11061_v44 }
 0x5dc   : > { %6454 = vmatmul.mubr.bf16.gmra.mrb[88].mxu0 %v11062_v57 }
 0x5dd   : > { %6457 = vmatprep.mubr.bf16.mxu0 %v11063_v13 }
 0x5e4   : > { %6458 = vmatmul.mubr.bf16.gmra.mrb[92].mxu0 %v11064_v16 }
 0x5e5   : > { %4239 = vmatprep.mubr.bf16.mxu0 %v11065_v2 }
 0x67f   : > { %v6431_v32 = vpop.f32.mrb[64].mxu0 }
 0x680   : > { %v3538_v37 = vpop.f32.mrb[65].mxu0 }
 0x681   : > { %v6432_v23 = vpop.f32.mrb[66].mxu0 }
 0x682   : > { %v3666_v55 = vpack.c.bf16 %v6432_v23, %v6431_v32  ;;  %v3541_v39 = vpop.f32.mrb[67].mxu0  ;;  %v6740_v32 = vld [vmem:[%s10883_s9 + $0xc0] ss:$16 sps:$4 sm:$0xff]  }
 0x683   : > { %v3665_v12 = vpack.c.bf16 %v3541_v39, %v3538_v37  ;;  %v6743_v37 = vld [vmem:[%s10883_s9 + $0xc8] ss:$16 sps:$4 sm:$0xff]   ;;  %4220 = vmatpush1.bf16.msra.mxu0 %v6740_v32  ;;  %v6746_v23 = vld [vmem:[%s10883_s9 + $0xe0] ss:$16 sps:$4 sm:$0xff]  }
 0x684   : > { %v6749_v39 = vld [vmem:[%s10883_s9 + $0xe8] ss:$16 sps:$4 sm:$0xff]  }
 0x685   : > { %6477 = vmatprep.mubr.bf16.mxu1 %v3665_v12  ;;  %v6751_v12 = vld [vmem:[%s10883_s9 + $0xec] ss:$16 sps:$4 sm:$0xff]  }
 0x686   : > { %6478 = vmatmul.mubr.bf16.vlgmr.msra.gmra.mrb[64].mxu1 %v3666_v55  ;;  %v6748_v55 = vld [vmem:[%s10883_s9 + $0xe4] ss:$16 sps:$4 sm:$0xff]   ;;  %v11075_v32 = vld [vmem:[#allocation19_spill] sm:$0xff] }
 0x687   : > { %v6435_v28 = vpop.f32.mrb[68].mxu0  ;;  %4401 = vmatpush1.bf16.msra.mxu1 %v6707_v3  ;;  %4221 = vmatprep.subr.bf16.mxu0 %v6748_v55  ;;  %v11076_v55 = vld [vmem:[#allocation22_spill] sm:$0xff] }
 0x688   : > { %v3554_v58 = vpop.f32.mrb[69].mxu0  ;;  %4402 = vmatprep.subr.bf16.mxu1 %v6715_v35  ;;  %4222 = vmatpush1.bf16.msra.mxu0 %v6746_v23  ;;  %v11066_v35 = vld [vmem:[#allocation13_spill] sm:$0xff] }
 0x689   : > { %v6436_v34 = vpop.f32.mrb[70].mxu0 }
 0x68a   : > { %v3668_v54 = vpack.c.bf16 %v6436_v34, %v6435_v28  ;;  %v3557_v63 = vpop.f32.mrb[71].mxu0 }
 0x68b   : > { %v3667_v49 = vpack.c.bf16 %v3557_v63, %v3554_v58  ;;  %4403 = vmatpush1.bf16.msra.mxu1 %v6713_v50  ;;  %v9582_v58 = vld [vmem:[%s10882_s8] ss:$0 sm:$0xff] }
 0x68c   : > { %4404 = vmatprep.subr.bf16.mxu1 %v6721_v25  ;;  %v11067_v25 = vld [vmem:[#allocation11_spill] sm:$0xff]  ;;  %v6752_v63 = vld [vmem:[%s10885_s11 + $0x40] sm:$0xff]  }
 0x68d   : > { %6481 = vmatprep.mubr.bf16.mxu1 %v3667_v49  ;;  %v6754_v49 = vld [vmem:[%s10885_s11 + $0xc0] sm:$0xff]   ;;  %6141 = vmatprep.subr.bf16.mxu0 %v6752_v63 }
 0x68e   : > { %6482 = vmatmul.mubr.bf16.gmra.mrb[68].mxu1 %v3668_v54 }
 0x68f   : > { %v6439_v43 = vpop.f32.mrb[72].mxu0  ;;  %4405 = vmatpush1.bf16.msra.mxu1 %v6719_v56  ;;  %v11068_v56 = vld [vmem:[#allocation14_spill] sm:$0xff] }
 0x690   : > { %v3570_v18 = vpop.f32.mrb[73].mxu0  ;;  %4406 = vmatprep.subr.bf16.mxu1 %v6727_v5 }
 0x691   : > { %v6440_v30 = vpop.f32.mrb[74].mxu0 }
 0x692   : > { %v3670_v27 = vpack.c.bf16 %v6440_v30, %v6439_v43  ;;  %v3573_v14 = vpop.f32.mrb[75].mxu0 }
 0x693   : > { %v3669_v22 = vpack.c.bf16 %v3573_v14, %v3570_v18  ;;  %4407 = vmatpush1.bf16.msra.mxu1 %v6725_v7  ;;  %v11069_v7 = vld [vmem:[#allocation12_spill] sm:$0xff] }
 0x694   : > { %4408 = vmatprep.subr.bf16.mxu1 %v6733_v51 }
 0x695   : > { %6485 = vmatprep.mubr.bf16.mxu1 %v3669_v22 }
 0x696   : > { %6486 = vmatmul.mubr.bf16.gmra.mrb[72].mxu1 %v3670_v27 }
 0x697   : > { %v6443_v19 = vpop.f32.mrb[76].mxu0  ;;  %4409 = vmatpush1.bf16.msra.mxu1 %v6731_v8 }
 0x698   : > { %v3586_v61 = vpop.f32.mrb[77].mxu0  ;;  %4410 = vmatprep.subr.bf16.mxu1 %v6739_v11 }
 0x699   : > { %v6444_v40 = vpop.f32.mrb[78].mxu0 }
 0x69a   : > { %v3672_v29 = vpack.c.bf16 %v6444_v40, %v6443_v19  ;;  %v3589_v15 = vpop.f32.mrb[79].mxu0  ;;  %v6753_v19 = vld [vmem:[%s10885_s11] sm:$0xff]  }
 0x69b   : > { %v3671_v24 = vpack.c.bf16 %v3589_v15, %v3586_v61  ;;  %4411 = vmatpush1.bf16.msra.mxu1 %v6737_v41  ;;  %v6755_v41 = vld [vmem:[%s10885_s11 + $0x80] sm:$0xff]   ;;  %v11070_v61 = vld [vmem:[#allocation17_spill] sm:$0xff] }
 0x69c   : > { %4412 = vmatprep.subr.bf16.mxu1 %v6745_v31  ;;  %v6756_v15 = vld [vmem:[%s10885_s11 + $0x48] sm:$0xff]   ;;  %v6765_v31 = vld [vmem:[%s10885_s11 + $0xd8] sm:$0xff]  }
 0x69d   : > { %6489 = vmatprep.mubr.bf16.mxu1 %v3671_v24  ;;  %v6758_v24 = vld [vmem:[%s10885_s11 + $0xc8] sm:$0xff]  }
 0x69e   : > { %6490 = vmatmul.mubr.bf16.gmra.mrb[76].mxu1 %v3672_v29 }
 0x69f   : > { %v6447_v46 = vpop.f32.mrb[80].mxu0  ;;  %4413 = vmatpush1.bf16.msra.mxu1 %v6743_v37 }
 0x6a0   : > { %v3602_v48 = vpop.f32.mrb[81].mxu0  ;;  %4414 = vmatprep.subr.bf16.mxu1 %v6751_v12 }
 0x6a1   : > { %v6448_v45 = vpop.f32.mrb[82].mxu0 }
 0x6a2   : > { %v3674_v17 = vpack.c.bf16 %v6448_v45, %v6447_v46  ;;  %v3605_v0 = vpop.f32.mrb[83].mxu0  ;;  %v11071_v46 = vld [vmem:[#allocation15_spill] sm:$0xff] }
 0x6a3   : > { %v3673_v42 = vpack.c.bf16 %v3605_v0, %v3602_v48  ;;  %4415 = vmatpush1.bf16.msra.mxu1 %v6749_v39 }
 0x6a4   : > { %6253 = vmatprep.subr.bf16.mxu1 %v6754_v49 }
 0x6a5   : > { %6493 = vmatprep.mubr.bf16.mxu1 %v3673_v42 }
 0x6a6   : > { %6494 = vmatmul.mubr.bf16.gmra.mrb[80].mxu1 %v3674_v17  ;;  %v11072_v17 = vld [vmem:[#allocation18_spill] sm:$0xff] }
 0x6a7   : > { %v6451_v6 = vpop.f32.mrb[84].mxu0 }
 0x6a8   : > { %v3618_v4 = vpop.f32.mrb[85].mxu0 }
 0x6a9   : > { %v6452_v44 = vpop.f32.mrb[86].mxu0 }
 0x6aa   : > { %v3676_v57 = vpack.c.bf16 %v6452_v44, %v6451_v6  ;;  %v3621_v13 = vpop.f32.mrb[87].mxu0  ;;  %v11073_v6 = vld [vmem:[#allocation16_spill] sm:$0xff]  ;;  %v6757_v44 = vld [vmem:[%s10885_s11 + $0x8] sm:$0xff]  }
 0x6ab   : > { %v3675_v16 = vpack.c.bf16 %v3621_v13, %v3618_v4 }
 0x6ad   : > { %6497 = vmatprep.mubr.bf16.mxu1 %v3675_v16 }
 0x6ae   : > { %6498 = vmatmul.mubr.bf16.gmra.mrb[84].mxu1 %v3676_v57  ;;  %v6759_v57 = vld [vmem:[%s10885_s11 + $0x88] sm:$0xff]  }
 0x6af   : > { %v6455_v20 = vpop.f32.mrb[88].mxu0 }
 0x6b0   : > { %v3634_v36 = vpop.f32.mrb[89].mxu0 }
 0x6b1   : > { %v6456_v21 = vpop.f32.mrb[90].mxu0 }
 0x6b2   : > { %v3678_v47 = vpack.c.bf16 %v6456_v21, %v6455_v20  ;;  %v3637_v52 = vpop.f32.mrb[91].mxu0  ;;  %v6760_v20 = vld [vmem:[%s10885_s11 + $0x50] sm:$0xff]  }
 0x6b3   : > { %v3677_v9 = vpack.c.bf16 %v3637_v52, %v3634_v36  ;;  %v6762_v36 = vld [vmem:[%s10885_s11 + $0xd0] sm:$0xff]  }
 0x6b5   : > { %6501 = vmatprep.mubr.bf16.mxu1 %v3677_v9 }
 0x6b6   : > { %6502 = vmatmul.mubr.bf16.gmra.mrb[88].mxu1 %v3678_v47 }
 0x6b7   : > { %v6459_v33 = vpop.f32.mrb[92].mxu0 }
 0x6b8   : > { %v3650_v38 = vpop.f32.mrb[93].mxu0 }
 0x6b9   : > { %v6460_v26 = vpop.f32.mrb[94].mxu0 }
 0x6ba   : > { %v3680_v1 = vpack.c.bf16 %v6460_v26, %v6459_v33  ;;  %v3653_v60 = vpop.f32.mrb[95].mxu0  ;;  %v6763_v26 = vld [vmem:[%s10885_s11 + $0x90] sm:$0xff]  }
 0x6bb   : > { %v3679_v59 = vpack.c.bf16 %v3653_v60, %v3650_v38  ;;  %v6761_v38 = vld [vmem:[%s10885_s11 + $0x10] sm:$0xff]  }
 0x6bd   : > { %6505 = vmatprep.mubr.bf16.mxu1 %v3679_v59 }
 0x6be   : > { %6506 = vmatmul.mubr.bf16.gmra.mrb[92].mxu1 %v3680_v1  ;;  %v11074_v1 = vld [vmem:[#allocation21_spill] sm:$0xff] }
 0x6bf   : > { %4432 = vmatprep.mubr.bf16.mxu1 %v11065_v2 }
 0x759   : > { %v6479_v3 = vpop.f32.mrb[64].mxu1 }
 0x75a   : > { %v3908_v28 = vadd.f32 %v6479_v3, %v11066_v35  ;;  %v3779_v50 = vpop.f32.mrb[65].mxu1  ;;  %v11077_v3 = vld [vmem:[#allocation20_spill] sm:$0xff] }
 0x75b   : > { %v3906_v34 = vadd.f32 %v3779_v50, %v11067_v25  ;;  %v6480_v54 = vpop.f32.mrb[66].mxu1  ;;  %v6767_v50 = vld [vmem:[%s10885_s11 + $0x98] sm:$0xff]  }
 0x75c   : > { %v3909_v5 = vadd.f32 %v6480_v54, %v11068_v56  ;;  %v3782_v43 = vpop.f32.mrb[67].mxu1  ;;  %v3947_v51 = vadd.f32 %v9582_v58, %v3908_v28  ;;  %v6766_v28 = vld [vmem:[%s10885_s11 + $0x18] sm:$0xff]  }
 0x75d   : > { %v3907_v18 = vadd.f32 %v3782_v43, %v11069_v7  ;;  %v3945_v27 = vadd.f32 %v9582_v58, %v3906_v34  ;;  %v11078_v43 = vld [vmem:[#allocation25_spill] sm:$0xff] }
 0x75e   : > { %v3948_v30 = vadd.f32 %v9582_v58, %v3909_v5 }
 0x75f   : > { %v3946_v14 = vadd.f32 %v9582_v58, %v3907_v18 }
 0x760   : > { %v3978_v22 = vpack.c.bf16 %v3948_v30, %v3947_v51  ;;  %v11079_v51 = vld [vmem:[#allocation23_spill] sm:$0xff] }
 0x761   : > { %v3977_v8 = vpack.c.bf16 %v3946_v14, %v3945_v27  ;;  %v6483_v11 = vpop.f32.mrb[68].mxu1  ;;  %v11080_v14 = vld [vmem:[#allocation26_spill] sm:$0xff] }
 0x762   : > { %v3912_v40 = vadd.f32 %v6483_v11, %v11070_v61  ;;  %v3795_v29 = vpop.f32.mrb[69].mxu1  ;;  %v11081_v11 = vld [vmem:[#allocation24_spill] sm:$0xff] }
 0x763   : > { %v3910_v48 = vadd.f32 %v3795_v29, %v11071_v46  ;;  %v6484_v45 = vpop.f32.mrb[70].mxu1  ;;  %4240 = vmatmul.mubr.bf16.vlgmr.msra.gmra.mrb[96].mxu0 %v3977_v8  ;;  %4433 = vmatmul.mubr.bf16.vlgmr.msra.gmra.mrb[96].mxu1 %v3977_v8 }
 0x764   : > { %v3913_v0 = vadd.f32 %v6484_v45, %v11072_v17  ;;  %v3798_v42 = vpop.f32.mrb[71].mxu1  ;;  %4249 = vmatprep.mubr.bf16.mxu0 %v11065_v2  ;;  %4442 = vmatprep.mubr.bf16.mxu1 %v11065_v2  ;;  %v3951_v13 = vadd.f32 %v9582_v58, %v3912_v40 }
 0x765   : > { %v3911_v4 = vadd.f32 %v3798_v42, %v11073_v6  ;;  %6142 = vmatpush3.bf16.msra.mxu0 %v6753_v19  ;;  %6254 = vmatpush3.bf16.msra.mxu1 %v6755_v41  ;;  %v3949_v21 = vadd.f32 %v9582_v58, %v3910_v48  ;;  %v11082_v48 = vld [vmem:[#allocation29_spill] sm:$0xff] }
 0x766   : > { %v3952_v16 = vadd.f32 %v9582_v58, %v3913_v0  ;;  %6143 = vmatprep.subr.bf16.mxu0 %v6756_v15  ;;  %6255 = vmatprep.subr.bf16.mxu1 %v6758_v24  ;;  %v11083_v0 = vld [vmem:[#allocation27_spill] sm:$0xff] }
 0x767   : > { %v3950_v47 = vadd.f32 %v9582_v58, %v3911_v4 }
 0x768   : > { %v3980_v52 = vpack.c.bf16 %v3952_v16, %v3951_v13 }
 0x769   : > { %v6487_v9 = vpop.f32.mrb[72].mxu1  ;;  %v3979_v33 = vpack.c.bf16 %v3950_v47, %v3949_v21  ;;  %6144 = vmatpush3.bf16.msra.mxu0 %v6757_v44  ;;  %6256 = vmatpush3.bf16.msra.mxu1 %v6759_v57  ;;  %v11084_v44 = vld [vmem:[#allocation30_spill] sm:$0xff] }
 0x76a   : > { %v3916_v60 = vadd.f32 %v6487_v9, %v11074_v1  ;;  %v3811_v59 = vpop.f32.mrb[73].mxu1  ;;  %6145 = vmatprep.subr.bf16.mxu0 %v6760_v20  ;;  %6257 = vmatprep.subr.bf16.mxu1 %v6762_v36  ;;  %v11085_v20 = vld [vmem:[#allocation28_spill] sm:$0xff] }
 0x76b   : > { %v3914_v37 = vadd.f32 %v3811_v59, %v11075_v32  ;;  %v6488_v23 = vpop.f32.mrb[74].mxu1  ;;  %4250 = vmatmul.mubr.bf16.gmra.mrb[100].mxu0 %v3978_v22  ;;  %4443 = vmatmul.mubr.bf16.gmra.mrb[100].mxu1 %v3978_v22  ;;  %v11088_v32 = vld [vmem:[#allocation34_spill] sm:$0xff] }
 0x76c   : > { %v3917_v39 = vadd.f32 %v6488_v23, %v11076_v55  ;;  %v3814_v12 = vpop.f32.mrb[75].mxu1  ;;  %4259 = vmatprep.mubr.bf16.mxu0 %v11065_v2  ;;  %4452 = vmatprep.mubr.bf16.mxu1 %v11065_v2  ;;  %v3955_v25 = vadd.f32 %v9582_v58, %v3916_v60  ;;  %v11087_v60 = vld [vmem:[#allocation31_spill] sm:$0xff] }
 0x76d   : > { %v3915_v35 = vadd.f32 %v3814_v12, %v11077_v3  ;;  %6146 = vmatpush3.bf16.msra.mxu0 %v6761_v38  ;;  %6258 = vmatpush3.bf16.msra.mxu1 %v6763_v26  ;;  %v3953_v54 = vadd.f32 %v9582_v58, %v3914_v37  ;;  %v11086_v38 = vld [vmem:[#allocation33_spill] sm:$0xff] }
 0x76e   : > { %v3956_v34 = vadd.f32 %v9582_v58, %v3917_v39  ;;  %6147 = vmatprep.subr.bf16.mxu0 %v6764_v62  ;;  %6259 = vmatprep.subr.bf16.mxu1 %v6765_v31  ;;  %v11089_v39 = vld [vmem:[#allocation32_spill] sm:$0xff] }
 0x76f   : > { %v3954_v63 = vadd.f32 %v9582_v58, %v3915_v35 }
 0x770   : > { %v9659_v49 = vpack.c.bf16 %v3956_v34, %v3955_v25  ;;  %v11090_v34 = vld [vmem:[#allocation37_spill] sm:$0xff] }
 0x771   : > { %v6491_v56 = vpop.f32.mrb[76].mxu1  ;;  %v3981_v5 = vpack.c.bf16 %v3954_v63, %v3953_v54  ;;  %6148 = vmatpush3.bf16.msra.mxu0 %v6766_v28  ;;  %6260 = vmatpush3.bf16.msra.mxu1 %v6767_v50 }
 0x772   : > { %v3920_v7 = vadd.f32 %v6491_v56, %v11078_v43  ;;  %v3827_v18 = vpop.f32.mrb[77].mxu1  ;;  %v11091_v56 = vld [vmem:[#allocation35_spill] sm:$0xff] }
 0x773   : > { %v3918_v30 = vadd.f32 %v3827_v18, %v11079_v51  ;;  %v6492_v27 = vpop.f32.mrb[78].mxu1  ;;  %4260 = vmatmul.mubr.bf16.gmra.mrb[104].mxu0 %v3979_v33  ;;  %4453 = vmatmul.mubr.bf16.gmra.mrb[104].mxu1 %v3979_v33  ;;  %v11092_v18 = vld [vmem:[#allocation38_spill] sm:$0xff] }
 0x774   : > { %v3921_v22 = vadd.f32 %v6492_v27, %v11080_v14  ;;  %v3830_v8 = vpop.f32.mrb[79].mxu1  ;;  %4269 = vmatprep.mubr.bf16.mxu0 %v11065_v2  ;;  %4462 = vmatprep.mubr.bf16.mxu1 %v11065_v2  ;;  %v3959_v41 = vadd.f32 %v9582_v58, %v3920_v7  ;;  %v11093_v14 = vld [vmem:[#allocation36_spill] sm:$0xff] }
 0x775   : > { %v3919_v19 = vadd.f32 %v3830_v8, %v11081_v11  ;;  %v3957_v40 = vadd.f32 %v9582_v58, %v3918_v30 }
 0x776   : > { %v3960_v61 = vadd.f32 %v9582_v58, %v3921_v22 }
 0x777   : > { %v3958_v29 = vadd.f32 %v9582_v58, %v3919_v19 }
 0x778   : > { %v9671_v15 = vpack.c.bf16 %v3960_v61, %v3959_v41  ;;  %v11094_v61 = vld [vmem:[#allocation41_spill] sm:$0xff] }
 0x779   : > { %v6495_v24 = vpop.f32.mrb[80].mxu1  ;;  %v3983_v46 = vpack.c.bf16 %v3958_v29, %v3957_v40 }
 0x77a   : > { %v3924_v45 = vadd.f32 %v6495_v24, %v11082_v48  ;;  %v3843_v17 = vpop.f32.mrb[81].mxu1  ;;  %v11095_v24 = vld [vmem:[#allocation39_spill] sm:$0xff] }
 0x77b   : > { %v3922_v42 = vadd.f32 %v3843_v17, %v11083_v0  ;;  %v6496_v6 = vpop.f32.mrb[82].mxu1  ;;  %4270 = vmatmul.mubr.bf16.gmra.mrb[108].mxu0 %v3980_v52  ;;  %4463 = vmatmul.mubr.bf16.gmra.mrb[108].mxu1 %v3980_v52  ;;  %v11096_v0 = vld [vmem:[#allocation42_spill] sm:$0xff] }
 0x77c   : > { %v3963_v4 = vadd.f32 %v9582_v58, %v3924_v45  ;;  %v3925_v57 = vadd.f32 %v6496_v6, %v11084_v44  ;;  %v3846_v13 = vpop.f32.mrb[83].mxu1  ;;  %4279 = vmatprep.mubr.bf16.mxu0 %v11065_v2  ;;  %4472 = vmatprep.mubr.bf16.mxu1 %v11065_v2  ;;  %v11097_v44 = vld [vmem:[#allocation40_spill] sm:$0xff] }
 0x77d   : > { %v3961_v16 = vadd.f32 %v9582_v58, %v3922_v42  ;;  %v3923_v36 = vadd.f32 %v3846_v13, %v11085_v20 }
 0x77e   : > { %v3964_v21 = vadd.f32 %v9582_v58, %v3925_v57 }
 0x77f   : > { %v3962_v47 = vadd.f32 %v9582_v58, %v3923_v36  ;;  %v6770_v36 = vld [vmem:[%s10885_s11 + $0x20] sm:$0xff]  }
 0x780   : > { %v9683_v9 = vpack.c.bf16 %v3964_v21, %v3963_v4  ;;  %v6771_v21 = vld [vmem:[%s10885_s11 + $0xa0] sm:$0xff]  }
 0x781   : > { %v6499_v52 = vpop.f32.mrb[84].mxu1  ;;  %v3985_v33 = vpack.c.bf16 %v3962_v47, %v3961_v16  ;;  %v6772_v47 = vld [vmem:[%s10885_s11 + $0x68] sm:$0xff]  }
 0x782   : > { %v3928_v26 = vadd.f32 %v6499_v52, %v11086_v38  ;;  %v3859_v1 = vpop.f32.mrb[85].mxu1  ;;  %v6774_v52 = vld [vmem:[%s10885_s11 + $0x28] sm:$0xff]   ;;  %v6776_v38 = vld [vmem:[%s10885_s11 + $0x70] sm:$0xff]  }
 0x783   : > { %v3926_v59 = vadd.f32 %v3859_v1, %v11087_v60  ;;  %v6500_v62 = vpop.f32.mrb[86].mxu1  ;;  %4280 = vmatmul.mubr.bf16.gmra.mrb[112].mxu0 %v3981_v5  ;;  %4473 = vmatmul.mubr.bf16.gmra.mrb[112].mxu1 %v3981_v5  ;;  %v6778_v1 = vld [vmem:[%s10885_s11 + $0x30] sm:$0xff]  }
 0x784   : > { %v3967_v31 = vadd.f32 %v9582_v58, %v3928_v26  ;;  %v3929_v37 = vadd.f32 %v6500_v62, %v11088_v32  ;;  %v3862_v23 = vpop.f32.mrb[87].mxu1  ;;  %4289 = vmatprep.mubr.bf16.mxu0 %v11065_v2  ;;  %4482 = vmatprep.mubr.bf16.mxu1 %v11065_v2  ;;  %v6777_v26 = vld [vmem:[%s10885_s11 + $0xf0] sm:$0xff]   ;;  %v6781_v62 = vld [vmem:[%s10885_s11 + $0xf8] sm:$0xff]  }
 0x785   : > { %v3965_v55 = vadd.f32 %v9582_v58, %v3926_v59  ;;  %v3927_v12 = vadd.f32 %v3862_v23, %v11089_v39  ;;  %v6779_v60 = vld [vmem:[%s10885_s11 + $0xb0] sm:$0xff]   ;;  %v6780_v59 = vld [vmem:[%s10885_s11 + $0x78] sm:$0xff]   ;;  %v11098_v23 = vld [vmem:[#allocation8_spill] sm:$0xff] }
 0x786   : > { %v3968_v3 = vadd.f32 %v9582_v58, %v3929_v37  ;;  %v6783_v32 = vld [vmem:[%s10885_s11 + $0xb8] sm:$0xff]   ;;  %v4025_v37 = vld [vmem:[%s10884_s10] sm:$0xf] }
 0x787   : > { %v3966_v35 = vadd.f32 %v9582_v58, %v3927_v12  ;;  %v9798_v39 = vrot.slane %v4025_v37, %v7120_v10  ;;  %v9801_v12 = vrot.slane %v4025_v37, %v11051_v53 }
 0x788   : > { %v3988_v28 = vpack.c.bf16 %v3968_v3, %v3967_v31  ;;  %v6782_v31 = vld [vmem:[%s10885_s11 + $0x38] sm:$0xff]   ;;  %v11099_v3 = vld [vmem:[#allocation9_spill] sm:$0xff] }
 0x789   : > { %v6503_v50 = vpop.f32.mrb[88].mxu1  ;;  %v3987_v25 = vpack.c.bf16 %v3966_v35, %v3965_v55  ;;  %v4041_v55 = vsub.s32 3, %v11098_v23  ;;  %v9804_v35 = vrot.slane %v4025_v37, %v11099_v3 }
 0x78a   : > { %v3932_v54 = vadd.f32 %v6503_v50, %v11090_v34  ;;  %v3875_v63 = vpop.f32.mrb[89].mxu1 }
 0x78b   : > { %v3930_v5 = vadd.f32 %v3875_v63, %v11091_v56  ;;  %v6504_v43 = vpop.f32.mrb[90].mxu1  ;;  %4290 = vmatmul.mubr.bf16.gmra.mrb[116].mxu0 %v9659_v49  ;;  %4483 = vmatmul.mubr.bf16.gmra.mrb[116].mxu1 %v9659_v49  ;;  %v9806_v50 = vrot.slane %v4025_v37, %v4041_v55 }
 0x78c   : > { %v3971_v7 = vadd.f32 %v9582_v58, %v3932_v54  ;;  %v3933_v51 = vadd.f32 %v6504_v43, %v11092_v18  ;;  %v3878_v30 = vpop.f32.mrb[91].mxu1  ;;  %4299 = vmatprep.mubr.bf16.mxu0 %v11065_v2  ;;  %4492 = vmatprep.mubr.bf16.mxu1 %v11065_v2 }
 0x78d   : > { %v3969_v27 = vadd.f32 %v9582_v58, %v3930_v5  ;;  %v3931_v22 = vadd.f32 %v3878_v30, %v11093_v14 }
 0x78e   : > { %v3972_v8 = vadd.f32 %v9582_v58, %v3933_v51 }
 0x78f   : > { %v3970_v11 = vadd.f32 %v9582_v58, %v3931_v22 }
 0x790   : > { %v9707_v19 = vpack.c.bf16 %v3972_v8, %v3971_v7 }
 0x791   : > { %v6507_v49 = vpop.f32.mrb[92].mxu1  ;;  %v3989_v41 = vpack.c.bf16 %v3970_v11, %v3969_v27 }
 0x792   : > { %v3936_v40 = vadd.f32 %v6507_v49, %v11094_v61  ;;  %v3891_v29 = vpop.f32.mrb[93].mxu1 }
 0x793   : > { %v3934_v48 = vadd.f32 %v3891_v29, %v11095_v24  ;;  %v6508_v45 = vpop.f32.mrb[94].mxu1  ;;  %4300 = vmatmul.mubr.bf16.gmra.mrb[120].mxu0 %v3983_v46  ;;  %4493 = vmatmul.mubr.bf16.gmra.mrb[120].mxu1 %v3983_v46 }
 0x794   : > { %v3975_v17 = vadd.f32 %v9582_v58, %v3936_v40  ;;  %v3937_v42 = vadd.f32 %v6508_v45, %v11096_v0  ;;  %v3894_v6 = vpop.f32.mrb[95].mxu1  ;;  %4309 = vmatprep.mubr.bf16.mxu0 %v11065_v2  ;;  %4502 = vmatprep.mubr.bf16.mxu1 %v11065_v2 }
 0x795   : > { %v3973_v4 = vadd.f32 %v9582_v58, %v3934_v48  ;;  %v3935_v57 = vadd.f32 %v3894_v6, %v11097_v44 }
 0x796   : > { %v3976_v13 = vadd.f32 %v9582_v58, %v3937_v42 }
 0x797   : > { %v3974_v16 = vadd.f32 %v9582_v58, %v3935_v57  ;;  %v6768_v58 = vld [vmem:[%s10885_s11 + $0x60] sm:$0xff]  }
 0x798   : > { %v9719_v20 = vpack.c.bf16 %v3976_v13, %v3975_v17  ;;  %6149 = vmatprep.subr.bf16.mxu0 %v6768_v58 }
 0x799   : > { %v3991_v46 = vpack.c.bf16 %v3974_v16, %v3973_v4  ;;  %6150 = vmatpush3.bf16.msra.mxu0 %v6770_v36 }
 0x79a   : > { %6151 = vmatprep.subr.bf16.mxu0 %v6772_v47 }
 0x79b   : > { %4310 = vmatmul.mubr.bf16.gmra.mrb[124].mxu0 %v9671_v15  ;;  %4503 = vmatmul.mubr.bf16.gmra.mrb[124].mxu1 %v9671_v15  ;;  %v6769_v15 = vld [vmem:[%s10885_s11 + $0xe0] sm:$0xff]  }
 0x79c   : > { %4319 = vmatprep.mubr.bf16.mxu0 %v11065_v2  ;;  %4512 = vmatprep.mubr.bf16.mxu1 %v11065_v2 }
 0x79d   : > { %6261 = vmatprep.subr.bf16.mxu1 %v6769_v15  ;;  %6152 = vmatpush3.bf16.msra.mxu0 %v6774_v52 }
 0x79e   : > { %6262 = vmatpush3.bf16.msra.mxu1 %v6771_v21  ;;  %6153 = vmatprep.subr.bf16.mxu0 %v6776_v38 }
 0x7a1   : > { %6154 = vmatpush3.bf16.msra.mxu0 %v6778_v1 }
 0x7a2   : > { %6155 = vmatprep.subr.bf16.mxu0 %v6780_v59 }
 0x7a3   : > { %4320 = vmatmul.mubr.bf16.gmra.mrb[128].mxu0 %v3985_v33  ;;  %4513 = vmatmul.mubr.bf16.gmra.mrb[128].mxu1 %v3985_v33  ;;  %v6775_v33 = vld [vmem:[%s10885_s11 + $0xa8] sm:$0xff]  }
 0x7a4   : > { %4329 = vmatprep.mubr.bf16.mxu0 %v11065_v2  ;;  %4522 = vmatprep.mubr.bf16.mxu1 %v11065_v2 }
 0x7a5   : > { %6156 = vmatpush3.bf16.msra.mxu0 %v6782_v31 }
 0x7ab   : > { %4330 = vmatmul.mubr.bf16.gmra.mrb[132].mxu0 %v9683_v9  ;;  %4523 = vmatmul.mubr.bf16.gmra.mrb[132].mxu1 %v9683_v9  ;;  %v6773_v9 = vld [vmem:[%s10885_s11 + $0xe8] sm:$0xff]  }
 0x7ac   : > { %4339 = vmatprep.mubr.bf16.mxu0 %v11065_v2  ;;  %4532 = vmatprep.mubr.bf16.mxu1 %v11065_v2 }
 0x7ad   : > { %6263 = vmatprep.subr.bf16.mxu1 %v6773_v9 }
 0x7ae   : > { %6264 = vmatpush3.bf16.msra.mxu1 %v6775_v33 }
 0x7af   : > { %6265 = vmatprep.subr.bf16.mxu1 %v6777_v26 }
 0x7b2   : > { %6266 = vmatpush3.bf16.msra.mxu1 %v6779_v60 }
 0x7b3   : > { %4340 = vmatmul.mubr.bf16.gmra.mrb[136].mxu0 %v3987_v25  ;;  %4533 = vmatmul.mubr.bf16.gmra.mrb[136].mxu1 %v3987_v25 }
 0x7b4   : > { %4349 = vmatprep.mubr.bf16.mxu0 %v11065_v2  ;;  %4542 = vmatprep.mubr.bf16.mxu1 %v11065_v2 }
 0x7b5   : > { %6267 = vmatprep.subr.bf16.mxu1 %v6781_v62 }
 0x7b6   : > { %6268 = vmatpush3.bf16.msra.mxu1 %v6783_v32 }
 0x7bb   : > { %4350 = vmatmul.mubr.bf16.gmra.mrb[140].mxu0 %v3988_v28  ;;  %4543 = vmatmul.mubr.bf16.gmra.mrb[140].mxu1 %v3988_v28 }
 0x7bc   : > { %4359 = vmatprep.mubr.bf16.mxu0 %v11065_v2  ;;  %4552 = vmatprep.mubr.bf16.mxu1 %v11065_v2 }
 0x7c3   : > { %4360 = vmatmul.mubr.bf16.gmra.mrb[144].mxu0 %v3989_v41  ;;  %4553 = vmatmul.mubr.bf16.gmra.mrb[144].mxu1 %v3989_v41 }
 0x7c4   : > { %4369 = vmatprep.mubr.bf16.mxu0 %v11065_v2  ;;  %4562 = vmatprep.mubr.bf16.mxu1 %v11065_v2 }
 0x7cb   : > { %4370 = vmatmul.mubr.bf16.gmra.mrb[148].mxu0 %v9707_v19  ;;  %4563 = vmatmul.mubr.bf16.gmra.mrb[148].mxu1 %v9707_v19 }
 0x7cc   : > { %4379 = vmatprep.mubr.bf16.mxu0 %v11065_v2  ;;  %4572 = vmatprep.mubr.bf16.mxu1 %v11065_v2 }
 0x7d3   : > { %4380 = vmatmul.mubr.bf16.gmra.mrb[152].mxu0 %v3991_v46  ;;  %4573 = vmatmul.mubr.bf16.gmra.mrb[152].mxu1 %v3991_v46 }
 0x7d4   : > { %4389 = vmatprep.mubr.bf16.mxu0 %v11065_v2  ;;  %4582 = vmatprep.mubr.bf16.mxu1 %v11065_v2 }
 0x7db   : > { %4390 = vmatmul.mubr.bf16.gmra.mrb[156].mxu0 %v9719_v20  ;;  %4583 = vmatmul.mubr.bf16.gmra.mrb[156].mxu1 %v9719_v20 }
 0x836   : > { %v4241_v2 = vpop.f32.mrb[96].mxu0  ;;  %v4434_v28 = vpop.f32.mrb[96].mxu1 }
 0x837   : > { %v4242_v25 = vadd.f32 %v4241_v2, %v9798_v39  ;;  %v4435_v34 = vadd.f32 %v4434_v28, %v9801_v12  ;;  %v4243_v54 = vpop.f32.mrb[97].mxu0  ;;  %v4436_v63 = vpop.f32.mrb[97].mxu1 }
 0x838   : > { %v9811_v56 = vadd.f32 %v4243_v54, %v9804_v35  ;;  %v4245_v10 = vpop.f32.mrb[98].mxu0  ;;  %v4438_v5 = vpop.f32.mrb[98].mxu1  ;;  %v9816_v27 = vadd.f32 %v4436_v63, %v9806_v50 }
 0x839   : > { %v4593_v53 = vadd.f32 3.0, %v4242_v25  ;;  %v4595_v43 = vadd.f32 3.0, %v4435_v34  ;;  %v4246_v7 = vadd.f32 %v4245_v10, %v9798_v39  ;;  %v4439_v18 = vadd.f32 %v4438_v5, %v9801_v12  ;;  %v4247_v51 = vpop.f32.mrb[99].mxu0  ;;  %v4440_v30 = vpop.f32.mrb[99].mxu1 }
 0x83a   : > { %v4248_v14 = vadd.f32 %v4247_v51, %v9804_v35  ;;  %v4441_v22 = vadd.f32 %v4440_v30, %v9806_v50  ;;  %v4594_v41 = vadd.f32 3.0, %v9811_v56  ;;  %v4596_v17 = vadd.f32 3.0, %v9816_v27 }
 0x83b   : > { %v4721_v8 = vmax.f32 %v4593_v53, 0.0  ;;  %v4723_v11 = vmax.f32 %v4595_v43, 0.0  ;;  %v4597_v19 = vadd.f32 3.0, %v4246_v7  ;;  %v4599_v49 = vadd.f32 3.0, %v4439_v18 }
 0x83c   : > { %v4598_v61 = vadd.f32 3.0, %v4248_v14  ;;  %v4600_v40 = vadd.f32 3.0, %v4441_v22  ;;  %v4722_v46 = vmax.f32 %v4594_v41, 0.0  ;;  %v4724_v26 = vmax.f32 %v4596_v17, 0.0 }
 0x83d   : > { %v4849_v29 = vmin.f32 %v4721_v8, 6.0  ;;  %v4851_v24 = vmin.f32 %v4723_v11, 6.0  ;;  %v4725_v48 = vmax.f32 %v4597_v19, 0.0  ;;  %v4727_v45 = vmax.f32 %v4599_v49, 0.0 }
 0x83e   : > { %v4726_v0 = vmax.f32 %v4598_v61, 0.0  ;;  %v4251_v42 = vpop.f32.mrb[100].mxu0  ;;  %v4444_v6 = vpop.f32.mrb[100].mxu1  ;;  %v4728_v58 = vmax.f32 %v4600_v40, 0.0  ;;  %v4850_v63 = vmin.f32 %v4722_v46, 6.0  ;;  %v4852_v10 = vmin.f32 %v4724_v26, 6.0 }
 0x83f   : > { %v4853_v4 = vmin.f32 %v4725_v48, 6.0  ;;  %v4855_v44 = vmin.f32 %v4727_v45, 6.0  ;;  %v4253_v57 = vpop.f32.mrb[101].mxu0  ;;  %v4446_v13 = vpop.f32.mrb[101].mxu1  ;;  %v9822_v16 = vmul.f32 %v4849_v29, %v4242_v25  ;;  %v9824_v20 = vmul.f32 %v4851_v24, %v4435_v34 }
 0x840   : > { %v4255_v15 = vpop.f32.mrb[102].mxu0  ;;  %v4448_v36 = vpop.f32.mrb[102].mxu1  ;;  %v4252_v9 = vadd.f32 %v4251_v42, %v9798_v39  ;;  %v4445_v52 = vadd.f32 %v4444_v6, %v9801_v12  ;;  %v4854_v1 = vmin.f32 %v4726_v0, 6.0  ;;  %v9833_v60 = vadd.f32 %v4253_v57, %v9804_v35 }
 0x841   : > { %v9826_v21 = vmul.f32 %v4853_v4, %v4246_v7  ;;  %v9828_v47 = vmul.f32 %v4855_v44, %v4439_v18  ;;  %v4257_v33 = vpop.f32.mrb[103].mxu0  ;;  %v4450_v38 = vpop.f32.mrb[103].mxu1  ;;  %v9836_v59 = vadd.f32 %v4446_v13, %v9806_v50  ;;  %v4856_v23 = vmin.f32 %v4728_v58, 6.0 }
 0x842   : > { %v4601_v32 = vadd.f32 3.0, %v4252_v9  ;;  %v4603_v37 = vadd.f32 3.0, %v4445_v52  ;;  %v4602_v55 = vadd.f32 3.0, %v9833_v60  ;;  %v9844_v3 = vadd.f32 %v4255_v15, %v9798_v39 }
 0x843   : > { %v5105_v62 = vpack.c.bf16 %v9826_v21, %v9822_v16  ;;  %v5107_v31 = vpack.c.bf16 %v9828_v47, %v9824_v20  ;;  %v9847_v2 = vadd.f32 %v4448_v36, %v9801_v12  ;;  %v9850_v34 = vadd.f32 %v4257_v33, %v9804_v35 }
 0x844   : > { %v4729_v28 = vmax.f32 %v4601_v32, 0.0  ;;  %v4731_v25 = vmax.f32 %v4603_v37, 0.0  ;;  %v9853_v54 = vadd.f32 %v4450_v38, %v9806_v50  ;;  %v4730_v5 = vmax.f32 %v4602_v55, 0.0 }
 0x845   : > { %v4604_v53 = vadd.f32 3.0, %v9836_v59  ;;  %v4605_v18 = vadd.f32 3.0, %v9844_v3  ;;  %v4607_v51 = vadd.f32 3.0, %v9847_v2  ;;  %v4982_v11 = vmul.f32 %v4854_v1, %v4248_v14 }
 0x846   : > { %v4261_v43 = vpop.f32.mrb[104].mxu0  ;;  %v4454_v7 = vpop.f32.mrb[104].mxu1  ;;  %v4984_v19 = vmul.f32 %v4856_v23, %v4441_v22  ;;  %v4606_v49 = vadd.f32 3.0, %v9850_v34  ;;  %v4608_v41 = vadd.f32 3.0, %v9853_v54  ;;  %v4857_v29 = vmin.f32 %v4729_v28, 6.0 }
 0x847   : > { %v4263_v30 = vpop.f32.mrb[105].mxu0  ;;  %v4456_v8 = vpop.f32.mrb[105].mxu1  ;;  %v4859_v24 = vmin.f32 %v4731_v25, 6.0  ;;  %v4978_v17 = vmul.f32 %v4850_v63, %v9811_v56  ;;  %v4980_v0 = vmul.f32 %v4852_v10, %v9816_v27  ;;  %v4858_v42 = vmin.f32 %v4730_v5, 6.0 }
 0x848   : > { %v4265_v61 = vpop.f32.mrb[106].mxu0  ;;  %v4458_v40 = vpop.f32.mrb[106].mxu1  ;;  %v4732_v6 = vmax.f32 %v4604_v53, 0.0  ;;  %v4733_v4 = vmax.f32 %v4605_v18, 0.0  ;;  %v4735_v44 = vmax.f32 %v4607_v51, 0.0  ;;  %v4262_v14 = vadd.f32 %v4261_v43, %v9798_v39 }
 0x849   : > { %v4267_v48 = vpop.f32.mrb[107].mxu0  ;;  %v4460_v45 = vpop.f32.mrb[107].mxu1  ;;  %v4455_v22 = vadd.f32 %v4454_v7, %v9801_v12  ;;  %v4734_v57 = vmax.f32 %v4606_v49, 0.0  ;;  %v4736_v13 = vmax.f32 %v4608_v41, 0.0  ;;  %v5106_v16 = vpack.c.bf16 %v4982_v11, %v4978_v17 }
 0x84a   : > { %v5108_v20 = vpack.c.bf16 %v4984_v19, %v4980_v0  ;;  %v9864_v46 = vmul.f32 %v4857_v29, %v4252_v9  ;;  %v9866_v58 = vmul.f32 %v4859_v24, %v4445_v52  ;;  %v4609_v15 = vadd.f32 3.0, %v4262_v14 }
 0x84b   : > { %v4611_v56 = vadd.f32 3.0, %v4455_v22  ;;  %v4860_v36 = vmin.f32 %v4732_v6, 6.0  ;;  %5464 = vmatprep.mubr.bf16.mxu0 %v5106_v16  ;;  %v9869_v27 = vadd.f32 %v4263_v30, %v9804_v35  ;;  %v9872_v21 = vadd.f32 %v4456_v8, %v9806_v50 }
 0x84c   : > { %5625 = vmatprep.mubr.bf16.mxu1 %v5108_v20  ;;  %v9875_v47 = vadd.f32 %v4265_v61, %v9798_v39  ;;  %v4737_v9 = vmax.f32 %v4609_v15, 0.0  ;;  %5465 = vmatmul.mubr.bf16.vlgmr.msra.gmra.mrb[160].mxu0 %v5105_v62  ;;  %v9878_v52 = vadd.f32 %v4458_v40, %v9801_v12  ;;  %v9881_v1 = vadd.f32 %v4267_v48, %v9804_v35 }
 0x84d   : > { %v4739_v26 = vmax.f32 %v4611_v56, 0.0  ;;  %5626 = vmatmul.mubr.bf16.vlgmr.msra.gmra.mrb[160].mxu1 %v5107_v31  ;;  %v4861_v23 = vmin.f32 %v4733_v4, 6.0  ;;  %v4862_v55 = vmin.f32 %v4734_v57, 6.0  ;;  %v4864_v28 = vmin.f32 %v4736_v13, 6.0 }
 0x84e   : > { %v4271_v33 = vpop.f32.mrb[108].mxu0  ;;  %v4464_v38 = vpop.f32.mrb[108].mxu1  ;;  %v9884_v25 = vadd.f32 %v4460_v45, %v9806_v50  ;;  %v4863_v5 = vmin.f32 %v4735_v44, 6.0  ;;  %v4610_v62 = vadd.f32 3.0, %v9869_v27  ;;  %v4612_v31 = vadd.f32 3.0, %v9872_v21 }
 0x84f   : > { %v4273_v32 = vpop.f32.mrb[109].mxu0  ;;  %v4466_v37 = vpop.f32.mrb[109].mxu1  ;;  %v4614_v53 = vadd.f32 3.0, %v9881_v1  ;;  %v4865_v18 = vmin.f32 %v4737_v9, 6.0  ;;  %v4867_v51 = vmin.f32 %v4739_v26, 6.0  ;;  %v4613_v30 = vadd.f32 3.0, %v9875_v47 }
 0x850   : > { %v4275_v63 = vpop.f32.mrb[110].mxu0  ;;  %v4468_v10 = vpop.f32.mrb[110].mxu1  ;;  %v4616_v8 = vadd.f32 3.0, %v9884_v25  ;;  %v4986_v11 = vmul.f32 %v4858_v42, %v9833_v60  ;;  %v4988_v19 = vmul.f32 %v4860_v36, %v9836_v59  ;;  %v4615_v49 = vadd.f32 3.0, %v9878_v52 }
 0x851   : > { %v4277_v43 = vpop.f32.mrb[111].mxu0  ;;  %v4470_v7 = vpop.f32.mrb[111].mxu1  ;;  %v4742_v41 = vmax.f32 %v4614_v53, 0.0  ;;  %v4989_v61 = vmul.f32 %v4861_v23, %v9844_v3  ;;  %v4990_v40 = vmul.f32 %v4862_v55, %v9850_v34  ;;  %v4992_v29 = vmul.f32 %v4864_v28, %v9853_v54 }
 0x852   : > { %v4744_v24 = vmax.f32 %v4616_v8, 0.0  ;;  %v4991_v48 = vmul.f32 %v4863_v5, %v9847_v2  ;;  %v4738_v45 = vmax.f32 %v4610_v62, 0.0  ;;  %v9899_v17 = vadd.f32 %v4271_v33, %v9798_v39 }
 0x853   : > { %v9902_v60 = vadd.f32 %v4464_v38, %v9801_v12  ;;  %v9904_v59 = vmul.f32 %v4865_v18, %v4262_v14  ;;  %v9906_v0 = vmul.f32 %v4867_v51, %v4455_v22  ;;  %v4740_v42 = vmax.f32 %v4612_v31, 0.0 }
 0x854   : > { %v4741_v3 = vmax.f32 %v4613_v30, 0.0  ;;  %v4743_v4 = vmax.f32 %v4615_v49, 0.0  ;;  %v4870_v54 = vmin.f32 %v4742_v41, 6.0  ;;  %v4617_v44 = vadd.f32 3.0, %v9899_v17 }
 0x855   : > { %v4619_v2 = vadd.f32 3.0, %v9902_v60  ;;  %v4872_v16 = vmin.f32 %v4744_v24, 6.0  ;;  %v5110_v20 = vpack.c.bf16 %v4990_v40, %v4986_v11  ;;  %v5112_v14 = vpack.c.bf16 %v4992_v29, %v4988_v19 }
 0x856   : > { %v4281_v6 = vpop.f32.mrb[112].mxu0  ;;  %v4474_v34 = vpop.f32.mrb[112].mxu1  ;;  %v9915_v22 = vadd.f32 %v4273_v32, %v9804_v35  ;;  %v4745_v36 = vmax.f32 %v4617_v44, 0.0  ;;  %v9922_v38 = vadd.f32 %v4466_v37, %v9806_v50  ;;  %v5109_v9 = vpack.c.bf16 %v4989_v61, %v9864_v46 }
 0x857   : > { %v9910_v57 = vpop.f32.mrb[113].mxu0  ;;  %v9912_v13 = vpop.f32.mrb[113].mxu1  ;;  %v4747_v33 = vmax.f32 %v4619_v2, 0.0  ;;  %5472 = vmatprep.mubr.bf16.mxu0 %v5110_v20  ;;  %5633 = vmatprep.mubr.bf16.mxu1 %v5112_v14  ;;  %v5111_v55 = vpack.c.bf16 %v4991_v48, %v9866_v58  ;;  %v9932_v28 = vadd.f32 %v4275_v63, %v9798_v39  ;;  %v9935_v5 = vadd.f32 %v4468_v10, %v9801_v12 }
 0x858   : > { %v9917_v15 = vpop.f32.mrb[114].mxu0  ;;  %v9919_v56 = vpop.f32.mrb[114].mxu1  ;;  %v4618_v32 = vadd.f32 3.0, %v9915_v22  ;;  %v4866_v37 = vmin.f32 %v4738_v45, 6.0  ;;  %v4868_v62 = vmin.f32 %v4740_v42, 6.0  ;;  %v4620_v46 = vadd.f32 3.0, %v9922_v38  ;;  %5473 = vmatmul.mubr.bf16.gmra.mrb[164].mxu0 %v5109_v9 }
 0x859   : > { %v9925_v26 = vpop.f32.mrb[115].mxu0  ;;  %v9927_v23 = vpop.f32.mrb[115].mxu1  ;;  %v9939_v31 = vadd.f32 %v4277_v43, %v9804_v35  ;;  %v4869_v53 = vmin.f32 %v4741_v3, 6.0  ;;  %v4871_v18 = vmin.f32 %v4743_v4, 6.0  ;;  %v4998_v51 = vmul.f32 %v4870_v54, %v9881_v1  ;;  %5634 = vmatmul.mubr.bf16.gmra.mrb[164].mxu1 %v5111_v55 }
 0x85a   : > { %v9943_v58 = vadd.f32 %v4470_v7, %v9806_v50  ;;  %v5000_v63 = vmul.f32 %v4872_v16, %v9884_v25  ;;  %v4873_v10 = vmin.f32 %v4745_v36, 6.0  ;;  %v4875_v30 = vmin.f32 %v4747_v33, 6.0 }
 0x85b   : > { %v4622_v8 = vadd.f32 3.0, %v9939_v31  ;;  %v4746_v11 = vmax.f32 %v4618_v32, 0.0  ;;  %v4621_v19 = vadd.f32 3.0, %v9932_v28  ;;  %v4623_v43 = vadd.f32 3.0, %v9935_v5 }
 0x85c   : > { %v4624_v49 = vadd.f32 3.0, %v9943_v58  ;;  %v4748_v1 = vmax.f32 %v4620_v46, 0.0  ;;  %v9951_v7 = vadd.f32 %v4281_v6, %v9798_v39  ;;  %v9954_v25 = vadd.f32 %v4474_v34, %v9801_v12 }
 0x85d   : > { %v4750_v40 = vmax.f32 %v4622_v8, 0.0  ;;  %v4994_v48 = vmul.f32 %v4866_v37, %v9869_v27  ;;  %v4996_v45 = vmul.f32 %v4868_v62, %v9872_v21  ;;  %v4997_v42 = vmul.f32 %v4869_v53, %v9875_v47 }
 0x85e   : > { %v4291_v41 = vpop.f32.mrb[116].mxu0  ;;  %v4484_v61 = vpop.f32.mrb[116].mxu1  ;;  %v4999_v3 = vmul.f32 %v4871_v18, %v9878_v52  ;;  %v9969_v6 = vmul.f32 %v4873_v10, %v9899_v17  ;;  %v4752_v34 = vmax.f32 %v4624_v49, 0.0  ;;  %v4625_v44 = vadd.f32 3.0, %v9951_v7 }
 0x85f   : > { %v9956_v29 = vpop.f32.mrb[117].mxu0  ;;  %v9958_v24 = vpop.f32.mrb[117].mxu1  ;;  %v4627_v2 = vadd.f32 3.0, %v9954_v25  ;;  %v9978_v21 = vmul.f32 %v4875_v30, %v9902_v60  ;;  %v4874_v47 = vmin.f32 %v4746_v11, 6.0  ;;  %v4749_v52 = vmax.f32 %v4621_v19, 0.0 }
 0x860   : > { %v9964_v4 = vpop.f32.mrb[118].mxu0  ;;  %v9966_v54 = vpop.f32.mrb[118].mxu1  ;;  %v5114_v20 = vpack.c.bf16 %v4998_v51, %v4994_v48  ;;  %v4876_v14 = vmin.f32 %v4748_v1, 6.0  ;;  %v4751_v36 = vmax.f32 %v4623_v43, 0.0  ;;  %v4878_v33 = vmin.f32 %v4750_v40, 6.0 }
 0x861   : > { %v9973_v16 = vpop.f32.mrb[119].mxu0  ;;  %v9975_v27 = vpop.f32.mrb[119].mxu1  ;;  %v5116_v17 = vpack.c.bf16 %v5000_v63, %v4996_v45  ;;  %v4753_v9 = vmax.f32 %v4625_v44, 0.0  ;;  %v9982_v32 = vadd.f32 %v9910_v57, %v9804_v35  ;;  %v9986_v55 = vadd.f32 %v9912_v13, %v9806_v50 }
 0x862   : > { %5480 = vmatprep.mubr.bf16.mxu0 %v5114_v20  ;;  %v5113_v60 = vpack.c.bf16 %v4997_v42, %v9904_v59  ;;  %v4880_v37 = vmin.f32 %v4752_v34, 6.0  ;;  %v4755_v62 = vmax.f32 %v4627_v2, 0.0  ;;  %v5115_v46 = vpack.c.bf16 %v4999_v3, %v9906_v0 }
 0x863   : > { %5641 = vmatprep.mubr.bf16.mxu1 %v5116_v17  ;;  %v9992_v53 = vadd.f32 %v9917_v15, %v9798_v39  ;;  %v4626_v18 = vadd.f32 3.0, %v9982_v32  ;;  %v4628_v57 = vadd.f32 3.0, %v9986_v55  ;;  %v9998_v13 = vadd.f32 %v9919_v56, %v9801_v12 }
 0x864   : > { %5481 = vmatmul.mubr.bf16.gmra.mrb[168].mxu0 %v5113_v60  ;;  %v4288_v59 = vadd.f32 %v9925_v26, %v9804_v35  ;;  %v4877_v0 = vmin.f32 %v4749_v52, 6.0  ;;  %v4879_v10 = vmin.f32 %v4751_v36, 6.0  ;;  %5642 = vmatmul.mubr.bf16.gmra.mrb[168].mxu1 %v5115_v46  ;;  %v10009_v30 = vadd.f32 %v9927_v23, %v9806_v50 }
 0x865   : > { %v4629_v15 = vadd.f32 3.0, %v9992_v53  ;;  %v5006_v11 = vmul.f32 %v4878_v33, %v9939_v31  ;;  %v4881_v26 = vmin.f32 %v4753_v9, 6.0  ;;  %v4631_v19 = vadd.f32 3.0, %v9998_v13 }
 0x866   : > { %v10002_v51 = vpop.f32.mrb[120].mxu0  ;;  %v10004_v63 = vpop.f32.mrb[120].mxu1  ;;  %v4630_v43 = vadd.f32 3.0, %v4288_v59  ;;  %v4883_v40 = vmin.f32 %v4755_v62, 6.0  ;;  %v4632_v48 = vadd.f32 3.0, %v10009_v30  ;;  %v10023_v23 = vadd.f32 %v4291_v41, %v9798_v39 }
 0x867   : > { %v10011_v8 = vpop.f32.mrb[121].mxu0  ;;  %v10013_v56 = vpop.f32.mrb[121].mxu1  ;;  %v10026_v45 = vadd.f32 %v4484_v61, %v9801_v12  ;;  %v5008_v3 = vmul.f32 %v4880_v37, %v9943_v58  ;;  %v4754_v34 = vmax.f32 %v4626_v18, 0.0  ;;  %v4756_v44 = vmax.f32 %v4628_v57, 0.0 }
 0x868   : > { %v10017_v49 = vpop.f32.mrb[122].mxu0  ;;  %v10019_v1 = vpop.f32.mrb[122].mxu1  ;;  %v4758_v2 = vmax.f32 %v4630_v43, 0.0  ;;  %v5002_v52 = vmul.f32 %v4874_v47, %v9915_v22  ;;  %v4757_v20 = vmax.f32 %v4629_v15, 0.0  ;;  %v4759_v36 = vmax.f32 %v4631_v19, 0.0 }
 0x869   : > { %v10028_v42 = vpop.f32.mrb[123].mxu0  ;;  %v10030_v31 = vpop.f32.mrb[123].mxu1  ;;  %v4633_v33 = vadd.f32 3.0, %v10023_v23  ;;  %v5004_v41 = vmul.f32 %v4876_v14, %v9922_v38  ;;  %v5005_v61 = vmul.f32 %v4877_v0, %v9932_v28  ;;  %v5007_v17 = vmul.f32 %v4879_v10, %v9935_v5 }
 0x86a   : > { %v4635_v9 = vadd.f32 3.0, %v10026_v45  ;;  %v10040_v60 = vmul.f32 %v4881_v26, %v9951_v7  ;;  %v10043_v58 = vmul.f32 %v4883_v40, %v9954_v25  ;;  %v4886_v37 = vmin.f32 %v4758_v2, 6.0 }
 0x86b   : > { %v4760_v22 = vmax.f32 %v4632_v48, 0.0  ;;  %v4882_v47 = vmin.f32 %v4754_v34, 6.0  ;;  %v4884_v62 = vmin.f32 %v4756_v44, 6.0  ;;  %v5118_v46 = vpack.c.bf16 %v5006_v11, %v5002_v52 }
 0x86c   : > { %v5120_v18 = vpack.c.bf16 %v5008_v3, %v5004_v41  ;;  %v4885_v28 = vmin.f32 %v4757_v20, 6.0  ;;  %v4887_v5 = vmin.f32 %v4759_v36, 6.0  ;;  %v4761_v14 = vmax.f32 %v4633_v33, 0.0 }
 0x86d   : > { %v10051_v7 = vadd.f32 %v9956_v29, %v9804_v35  ;;  %v4763_v10 = vmax.f32 %v4635_v9, 0.0  ;;  %5488 = vmatprep.mubr.bf16.mxu0 %v5118_v46  ;;  %v10059_v15 = vadd.f32 %v9958_v24, %v9806_v50  ;;  %v5117_v11 = vpack.c.bf16 %v5005_v61, %v9969_v6 }
 0x86e   : > { %v10045_v57 = vpop.f32.mrb[124].mxu0  ;;  %v10047_v38 = vpop.f32.mrb[124].mxu1  ;;  %5649 = vmatprep.mubr.bf16.mxu1 %v5120_v18  ;;  %v5119_v26 = vpack.c.bf16 %v5007_v17, %v9978_v21  ;;  %v5014_v29 = vmul.f32 %v4886_v37, %v4288_v59  ;;  %v4888_v40 = vmin.f32 %v4760_v22, 6.0  ;;  %v10070_v3 = vadd.f32 %v9964_v4, %v9798_v39 }
 0x86f   : > { %v10053_v0 = vpop.f32.mrb[125].mxu0  ;;  %v10055_v25 = vpop.f32.mrb[125].mxu1  ;;  %v4634_v48 = vadd.f32 3.0, %v10051_v7  ;;  %v4636_v6 = vadd.f32 3.0, %v10059_v15  ;;  %5489 = vmatmul.mubr.bf16.gmra.mrb[172].mxu0 %v5117_v11  ;;  %v10079_v21 = vadd.f32 %v9966_v54, %v9801_v12  ;;  %v10083_v59 = vadd.f32 %v9973_v16, %v9804_v35 }
 0x870   : > { %v10063_v19 = vpop.f32.mrb[126].mxu0  ;;  %v10065_v43 = vpop.f32.mrb[126].mxu1  ;;  %5650 = vmatmul.mubr.bf16.gmra.mrb[172].mxu1 %v5119_v26  ;;  %v10087_v4 = vadd.f32 %v9975_v27, %v9806_v50  ;;  %v4889_v44 = vmin.f32 %v4761_v14, 6.0  ;;  %v4637_v2 = vadd.f32 3.0, %v10070_v3  ;;  %v10092_v52 = vadd.f32 %v10002_v51, %v9798_v39 }
 0x871   : > { %v10072_v34 = vpop.f32.mrb[127].mxu0  ;;  %v10074_v24 = vpop.f32.mrb[127].mxu1  ;;  %v10096_v20 = vadd.f32 %v10004_v63, %v9801_v12  ;;  %v4891_v54 = vmin.f32 %v4763_v10, 6.0  ;;  %v4639_v36 = vadd.f32 3.0, %v10079_v21  ;;  %v4638_v16 = vadd.f32 3.0, %v10083_v59 }
 0x872   : > { %v4640_v33 = vadd.f32 3.0, %v10087_v4  ;;  %v4762_v27 = vmax.f32 %v4634_v48, 0.0  ;;  %v4764_v41 = vmax.f32 %v4636_v6, 0.0  ;;  %v4765_v61 = vmax.f32 %v4637_v2, 0.0 }
 0x873   : > { %v4641_v17 = vadd.f32 3.0, %v10092_v52  ;;  %v5016_v9 = vmul.f32 %v4888_v40, %v10009_v30  ;;  %v4767_v51 = vmax.f32 %v4639_v36, 0.0  ;;  %v4766_v37 = vmax.f32 %v4638_v16, 0.0 }
 0x874   : > { %v4643_v22 = vadd.f32 3.0, %v10096_v20  ;;  %v5010_v18 = vmul.f32 %v4882_v47, %v9982_v32  ;;  %v5012_v14 = vmul.f32 %v4884_v62, %v9986_v55  ;;  %v4768_v10 = vmax.f32 %v4640_v33, 0.0 }
 0x875   : > { %v4769_v11 = vmax.f32 %v4641_v17, 0.0  ;;  %v5013_v30 = vmul.f32 %v4885_v28, %v9992_v53  ;;  %v5015_v40 = vmul.f32 %v4887_v5, %v9998_v13  ;;  %v10117_v6 = vmul.f32 %v4889_v44, %v10023_v23 }
 0x876   : > { %v10104_v63 = vpop.f32.mrb[128].mxu0  ;;  %v10106_v46 = vpop.f32.mrb[128].mxu1  ;;  %v10120_v2 = vmul.f32 %v4891_v54, %v10026_v45  ;;  %v4890_v55 = vmin.f32 %v4762_v27, 6.0  ;;  %v4892_v47 = vmin.f32 %v4764_v41, 6.0  ;;  %v4893_v62 = vmin.f32 %v4765_v61, 6.0 }
 0x877   : > { %v10110_v26 = vpop.f32.mrb[129].mxu0  ;;  %v10112_v48 = vpop.f32.mrb[129].mxu1  ;;  %v5122_v16 = vpack.c.bf16 %v5014_v29, %v5010_v18  ;;  %v4895_v53 = vmin.f32 %v4767_v51, 6.0  ;;  %v4894_v13 = vmin.f32 %v4766_v37, 6.0  ;;  %v4771_v28 = vmax.f32 %v4643_v22, 0.0 }
 0x878   : > { %v10122_v36 = vpop.f32.mrb[130].mxu0  ;;  %v10124_v32 = vpop.f32.mrb[130].mxu1  ;;  %v5124_v23 = vpack.c.bf16 %v5016_v9, %v5012_v14  ;;  %v4896_v5 = vmin.f32 %v4768_v10, 6.0  ;;  %v4897_v44 = vmin.f32 %v4769_v11, 6.0  ;;  %v10132_v45 = vadd.f32 %v10011_v8, %v9804_v35 }
 0x879   : > { %v10126_v33 = vpop.f32.mrb[131].mxu0  ;;  %v10128_v17 = vpop.f32.mrb[131].mxu1  ;;  %5496 = vmatprep.mubr.bf16.mxu0 %v5122_v16  ;;  %v10136_v54 = vadd.f32 %v10013_v56, %v9806_v50  ;;  %v5121_v29 = vpack.c.bf16 %v5013_v30, %v10040_v60  ;;  %v5123_v27 = vpack.c.bf16 %v5015_v40, %v10043_v58  ;;  %v10142_v41 = vadd.f32 %v10017_v49, %v9798_v39 }
 0x87a   : > { %5657 = vmatprep.mubr.bf16.mxu1 %v5124_v23  ;;  %v10146_v61 = vadd.f32 %v10019_v1, %v9801_v12  ;;  %v4642_v8 = vadd.f32 3.0, %v10132_v45  ;;  %v10152_v56 = vadd.f32 %v10028_v42, %v9804_v35  ;;  %v10156_v60 = vadd.f32 %v10030_v31, %v9806_v50 }
 0x87b   : > { %v4644_v9 = vadd.f32 3.0, %v10136_v54  ;;  %5497 = vmatmul.mubr.bf16.gmra.mrb[176].mxu0 %v5121_v29  ;;  %5658 = vmatmul.mubr.bf16.gmra.mrb[176].mxu1 %v5123_v27  ;;  %v4645_v49 = vadd.f32 3.0, %v10142_v41  ;;  %v10162_v1 = vadd.f32 %v10045_v57, %v9798_v39  ;;  %v10166_v51 = vadd.f32 %v10047_v38, %v9801_v12 }
 0x87c   : > { %v4647_v58 = vadd.f32 3.0, %v10146_v61  ;;  %v4899_v31 = vmin.f32 %v4771_v28, 6.0  ;;  %v4770_v22 = vmax.f32 %v4642_v8, 0.0  ;;  %v4646_v18 = vadd.f32 3.0, %v10152_v56 }
 0x87d   : > { %v4648_v14 = vadd.f32 3.0, %v10156_v60  ;;  %v4772_v57 = vmax.f32 %v4644_v9, 0.0  ;;  %v4773_v30 = vmax.f32 %v4645_v49, 0.0  ;;  %v4649_v40 = vadd.f32 3.0, %v10162_v1 }
 0x87e   : > { %v10168_v42 = vpop.f32.mrb[132].mxu0  ;;  %v10170_v37 = vpop.f32.mrb[132].mxu1  ;;  %v4651_v38 = vadd.f32 3.0, %v10166_v51  ;;  %v5022_v28 = vmul.f32 %v4894_v13, %v10083_v59  ;;  %v5024_v29 = vmul.f32 %v4896_v5, %v10087_v4  ;;  %v4775_v27 = vmax.f32 %v4647_v58, 0.0 }
 0x87f   : > { %11100 = vst [vmem:[#allocation44_spill] sm:$0xff] %v10168_v42  ;;  %11101 = vst [vmem:[#allocation53_spill] sm:$0xff] %v10170_v37  ;;  %v10174_v10 = vpop.f32.mrb[133].mxu0  ;;  %v10176_v11 = vpop.f32.mrb[133].mxu1  ;;  %v4774_v8 = vmax.f32 %v4646_v18, 0.0  ;;  %v5018_v9 = vmul.f32 %v4890_v55, %v10051_v7  ;;  %v5020_v49 = vmul.f32 %v4892_v47, %v10059_v15  ;;  %v4777_v42 = vmax.f32 %v4649_v40, 0.0 }
 0x880   : > { %11102 = vst [vmem:[#allocation45_spill] sm:$0xff] %v10174_v10  ;;  %11103 = vst [vmem:[#allocation46_spill] sm:$0xff] %v10176_v11  ;;  %v10180_v16 = vpop.f32.mrb[134].mxu0  ;;  %v10182_v23 = vpop.f32.mrb[134].mxu1  ;;  %v4776_v11 = vmax.f32 %v4648_v14, 0.0  ;;  %v10195_v59 = vmul.f32 %v4897_v44, %v10092_v52  ;;  %v4779_v4 = vmax.f32 %v4651_v38, 0.0  ;;  %v10198_v13 = vmul.f32 %v4899_v31, %v10096_v20 }
 0x881   : > { %11104 = vst [vmem:[#allocation54_spill] sm:$0xff] %v10180_v16  ;;  %11105 = vst [vmem:[#allocation62_spill] sm:$0xff] %v10182_v23  ;;  %v10186_v37 = vpop.f32.mrb[135].mxu0  ;;  %v10188_v10 = vpop.f32.mrb[135].mxu1  ;;  %v5021_v16 = vmul.f32 %v4893_v62, %v10070_v3  ;;  %v5023_v23 = vmul.f32 %v4895_v53, %v10079_v21  ;;  %v4898_v5 = vmin.f32 %v4770_v22, 6.0  ;;  %v4900_v58 = vmin.f32 %v4772_v57, 6.0 }
 0x882   : > { %11106 = vst [vmem:[#allocation47_spill] sm:$0xff] %v10188_v10  ;;  %v4901_v18 = vmin.f32 %v4773_v30, 6.0  ;;  %v4903_v10 = vmin.f32 %v4775_v27, 6.0  ;;  %v4902_v7 = vmin.f32 %v4774_v8, 6.0  ;;  %v5126_v55 = vpack.c.bf16 %v5022_v28, %v5018_v9 }
 0x883   : > { %v5128_v15 = vpack.c.bf16 %v5024_v29, %v5020_v49  ;;  %v4904_v47 = vmin.f32 %v4776_v11, 6.0  ;;  %v4905_v14 = vmin.f32 %v4777_v42, 6.0  ;;  %v10202_v3 = vadd.f32 %v10053_v0, %v9804_v35 }
 0x884   : > { %v10206_v21 = vadd.f32 %v10055_v25, %v9806_v50  ;;  %v4907_v62 = vmin.f32 %v4779_v4, 6.0  ;;  %5504 = vmatprep.mubr.bf16.mxu0 %v5126_v55  ;;  %v5125_v53 = vpack.c.bf16 %v5021_v16, %v10117_v6  ;;  %v5127_v44 = vpack.c.bf16 %v5023_v23, %v10120_v2 }
 0x885   : > { %5665 = vmatprep.mubr.bf16.mxu1 %v5128_v15  ;;  %v10216_v42 = vadd.f32 %v10063_v19, %v9798_v39  ;;  %v4650_v25 = vadd.f32 3.0, %v10202_v3  ;;  %v10226_v11 = vadd.f32 %v10065_v43, %v9801_v12  ;;  %v4318_v6 = vadd.f32 %v10072_v34, %v9804_v35 }
 0x886   : > { %v10208_v52 = vpop.f32.mrb[136].mxu0  ;;  %v10210_v20 = vpop.f32.mrb[136].mxu1  ;;  %v4652_v22 = vadd.f32 3.0, %v10206_v21  ;;  %5505 = vmatmul.mubr.bf16.gmra.mrb[180].mxu0 %v5125_v53  ;;  %5666 = vmatmul.mubr.bf16.gmra.mrb[180].mxu1 %v5127_v44  ;;  %v10237_v30 = vadd.f32 %v10074_v24, %v9806_v50  ;;  %v10241_v40 = vadd.f32 %v10104_v63, %v9798_v39  ;;  %v10245_v43 = vadd.f32 %v10106_v46, %v9801_v12 }
 0x887   : > { %v10218_v0 = vpop.f32.mrb[137].mxu0  ;;  %v10220_v31 = vpop.f32.mrb[137].mxu1  ;;  %v4653_v19 = vadd.f32 3.0, %v10216_v42  ;;  %v5030_v16 = vmul.f32 %v4902_v7, %v10152_v56  ;;  %v4778_v23 = vmax.f32 %v4650_v25, 0.0  ;;  %v4655_v28 = vadd.f32 3.0, %v10226_v11 }
 0x888   : > { %v10230_v2 = vpop.f32.mrb[138].mxu0  ;;  %v10232_v57 = vpop.f32.mrb[138].mxu1  ;;  %v4654_v29 = vadd.f32 3.0, %v4318_v6  ;;  %v4780_v24 = vmax.f32 %v4652_v22, 0.0  ;;  %v4656_v27 = vadd.f32 3.0, %v10237_v30  ;;  %v4657_v63 = vadd.f32 3.0, %v10241_v40 }
 0x889   : > { %v10247_v34 = vpop.f32.mrb[139].mxu0  ;;  %v10249_v38 = vpop.f32.mrb[139].mxu1  ;;  %v4659_v8 = vadd.f32 3.0, %v10245_v43  ;;  %v5032_v46 = vmul.f32 %v4904_v47, %v10156_v60  ;;  %v4781_v9 = vmax.f32 %v4653_v19, 0.0  ;;  %v4783_v49 = vmax.f32 %v4655_v28, 0.0 }
 0x88a   : > { %11107 = vst [vmem:[#allocation48_spill] sm:$0xff] %v10247_v34  ;;  %11108 = vst [vmem:[#allocation55_spill] sm:$0xff] %v10249_v38  ;;  %v4782_v4 = vmax.f32 %v4654_v29, 0.0  ;;  %v5026_v55 = vmul.f32 %v4898_v5, %v10132_v45  ;;  %v5028_v56 = vmul.f32 %v4900_v58, %v10136_v54  ;;  %v4784_v7 = vmax.f32 %v4656_v27, 0.0 }
 0x88b   : > { %v4785_v15 = vmax.f32 %v4657_v63, 0.0  ;;  %v5029_v53 = vmul.f32 %v4901_v18, %v10142_v41  ;;  %v5031_v44 = vmul.f32 %v4903_v10, %v10146_v61  ;;  %v4787_v22 = vmax.f32 %v4659_v8, 0.0 }
 0x88c   : > { %v4910_v25 = vmin.f32 %v4782_v4, 6.0  ;;  %v10266_v60 = vmul.f32 %v4905_v14, %v10162_v1  ;;  %v10269_v47 = vmul.f32 %v4907_v62, %v10166_v51  ;;  %v4906_v45 = vmin.f32 %v4778_v23, 6.0 }
 0x88d   : > { %v4908_v54 = vmin.f32 %v4780_v24, 6.0  ;;  %v4909_v41 = vmin.f32 %v4781_v9, 6.0  ;;  %v4911_v61 = vmin.f32 %v4783_v49, 6.0  ;;  %v5130_v10 = vpack.c.bf16 %v5030_v16, %v5026_v55  ;;  %v11112_v9 = vld [vmem:[#allocation53_spill] sm:$0xff] }
 0x88e   : > { %v10261_v38 = vpop.f32.mrb[140].mxu0  ;;  %v10263_v34 = vpop.f32.mrb[140].mxu1  ;;  %v5132_v18 = vpack.c.bf16 %v5032_v46, %v5028_v56  ;;  %v5038_v29 = vmul.f32 %v4910_v25, %v4318_v6  ;;  %v4912_v1 = vmin.f32 %v4784_v7, 6.0  ;;  %v4913_v14 = vmin.f32 %v4785_v15, 6.0 }
 0x88f   : > { %v10271_v5 = vpop.f32.mrb[141].mxu0  ;;  %v10273_v58 = vpop.f32.mrb[141].mxu1  ;;  %v4324_v51 = vadd.f32 %v10110_v26, %v9804_v35  ;;  %v4915_v24 = vmin.f32 %v4787_v22, 6.0  ;;  %5512 = vmatprep.mubr.bf16.mxu0 %v5130_v10  ;;  %v10287_v16 = vadd.f32 %v10112_v48, %v9806_v50  ;;  %v5129_v27 = vpack.c.bf16 %v5029_v53, %v10195_v59 }
 0x890   : > { %v10275_v19 = vpop.f32.mrb[142].mxu0  ;;  %v10277_v28 = vpop.f32.mrb[142].mxu1  ;;  %5673 = vmatprep.mubr.bf16.mxu1 %v5132_v18  ;;  %v5131_v6 = vpack.c.bf16 %v5031_v44, %v10198_v13  ;;  %v10293_v8 = vadd.f32 %v10122_v36, %v9798_v39  ;;  %v10297_v26 = vadd.f32 %v10124_v32, %v9801_v12  ;;  %v10301_v46 = vadd.f32 %v10126_v33, %v9804_v35  ;;  %v11111_v13 = vld [vmem:[#allocation44_spill] sm:$0xff] }
 0x891   : > { %v10281_v62 = vpop.f32.mrb[143].mxu0  ;;  %v10283_v23 = vpop.f32.mrb[143].mxu1  ;;  %v4658_v63 = vadd.f32 3.0, %v4324_v51  ;;  %v4660_v48 = vadd.f32 3.0, %v10287_v16  ;;  %5513 = vmatmul.mubr.bf16.gmra.mrb[184].mxu0 %v5129_v27  ;;  %v10306_v59 = vadd.f32 %v10128_v17, %v9806_v50  ;;  %v10310_v36 = vadd.f32 %v11111_v13, %v9798_v39 }
 0x892   : > { %11109 = vst [vmem:[#allocation63_spill] sm:$0xff] %v10281_v62  ;;  %11110 = vst [vmem:[#allocation49_spill] sm:$0xff] %v10283_v23  ;;  %5674 = vmatmul.mubr.bf16.gmra.mrb[184].mxu1 %v5131_v6  ;;  %v10314_v32 = vadd.f32 %v11112_v9, %v9801_v12  ;;  %v4661_v33 = vadd.f32 3.0, %v10293_v8  ;;  %v4663_v4 = vadd.f32 3.0, %v10297_v26  ;;  %v4662_v55 = vadd.f32 3.0, %v10301_v46 }
 0x893   : > { %v4786_v49 = vmax.f32 %v4658_v63, 0.0  ;;  %v4788_v56 = vmax.f32 %v4660_v48, 0.0  ;;  %v4664_v7 = vadd.f32 3.0, %v10306_v59  ;;  %v4665_v17 = vadd.f32 3.0, %v10310_v36 }
 0x894   : > { %v4667_v15 = vadd.f32 3.0, %v10314_v32  ;;  %v4789_v22 = vmax.f32 %v4661_v33, 0.0  ;;  %v4791_v10 = vmax.f32 %v4663_v4, 0.0  ;;  %v4790_v18 = vmax.f32 %v4662_v55, 0.0 }
 0x895   : > { %v4914_v25 = vmin.f32 %v4786_v49, 6.0  ;;  %v5040_v63 = vmul.f32 %v4912_v1, %v10237_v30  ;;  %v4792_v48 = vmax.f32 %v4664_v7, 0.0  ;;  %v4793_v13 = vmax.f32 %v4665_v17, 0.0 }
 0x896   : > { %v10322_v53 = vpop.f32.mrb[144].mxu0  ;;  %v10324_v44 = vpop.f32.mrb[144].mxu1  ;;  %v4795_v9 = vmax.f32 %v4667_v15, 0.0  ;;  %v5036_v49 = vmul.f32 %v4908_v54, %v10206_v21  ;;  %v5037_v33 = vmul.f32 %v4909_v41, %v10216_v42  ;;  %v5039_v4 = vmul.f32 %v4911_v61, %v10226_v11  ;;  %v11118_v15 = vld [vmem:[#allocation45_spill] sm:$0xff] }
 0x897   : > { %11113 = vst [vmem:[#allocation50_spill] sm:$0xff] %v10322_v53  ;;  %v10326_v27 = vpop.f32.mrb[145].mxu0  ;;  %v10328_v6 = vpop.f32.mrb[145].mxu1  ;;  %v5034_v53 = vmul.f32 %v4906_v45, %v10202_v3  ;;  %v10344_v30 = vmul.f32 %v4913_v14, %v10241_v40  ;;  %v10347_v1 = vmul.f32 %v4915_v24, %v10245_v43  ;;  %v10349_v7 = vmul.f32 %v4914_v25, %v4324_v51  ;;  %v11119_v40 = vld [vmem:[#allocation46_spill] sm:$0xff] }
 0x898   : > { %11114 = vst [vmem:[#allocation56_spill] sm:$0xff] %v10328_v6  ;;  %v10331_v23 = vpop.f32.mrb[146].mxu0  ;;  %v10333_v62 = vpop.f32.mrb[146].mxu1  ;;  %v4916_v17 = vmin.f32 %v4788_v56, 6.0  ;;  %v4917_v3 = vmin.f32 %v4789_v22, 6.0  ;;  %v4919_v45 = vmin.f32 %v4791_v10, 6.0  ;;  %v5136_v61 = vpack.c.bf16 %v5040_v63, %v5036_v49 }
 0x899   : > { %11115 = vst [vmem:[#allocation64_spill] sm:$0xff] %v10333_v62  ;;  %v10339_v55 = vpop.f32.mrb[147].mxu0  ;;  %v10341_v6 = vpop.f32.mrb[147].mxu1  ;;  %v4918_v21 = vmin.f32 %v4790_v18, 6.0  ;;  %v5134_v54 = vpack.c.bf16 %v5038_v29, %v5034_v53  ;;  %v4920_v42 = vmin.f32 %v4792_v48, 6.0  ;;  %v4921_v41 = vmin.f32 %v4793_v13, 6.0 }
 0x89a   : > { %11116 = vst [vmem:[#allocation51_spill] sm:$0xff] %v10339_v55  ;;  %11117 = vst [vmem:[#allocation52_spill] sm:$0xff] %v10341_v6  ;;  %v4923_v11 = vmin.f32 %v4795_v9, 6.0  ;;  %v4334_v6 = vadd.f32 %v11118_v15, %v9804_v35  ;;  %v10355_v14 = vadd.f32 %v11119_v40, %v9806_v50  ;;  %v5133_v43 = vpack.c.bf16 %v5037_v33, %v10266_v60  ;;  %v11120_v24 = vld [vmem:[#allocation54_spill] sm:$0xff]  ;;  %v11122_v22 = vld [vmem:[#allocation47_spill] sm:$0xff] }
 0x89b   : > { %5520 = vmatprep.mubr.bf16.mxu0 %v5134_v54  ;;  %v5135_v51 = vpack.c.bf16 %v5039_v4, %v10269_v47  ;;  %5681 = vmatprep.mubr.bf16.mxu1 %v5136_v61  ;;  %v10361_v29 = vadd.f32 %v11120_v24, %v9798_v39  ;;  %v11121_v56 = vld [vmem:[#allocation62_spill] sm:$0xff]  ;;  %v4338_v25 = vadd.f32 %v10186_v37, %v9804_v35 }
 0x89c   : > { %v10365_v53 = vadd.f32 %v11121_v56, %v9801_v12  ;;  %v10371_v10 = vadd.f32 %v11122_v22, %v9806_v50  ;;  %v4666_v47 = vadd.f32 3.0, %v4334_v6  ;;  %v4668_v63 = vadd.f32 3.0, %v10355_v14  ;;  %5521 = vmatmul.mubr.bf16.gmra.mrb[188].mxu0 %v5133_v43 }
 0x89d   : > { %5682 = vmatmul.mubr.bf16.gmra.mrb[188].mxu1 %v5135_v51  ;;  %v10380_v48 = vadd.f32 %v10208_v52, %v9798_v39  ;;  %v10384_v37 = vadd.f32 %v10210_v20, %v9801_v12  ;;  %v4669_v49 = vadd.f32 3.0, %v10361_v29  ;;  %v4670_v4 = vadd.f32 3.0, %v4338_v25 }
 0x89e   : > { %v10373_v18 = vpop.f32.mrb[148].mxu0  ;;  %v10375_v60 = vpop.f32.mrb[148].mxu1  ;;  %v4671_v33 = vadd.f32 3.0, %v10365_v53  ;;  %v4672_v54 = vadd.f32 3.0, %v10371_v10  ;;  %v4794_v52 = vmax.f32 %v4666_v47, 0.0  ;;  %v4796_v40 = vmax.f32 %v4668_v63, 0.0 }
 0x89f   : > { %11123 = vst [vmem:[#allocation57_spill] sm:$0xff] %v10373_v18  ;;  %11124 = vst [vmem:[#allocation65_spill] sm:$0xff] %v10375_v60  ;;  %v10386_v13 = vpop.f32.mrb[149].mxu0  ;;  %v10388_v9 = vpop.f32.mrb[149].mxu1  ;;  %v4673_v20 = vadd.f32 3.0, %v10380_v48  ;;  %v4675_v43 = vadd.f32 3.0, %v10384_v37  ;;  %v5046_v60 = vmul.f32 %v4918_v21, %v10301_v46  ;;  %v5044_v47 = vmul.f32 %v4916_v17, %v10287_v16 }
 0x8a0   : > { %11125 = vst [vmem:[#allocation58_spill] sm:$0xff] %v10386_v13  ;;  %11126 = vst [vmem:[#allocation66_spill] sm:$0xff] %v10388_v9  ;;  %v10393_v61 = vpop.f32.mrb[150].mxu0  ;;  %v10395_v15 = vpop.f32.mrb[150].mxu1  ;;  %v4797_v56 = vmax.f32 %v4669_v49, 0.0  ;;  %v4799_v22 = vmax.f32 %v4671_v33, 0.0  ;;  %v5045_v63 = vmul.f32 %v4917_v3, %v10293_v8  ;;  %v5047_v55 = vmul.f32 %v4919_v45, %v10297_v26 }
 0x8a1   : > { %11127 = vst [vmem:[#allocation59_spill] sm:$0xff] %v10393_v61  ;;  %11128 = vst [vmem:[#allocation67_spill] sm:$0xff] %v10395_v15  ;;  %v10399_v51 = vpop.f32.mrb[151].mxu0  ;;  %v10401_v24 = vpop.f32.mrb[151].mxu1  ;;  %v4798_v9 = vmax.f32 %v4670_v4, 0.0  ;;  %v4800_v13 = vmax.f32 %v4672_v54, 0.0  ;;  %v5048_v61 = vmul.f32 %v4920_v42, %v10306_v59  ;;  %v10412_v49 = vmul.f32 %v4923_v11, %v10314_v32 }
 0x8a2   : > { %11129 = vst [vmem:[#allocation60_spill] sm:$0xff] %v10399_v51  ;;  %v4922_v18 = vmin.f32 %v4794_v52, 6.0  ;;  %v4801_v15 = vmax.f32 %v4673_v20, 0.0  ;;  %v10409_v51 = vmul.f32 %v4921_v41, %v10310_v36  ;;  %v4924_v33 = vmin.f32 %v4796_v40, 6.0 }
 0x8a3   : > { %v4926_v62 = vmin.f32 %v4798_v9, 6.0  ;;  %v4803_v4 = vmax.f32 %v4675_v43, 0.0  ;;  %v4925_v59 = vmin.f32 %v4797_v56, 6.0  ;;  %v4927_v21 = vmin.f32 %v4799_v22, 6.0  ;;  %v11131_v9 = vld [vmem:[#allocation55_spill] sm:$0xff] }
 0x8a4   : > { %v10414_v46 = vmul.f32 %v4922_v18, %v4334_v6  ;;  %v4928_v42 = vmin.f32 %v4800_v13, 6.0  ;;  %v4929_v26 = vmin.f32 %v4801_v15, 6.0  ;;  %v5138_v36 = vpack.c.bf16 %v5046_v60, %v10349_v7 }
 0x8a5   : > { %v10420_v8 = vmul.f32 %v4926_v62, %v4338_v25  ;;  %v5140_v17 = vpack.c.bf16 %v5048_v61, %v5044_v47  ;;  %v4344_v6 = vadd.f32 %v10218_v0, %v9804_v35  ;;  %v10431_v45 = vadd.f32 %v10220_v31, %v9806_v50  ;;  %v11130_v31 = vld [vmem:[#allocation48_spill] sm:$0xff] }
 0x8a6   : > { %v10416_v54 = vpop.f32.mrb[152].mxu0  ;;  %v10418_v16 = vpop.f32.mrb[152].mxu1  ;;  %v5137_v41 = vpack.c.bf16 %v5045_v63, %v10344_v30  ;;  %v5139_v62 = vpack.c.bf16 %v5047_v55, %v10347_v1  ;;  %v4931_v7 = vmin.f32 %v4803_v4, 6.0  ;;  %5528 = vmatprep.mubr.bf16.mxu0 %v5138_v36  ;;  %v10441_v18 = vadd.f32 %v10230_v2, %v9798_v39 }
 0x8a7   : > { %v10423_v3 = vpop.f32.mrb[153].mxu0  ;;  %v10425_v32 = vpop.f32.mrb[153].mxu1  ;;  %5689 = vmatprep.mubr.bf16.mxu1 %v5140_v17  ;;  %v10445_v0 = vadd.f32 %v10232_v57, %v9801_v12  ;;  %v4348_v30 = vadd.f32 %v11130_v31, %v9804_v35  ;;  %v4674_v1 = vadd.f32 3.0, %v4344_v6  ;;  %v4676_v13 = vadd.f32 3.0, %v10431_v45 }
 0x8a8   : > { %v10435_v11 = vpop.f32.mrb[154].mxu0  ;;  %v10437_v25 = vpop.f32.mrb[154].mxu1  ;;  %5529 = vmatmul.mubr.bf16.gmra.mrb[192].mxu0 %v5137_v41  ;;  %5690 = vmatmul.mubr.bf16.gmra.mrb[192].mxu1 %v5139_v62  ;;  %v4541_v2 = vadd.f32 %v11131_v9, %v9806_v50  ;;  %v10458_v61 = vadd.f32 %v10261_v38, %v9798_v39  ;;  %v4677_v57 = vadd.f32 3.0, %v10441_v18  ;;  %v10464_v40 = vadd.f32 %v10263_v34, %v9801_v12 }
 0x8a9   : > { %v10449_v60 = vpop.f32.mrb[155].mxu0  ;;  %v10451_v55 = vpop.f32.mrb[155].mxu1  ;;  %v4679_v15 = vadd.f32 3.0, %v10445_v0  ;;  %v4678_v52 = vadd.f32 3.0, %v4348_v30  ;;  %v4802_v20 = vmax.f32 %v4674_v1, 0.0  ;;  %v4804_v43 = vmax.f32 %v4676_v13, 0.0 }
 0x8aa   : > { %v4680_v56 = vadd.f32 3.0, %v4541_v2  ;;  %v4681_v22 = vadd.f32 3.0, %v10458_v61  ;;  %v4805_v47 = vmax.f32 %v4677_v57, 0.0  ;;  %v4683_v38 = vadd.f32 3.0, %v10464_v40 }
 0x8ab   : > { %v4807_v63 = vmax.f32 %v4679_v15, 0.0  ;;  %v4806_v4 = vmax.f32 %v4678_v52, 0.0  ;;  %v5056_v36 = vmul.f32 %v4928_v42, %v10371_v10  ;;  %v4930_v17 = vmin.f32 %v4802_v20, 6.0 }
 0x8ac   : > { %v4808_v41 = vmax.f32 %v4680_v56, 0.0  ;;  %v4809_v62 = vmax.f32 %v4681_v22, 0.0  ;;  %v5052_v34 = vmul.f32 %v4924_v33, %v10355_v14  ;;  %v5053_v1 = vmul.f32 %v4925_v59, %v10361_v29 }
 0x8ad   : > { %v5055_v13 = vmul.f32 %v4927_v21, %v10365_v53  ;;  %v4934_v57 = vmin.f32 %v4806_v4, 6.0  ;;  %v10481_v10 = vmul.f32 %v4929_v26, %v10380_v48  ;;  %v10484_v42 = vmul.f32 %v4931_v7, %v10384_v37 }
 0x8ae   : > { %v10469_v31 = vpop.f32.mrb[156].mxu0  ;;  %v10471_v9 = vpop.f32.mrb[156].mxu1  ;;  %v4936_v20 = vmin.f32 %v4808_v41, 6.0  ;;  %v4811_v56 = vmax.f32 %v4683_v38, 0.0  ;;  %v10490_v29 = vmul.f32 %v4930_v17, %v4344_v6  ;;  %v4932_v53 = vmin.f32 %v4804_v43, 6.0 }
 0x8af   : > { %v10476_v15 = vpop.f32.mrb[157].mxu0  ;;  %v10478_v52 = vpop.f32.mrb[157].mxu1  ;;  %v4933_v33 = vmin.f32 %v4805_v47, 6.0  ;;  %v4935_v59 = vmin.f32 %v4807_v63, 6.0  ;;  %v5062_v48 = vmul.f32 %v4934_v57, %v4348_v30  ;;  %v4937_v26 = vmin.f32 %v4809_v62, 6.0 }
 0x8b0   : > { %v10486_v22 = vpop.f32.mrb[158].mxu0  ;;  %v10488_v14 = vpop.f32.mrb[158].mxu1  ;;  %v5142_v37 = vpack.c.bf16 %v10420_v8, %v10414_v46  ;;  %v5144_v7 = vpack.c.bf16 %v5056_v36, %v5052_v34  ;;  %v5064_v38 = vmul.f32 %v4936_v20, %v4541_v2  ;;  %v4354_v41 = vadd.f32 %v10271_v5, %v9804_v35 }
 0x8b1   : > { %11132 = vst [vmem:[#allocation68_spill] sm:$0xff] %v10486_v22  ;;  %11133 = vst [vmem:[#allocation61_spill] sm:$0xff] %v10488_v14  ;;  %v10492_v21 = vpop.f32.mrb[159].mxu0  ;;  %v10494_v4 = vpop.f32.mrb[159].mxu1  ;;  %v4547_v6 = vadd.f32 %v10273_v58, %v9806_v50  ;;  %v5141_v43 = vpack.c.bf16 %v5053_v1, %v10409_v51  ;;  %v4939_v47 = vmin.f32 %v4811_v56, 6.0  ;;  %v5143_v63 = vpack.c.bf16 %v5055_v13, %v10412_v49  ;;  %v11136_v58 = vld [vmem:[#allocation63_spill] sm:$0xff] }
 0x8b2   : > { %11134 = vst [vmem:[#allocation69_spill] sm:$0xff] %v10492_v21  ;;  %11135 = vst [vmem:[#allocation10_spill] sm:$0xff] %v10494_v4  ;;  %5536 = vmatprep.mubr.bf16.mxu0 %v5142_v37  ;;  %5697 = vmatprep.mubr.bf16.mxu1 %v5144_v7  ;;  %v10506_v30 = vadd.f32 %v10275_v19, %v9798_v39  ;;  %v10510_v46 = vadd.f32 %v10277_v28, %v9801_v12  ;;  %v4682_v8 = vadd.f32 3.0, %v4354_v41  ;;  %v11137_v51 = vld [vmem:[#allocation49_spill] sm:$0xff]  ;;  %v11138_v19 = vld [vmem:[#allocation50_spill] sm:$0xff] }
 0x8b3   : > { %v4684_v5 = vadd.f32 3.0, %v4547_v6  ;;  %5537 = vmatmul.mubr.bf16.gmra.mrb[196].mxu0 %v5141_v43  ;;  %v4358_v2 = vadd.f32 %v11136_v58, %v9804_v35  ;;  %v4551_v36 = vadd.f32 %v11137_v51, %v9806_v50  ;;  %5698 = vmatmul.mubr.bf16.gmra.mrb[196].mxu1 %v5143_v63  ;;  %v10520_v62 = vadd.f32 %v11138_v19, %v9798_v39 }
 0x8b4   : > { %v4685_v49 = vadd.f32 3.0, %v10506_v30  ;;  %v4687_v17 = vadd.f32 3.0, %v10510_v46  ;;  %v10524_v28 = vadd.f32 %v10324_v44, %v9801_v12  ;;  %v4810_v34 = vmax.f32 %v4682_v8, 0.0 }
 0x8b5   : > { %v4812_v1 = vmax.f32 %v4684_v5, 0.0  ;;  %v4686_v13 = vadd.f32 3.0, %v4358_v2  ;;  %v4688_v57 = vadd.f32 3.0, %v4551_v36  ;;  %v4689_v37 = vadd.f32 3.0, %v10520_v62 }
 0x8b6   : > { %v4813_v20 = vmax.f32 %v4685_v49, 0.0  ;;  %v4815_v56 = vmax.f32 %v4687_v17, 0.0  ;;  %v4691_v7 = vadd.f32 3.0, %v10524_v28  ;;  %v4938_v43 = vmin.f32 %v4810_v34, 6.0 }
 0x8b7   : > { %v4940_v63 = vmin.f32 %v4812_v1, 6.0  ;;  %v4814_v58 = vmax.f32 %v4686_v13, 0.0  ;;  %v4816_v51 = vmax.f32 %v4688_v57, 0.0  ;;  %v5060_v19 = vmul.f32 %v4932_v53, %v10431_v45 }
 0x8b8   : > { %v5061_v4 = vmul.f32 %v4933_v33, %v10441_v18  ;;  %v5063_v44 = vmul.f32 %v4935_v59, %v10445_v0  ;;  %v4817_v8 = vmax.f32 %v4689_v37, 0.0  ;;  %v10532_v5 = vmul.f32 %v4937_v26, %v10458_v61  ;;  %v11139_v33 = vld [vmem:[#allocation56_spill] sm:$0xff] }
 0x8b9   : > { %v4942_v49 = vmin.f32 %v4814_v58, 6.0  ;;  %v4944_v17 = vmin.f32 %v4816_v51, 6.0  ;;  %v4819_v21 = vmax.f32 %v4691_v7, 0.0  ;;  %v10535_v14 = vmul.f32 %v4939_v47, %v10464_v40 }
 0x8ba   : > { %v5066_v34 = vmul.f32 %v4938_v43, %v4354_v41  ;;  %v4941_v1 = vmin.f32 %v4813_v20, 6.0  ;;  %v4943_v13 = vmin.f32 %v4815_v56, 6.0  ;;  %v5068_v57 = vmul.f32 %v4940_v63, %v4547_v6 }
 0x8bb   : > { %v4945_v22 = vmin.f32 %v4817_v8, 6.0  ;;  %v5146_v45 = vpack.c.bf16 %v5062_v48, %v10490_v29  ;;  %v5148_v18 = vpack.c.bf16 %v5064_v38, %v5060_v19  ;;  %v5070_v53 = vmul.f32 %v4942_v49, %v4358_v2  ;;  %v11140_v38 = vld [vmem:[#allocation64_spill] sm:$0xff] }
 0x8bc   : > { %v5072_v0 = vmul.f32 %v4944_v17, %v4551_v36  ;;  %v4364_v61 = vadd.f32 %v10326_v27, %v9804_v35  ;;  %v4557_v59 = vadd.f32 %v11139_v33, %v9806_v50  ;;  %v4947_v26 = vmin.f32 %v4819_v21, 6.0  ;;  %v11141_v27 = vld [vmem:[#allocation51_spill] sm:$0xff]  ;;  %v11142_v36 = vld [vmem:[#allocation52_spill] sm:$0xff] }
 0x8bd   : > { %5544 = vmatprep.mubr.bf16.mxu0 %v5146_v45  ;;  %5705 = vmatprep.mubr.bf16.mxu1 %v5148_v18  ;;  %v5145_v40 = vpack.c.bf16 %v5061_v4, %v10481_v10  ;;  %v5147_v41 = vpack.c.bf16 %v5063_v44, %v10484_v42  ;;  %v4366_v6 = vadd.f32 %v10331_v23, %v9798_v39  ;;  %v11143_v42 = vld [vmem:[#allocation57_spill] sm:$0xff] }
 0x8be   : > { %v4690_v29 = vadd.f32 3.0, %v4364_v61  ;;  %v4692_v48 = vadd.f32 3.0, %v4557_v59  ;;  %v10548_v47 = vadd.f32 %v11140_v38, %v9801_v12  ;;  %v4368_v2 = vadd.f32 %v11141_v27, %v9804_v35  ;;  %v11144_v23 = vld [vmem:[#allocation65_spill] sm:$0xff] }
 0x8bf   : > { %5545 = vmatmul.mubr.bf16.gmra.mrb[200].mxu0 %v5145_v40  ;;  %5706 = vmatmul.mubr.bf16.gmra.mrb[200].mxu1 %v5147_v41  ;;  %v4693_v21 = vadd.f32 3.0, %v4366_v6  ;;  %v4561_v10 = vadd.f32 %v11142_v36, %v9806_v50  ;;  %v10556_v4 = vadd.f32 %v11143_v42, %v9798_v39  ;;  %v10560_v20 = vadd.f32 %v11144_v23, %v9801_v12 }
 0x8c0   : > { %v4818_v56 = vmax.f32 %v4690_v29, 0.0  ;;  %v4820_v37 = vmax.f32 %v4692_v48, 0.0  ;;  %v4695_v7 = vadd.f32 3.0, %v10548_v47  ;;  %v4694_v43 = vadd.f32 3.0, %v4368_v2 }
 0x8c1   : > { %v4821_v63 = vmax.f32 %v4693_v21, 0.0  ;;  %v4696_v58 = vadd.f32 3.0, %v4561_v10  ;;  %v4697_v51 = vadd.f32 3.0, %v10556_v4  ;;  %v4699_v19 = vadd.f32 3.0, %v10560_v20 }
 0x8c2   : > { %v4946_v44 = vmin.f32 %v4818_v56, 6.0  ;;  %v4948_v8 = vmin.f32 %v4820_v37, 6.0  ;;  %v4823_v49 = vmax.f32 %v4695_v7, 0.0  ;;  %v4822_v17 = vmax.f32 %v4694_v43, 0.0 }
 0x8c3   : > { %v5069_v45 = vmul.f32 %v4941_v1, %v10506_v30  ;;  %v4949_v18 = vmin.f32 %v4821_v63, 6.0  ;;  %v4824_v33 = vmax.f32 %v4696_v58, 0.0  ;;  %v4825_v40 = vmax.f32 %v4697_v51, 0.0 }
 0x8c4   : > { %v5071_v41 = vmul.f32 %v4943_v13, %v10510_v46  ;;  %v10568_v29 = vmul.f32 %v4945_v22, %v10520_v62  ;;  %v4950_v48 = vmin.f32 %v4822_v17, 6.0  ;;  %v4827_v38 = vmax.f32 %v4699_v19, 0.0  ;;  %v11145_v22 = vld [vmem:[#allocation58_spill] sm:$0xff] }
 0x8c5   : > { %v10571_v27 = vmul.f32 %v4947_v26, %v10524_v28  ;;  %v5074_v21 = vmul.f32 %v4946_v44, %v4364_v61  ;;  %v10573_v36 = vmul.f32 %v4948_v8, %v4557_v59  ;;  %v4952_v42 = vmin.f32 %v4824_v33, 6.0  ;;  %v11146_v28 = vld [vmem:[#allocation66_spill] sm:$0xff] }
 0x8c6   : > { %v10575_v23 = vmul.f32 %v4949_v18, %v4366_v6  ;;  %v4951_v30 = vmin.f32 %v4823_v49, 6.0  ;;  %v5150_v1 = vpack.c.bf16 %v5070_v53, %v5066_v34  ;;  %v5152_v56 = vpack.c.bf16 %v5072_v0, %v5068_v57  ;;  %v11147_v34 = vld [vmem:[#allocation59_spill] sm:$0xff] }
 0x8c7   : > { %v5078_v37 = vmul.f32 %v4950_v48, %v4368_v2  ;;  %v5080_v7 = vmul.f32 %v4952_v42, %v4561_v10  ;;  %v4953_v46 = vmin.f32 %v4825_v40, 6.0  ;;  %v4374_v62 = vadd.f32 %v11145_v22, %v9804_v35  ;;  %v11148_v53 = vld [vmem:[#allocation67_spill] sm:$0xff]  ;;  %v11149_v2 = vld [vmem:[#allocation60_spill] sm:$0xff] }
 0x8c8   : > { %v4955_v13 = vmin.f32 %v4827_v38, 6.0  ;;  %5552 = vmatprep.mubr.bf16.mxu0 %v5150_v1  ;;  %5713 = vmatprep.mubr.bf16.mxu1 %v5152_v56  ;;  %v4567_v61 = vadd.f32 %v11146_v28, %v9806_v50  ;;  %v5149_v59 = vpack.c.bf16 %v5069_v45, %v10532_v5  ;;  %v5151_v26 = vpack.c.bf16 %v5071_v41, %v10535_v14 }
 0x8c9   : > { %v4698_v6 = vadd.f32 3.0, %v4374_v62  ;;  %v4376_v57 = vadd.f32 %v11147_v34, %v9798_v39  ;;  %v4569_v0 = vadd.f32 %v11148_v53, %v9801_v12  ;;  %v4378_v10 = vadd.f32 %v11149_v2, %v9804_v35 }
 0x8ca   : > { %v4700_v43 = vadd.f32 3.0, %v4567_v61  ;;  %5553 = vmatmul.mubr.bf16.gmra.mrb[204].mxu0 %v5149_v59  ;;  %5714 = vmatmul.mubr.bf16.gmra.mrb[204].mxu1 %v5151_v26  ;;  %v10591_v63 = vadd.f32 %v10401_v24, %v9806_v50  ;;  %v10595_v14 = vadd.f32 %v10416_v54, %v9798_v39  ;;  %v10599_v5 = vadd.f32 %v10418_v16, %v9801_v12 }
 0x8cb   : > { %v4826_v58 = vmax.f32 %v4698_v6, 0.0  ;;  %v4701_v51 = vadd.f32 3.0, %v4376_v57  ;;  %v4703_v19 = vadd.f32 3.0, %v4569_v0  ;;  %v4702_v44 = vadd.f32 3.0, %v4378_v10 }
 0x8cc   : > { %v4828_v8 = vmax.f32 %v4700_v43, 0.0  ;;  %v4704_v49 = vadd.f32 3.0, %v10591_v63  ;;  %v4705_v17 = vadd.f32 3.0, %v10595_v14  ;;  %v4707_v24 = vadd.f32 3.0, %v10599_v5 }
 0x8cd   : > { %v4954_v45 = vmin.f32 %v4826_v58, 6.0  ;;  %v4829_v18 = vmax.f32 %v4701_v51, 0.0  ;;  %v4831_v33 = vmax.f32 %v4703_v19, 0.0  ;;  %v4830_v54 = vmax.f32 %v4702_v44, 0.0 }
 0x8ce   : > { %v4956_v40 = vmin.f32 %v4828_v8, 6.0  ;;  %v4832_v41 = vmax.f32 %v4704_v49, 0.0  ;;  %v4833_v48 = vmax.f32 %v4705_v17, 0.0  ;;  %v4835_v16 = vmax.f32 %v4707_v24, 0.0 }
 0x8cf   : > { %v5079_v38 = vmul.f32 %v4951_v30, %v10548_v47  ;;  %v4957_v42 = vmin.f32 %v4829_v18, 6.0  ;;  %v4959_v1 = vmin.f32 %v4831_v33, 6.0  ;;  %v4958_v56 = vmin.f32 %v4830_v54, 6.0 }
 0x8d0   : > { %v10606_v22 = vmul.f32 %v4953_v46, %v10556_v4  ;;  %v10609_v28 = vmul.f32 %v4955_v13, %v10560_v20  ;;  %v10611_v59 = vmul.f32 %v4954_v45, %v4374_v62  ;;  %v10613_v26 = vmul.f32 %v4956_v40, %v4567_v61 }
 0x8d1   : > { %v4960_v6 = vmin.f32 %v4832_v41, 6.0  ;;  %v4961_v34 = vmin.f32 %v4833_v48, 6.0  ;;  %v4963_v53 = vmin.f32 %v4835_v16, 6.0  ;;  %v5154_v2 = vpack.c.bf16 %v5078_v37, %v5074_v21 }
 0x8d2   : > { %v10615_v43 = vmul.f32 %v4957_v42, %v4376_v57  ;;  %v10617_v47 = vmul.f32 %v4959_v1, %v4569_v0  ;;  %v5086_v30 = vmul.f32 %v4958_v56, %v4378_v10  ;;  %v5156_v58 = vpack.c.bf16 %v5080_v7, %v10573_v36 }
 0x8d3   : > { %5560 = vmatprep.mubr.bf16.mxu0 %v5154_v2  ;;  %v4384_v4 = vadd.f32 %v10423_v3, %v9804_v35  ;;  %v4577_v20 = vadd.f32 %v10425_v32, %v9806_v50  ;;  %v5153_v46 = vpack.c.bf16 %v10575_v23, %v10568_v29  ;;  %v5155_v62 = vpack.c.bf16 %v5079_v38, %v10571_v27  ;;  %v11150_v2 = vld [vmem:[#allocation68_spill] sm:$0xff] }
 0x8d4   : > { %5721 = vmatprep.mubr.bf16.mxu1 %v5156_v58  ;;  %v4386_v21 = vadd.f32 %v10435_v11, %v9798_v39  ;;  %v4579_v37 = vadd.f32 %v10437_v25, %v9801_v12  ;;  %v4388_v36 = vadd.f32 %v10449_v60, %v9804_v35  ;;  %v4581_v3 = vadd.f32 %v10451_v55, %v9806_v50 }
 0x8d5   : > { %v4706_v7 = vadd.f32 3.0, %v4384_v4  ;;  %v4708_v32 = vadd.f32 3.0, %v4577_v20  ;;  %5561 = vmatmul.mubr.bf16.gmra.mrb[208].mxu0 %v5153_v46  ;;  %5722 = vmatmul.mubr.bf16.gmra.mrb[208].mxu1 %v5155_v62  ;;  %v10637_v29 = vadd.f32 %v10469_v31, %v9798_v39  ;;  %v10641_v11 = vadd.f32 %v10471_v9, %v9801_v12 }
 0x8d6   : > { %v4709_v27 = vadd.f32 3.0, %v4386_v21  ;;  %v4711_v25 = vadd.f32 3.0, %v4579_v37  ;;  %v4710_v23 = vadd.f32 3.0, %v4388_v36  ;;  %v4712_v13 = vadd.f32 3.0, %v4581_v3 }
 0x8d7   : > { %v4834_v60 = vmax.f32 %v4706_v7, 0.0  ;;  %v4836_v61 = vmax.f32 %v4708_v32, 0.0  ;;  %v4713_v55 = vadd.f32 3.0, %v10637_v29  ;;  %v4715_v57 = vadd.f32 3.0, %v10641_v11 }
 0x8d8   : > { %v4837_v0 = vmax.f32 %v4709_v27, 0.0  ;;  %v4839_v10 = vmax.f32 %v4711_v25, 0.0  ;;  %v4838_v51 = vmax.f32 %v4710_v23, 0.0  ;;  %v4840_v19 = vmax.f32 %v4712_v13, 0.0 }
 0x8d9   : > { %v5088_v31 = vmul.f32 %v4960_v6, %v10591_v63  ;;  %v4962_v44 = vmin.f32 %v4834_v60, 6.0  ;;  %v4964_v8 = vmin.f32 %v4836_v61, 6.0  ;;  %v4841_v9 = vmax.f32 %v4713_v55, 0.0 }
 0x8da   : > { %v4965_v49 = vmin.f32 %v4837_v0, 6.0  ;;  %v4967_v17 = vmin.f32 %v4839_v10, 6.0  ;;  %v4966_v24 = vmin.f32 %v4838_v51, 6.0  ;;  %v4968_v45 = vmin.f32 %v4840_v19, 6.0 }
 0x8db   : > { %v5089_v18 = vmul.f32 %v4961_v34, %v10595_v14  ;;  %v5091_v33 = vmul.f32 %v4963_v53, %v10599_v5  ;;  %v5090_v54 = vmul.f32 %v4962_v44, %v4384_v4  ;;  %v4843_v40 = vmax.f32 %v4715_v57, 0.0 }
 0x8dc   : > { %v5092_v41 = vmul.f32 %v4964_v8, %v4577_v20  ;;  %v5093_v48 = vmul.f32 %v4965_v49, %v4386_v21  ;;  %v5094_v16 = vmul.f32 %v4966_v24, %v4388_v36  ;;  %v4969_v38 = vmin.f32 %v4841_v9, 6.0 }
 0x8dd   : > { %v5095_v42 = vmul.f32 %v4967_v17, %v4579_v37  ;;  %v5096_v1 = vmul.f32 %v4968_v45, %v4581_v3  ;;  %v5158_v63 = vpack.c.bf16 %v5086_v30, %v10611_v59  ;;  %v5160_v56 = vpack.c.bf16 %v5088_v31, %v10613_v26  ;;  %v11151_v26 = vld [vmem:[#allocation61_spill] sm:$0xff]  ;;  %v10671_v17 = vld [vmem:[%s10886_s12] ss:$0 sm:$0xff]  ;;  %v6854_v45 = vld [vmem:[%s7117_s14 + $0x18] sm:$0xff] }
 0x8de   : > { %v4394_v6 = vadd.f32 %v10476_v15, %v9804_v35  ;;  %v4587_v14 = vadd.f32 %v10478_v52, %v9806_v50  ;;  %v5157_v5 = vpack.c.bf16 %v10615_v43, %v10606_v22  ;;  %v5159_v34 = vpack.c.bf16 %v10617_v47, %v10609_v28  ;;  %v11152_v15 = vld [vmem:[#allocation69_spill] sm:$0xff]  ;;  %v11153_v22 = vld [vmem:[#allocation10_spill] sm:$0xff] }
 0x8df   : > { %v4971_v53 = vmin.f32 %v4843_v40, 6.0  ;;  %5568 = vmatprep.mubr.bf16.mxu0 %v5158_v63  ;;  %5729 = vmatprep.mubr.bf16.mxu1 %v5160_v56  ;;  %v4396_v59 = vadd.f32 %v11150_v2, %v9798_v39  ;;  %v4589_v30 = vadd.f32 %v11151_v26, %v9801_v12  ;;  %v4398_v58 = vadd.f32 %v11152_v15, %v9804_v35 }
 0x8e0   : > { %v4714_v4 = vadd.f32 3.0, %v4394_v6  ;;  %v4716_v52 = vadd.f32 3.0, %v4587_v14  ;;  %5569 = vmatmul.mubr.bf16.gmra.mrb[212].mxu0 %v5157_v5  ;;  %5730 = vmatmul.mubr.bf16.gmra.mrb[212].mxu1 %v5159_v34  ;;  %v4591_v43 = vadd.f32 %v11153_v22, %v9806_v50  ;;  %v5162_v28 = vpack.c.bf16 %v5094_v16, %v5090_v54  ;;  %v6857_v22 = vld [vmem:[%s7117_s14 + $0x30] sm:$0xff] }
 0x8e1   : > { %v4717_v47 = vadd.f32 3.0, %v4396_v59  ;;  %v4719_v20 = vadd.f32 3.0, %v4589_v30  ;;  %v4718_v46 = vadd.f32 3.0, %v4398_v58  ;;  %v5164_v62 = vpack.c.bf16 %v5096_v1, %v5092_v41  ;;  %v6856_v1 = vld [vmem:[%s7117_s14 + $0x28] sm:$0x3] }
 0x8e2   : > { %v4842_v21 = vmax.f32 %v4714_v4, 0.0  ;;  %v4844_v39 = vmax.f32 %v4716_v52, 0.0  ;;  %v4720_v37 = vadd.f32 3.0, %v4591_v43  ;;  %5576 = vmatprep.mubr.bf16.mxu0 %v5162_v28  ;;  %v5161_v12 = vpack.c.bf16 %v5093_v48, %v5089_v18  ;;  %v6858_v28 = vld [vmem:[%s7117_s14 + $0x38] sm:$0xff] }
 0x8e3   : > { %v4845_v36 = vmax.f32 %v4717_v47, 0.0  ;;  %v4847_v3 = vmax.f32 %v4719_v20, 0.0  ;;  %v4846_v35 = vmax.f32 %v4718_v46, 0.0  ;;  %5737 = vmatprep.mubr.bf16.mxu1 %v5164_v62  ;;  %v5163_v7 = vpack.c.bf16 %v5095_v42, %v5091_v33  ;;  %v6855_v33 = vld [vmem:[%s7117_s14 + $0x20] sm:$0xff] }
 0x8e4   : > { %v4970_v32 = vmin.f32 %v4842_v21, 6.0  ;;  %v4972_v27 = vmin.f32 %v4844_v39, 6.0  ;;  %v4848_v25 = vmax.f32 %v4720_v37, 0.0  ;;  %v5097_v60 = vmul.f32 %v4969_v38, %v10637_v29 }
 0x8e5   : > { %v4973_v23 = vmin.f32 %v4845_v36, 6.0  ;;  %v4975_v50 = vmin.f32 %v4847_v3, 6.0  ;;  %v4974_v13 = vmin.f32 %v4846_v35, 6.0  ;;  %v5099_v61 = vmul.f32 %v4971_v53, %v10641_v11 }
 0x8e6   : > { %v4976_v55 = vmin.f32 %v4848_v25, 6.0  ;;  %v5098_v57 = vmul.f32 %v4970_v32, %v4394_v6  ;;  %v5100_v19 = vmul.f32 %v4972_v27, %v4587_v14  ;;  %v543_v18 = vrot.slane %v6854_v45, 1 }
 0x8e7   : > { %v5101_v0 = vmul.f32 %v4973_v23, %v4396_v59  ;;  %v5103_v10 = vmul.f32 %v4975_v50, %v4589_v30  ;;  %v5102_v51 = vmul.f32 %v4974_v13, %v4398_v58  ;;  %v544_v54 = vrot.slane %v6855_v33, 1 }
 0x8e8   : > { %v5104_v31 = vmul.f32 %v4976_v55, %v4591_v43  ;;  %5577 = vmatmul.mubr.bf16.gmra.mrb[216].mxu0 %v5161_v12  ;;  %5738 = vmatmul.mubr.bf16.gmra.mrb[216].mxu1 %v5163_v7  ;;  %v546_v63 = vrot.slane %v6856_v1, 1  ;;  %v548_v43 = vrot.slane %v6857_v22, 1  ;;  %v549_v47 = vrot.slane %v6858_v28, 1  ;;  %v6859_v12 = vld [vmem:[%s7117_s14 + $0x40] sm:$0x3] }
 0x8e9   : > { %v5166_v44 = vpack.c.bf16 %v5102_v51, %v5098_v57  ;;  %v5165_v8 = vpack.c.bf16 %v5101_v0, %v5097_v60  ;;  %v5167_v9 = vpack.c.bf16 %v5103_v10, %v5099_v61  ;;  %v545_v34 = vsel %vm542_vm0, %v543_v18, %v544_v54  ;;  %v6860_v10 = vld [vmem:[%s7117_s14 + $0x48] sm:$0xff] }
 0x8ea   : > { %v5168_v49 = vpack.c.bf16 %v5104_v31, %v5100_v19  ;;  %v547_v59 = vsel %vm542_vm0, %v544_v54, %v546_v63  ;;  %v551_v36 = vrot.slane %v6859_v12, 1  ;;  %v550_v32 = vsel %vm542_vm0, %v548_v43, %v549_v47  ;;  %v6861_v19 = vld [vmem:[%s7117_s14 + $0x50] sm:$0xff] }
 0x8eb   : > { %5584 = vmatprep.mubr.bf16.mxu0 %v5166_v44  ;;  %v553_v51 = vrot.slane %v6860_v10, 1  ;;  %v554_v31 = vrot.slane %v6861_v19, 1 }
 0x8ec   : > { %5745 = vmatprep.mubr.bf16.mxu1 %v5168_v49  ;;  %v552_v50 = vsel %vm542_vm0, %v549_v47, %v551_v36 }
 0x8f0   : > { %5585 = vmatmul.mubr.bf16.gmra.mrb[220].mxu0 %v5165_v8  ;;  %5746 = vmatmul.mubr.bf16.gmra.mrb[220].mxu1 %v5167_v9 }
 0x91f   : > { %v6157_v29 = vpop.f32.mrb[160].mxu0 }
 0x920   : > { %v6269_v11 = vpop.f32.mrb[160].mxu1  ;;  %v6158_v24 = vpop.f32.mrb[161].mxu0 }
 0x921   : > { %v6270_v40 = vpop.f32.mrb[161].mxu1  ;;  %v6159_v41 = vadd.f32 %v6158_v24, %v6157_v29  ;;  %v6160_v16 = vpop.f32.mrb[162].mxu0  ;;  %v6862_v24 = vld [vmem:[%s7117_s14 + $0x58] sm:$0x3] }
 0x922   : > { %v6271_v48 = vadd.f32 %v6270_v40, %v6269_v11  ;;  %v6272_v38 = vpop.f32.mrb[162].mxu1  ;;  %v6161_v42 = vpop.f32.mrb[163].mxu0  ;;  %v556_v45 = vrot.slane %v6862_v24, 1  ;;  %v555_v40 = vsel %vm542_vm0, %v553_v51, %v554_v31 }
 0x923   : > { %v6273_v56 = vpop.f32.mrb[163].mxu1  ;;  %v5467_v6 = vadd.f32 %v6159_v41, %v10671_v17  ;;  %v6162_v14 = vadd.f32 %v6161_v42, %v6160_v16 }
 0x924   : > { %v6274_v5 = vadd.f32 %v6273_v56, %v6272_v38  ;;  %v557_v38 = vsel %vm542_vm0, %v554_v31, %v556_v45 }
 0x925   : > { %v5628_v53 = vadd.f32 %v6271_v48, %v5467_v6  ;;  %v5470_v2 = vadd.f32 %v6162_v14, %v10671_v17 }
 0x927   : > { %v5754_v26 = vadd.f32 %v5628_v53, %v545_v34  ;;  %v5631_v30 = vadd.f32 %v6274_v5, %v5470_v2  ;;  %v6863_v5 = vld [vmem:[%s7117_s14 + $0x60] sm:$0xff]  ;;  %v6864_v53 = vld [vmem:[%s7117_s14 + $0x68] sm:$0xff] }
 0x928   : > { %v558_v34 = vrot.slane %v6863_v5, 1  ;;  %v559_v2 = vrot.slane %v6864_v53, 1 }
 0x929   : > { %5786 = vst [vmem:[%s10683_s22] sm:$0xff] %v5754_v26  ;;  %v5755_v15 = vadd.f32 %v5631_v30, %v547_v59 }
 0x92b   : > { %5787 = vst [vmem:[%s10683_s22 + $0x8] sm:$0xff] %v5755_v15  ;;  %v6163_v58 = vpop.f32.mrb[164].mxu0 }
 0x92c   : > { %v6275_v4 = vpop.f32.mrb[164].mxu1  ;;  %v6164_v52 = vpop.f32.mrb[165].mxu0 }
 0x92d   : > { %v6165_v20 = vadd.f32 %v6164_v52, %v6163_v58  ;;  %v6276_v46 = vpop.f32.mrb[165].mxu1  ;;  %v6166_v62 = vpop.f32.mrb[166].mxu0  ;;  %v6865_v52 = vld [vmem:[%s7117_s14 + $0x70] sm:$0x3] }
 0x92e   : > { %v6277_v21 = vadd.f32 %v6276_v46, %v6275_v4  ;;  %v6278_v39 = vpop.f32.mrb[166].mxu1  ;;  %v6167_v37 = vpop.f32.mrb[167].mxu0  ;;  %v561_v22 = vrot.slane %v6865_v52, 1  ;;  %v560_v46 = vsel %vm542_vm0, %v558_v34, %v559_v2 }
 0x92f   : > { %v5475_v3 = vadd.f32 %v6165_v20, %v10671_v17  ;;  %v6168_v35 = vadd.f32 %v6167_v37, %v6166_v62  ;;  %v6279_v7 = vpop.f32.mrb[167].mxu1 }
 0x930   : > { %v6280_v27 = vadd.f32 %v6279_v7, %v6278_v39  ;;  %v562_v39 = vsel %vm542_vm0, %v559_v2, %v561_v22 }
 0x931   : > { %v5636_v25 = vadd.f32 %v6277_v21, %v5475_v3  ;;  %v5478_v23 = vadd.f32 %v6168_v35, %v10671_v17 }
 0x933   : > { %v5756_v13 = vadd.f32 %v5636_v25, %v550_v32  ;;  %v5639_v60 = vadd.f32 %v6280_v27, %v5478_v23  ;;  %v6866_v32 = vld [vmem:[%s7117_s14 + $0x78] sm:$0xff]  ;;  %v6867_v25 = vld [vmem:[%s7117_s14 + $0x80] sm:$0xff] }
 0x934   : > { %v563_v27 = vrot.slane %v6866_v32, 1  ;;  %v564_v23 = vrot.slane %v6867_v25, 1 }
 0x935   : > { %5788 = vst [vmem:[%s10683_s22 + $0x10] sm:$0xff] %v5756_v13  ;;  %v5757_v61 = vadd.f32 %v5639_v60, %v552_v50 }
 0x937   : > { %v6169_v55 = vpop.f32.mrb[168].mxu0  ;;  %5789 = vst [vmem:[%s10683_s22 + $0x18] sm:$0xff] %v5757_v61  ;;  %v6281_v57 = vpop.f32.mrb[168].mxu1 }
 0x938   : > { %v6170_v0 = vpop.f32.mrb[169].mxu0  ;;  %v6282_v8 = vpop.f32.mrb[169].mxu1 }
 0x939   : > { %v6171_v44 = vadd.f32 %v6170_v0, %v6169_v55  ;;  %v6172_v9 = vpop.f32.mrb[170].mxu0  ;;  %v6283_v49 = vadd.f32 %v6282_v8, %v6281_v57  ;;  %v6284_v29 = vpop.f32.mrb[170].mxu1  ;;  %v6868_v0 = vld [vmem:[%s7117_s14 + $0x88] sm:$0x3]  ;;  %v565_v8 = vsel %vm542_vm0, %v563_v27, %v564_v23 }
 0x93a   : > { %v6173_v11 = vpop.f32.mrb[171].mxu0  ;;  %v6285_v54 = vpop.f32.mrb[171].mxu1  ;;  %v566_v10 = vrot.slane %v6868_v0, 1 }
 0x93b   : > { %v5483_v18 = vadd.f32 %v6171_v44, %v10671_v17  ;;  %v6174_v33 = vadd.f32 %v6173_v11, %v6172_v9  ;;  %v6286_v41 = vadd.f32 %v6285_v54, %v6284_v29 }
 0x93c   : > { %v567_v29 = vsel %vm542_vm0, %v564_v23, %v566_v10 }
 0x93d   : > { %v5644_v48 = vadd.f32 %v6283_v49, %v5483_v18  ;;  %v5486_v16 = vadd.f32 %v6174_v33, %v10671_v17 }
 0x93f   : > { %v5758_v42 = vadd.f32 %v5644_v48, %v555_v40  ;;  %v5647_v1 = vadd.f32 %v6286_v41, %v5486_v16  ;;  %v6869_v40 = vld [vmem:[%s7117_s14 + $0x90] sm:$0xff]  ;;  %v6870_v48 = vld [vmem:[%s7117_s14 + $0x98] sm:$0xff] }
 0x940   : > { %v568_v41 = vrot.slane %v6869_v40, 1  ;;  %v569_v16 = vrot.slane %v6870_v48, 1 }
 0x941   : > { %5790 = vst [vmem:[%s10683_s22 + $0x20] sm:$0xff] %v5758_v42  ;;  %v5759_v63 = vadd.f32 %v5647_v1, %v557_v38 }
 0x942   : > { %v6175_v56 = vpop.f32.mrb[172].mxu0 }
 0x943   : > { %5791 = vst [vmem:[%s10683_s22 + $0x28] sm:$0xff] %v5759_v63  ;;  %v6287_v6 = vpop.f32.mrb[172].mxu1  ;;  %v6176_v14 = vpop.f32.mrb[173].mxu0 }
 0x944   : > { %v6288_v59 = vpop.f32.mrb[173].mxu1  ;;  %v6177_v26 = vadd.f32 %v6176_v14, %v6175_v56  ;;  %v6178_v15 = vpop.f32.mrb[174].mxu0  ;;  %v6871_v14 = vld [vmem:[%s7117_s14 + $0xa0] sm:$0x3] }
 0x945   : > { %v6289_v30 = vadd.f32 %v6288_v59, %v6287_v6  ;;  %v6290_v58 = vpop.f32.mrb[174].mxu1  ;;  %v6179_v4 = vpop.f32.mrb[175].mxu0  ;;  %v571_v5 = vrot.slane %v6871_v14, 1 }
 0x946   : > { %v6291_v43 = vpop.f32.mrb[175].mxu1  ;;  %v5491_v28 = vadd.f32 %v6177_v26, %v10671_v17  ;;  %v6180_v47 = vadd.f32 %v6179_v4, %v6178_v15  ;;  %v570_v26 = vsel %vm542_vm0, %v568_v41, %v569_v16 }
 0x947   : > { %v6292_v20 = vadd.f32 %v6291_v43, %v6290_v58  ;;  %v572_v58 = vsel %vm542_vm0, %v569_v16, %v571_v5 }
 0x948   : > { %v5652_v62 = vadd.f32 %v6289_v30, %v5491_v28  ;;  %v5494_v21 = vadd.f32 %v6180_v47, %v10671_v17 }
 0x94a   : > { %v5760_v37 = vadd.f32 %v5652_v62, %v560_v46  ;;  %v5655_v12 = vadd.f32 %v6292_v20, %v5494_v21  ;;  %v6872_v20 = vld [vmem:[%s7117_s14 + $0xa8] sm:$0xff]  ;;  %v6873_v62 = vld [vmem:[%s7117_s14 + $0xb0] sm:$0xff] }
 0x94b   : > { %v573_v46 = vrot.slane %v6872_v20, 1  ;;  %v574_v21 = vrot.slane %v6873_v62, 1 }
 0x94c   : > { %5792 = vst [vmem:[%s10683_s22 + $0x30] sm:$0xff] %v5760_v37  ;;  %v5761_v36 = vadd.f32 %v5655_v12, %v562_v39 }
 0x94e   : > { %5793 = vst [vmem:[%s10683_s22 + $0x38] sm:$0xff] %v5761_v36  ;;  %v6181_v3 = vpop.f32.mrb[176].mxu0  ;;  %v6293_v35 = vpop.f32.mrb[176].mxu1 }
 0x94f   : > { %v6182_v7 = vpop.f32.mrb[177].mxu0  ;;  %v6294_v50 = vpop.f32.mrb[177].mxu1 }
 0x950   : > { %v6183_v13 = vadd.f32 %v6182_v7, %v6181_v3  ;;  %v6295_v60 = vadd.f32 %v6294_v50, %v6293_v35  ;;  %v6184_v61 = vpop.f32.mrb[178].mxu0  ;;  %v6296_v55 = vpop.f32.mrb[178].mxu1  ;;  %v6874_v7 = vld [vmem:[%s7117_s14 + $0xb8] sm:$0x3] }
 0x951   : > { %v6185_v57 = vpop.f32.mrb[179].mxu0  ;;  %v6297_v51 = vpop.f32.mrb[179].mxu1  ;;  %v576_v32 = vrot.slane %v6874_v7, 1 }
 0x952   : > { %v5499_v19 = vadd.f32 %v6183_v13, %v10671_v17  ;;  %v6186_v31 = vadd.f32 %v6185_v57, %v6184_v61  ;;  %v6298_v44 = vadd.f32 %v6297_v51, %v6296_v55  ;;  %v575_v13 = vsel %vm542_vm0, %v573_v46, %v574_v21 }
 0x953   : > { %v577_v55 = vsel %vm542_vm0, %v574_v21, %v576_v32 }
 0x954   : > { %v5660_v9 = vadd.f32 %v6295_v60, %v5499_v19  ;;  %v5502_v49 = vadd.f32 %v6186_v31, %v10671_v17 }
 0x956   : > { %v5762_v11 = vadd.f32 %v5660_v9, %v565_v8  ;;  %v5663_v24 = vadd.f32 %v6298_v44, %v5502_v49  ;;  %v6875_v44 = vld [vmem:[%s7117_s14 + $0xc0] sm:$0xff]  ;;  %v6876_v9 = vld [vmem:[%s7117_s14 + $0xc8] sm:$0xff] }
 0x957   : > { %v578_v8 = vrot.slane %v6875_v44, 1  ;;  %v579_v49 = vrot.slane %v6876_v9, 1 }
 0x958   : > { %5794 = vst [vmem:[%s10683_s22 + $0x40] sm:$0xff] %v5762_v11  ;;  %v5763_v45 = vadd.f32 %v5663_v24, %v567_v29 }
 0x959   : > { %v6187_v18 = vpop.f32.mrb[180].mxu0  ;;  %v6299_v33 = vpop.f32.mrb[180].mxu1 }
 0x95a   : > { %5795 = vst [vmem:[%s10683_s22 + $0x48] sm:$0xff] %v5763_v45  ;;  %v6188_v54 = vpop.f32.mrb[181].mxu0  ;;  %v6300_v38 = vpop.f32.mrb[181].mxu1 }
 0x95b   : > { %v6189_v42 = vadd.f32 %v6188_v54, %v6187_v18  ;;  %v6301_v1 = vadd.f32 %v6300_v38, %v6299_v33  ;;  %v6190_v63 = vpop.f32.mrb[182].mxu0  ;;  %v6302_v56 = vpop.f32.mrb[182].mxu1  ;;  %v6877_v54 = vld [vmem:[%s7117_s14 + $0xd0] sm:$0x3] }
 0x95c   : > { %v6191_v6 = vpop.f32.mrb[183].mxu0  ;;  %v6303_v34 = vpop.f32.mrb[183].mxu1  ;;  %v581_v40 = vrot.slane %v6877_v54, 1 }
 0x95d   : > { %v5507_v53 = vadd.f32 %v6189_v42, %v10671_v17  ;;  %v6192_v2 = vadd.f32 %v6191_v6, %v6190_v63  ;;  %v6304_v59 = vadd.f32 %v6303_v34, %v6302_v56  ;;  %v580_v42 = vsel %vm542_vm0, %v578_v8, %v579_v49 }
 0x95e   : > { %v582_v56 = vsel %vm542_vm0, %v579_v49, %v581_v40 }
 0x95f   : > { %v5668_v30 = vadd.f32 %v6301_v1, %v5507_v53  ;;  %v5510_v15 = vadd.f32 %v6192_v2, %v10671_v17 }
 0x961   : > { %v5764_v4 = vadd.f32 %v5668_v30, %v570_v26  ;;  %v5671_v52 = vadd.f32 %v6304_v59, %v5510_v15  ;;  %v6878_v59 = vld [vmem:[%s7117_s14 + $0xd8] sm:$0xff]  ;;  %v6879_v30 = vld [vmem:[%s7117_s14 + $0xe0] sm:$0xff] }
 0x962   : > { %v583_v26 = vrot.slane %v6878_v59, 1  ;;  %v584_v15 = vrot.slane %v6879_v30, 1 }
 0x963   : > { %5796 = vst [vmem:[%s10683_s22 + $0x50] sm:$0xff] %v5764_v4  ;;  %v5765_v22 = vadd.f32 %v5671_v52, %v572_v58 }
 0x964   : > { %v6193_v43 = vpop.f32.mrb[184].mxu0 }
 0x965   : > { %v6305_v28 = vpop.f32.mrb[184].mxu1  ;;  %5797 = vst [vmem:[%s10683_s22 + $0x58] sm:$0xff] %v5765_v22  ;;  %v6194_v47 = vpop.f32.mrb[185].mxu0 }
 0x966   : > { %v6306_v39 = vpop.f32.mrb[185].mxu1  ;;  %v6195_v37 = vadd.f32 %v6194_v47, %v6193_v43  ;;  %v6196_v36 = vpop.f32.mrb[186].mxu0  ;;  %v6880_v47 = vld [vmem:[%s7117_s14 + $0xe8] sm:$0x3] }
 0x967   : > { %v6307_v12 = vadd.f32 %v6306_v39, %v6305_v28  ;;  %v6308_v3 = vpop.f32.mrb[186].mxu1  ;;  %v6197_v35 = vpop.f32.mrb[187].mxu0  ;;  %v586_v20 = vrot.slane %v6880_v47, 1 }
 0x968   : > { %v6309_v27 = vpop.f32.mrb[187].mxu1  ;;  %v5515_v25 = vadd.f32 %v6195_v37, %v10671_v17  ;;  %v6198_v23 = vadd.f32 %v6197_v35, %v6196_v36  ;;  %v585_v37 = vsel %vm542_vm0, %v583_v26, %v584_v15 }
 0x969   : > { %v6310_v50 = vadd.f32 %v6309_v27, %v6308_v3  ;;  %v587_v3 = vsel %vm542_vm0, %v584_v15, %v586_v20 }
 0x96a   : > { %v5676_v60 = vadd.f32 %v6307_v12, %v5515_v25  ;;  %v5518_v61 = vadd.f32 %v6198_v23, %v10671_v17 }
 0x96c   : > { %v5766_v57 = vadd.f32 %v5676_v60, %v575_v13  ;;  %v5679_v0 = vadd.f32 %v6310_v50, %v5518_v61  ;;  %v6881_v50 = vld [vmem:[%s7117_s14 + $0xf0] sm:$0xff]  ;;  %v6882_v60 = vld [vmem:[%s7117_s14 + $0xf8] sm:$0xff] }
 0x96d   : > { %v588_v13 = vrot.slane %v6881_v50, 1  ;;  %v589_v61 = vrot.slane %v6882_v60, 1 }
 0x96e   : > { %5798 = vst [vmem:[%s10683_s22 + $0x60] sm:$0xff] %v5766_v57  ;;  %v5767_v10 = vadd.f32 %v5679_v0, %v577_v55 }
 0x96f   : > { %v6199_v51 = vpop.f32.mrb[188].mxu0 }
 0x970   : > { %v6311_v19 = vpop.f32.mrb[188].mxu1  ;;  %5799 = vst [vmem:[%s10683_s22 + $0x68] sm:$0xff] %v5767_v10  ;;  %v6200_v31 = vpop.f32.mrb[189].mxu0 }
 0x971   : > { %v6312_v29 = vpop.f32.mrb[189].mxu1  ;;  %v6201_v11 = vadd.f32 %v6200_v31, %v6199_v51  ;;  %v6202_v45 = vpop.f32.mrb[190].mxu0  ;;  %v6883_v31 = vld [vmem:[%s7117_s14 + $0x100] sm:$0x3] }
 0x972   : > { %v6313_v24 = vadd.f32 %v6312_v29, %v6311_v19  ;;  %v6314_v18 = vpop.f32.mrb[190].mxu1  ;;  %v6203_v33 = vpop.f32.mrb[191].mxu0  ;;  %v591_v44 = vrot.slane %v6883_v31, 1  ;;  %v590_v29 = vsel %vm542_vm0, %v588_v13, %v589_v61 }
 0x973   : > { %v6315_v41 = vpop.f32.mrb[191].mxu1  ;;  %v5523_v48 = vadd.f32 %v6201_v11, %v10671_v17  ;;  %v6204_v16 = vadd.f32 %v6203_v33, %v6202_v45 }
 0x974   : > { %v6316_v38 = vadd.f32 %v6315_v41, %v6314_v18  ;;  %v592_v18 = vsel %vm542_vm0, %v589_v61, %v591_v44 }
 0x975   : > { %v5684_v1 = vadd.f32 %v6313_v24, %v5523_v48  ;;  %v5526_v63 = vadd.f32 %v6204_v16, %v10671_v17 }
 0x977   : > { %v5768_v6 = vadd.f32 %v5684_v1, %v580_v42  ;;  %v5687_v14 = vadd.f32 %v6316_v38, %v5526_v63  ;;  %v6884_v38 = vld [vmem:[%s7117_s14 + $0x108] sm:$0xff]  ;;  %v6885_v1 = vld [vmem:[%s7117_s14 + $0x110] sm:$0xff] }
 0x978   : > { %v593_v42 = vrot.slane %v6884_v38, 1  ;;  %v594_v63 = vrot.slane %v6885_v1, 1 }
 0x979   : > { %5800 = vst [vmem:[%s10683_s22 + $0x70] sm:$0xff] %v5768_v6  ;;  %v5769_v5 = vadd.f32 %v5687_v14, %v582_v56 }
 0x97b   : > { %v6205_v34 = vpop.f32.mrb[192].mxu0  ;;  %v6317_v53 = vpop.f32.mrb[192].mxu1  ;;  %5801 = vst [vmem:[%s10683_s22 + $0x78] sm:$0xff] %v5769_v5 }
 0x97c   : > { %v6206_v2 = vpop.f32.mrb[193].mxu0  ;;  %v6318_v58 = vpop.f32.mrb[193].mxu1 }
 0x97d   : > { %v6207_v4 = vadd.f32 %v6206_v2, %v6205_v34  ;;  %v6319_v52 = vadd.f32 %v6318_v58, %v6317_v53  ;;  %v6208_v22 = vpop.f32.mrb[194].mxu0  ;;  %v6320_v43 = vpop.f32.mrb[194].mxu1  ;;  %v6886_v2 = vld [vmem:[%s7117_s14 + $0x118] sm:$0x3] }
 0x97e   : > { %v6209_v28 = vpop.f32.mrb[195].mxu0  ;;  %v6321_v46 = vpop.f32.mrb[195].mxu1  ;;  %v596_v59 = vrot.slane %v6886_v2, 1 }
 0x97f   : > { %v5531_v62 = vadd.f32 %v6207_v4, %v10671_v17  ;;  %v6210_v21 = vadd.f32 %v6209_v28, %v6208_v22  ;;  %v6322_v39 = vadd.f32 %v6321_v46, %v6320_v43  ;;  %v595_v4 = vsel %vm542_vm0, %v593_v42, %v594_v63 }
 0x980   : > { %v597_v43 = vsel %vm542_vm0, %v594_v63, %v596_v59 }
 0x981   : > { %v5692_v12 = vadd.f32 %v6319_v52, %v5531_v62  ;;  %v5534_v36 = vadd.f32 %v6210_v21, %v10671_v17 }
 0x983   : > { %v5770_v35 = vadd.f32 %v5692_v12, %v585_v37  ;;  %v5695_v7 = vadd.f32 %v6322_v39, %v5534_v36  ;;  %v6887_v39 = vld [vmem:[%s7117_s14 + $0x120] sm:$0xff]  ;;  %v6888_v12 = vld [vmem:[%s7117_s14 + $0x128] sm:$0xff] }
 0x984   : > { %v598_v37 = vrot.slane %v6887_v39, 1  ;;  %v599_v36 = vrot.slane %v6888_v12, 1 }
 0x985   : > { %5802 = vst [vmem:[%s10683_s22 + $0x80] sm:$0xff] %v5770_v35  ;;  %v5771_v32 = vadd.f32 %v5695_v7, %v587_v3 }
 0x986   : > { %v6211_v27 = vpop.f32.mrb[196].mxu0  ;;  %v6323_v25 = vpop.f32.mrb[196].mxu1 }
 0x987   : > { %5803 = vst [vmem:[%s10683_s22 + $0x88] sm:$0xff] %v5771_v32  ;;  %v6212_v23 = vpop.f32.mrb[197].mxu0  ;;  %v6324_v57 = vpop.f32.mrb[197].mxu1 }
 0x988   : > { %v6213_v55 = vadd.f32 %v6212_v23, %v6211_v27  ;;  %v6214_v0 = vpop.f32.mrb[198].mxu0  ;;  %v6325_v10 = vadd.f32 %v6324_v57, %v6323_v25  ;;  %v6326_v51 = vpop.f32.mrb[198].mxu1  ;;  %v6889_v23 = vld [vmem:[%s7117_s14 + $0x130] sm:$0x3]  ;;  %v600_v57 = vsel %vm542_vm0, %v598_v37, %v599_v36 }
 0x989   : > { %v6215_v19 = vpop.f32.mrb[199].mxu0  ;;  %v6327_v49 = vpop.f32.mrb[199].mxu1  ;;  %v601_v50 = vrot.slane %v6889_v23, 1 }
 0x98a   : > { %v5539_v8 = vadd.f32 %v6213_v55, %v10671_v17  ;;  %v6216_v9 = vadd.f32 %v6215_v19, %v6214_v0  ;;  %v6328_v11 = vadd.f32 %v6327_v49, %v6326_v51 }
 0x98b   : > { %v602_v51 = vsel %vm542_vm0, %v599_v36, %v601_v50 }
 0x98c   : > { %v5700_v24 = vadd.f32 %v6325_v10, %v5539_v8  ;;  %v5542_v45 = vadd.f32 %v6216_v9, %v10671_v17 }
 0x98e   : > { %v5772_v33 = vadd.f32 %v5700_v24, %v590_v29  ;;  %v5703_v54 = vadd.f32 %v6328_v11, %v5542_v45  ;;  %v6890_v29 = vld [vmem:[%s7117_s14 + $0x138] sm:$0xff]  ;;  %v6891_v24 = vld [vmem:[%s7117_s14 + $0x140] sm:$0xff] }
 0x98f   : > { %v603_v11 = vrot.slane %v6890_v29, 1  ;;  %v604_v45 = vrot.slane %v6891_v24, 1 }
 0x990   : > { %5804 = vst [vmem:[%s10683_s22 + $0x90] sm:$0xff] %v5772_v33  ;;  %v5773_v40 = vadd.f32 %v5703_v54, %v592_v18 }
 0x992   : > { %5805 = vst [vmem:[%s10683_s22 + $0x98] sm:$0xff] %v5773_v40  ;;  %v6217_v41 = vpop.f32.mrb[200].mxu0  ;;  %v6329_v48 = vpop.f32.mrb[200].mxu1 }
 0x993   : > { %v6218_v16 = vpop.f32.mrb[201].mxu0  ;;  %v6330_v56 = vpop.f32.mrb[201].mxu1 }
 0x994   : > { %v6219_v6 = vadd.f32 %v6218_v16, %v6217_v41  ;;  %v6331_v14 = vadd.f32 %v6330_v56, %v6329_v48  ;;  %v6220_v5 = vpop.f32.mrb[202].mxu0  ;;  %v6332_v34 = vpop.f32.mrb[202].mxu1  ;;  %v6892_v16 = vld [vmem:[%s7117_s14 + $0x148] sm:$0x3] }
 0x995   : > { %v6221_v53 = vpop.f32.mrb[203].mxu0  ;;  %v6333_v26 = vpop.f32.mrb[203].mxu1  ;;  %v606_v38 = vrot.slane %v6892_v16, 1 }
 0x996   : > { %v5547_v30 = vadd.f32 %v6219_v6, %v10671_v17  ;;  %v6222_v15 = vadd.f32 %v6221_v53, %v6220_v5  ;;  %v6334_v58 = vadd.f32 %v6333_v26, %v6332_v34  ;;  %v605_v6 = vsel %vm542_vm0, %v603_v11, %v604_v45 }
 0x997   : > { %v607_v34 = vsel %vm542_vm0, %v604_v45, %v606_v38 }
 0x998   : > { %v5708_v52 = vadd.f32 %v6331_v14, %v5547_v30  ;;  %v5550_v22 = vadd.f32 %v6222_v15, %v10671_v17 }
 0x99a   : > { %v5774_v28 = vadd.f32 %v5708_v52, %v595_v4  ;;  %v5711_v47 = vadd.f32 %v6334_v58, %v5550_v22  ;;  %v6893_v58 = vld [vmem:[%s7117_s14 + $0x150] sm:$0xff]  ;;  %v6894_v52 = vld [vmem:[%s7117_s14 + $0x158] sm:$0xff] }
 0x99b   : > { %v608_v4 = vrot.slane %v6893_v58, 1  ;;  %v609_v22 = vrot.slane %v6894_v52, 1 }
 0x99c   : > { %5806 = vst [vmem:[%s10683_s22 + $0xa0] sm:$0xff] %v5774_v28  ;;  %v5775_v20 = vadd.f32 %v5711_v47, %v597_v43 }
 0x99d   : > { %v6223_v46 = vpop.f32.mrb[204].mxu0  ;;  %v6335_v62 = vpop.f32.mrb[204].mxu1 }
 0x99e   : > { %5807 = vst [vmem:[%s10683_s22 + $0xa8] sm:$0xff] %v5775_v20  ;;  %v6224_v21 = vpop.f32.mrb[205].mxu0  ;;  %v6336_v3 = vpop.f32.mrb[205].mxu1 }
 0x99f   : > { %v6225_v35 = vadd.f32 %v6224_v21, %v6223_v46  ;;  %v6337_v7 = vadd.f32 %v6336_v3, %v6335_v62  ;;  %v6226_v32 = vpop.f32.mrb[206].mxu0  ;;  %v6338_v27 = vpop.f32.mrb[206].mxu1  ;;  %v6895_v21 = vld [vmem:[%s7117_s14 + $0x160] sm:$0x3] }
 0x9a0   : > { %v6227_v25 = vpop.f32.mrb[207].mxu0  ;;  %v6339_v13 = vpop.f32.mrb[207].mxu1  ;;  %v611_v39 = vrot.slane %v6895_v21, 1 }
 0x9a1   : > { %v5555_v60 = vadd.f32 %v6225_v35, %v10671_v17  ;;  %v6228_v61 = vadd.f32 %v6227_v25, %v6226_v32  ;;  %v6340_v55 = vadd.f32 %v6339_v13, %v6338_v27  ;;  %v610_v35 = vsel %vm542_vm0, %v608_v4, %v609_v22 }
 0x9a2   : > { %v612_v27 = vsel %vm542_vm0, %v609_v22, %v611_v39 }
 0x9a3   : > { %v5716_v0 = vadd.f32 %v6337_v7, %v5555_v60  ;;  %v5558_v10 = vadd.f32 %v6228_v61, %v10671_v17  ;;  %v6896_v61 = vld [vmem:[%s7117_s14 + $0x168] sm:$0xff] }
 0x9a5   : > { %v5776_v19 = vadd.f32 %v5716_v0, %v600_v57  ;;  %v5719_v31 = vadd.f32 %v6340_v55, %v5558_v10  ;;  %v613_v55 = vrot.slane %v6896_v61, 1  ;;  %v6897_v57 = vld [vmem:[%s7117_s14 + $0x170] sm:$0xff] }
 0x9a6   : > { %v614_v0 = vrot.slane %v6897_v57, 1 }
 0x9a7   : > { %5808 = vst [vmem:[%s10683_s22 + $0xb0] sm:$0xff] %v5776_v19  ;;  %v5777_v44 = vadd.f32 %v5719_v31, %v602_v51 }
 0x9a8   : > { %v6229_v8 = vpop.f32.mrb[208].mxu0  ;;  %v6341_v9 = vpop.f32.mrb[208].mxu1 }
 0x9a9   : > { %5809 = vst [vmem:[%s10683_s22 + $0xb8] sm:$0xff] %v5777_v44  ;;  %v6230_v49 = vpop.f32.mrb[209].mxu0  ;;  %v6342_v18 = vpop.f32.mrb[209].mxu1 }
 0x9aa   : > { %v6231_v33 = vadd.f32 %v6230_v49, %v6229_v8  ;;  %v6343_v54 = vadd.f32 %v6342_v18, %v6341_v9  ;;  %v6232_v40 = vpop.f32.mrb[210].mxu0  ;;  %v6344_v41 = vpop.f32.mrb[210].mxu1  ;;  %v6898_v49 = vld [vmem:[%s7117_s14 + $0x178] sm:$0x3] }
 0x9ab   : > { %v6233_v48 = vpop.f32.mrb[211].mxu0  ;;  %v6345_v42 = vpop.f32.mrb[211].mxu1  ;;  %v616_v29 = vrot.slane %v6898_v49, 1 }
 0x9ac   : > { %v5563_v1 = vadd.f32 %v6231_v33, %v10671_v17  ;;  %v6234_v63 = vadd.f32 %v6233_v48, %v6232_v40  ;;  %v6346_v56 = vadd.f32 %v6345_v42, %v6344_v41  ;;  %v615_v33 = vsel %vm542_vm0, %v613_v55, %v614_v0 }
 0x9ad   : > { %v617_v41 = vsel %vm542_vm0, %v614_v0, %v616_v29 }
 0x9ae   : > { %v5724_v14 = vadd.f32 %v6343_v54, %v5563_v1  ;;  %v5566_v5 = vadd.f32 %v6234_v63, %v10671_v17  ;;  %v6899_v63 = vld [vmem:[%s7117_s14 + $0x180] sm:$0xff] }
 0x9b0   : > { %v5778_v53 = vadd.f32 %v5724_v14, %v605_v6  ;;  %v5727_v2 = vadd.f32 %v6346_v56, %v5566_v5  ;;  %v618_v56 = vrot.slane %v6899_v63, 1  ;;  %v6900_v6 = vld [vmem:[%s7117_s14 + $0x188] sm:$0xff] }
 0x9b1   : > { %v619_v14 = vrot.slane %v6900_v6, 1 }
 0x9b2   : > { %5810 = vst [vmem:[%s10683_s22 + $0xc0] sm:$0xff] %v5778_v53  ;;  %v5779_v59 = vadd.f32 %v5727_v2, %v607_v34 }
 0x9b3   : > { %v6235_v26 = vpop.f32.mrb[212].mxu0  ;;  %v6347_v30 = vpop.f32.mrb[212].mxu1 }
 0x9b4   : > { %5811 = vst [vmem:[%s10683_s22 + $0xc8] sm:$0xff] %v5779_v59  ;;  %v6236_v15 = vpop.f32.mrb[213].mxu0  ;;  %v6348_v43 = vpop.f32.mrb[213].mxu1 }
 0x9b5   : > { %v6237_v28 = vadd.f32 %v6236_v15, %v6235_v26  ;;  %v6349_v47 = vadd.f32 %v6348_v43, %v6347_v30  ;;  %v6238_v20 = vpop.f32.mrb[214].mxu0  ;;  %v6350_v46 = vpop.f32.mrb[214].mxu1  ;;  %v6901_v15 = vld [vmem:[%s7117_s14 + $0x190] sm:$0x3] }
 0x9b6   : > { %v6239_v62 = vpop.f32.mrb[215].mxu0  ;;  %v6351_v37 = vpop.f32.mrb[215].mxu1  ;;  %v621_v58 = vrot.slane %v6901_v15, 1 }
 0x9b7   : > { %v5571_v12 = vadd.f32 %v6237_v28, %v10671_v17  ;;  %v6240_v36 = vadd.f32 %v6239_v62, %v6238_v20  ;;  %v6352_v3 = vadd.f32 %v6351_v37, %v6350_v46  ;;  %v620_v28 = vsel %vm542_vm0, %v618_v56, %v619_v14 }
 0x9b8   : > { %v622_v46 = vsel %vm542_vm0, %v619_v14, %v621_v58 }
 0x9b9   : > { %v5732_v7 = vadd.f32 %v6349_v47, %v5571_v12  ;;  %v5574_v32 = vadd.f32 %v6240_v36, %v10671_v17 }
 0x9bb   : > { %v5780_v25 = vadd.f32 %v5732_v7, %v610_v35  ;;  %v5735_v23 = vadd.f32 %v6352_v3, %v5574_v32  ;;  %v6241_v50 = vpop.f32.mrb[216].mxu0  ;;  %v6353_v13 = vpop.f32.mrb[216].mxu1 }
 0x9bc   : > { %v6242_v60 = vpop.f32.mrb[217].mxu0  ;;  %v6354_v10 = vpop.f32.mrb[217].mxu1 }
 0x9bd   : > { %5812 = vst [vmem:[%s10683_s22 + $0xd0] sm:$0xff] %v5780_v25  ;;  %v5781_v51 = vadd.f32 %v5735_v23, %v612_v27  ;;  %v6243_v19 = vadd.f32 %v6242_v60, %v6241_v50  ;;  %v6355_v31 = vadd.f32 %v6354_v10, %v6353_v13  ;;  %v6244_v44 = vpop.f32.mrb[218].mxu0  ;;  %v6356_v8 = vpop.f32.mrb[218].mxu1 }
 0x9be   : > { %v6245_v9 = vpop.f32.mrb[219].mxu0  ;;  %v6357_v11 = vpop.f32.mrb[219].mxu1 }
 0x9bf   : > { %5813 = vst [vmem:[%s10683_s22 + $0xd8] sm:$0xff] %v5781_v51  ;;  %v5579_v24 = vadd.f32 %v6243_v19, %v10671_v17  ;;  %v6246_v45 = vadd.f32 %v6245_v9, %v6244_v44  ;;  %v6358_v18 = vadd.f32 %v6357_v11, %v6356_v8 }
 0x9c1   : > { %v5740_v54 = vadd.f32 %v6355_v31, %v5579_v24  ;;  %v5582_v40 = vadd.f32 %v6246_v45, %v10671_v17 }
 0x9c3   : > { %v5782_v48 = vadd.f32 %v5740_v54, %v615_v33  ;;  %v5743_v16 = vadd.f32 %v6358_v18, %v5582_v40  ;;  %v6247_v38 = vpop.f32.mrb[220].mxu0  ;;  %v6359_v42 = vpop.f32.mrb[220].mxu1 }
 0x9c4   : > { %v6248_v1 = vpop.f32.mrb[221].mxu0  ;;  %v6360_v5 = vpop.f32.mrb[221].mxu1 }
 0x9c5   : > { %5814 = vst [vmem:[%s10683_s22 + $0xe0] sm:$0xff] %v5782_v48  ;;  %v5783_v34 = vadd.f32 %v5743_v16, %v617_v41  ;;  %v6249_v53 = vadd.f32 %v6248_v1, %v6247_v38  ;;  %v6361_v2 = vadd.f32 %v6360_v5, %v6359_v42  ;;  %v6250_v59 = vpop.f32.mrb[222].mxu0  ;;  %v6362_v26 = vpop.f32.mrb[222].mxu1 }
 0x9c6   : > { %v6251_v30 = vpop.f32.mrb[223].mxu0  ;;  %v6363_v4 = vpop.f32.mrb[223].mxu1 }
 0x9c7   : > { %5815 = vst [vmem:[%s10683_s22 + $0xe8] sm:$0xff] %v5783_v34  ;;  %v5587_v52 = vadd.f32 %v6249_v53, %v10671_v17  ;;  %v6252_v22 = vadd.f32 %v6251_v30, %v6250_v59  ;;  %v6364_v43 = vadd.f32 %v6363_v4, %v6362_v26 }
 0x9c9   : > { %v5748_v47 = vadd.f32 %v6361_v2, %v5587_v52  ;;  %v5590_v20 = vadd.f32 %v6252_v22, %v10671_v17 }
 0x9cb   : > { %v5784_v62 = vadd.f32 %v5748_v47, %v620_v28  ;;  %v5751_v21 = vadd.f32 %v6364_v43, %v5590_v20 }
 0x9cd   : > { %5816 = vst [vmem:[%s10683_s22 + $0xf0] sm:$0xff] %v5784_v62  ;;  %v5785_v39 = vadd.f32 %v5751_v21, %v622_v46 }
 0x9cf   : > { %5817 = vst [vmem:[%s10683_s22 + $0xf8] sm:$0xff] %v5785_v39 }
 0x9d0   : > { %6915 = shalt.err (!%p6912_p3)
}
 0x9d1   : > { %s6916_s15 = scalar_lea.hbm %s10825_s16, 4096  ;;  %s6920_s14 = scalar_lea.hbm %s10887_s13, 8192 }
 0x9d2   : > { %p6917_p4 = scmp.ne.s32.totalorder %s10825_s16, %s6916_s15  ;;  %p6921_p9 = scmp.lt.u32.totalorder %s10825_s16, %s10887_s13 }
 0x9d3   : > { %p6922_p10 = scmp.lt.u32.totalorder %s6920_s14, %s6916_s15  ;;  %p6924_p12 = scmp.lt.u32.totalorder %s6916_s15, %s10825_s16 }
 0x9d4   : > { %p6918_p7 = pnand %p6917_p4, %p7078_p5 }
 0x9d5   : > { %p6923_p11 = por %p6922_p10, %p6921_p9 }
 0x9d6   : > { %p6919_p8 = pneg %p6918_p7 }
 0x9d7   : > { %p6925_p13 = por %p6924_p12, %p6923_p11 }
 0x9d9   : > { %p6926_p0 = pnand %p6925_p13, %p6919_p8 }
 0x9db   : > { %6929 = shalt.err (!%p6926_p0)
}
 0x9dc   : > { %s6968_s20 = smov 128   ;;  %s6969_s17 = smov 8  }
 0x9dd   : > { %6510 = dma.vmem_to_hbm [thread:$0]  (%p7078_p5), %s10827_s24, 4096, %s10825_s16, %s10833_s29, %s6968_s20, %s6968_s20, %s6969_s17  }
 0x9de PF: > { %p6516_p1 = scmp.ge.s32.totalorder %s6964_s28, 2  ;;  %s5847_s21 = sand.u32 1, %s6952_s25  }
 0x9df   : > { %s5848_s15 = scalar_lea.sflag [#allocation3], %s5847_s21 }
 0x9e0   : > { %p6513_p2 = pnand %p6516_p1, %p7082_p6 }
 0x9e2   : > { %6947 = dma.done.wait (!%p6513_p2), %s5848_s15, 4096  }
 0x9e3   : > { %6949 = vsyncadd (!%p6513_p2), %s5848_s15, 4294963200  ;;  %s11154_s28 = sld [smem:[#allocation6_spill]]  ;;  %s11155_s22 = sld [smem:[#allocation5_spill]] }
 0x9e4   : > { %s11156_s27 = sld [smem:[#allocation7_spill]]  ;;  %s11157_s25 = smov %s6956_s26 }
 0x9e9   : > { %p23_p3 = scmp.ge.s32.totalorder %s11154_s28, 4   ;;  %s11158_s26 = smov %s11155_s22 }
 0x9eb   :  { %25 = sbr.rel (!%p23_p3) target bundleno = 3 (0x3), region = 107 }
 0x9f2   :  { %5853 = vsyncpa [#allocation3], 1 }
 0x9f3   :  { %5855 = vsyncpa [#allocation3 + $0x1], 1 }

</bundles_post_ra>
